<compile_context>
chip_gen: v7x
topology: tpu7x:2x2x1
jax: 0.10.0
libtpu: 0.0.40
codegen_flags: <defaults>
</compile_context>

<pallas_src>
import functools

import numpy as np
import jax
import jax.numpy as jnp
from jax import lax
from jax.experimental import pallas as pl
from jax.experimental.pallas import tpu as pltpu

# Builder default LeakyReLU slope in the source codebase's conv blocks.
# TODO(synk): nn.LeakyReLU's own default is 0.01 -- confirm against hp.builder for pretrained weights.
LRELU_SLOPE = 0.2

TB = 8          # batch tile per grid step; lane axis of every feature map is Npix * TB
NA_PAD = 128    # actions padded to a lane-dense width, sliced back to n_actions in the wrapper
TAPS = tuple((di, dj) for di in (-1, 0, 1) for dj in (-1, 0, 1))   # tap t = (di+1)*3 + (dj+1)


# ----------------------------------------------------------------------------
# Fused decoder kernel: one grid step == TB batch elements, everything VMEM/vreg resident
# ----------------------------------------------------------------------------
def _decoder_kernel(zb_ref, zt_ref, wf_ref, bf_ref, s1_ref, s2_ref,
                    m8_ref, m16_ref, w1_ref, b1_ref, w2_ref, b2_ref,
                    w3_ref, b3_ref, wa1_ref, ba1_ref, wa2_ref, ba2_ref,
                    feat_ref, img_ref, act_ref,
                    x0_s, xcol8_s, xcol16_s):
    f32 = jnp.float32
    tb = zb_ref.shape[1]
    c0 = bf_ref.shape[0]

    def lrelu(v):
        return jnp.where(v > 0, v, LRELU_SLOPE * v)

    def conv3x3(x, w_r, b_r, mask_r, xcol_r, w_img, act):
        # 'same' 3x3 conv on the (Cin, Npix*TB) pixel-major/batch-minor layout as ONE fused-K GEMM:
        # stage the 9 lane-shifted + border-masked views into a (9*Cin, N) VMEM im2col scratch,
        # then a single (Cout, 9*Cin) @ (9*Cin, N) matmul.
        cin, n = x.shape
        for t, (di, dj) in enumerate(TAPS):
            off = (di * w_img + dj) * tb              # fetch source lane l + off
            xs = x if off == 0 else pltpu.roll(x, shift=(-off) % n, axis=1)
            xcol_r[t * cin:(t + 1) * cin, :] = xs * mask_r[t * cin:(t + 1) * cin, :]
        y = jnp.dot(w_r[...], xcol_r[...], preferred_element_type=f32) + b_r[...]
        return act(y)

    # ---- ConvBlockFirstDec: dense z -> (c0, 4, 4), LeakyReLU ------------------------------------
    # One K=nz GEMM; rows of y0 are (pixel, channel), re-blocked into the (c0, 16*TB) layout.
    y0 = jnp.dot(wf_ref[...], zt_ref[0], preferred_element_type=f32)      # (16*c0, TB)
    for s in range(16):
        x0_s[:, s * tb:(s + 1) * tb] = y0[s * c0:(s + 1) * c0, :]
    x0 = lrelu(x0_s[...] + bf_ref[...])                                   # (c0, 16*TB)

    # ---- pyramid-0: 2x NN upsample (4->8, precomputed selection matmul) + conv c0->ngf ----------
    u1 = jnp.dot(x0, s1_ref[...], preferred_element_type=f32)             # (c0, 64*TB)
    x1 = conv3x3(u1, w1_ref, b1_ref, m8_ref, xcol8_s, 8, lrelu)           # (ngf, 64*TB)

    # ---- additional_conv_layer: 2x NN upsample (8->16) + conv ngf->ngf, Tanh -> feat ------------
    u2 = jnp.dot(x1, s2_ref[...], preferred_element_type=f32)             # (ngf, 256*TB)
    feat = conv3x3(u2, w2_ref, b2_ref, m16_ref, xcol16_s, 16, jnp.tanh)   # (ngf, 256*TB)
    feat_ref[0] = feat

    # ---- gen_head: 3x3 conv ngf -> input_nc (padded to 8 channels), Tanh, no upsample -----------
    img = conv3x3(feat, w3_ref, b3_ref, m16_ref, xcol16_s, 16, jnp.tanh)  # (8, 256*TB)
    img_ref[0] = img

    # ---- action head (Predictor): one GEMM per layer over the whole batch tile ------------------
    zb = zb_ref[0]                                                        # (TB, nz)
    a1 = lrelu(jnp.dot(zb, wa1_ref[...], preferred_element_type=f32) + ba1_ref[...])
    act_ref[0] = jnp.dot(a1, wa2_ref[...], preferred_element_type=f32) + ba2_ref[...]


# ----------------------------------------------------------------------------
# Host-side constants: upsample selection matrices + conv border masks (resident VMEM constants)
# ----------------------------------------------------------------------------
def build_decoder_constants(hp, tb):
    ngf = hp["ngf"]
    c0 = 2 * ngf

    def up_select(hin, win):
        # S with  (X @ S)[:, pout*tb+b] = X[:, src(pout)*tb+b]  == 2x nearest-neighbor upsample.
        hout, wout = 2 * hin, 2 * win
        pout = np.arange(hout * wout)
        src = (pout // wout // 2) * win + (pout % wout) // 2
        s_pix = (np.arange(hin * win)[:, None] == src[None, :]).astype(np.float32)
        return jnp.asarray(np.kron(s_pix, np.eye(tb, dtype=np.float32)))

    def conv_mask(h, w, cin):
        # (9*cin, h*w*tb) 0/1 mask; rows grouped per tap, value = in-bounds(y+di, x+dj).
        p = np.arange(h * w)
        y, x = p // w, p % w
        rows = []
        for di, dj in TAPS:
            ok = ((y + di >= 0) & (y + di < h) & (x + dj >= 0) & (x + dj < w))
            lane = np.repeat(ok.astype(np.float32), tb)
            rows.append(np.broadcast_to(lane, (cin, h * w * tb)))
        return jnp.asarray(np.concatenate(rows, axis=0))

    return {
        "up1": up_select(4, 4),            # (16*tb,  64*tb)
        "up2": up_select(8, 8),            # (64*tb, 256*tb)
        "mask8": conv_mask(8, 8, c0),      # (9*c0,   64*tb)
        "mask16": conv_mask(16, 16, ngf),  # (9*ngf, 256*tb)
    }


# ----------------------------------------------------------------------------
# Deterministic Xavier-uniform init (matches init_weights_xavier intent; fresh-init layouts)
# ----------------------------------------------------------------------------
def _xavier(key, shape, fan_in, fan_out):
    lim = (6.0 / (fan_in + fan_out)) ** 0.5
    return jax.random.uniform(key, shape, jnp.float32, -lim, lim)


def init_params(key, hp):
    nz, ngf, nc = hp["nz_enc"], hp["ngf"], hp["input_nc"]
    nzm, na = hp["nz_mid"], hp["n_actions"]
    c0 = 2 * ngf
    assert nc <= 8 and na <= NA_PAD
    keys = jax.random.split(key, 6)
    p = {}
    # ConvBlockFirstDec dense: row = pixel*c0 + channel  (pixel = y*4 + x)
    p["first_w"] = _xavier(keys[0], (16 * c0, nz), nz, 16 * c0)
    p["first_b"] = jnp.zeros((c0, 1), jnp.float32)
    # conv weights flattened for the fused-K GEMM: col = tap*Cin + cin, tap = (di+1)*3 + (dj+1)
    p["pyr0_w"] = _xavier(keys[1], (ngf, 9 * c0), 9 * c0, 9 * ngf)
    p["pyr0_b"] = jnp.zeros((ngf, 1), jnp.float32)
    p["add_w"] = _xavier(keys[2], (ngf, 9 * ngf), 9 * ngf, 9 * ngf)
    p["add_b"] = jnp.zeros((ngf, 1), jnp.float32)
    head_w = _xavier(keys[3], (nc, 9 * ngf), 9 * ngf, 9 * nc)
    p["head_w"] = jnp.zeros((8, 9 * ngf), jnp.float32).at[:nc].set(head_w)   # pad Cout 3 -> 8
    p["head_b"] = jnp.zeros((8, 1), jnp.float32)
    # act_net (Predictor): nz -> nz_mid -> n_actions (output padded to NA_PAD lanes)
    p["act_w1"] = _xavier(keys[4], (nz, nzm), nz, nzm)
    p["act_b1"] = jnp.zeros((1, nzm), jnp.float32)
    w2 = _xavier(keys[5], (nzm, na), nzm, na)
    p["act_w2"] = jnp.zeros((nzm, NA_PAD), jnp.float32).at[:, :na].set(w2)
    p["act_b2"] = jnp.zeros((1, NA_PAD), jnp.float32)
    # Gaussian decoder distribution constant log_sigma
    p["log_sigma"] = jnp.array(np.log(hp["initial_sigma"]), jnp.float32)
    return p


# ----------------------------------------------------------------------------
# DecoderModule.forward
# ----------------------------------------------------------------------------
def decoder_forward(params, consts, z, *, hp, tb=TB):
    """z: (B, nz_enc). Returns dict(feat NCHW, images NCHW, actions, log_sigma)."""
    assert hp["img_sz"] == 16  # TODO(synk): generalize the fused pyramid to other img_sz / n_conv_layers
    B = z.shape[0]
    nz, ngf, nc = hp["nz_enc"], hp["ngf"], hp["input_nc"]
    nzm, na = hp["nz_mid"], hp["n_actions"]
    c0 = 2 * ngf
    f32 = jnp.float32

    g = (B + tb - 1) // tb
    bpad = g * tb
    n64, n256 = 64 * tb, 256 * tb

    zp = jnp.zeros((bpad, nz), f32).at[:B].set(z.astype(f32))
    zb = zp.reshape(g, tb, nz)                   # row-major latents for the action head GEMM
    zt = zb.transpose(0, 2, 1)                   # (g, nz, tb) for the first dense GEMM

    def cspec(shape):
        nd = len(shape)
        return pl.BlockSpec(shape, lambda gi, _nd=nd: (0,) * _nd)

    out_shape = (
        jax.ShapeDtypeStruct((g, ngf, n256), f32),     # feat  (C, Npix*TB) per tile
        jax.ShapeDtypeStruct((g, 8, n256), f32),       # images, channels padded 3 -> 8
        jax.ShapeDtypeStruct((g, tb, NA_PAD), f32),    # actions, lane-padded
    )

    feat_t, img_t, act_t = pl.pallas_call(
        _decoder_kernel,
        out_shape=out_shape,
        grid_spec=pltpu.PrefetchScalarGridSpec(
            num_scalar_prefetch=0,
            grid=(g,),
            in_specs=[
                pl.BlockSpec((1, tb, nz), lambda gi: (gi, 0, 0)),   # zb
                pl.BlockSpec((1, nz, tb), lambda gi: (gi, 0, 0)),   # zT
                cspec((16 * c0, nz)), cspec((c0, 1)),               # first dense
                cspec((16 * tb, n64)), cspec((n64, n256)),          # upsample selections
                cspec((9 * c0, n64)), cspec((9 * ngf, n256)),       # conv border masks
                cspec((ngf, 9 * c0)), cspec((ngf, 1)),              # pyramid-0
                cspec((ngf, 9 * ngf)), cspec((ngf, 1)),             # additional_conv
                cspec((8, 9 * ngf)), cspec((8, 1)),                 # gen_head (padded)
                cspec((nz, nzm)), cspec((1, nzm)),                  # act_net layer 1
                cspec((nzm, NA_PAD)), cspec((1, NA_PAD)),           # act_net layer 2 (padded)
            ],
            out_specs=[
                pl.BlockSpec((1, ngf, n256), lambda gi: (gi, 0, 0)),
                pl.BlockSpec((1, 8, n256), lambda gi: (gi, 0, 0)),
                pl.BlockSpec((1, tb, NA_PAD), lambda gi: (gi, 0, 0)),
            ],
            scratch_shapes=[
                pltpu.VMEM((c0, 16 * tb), f32),       # first-layer activation assembly
                pltpu.VMEM((9 * c0, n64), f32),       # im2col scratch, 8x8 level
                pltpu.VMEM((9 * ngf, n256), f32),     # im2col scratch, 16x16 level (reused by gen_head)
            ],
        ),
        compiler_params=pltpu.CompilerParams(
            dimension_semantics=("parallel",),
            vmem_limit_bytes=32 * 1024 * 1024,
        ),
    )(zb, zt,
      params["first_w"], params["first_b"],
      consts["up1"], consts["up2"], consts["mask8"], consts["mask16"],
      params["pyr0_w"], params["pyr0_b"],
      params["add_w"], params["add_b"],
      params["head_w"], params["head_b"],
      params["act_w1"], params["act_b1"],
      params["act_w2"], params["act_b2"])

    # (g, C, Npix*TB) -> (B, C, H, W);  lane index = pixel*TB + batch-in-tile
    feat = feat_t.reshape(g, ngf, 16, 16, tb).transpose(0, 4, 1, 2, 3).reshape(bpad, ngf, 16, 16)[:B]
    images = img_t.reshape(g, 8, 16, 16, tb).transpose(0, 4, 1, 2, 3).reshape(bpad, 8, 16, 16)[:B, :nc]
    actions = act_t.reshape(bpad, NA_PAD)[:B, :na]

    # ProbabilisticConvDecoder (gaussian): distr = Gaussian(images, log_sigma * ones_like(images))
    return {"feat": feat, "images": images, "actions": actions, "log_sigma": params["log_sigma"]}
    # TODO(synk): categorical / bitwise-categorical / discrete-logistic-mixture decoder heads and the
    # PixelCopy / PixelShift (grid_sample) variants are not exercised in this config.


# ----------------------------------------------------------------------------
# Pure-JAX reference of the same forward pass (correctness check only, no Pallas)
# ----------------------------------------------------------------------------
def decoder_reference(params, z, hp):
    nz, ngf, nc = hp["nz_enc"], hp["ngf"], hp["input_nc"]
    na = hp["n_actions"]
    c0 = 2 * ngf
    hi = lax.Precision.HIGHEST

    def lrelu(v):
        return jnp.where(v > 0, v, LRELU_SLOPE * v)

    def conv3x3(x, wflat, b, act):
        cout, cin = wflat.shape[0], x.shape[1]
        w = wflat.reshape(cout, 3, 3, cin).transpose(0, 3, 1, 2)   # -> OIHW
        y = lax.conv_general_dilated(x, w, (1, 1), ((1, 1), (1, 1)),
                                     dimension_numbers=("NCHW", "OIHW", "NCHW"),
                                     precision=hi)
        return act(y + b.reshape(1, cout, 1, 1))

    def up2(x):
        return jnp.repeat(jnp.repeat(x, 2, axis=2), 2, axis=3)

    z = z.astype(jnp.float32)
    B = z.shape[0]
    wf = params["first_w"].reshape(16, c0, nz)
    x0 = jnp.einsum("sck,bk->bcs", wf, z, precision=hi).reshape(B, c0, 4, 4)
    x0 = lrelu(x0 + params["first_b"].reshape(1, c0, 1, 1))
    x1 = conv3x3(up2(x0), params["pyr0_w"], params["pyr0_b"], lrelu)
    feat = conv3x3(up2(x1), params["add_w"], params["add_b"], jnp.tanh)
    img = conv3x3(feat, params["head_w"], params["head_b"], jnp.tanh)[:, :nc]
    a1 = lrelu(jnp.dot(z, params["act_w1"], precision=hi) + params["act_b1"])
    act = (jnp.dot(a1, params["act_w2"], precision=hi) + params["act_b2"])[:, :na]
    return {"feat": feat, "images": img, "actions": act}


if __name__ == "__main__":
    hp = dict(
        img_sz=16,       # -> n = 4 conv levels
        nz_enc=32,
        ngf=8,
        input_nc=3,
        nz_mid=32,
        n_actions=4,
        initial_sigma=1.0,
    )
    key = jax.random.PRNGKey(0)
    k_param, k_z = jax.random.split(key)
    params = init_params(k_param, hp)
    consts = build_decoder_constants(hp, TB)

    B = 2
    z = jax.random.normal(k_z, (B, hp["nz_enc"]), jnp.float32)

    fwd = jax.jit(functools.partial(decoder_forward, hp=hp, tb=TB))
    out = fwd(params, consts, z)
    jax.block_until_ready(out)

    assert out["feat"].shape == (B, hp["ngf"], 16, 16)
    assert out["images"].shape == (B, hp["input_nc"], 16, 16)
    assert out["actions"].shape == (B, hp["n_actions"])
    assert bool(jnp.all(jnp.isfinite(out["images"])))
    assert bool(jnp.all(jnp.abs(out["images"]) <= 1.0))   # tanh head

    # Numerical check against the pure-JAX reference (0.05 band tolerates f32-MXU vs XLA rounding
    # differences while catching any structural error in the fused conv/upsample formulation).
    ref = decoder_reference(params, z, hp)
    for name in ("feat", "images", "actions"):
        err = float(jnp.max(jnp.abs(out[name] - ref[name])))
        assert err < 5e-2, f"{name} mismatch vs reference: max abs err {err}"

    print("KERNEL_OK")
</pallas_src>

<mosaic_0001>
module attributes {stable_mosaic.version = 11 : i64} {
  func.func @_decoder_kernel(%arg0: i32, %arg1: memref<1x8x32xf32, #tpu.memory_space<vmem>>, %arg2: memref<1x32x8xf32, #tpu.memory_space<vmem>>, %arg3: memref<256x32xf32, #tpu.memory_space<vmem>>, %arg4: memref<16x1xf32, #tpu.memory_space<vmem>>, %arg5: memref<128x512xf32, #tpu.memory_space<vmem>>, %arg6: memref<512x2048xf32, #tpu.memory_space<vmem>>, %arg7: memref<144x512xf32, #tpu.memory_space<vmem>>, %arg8: memref<72x2048xf32, #tpu.memory_space<vmem>>, %arg9: memref<8x144xf32, #tpu.memory_space<vmem>>, %arg10: memref<8x1xf32, #tpu.memory_space<vmem>>, %arg11: memref<8x72xf32, #tpu.memory_space<vmem>>, %arg12: memref<8x1xf32, #tpu.memory_space<vmem>>, %arg13: memref<8x72xf32, #tpu.memory_space<vmem>>, %arg14: memref<8x1xf32, #tpu.memory_space<vmem>>, %arg15: memref<32x32xf32, #tpu.memory_space<vmem>>, %arg16: memref<1x32xf32, #tpu.memory_space<vmem>>, %arg17: memref<32x128xf32, #tpu.memory_space<vmem>>, %arg18: memref<1x128xf32, #tpu.memory_space<vmem>>, %arg19: memref<1x8x2048xf32, #tpu.memory_space<vmem>>, %arg20: memref<1x8x2048xf32, #tpu.memory_space<vmem>>, %arg21: memref<1x8x128xf32, #tpu.memory_space<vmem>>, %arg22: memref<16x128xf32, #tpu.memory_space<vmem>>, %arg23: memref<144x512xf32, #tpu.memory_space<vmem>>, %arg24: memref<72x2048xf32, #tpu.memory_space<vmem>>) attributes {dimension_semantics = [#tpu.dimension_semantics<parallel>], iteration_bounds = array<i64: 1>, scalar_prefetch = 0 : i64, scratch_operands = 3 : i64, tpu.core_type = #tpu.core_type<tc>, window_params = [{transform_indices = @transform_0, window_bounds = array<i64: 1, 8, 32>}, {transform_indices = @transform_1, window_bounds = array<i64: 1, 32, 8>}, {pipeline_mode = #tpu.pipeline_mode<synchronous>, transform_indices = @transform_2, window_bounds = array<i64: 256, 32>}, {pipeline_mode = #tpu.pipeline_mode<synchronous>, transform_indices = @transform_3, window_bounds = array<i64: 16, 1>}, {pipeline_mode = #tpu.pipeline_mode<synchronous>, transform_indices = @transform_4, window_bounds = array<i64: 128, 512>}, {pipeline_mode = #tpu.pipeline_mode<synchronous>, transform_indices = @transform_5, window_bounds = array<i64: 512, 2048>}, {pipeline_mode = #tpu.pipeline_mode<synchronous>, transform_indices = @transform_6, window_bounds = array<i64: 144, 512>}, {pipeline_mode = #tpu.pipeline_mode<synchronous>, transform_indices = @transform_7, window_bounds = array<i64: 72, 2048>}, {pipeline_mode = #tpu.pipeline_mode<synchronous>, transform_indices = @transform_8, window_bounds = array<i64: 8, 144>}, {pipeline_mode = #tpu.pipeline_mode<synchronous>, transform_indices = @transform_9, window_bounds = array<i64: 8, 1>}, {pipeline_mode = #tpu.pipeline_mode<synchronous>, transform_indices = @transform_10, window_bounds = array<i64: 8, 72>}, {pipeline_mode = #tpu.pipeline_mode<synchronous>, transform_indices = @transform_11, window_bounds = array<i64: 8, 1>}, {pipeline_mode = #tpu.pipeline_mode<synchronous>, transform_indices = @transform_12, window_bounds = array<i64: 8, 72>}, {pipeline_mode = #tpu.pipeline_mode<synchronous>, transform_indices = @transform_13, window_bounds = array<i64: 8, 1>}, {pipeline_mode = #tpu.pipeline_mode<synchronous>, transform_indices = @transform_14, window_bounds = array<i64: 32, 32>}, {pipeline_mode = #tpu.pipeline_mode<synchronous>, transform_indices = @transform_15, window_bounds = array<i64: 1, 32>}, {pipeline_mode = #tpu.pipeline_mode<synchronous>, transform_indices = @transform_16, window_bounds = array<i64: 32, 128>}, {pipeline_mode = #tpu.pipeline_mode<synchronous>, transform_indices = @transform_17, window_bounds = array<i64: 1, 128>}, {transform_indices = @transform_18, window_bounds = array<i64: 1, 8, 2048>}, {transform_indices = @transform_19, window_bounds = array<i64: 1, 8, 2048>}, {transform_indices = @transform_20, window_bounds = array<i64: 1, 8, 128>}]} {
    %c0 = arith.constant 0 : index
    %c0_0 = arith.constant 0 : index
    %0 = vector.load %arg3[%c0, %c0_0] : memref<256x32xf32, #tpu.memory_space<vmem>>, vector<256x32xf32>
    %c0_1 = arith.constant 0 : index
    %c0_2 = arith.constant 0 : index
    %c0_3 = arith.constant 0 : index
    %1 = vector.load %arg2[%c0_1, %c0_2, %c0_3] : memref<1x32x8xf32, #tpu.memory_space<vmem>>, vector<1x32x8xf32>
    %2 = vector.shape_cast %1 : vector<1x32x8xf32> to vector<32x8xf32>
    %cst = arith.constant dense<0.000000e+00> : vector<256x8xf32>
    %3 = tpu.matmul %0, %2, %cst {dimension_numbers = #tpu.dot_dimension_numbers<[1], [0], [0], [1], [0, 0, 1, 1], [], []>} : vector<256x32xf32>, vector<32x8xf32>, vector<256x8xf32> -> vector<256x8xf32>
    %4 = vector.extract_strided_slice %3 {offsets = [0, 0], sizes = [16, 8], strides = [1, 1]} : vector<256x8xf32> to vector<16x8xf32>
    %c0_4 = arith.constant 0 : index
    %c0_5 = arith.constant 0 : index
    %5 = vector.load %arg22[%c0_4, %c0_5] : memref<16x128xf32, #tpu.memory_space<vmem>>, vector<16x8xf32>
    tpu.vector_store %arg22[%c0_4, %c0_5], %4 {strides = array<i32>} : memref<16x128xf32, #tpu.memory_space<vmem>>, vector<16x8xf32>,
    %6 = vector.extract_strided_slice %3 {offsets = [16, 0], sizes = [16, 8], strides = [1, 1]} : vector<256x8xf32> to vector<16x8xf32>
    %c0_6 = arith.constant 0 : index
    %c8 = arith.constant 8 : index
    %7 = vector.load %arg22[%c0_6, %c8] : memref<16x128xf32, #tpu.memory_space<vmem>>, vector<16x8xf32>
    tpu.vector_store %arg22[%c0_6, %c8], %6 {strides = array<i32>} : memref<16x128xf32, #tpu.memory_space<vmem>>, vector<16x8xf32>,
    %8 = vector.extract_strided_slice %3 {offsets = [32, 0], sizes = [16, 8], strides = [1, 1]} : vector<256x8xf32> to vector<16x8xf32>
    %c0_7 = arith.constant 0 : index
    %c16 = arith.constant 16 : index
    %9 = vector.load %arg22[%c0_7, %c16] : memref<16x128xf32, #tpu.memory_space<vmem>>, vector<16x8xf32>
    tpu.vector_store %arg22[%c0_7, %c16], %8 {strides = array<i32>} : memref<16x128xf32, #tpu.memory_space<vmem>>, vector<16x8xf32>,
    %10 = vector.extract_strided_slice %3 {offsets = [48, 0], sizes = [16, 8], strides = [1, 1]} : vector<256x8xf32> to vector<16x8xf32>
    %c0_8 = arith.constant 0 : index
    %c24 = arith.constant 24 : index
    %11 = vector.load %arg22[%c0_8, %c24] : memref<16x128xf32, #tpu.memory_space<vmem>>, vector<16x8xf32>
    tpu.vector_store %arg22[%c0_8, %c24], %10 {strides = array<i32>} : memref<16x128xf32, #tpu.memory_space<vmem>>, vector<16x8xf32>,
    %12 = vector.extract_strided_slice %3 {offsets = [64, 0], sizes = [16, 8], strides = [1, 1]} : vector<256x8xf32> to vector<16x8xf32>
    %c0_9 = arith.constant 0 : index
    %c32 = arith.constant 32 : index
    %13 = vector.load %arg22[%c0_9, %c32] : memref<16x128xf32, #tpu.memory_space<vmem>>, vector<16x8xf32>
    tpu.vector_store %arg22[%c0_9, %c32], %12 {strides = array<i32>} : memref<16x128xf32, #tpu.memory_space<vmem>>, vector<16x8xf32>,
    %14 = vector.extract_strided_slice %3 {offsets = [80, 0], sizes = [16, 8], strides = [1, 1]} : vector<256x8xf32> to vector<16x8xf32>
    %c0_10 = arith.constant 0 : index
    %c40 = arith.constant 40 : index
    %15 = vector.load %arg22[%c0_10, %c40] : memref<16x128xf32, #tpu.memory_space<vmem>>, vector<16x8xf32>
    tpu.vector_store %arg22[%c0_10, %c40], %14 {strides = array<i32>} : memref<16x128xf32, #tpu.memory_space<vmem>>, vector<16x8xf32>,
    %16 = vector.extract_strided_slice %3 {offsets = [96, 0], sizes = [16, 8], strides = [1, 1]} : vector<256x8xf32> to vector<16x8xf32>
    %c0_11 = arith.constant 0 : index
    %c48 = arith.constant 48 : index
    %17 = vector.load %arg22[%c0_11, %c48] : memref<16x128xf32, #tpu.memory_space<vmem>>, vector<16x8xf32>
    tpu.vector_store %arg22[%c0_11, %c48], %16 {strides = array<i32>} : memref<16x128xf32, #tpu.memory_space<vmem>>, vector<16x8xf32>,
    %18 = vector.extract_strided_slice %3 {offsets = [112, 0], sizes = [16, 8], strides = [1, 1]} : vector<256x8xf32> to vector<16x8xf32>
    %c0_12 = arith.constant 0 : index
    %c56 = arith.constant 56 : index
    %19 = vector.load %arg22[%c0_12, %c56] : memref<16x128xf32, #tpu.memory_space<vmem>>, vector<16x8xf32>
    tpu.vector_store %arg22[%c0_12, %c56], %18 {strides = array<i32>} : memref<16x128xf32, #tpu.memory_space<vmem>>, vector<16x8xf32>,
    %20 = vector.extract_strided_slice %3 {offsets = [128, 0], sizes = [16, 8], strides = [1, 1]} : vector<256x8xf32> to vector<16x8xf32>
    %c0_13 = arith.constant 0 : index
    %c64 = arith.constant 64 : index
    %21 = vector.load %arg22[%c0_13, %c64] : memref<16x128xf32, #tpu.memory_space<vmem>>, vector<16x8xf32>
    tpu.vector_store %arg22[%c0_13, %c64], %20 {strides = array<i32>} : memref<16x128xf32, #tpu.memory_space<vmem>>, vector<16x8xf32>,
    %22 = vector.extract_strided_slice %3 {offsets = [144, 0], sizes = [16, 8], strides = [1, 1]} : vector<256x8xf32> to vector<16x8xf32>
    %c0_14 = arith.constant 0 : index
    %c72 = arith.constant 72 : index
    %23 = vector.load %arg22[%c0_14, %c72] : memref<16x128xf32, #tpu.memory_space<vmem>>, vector<16x8xf32>
    tpu.vector_store %arg22[%c0_14, %c72], %22 {strides = array<i32>} : memref<16x128xf32, #tpu.memory_space<vmem>>, vector<16x8xf32>,
    %24 = vector.extract_strided_slice %3 {offsets = [160, 0], sizes = [16, 8], strides = [1, 1]} : vector<256x8xf32> to vector<16x8xf32>
    %c0_15 = arith.constant 0 : index
    %c80 = arith.constant 80 : index
    %25 = vector.load %arg22[%c0_15, %c80] : memref<16x128xf32, #tpu.memory_space<vmem>>, vector<16x8xf32>
    tpu.vector_store %arg22[%c0_15, %c80], %24 {strides = array<i32>} : memref<16x128xf32, #tpu.memory_space<vmem>>, vector<16x8xf32>,
    %26 = vector.extract_strided_slice %3 {offsets = [176, 0], sizes = [16, 8], strides = [1, 1]} : vector<256x8xf32> to vector<16x8xf32>
    %c0_16 = arith.constant 0 : index
    %c88 = arith.constant 88 : index
    %27 = vector.load %arg22[%c0_16, %c88] : memref<16x128xf32, #tpu.memory_space<vmem>>, vector<16x8xf32>
    tpu.vector_store %arg22[%c0_16, %c88], %26 {strides = array<i32>} : memref<16x128xf32, #tpu.memory_space<vmem>>, vector<16x8xf32>,
    %28 = vector.extract_strided_slice %3 {offsets = [192, 0], sizes = [16, 8], strides = [1, 1]} : vector<256x8xf32> to vector<16x8xf32>
    %c0_17 = arith.constant 0 : index
    %c96 = arith.constant 96 : index
    %29 = vector.load %arg22[%c0_17, %c96] : memref<16x128xf32, #tpu.memory_space<vmem>>, vector<16x8xf32>
    tpu.vector_store %arg22[%c0_17, %c96], %28 {strides = array<i32>} : memref<16x128xf32, #tpu.memory_space<vmem>>, vector<16x8xf32>,
    %30 = vector.extract_strided_slice %3 {offsets = [208, 0], sizes = [16, 8], strides = [1, 1]} : vector<256x8xf32> to vector<16x8xf32>
    %c0_18 = arith.constant 0 : index
    %c104 = arith.constant 104 : index
    %31 = vector.load %arg22[%c0_18, %c104] : memref<16x128xf32, #tpu.memory_space<vmem>>, vector<16x8xf32>
    tpu.vector_store %arg22[%c0_18, %c104], %30 {strides = array<i32>} : memref<16x128xf32, #tpu.memory_space<vmem>>, vector<16x8xf32>,
    %32 = vector.extract_strided_slice %3 {offsets = [224, 0], sizes = [16, 8], strides = [1, 1]} : vector<256x8xf32> to vector<16x8xf32>
    %c0_19 = arith.constant 0 : index
    %c112 = arith.constant 112 : index
    %33 = vector.load %arg22[%c0_19, %c112] : memref<16x128xf32, #tpu.memory_space<vmem>>, vector<16x8xf32>
    tpu.vector_store %arg22[%c0_19, %c112], %32 {strides = array<i32>} : memref<16x128xf32, #tpu.memory_space<vmem>>, vector<16x8xf32>,
    %34 = vector.extract_strided_slice %3 {offsets = [240, 0], sizes = [16, 8], strides = [1, 1]} : vector<256x8xf32> to vector<16x8xf32>
    %c0_20 = arith.constant 0 : index
    %c120 = arith.constant 120 : index
    %35 = vector.load %arg22[%c0_20, %c120] : memref<16x128xf32, #tpu.memory_space<vmem>>, vector<16x8xf32>
    tpu.vector_store %arg22[%c0_20, %c120], %34 {strides = array<i32>} : memref<16x128xf32, #tpu.memory_space<vmem>>, vector<16x8xf32>,
    %c0_21 = arith.constant 0 : index
    %c0_22 = arith.constant 0 : index
    %36 = vector.load %arg22[%c0_21, %c0_22] : memref<16x128xf32, #tpu.memory_space<vmem>>, vector<16x128xf32>
    %c0_23 = arith.constant 0 : index
    %c0_24 = arith.constant 0 : index
    %37 = vector.load %arg4[%c0_23, %c0_24] : memref<16x1xf32, #tpu.memory_space<vmem>>, vector<16x1xf32>
    %38 = vector.broadcast %37 : vector<16x1xf32> to vector<16x128xf32>
    %39 = arith.addf %36, %38 : vector<16x128xf32>
    %cst_25 = arith.constant 0.000000e+00 : f32
    %40 = vector.broadcast %cst_25 : f32 to vector<16x128xf32>
    %41 = arith.cmpf ogt, %39, %40 : vector<16x128xf32>
    %cst_26 = arith.constant 2.000000e-01 : f32
    %42 = vector.broadcast %cst_26 : f32 to vector<16x128xf32>
    %43 = arith.mulf %42, %39 : vector<16x128xf32>
    %44 = arith.select %41, %39, %43 : vector<16x128xi1>, vector<16x128xf32>
    %c0_27 = arith.constant 0 : index
    %c0_28 = arith.constant 0 : index
    %45 = vector.load %arg5[%c0_27, %c0_28] : memref<128x512xf32, #tpu.memory_space<vmem>>, vector<128x512xf32>
    %cst_29 = arith.constant dense<0.000000e+00> : vector<16x512xf32>
    %46 = tpu.matmul %44, %45, %cst_29 {dimension_numbers = #tpu.dot_dimension_numbers<[1], [0], [0], [1], [0, 0, 1, 1], [], []>} : vector<16x128xf32>, vector<128x512xf32>, vector<16x512xf32> -> vector<16x512xf32>
    %c72_i32 = arith.constant 72 : i32
    %47 = tpu.dynamic_rotate %46 by %c72_i32 dim 1 : vector<16x512xf32>, i32 -> vector<16x512xf32>
    %c0_30 = arith.constant 0 : index
    %c0_31 = arith.constant 0 : index
    %48 = vector.load %arg7[%c0_30, %c0_31] : memref<144x512xf32, #tpu.memory_space<vmem>>, vector<16x512xf32>
    %49 = arith.mulf %47, %48 : vector<16x512xf32>
    %c0_32 = arith.constant 0 : index
    %c0_33 = arith.constant 0 : index
    %50 = vector.load %arg23[%c0_32, %c0_33] : memref<144x512xf32, #tpu.memory_space<vmem>>, vector<16x512xf32>
    tpu.vector_store %arg23[%c0_32, %c0_33], %49 {strides = array<i32>} : memref<144x512xf32, #tpu.memory_space<vmem>>, vector<16x512xf32>,
    %c64_i32 = arith.constant 64 : i32
    %51 = tpu.dynamic_rotate %46 by %c64_i32 dim 1 : vector<16x512xf32>, i32 -> vector<16x512xf32>
    %c16_34 = arith.constant 16 : index
    %c0_35 = arith.constant 0 : index
    %52 = vector.load %arg7[%c16_34, %c0_35] : memref<144x512xf32, #tpu.memory_space<vmem>>, vector<16x512xf32>
    %53 = arith.mulf %51, %52 : vector<16x512xf32>
    %c16_36 = arith.constant 16 : index
    %c0_37 = arith.constant 0 : index
    %54 = vector.load %arg23[%c16_36, %c0_37] : memref<144x512xf32, #tpu.memory_space<vmem>>, vector<16x512xf32>
    tpu.vector_store %arg23[%c16_36, %c0_37], %53 {strides = array<i32>} : memref<144x512xf32, #tpu.memory_space<vmem>>, vector<16x512xf32>,
    %c56_i32 = arith.constant 56 : i32
    %55 = tpu.dynamic_rotate %46 by %c56_i32 dim 1 : vector<16x512xf32>, i32 -> vector<16x512xf32>
    %c32_38 = arith.constant 32 : index
    %c0_39 = arith.constant 0 : index
    %56 = vector.load %arg7[%c32_38, %c0_39] : memref<144x512xf32, #tpu.memory_space<vmem>>, vector<16x512xf32>
    %57 = arith.mulf %55, %56 : vector<16x512xf32>
    %c32_40 = arith.constant 32 : index
    %c0_41 = arith.constant 0 : index
    %58 = vector.load %arg23[%c32_40, %c0_41] : memref<144x512xf32, #tpu.memory_space<vmem>>, vector<16x512xf32>
    tpu.vector_store %arg23[%c32_40, %c0_41], %57 {strides = array<i32>} : memref<144x512xf32, #tpu.memory_space<vmem>>, vector<16x512xf32>,
    %c8_i32 = arith.constant 8 : i32
    %59 = tpu.dynamic_rotate %46 by %c8_i32 dim 1 : vector<16x512xf32>, i32 -> vector<16x512xf32>
    %c48_42 = arith.constant 48 : index
    %c0_43 = arith.constant 0 : index
    %60 = vector.load %arg7[%c48_42, %c0_43] : memref<144x512xf32, #tpu.memory_space<vmem>>, vector<16x512xf32>
    %61 = arith.mulf %59, %60 : vector<16x512xf32>
    %c48_44 = arith.constant 48 : index
    %c0_45 = arith.constant 0 : index
    %62 = vector.load %arg23[%c48_44, %c0_45] : memref<144x512xf32, #tpu.memory_space<vmem>>, vector<16x512xf32>
    tpu.vector_store %arg23[%c48_44, %c0_45], %61 {strides = array<i32>} : memref<144x512xf32, #tpu.memory_space<vmem>>, vector<16x512xf32>,
    %c64_46 = arith.constant 64 : index
    %c0_47 = arith.constant 0 : index
    %63 = vector.load %arg7[%c64_46, %c0_47] : memref<144x512xf32, #tpu.memory_space<vmem>>, vector<16x512xf32>
    %64 = arith.mulf %46, %63 : vector<16x512xf32>
    %c64_48 = arith.constant 64 : index
    %c0_49 = arith.constant 0 : index
    %65 = vector.load %arg23[%c64_48, %c0_49] : memref<144x512xf32, #tpu.memory_space<vmem>>, vector<16x512xf32>
    tpu.vector_store %arg23[%c64_48, %c0_49], %64 {strides = array<i32>} : memref<144x512xf32, #tpu.memory_space<vmem>>, vector<16x512xf32>,
    %c504_i32 = arith.constant 504 : i32
    %66 = tpu.dynamic_rotate %46 by %c504_i32 dim 1 : vector<16x512xf32>, i32 -> vector<16x512xf32>
    %c80_50 = arith.constant 80 : index
    %c0_51 = arith.constant 0 : index
    %67 = vector.load %arg7[%c80_50, %c0_51] : memref<144x512xf32, #tpu.memory_space<vmem>>, vector<16x512xf32>
    %68 = arith.mulf %66, %67 : vector<16x512xf32>
    %c80_52 = arith.constant 80 : index
    %c0_53 = arith.constant 0 : index
    %69 = vector.load %arg23[%c80_52, %c0_53] : memref<144x512xf32, #tpu.memory_space<vmem>>, vector<16x512xf32>
    tpu.vector_store %arg23[%c80_52, %c0_53], %68 {strides = array<i32>} : memref<144x512xf32, #tpu.memory_space<vmem>>, vector<16x512xf32>,
    %c456_i32 = arith.constant 456 : i32
    %70 = tpu.dynamic_rotate %46 by %c456_i32 dim 1 : vector<16x512xf32>, i32 -> vector<16x512xf32>
    %c96_54 = arith.constant 96 : index
    %c0_55 = arith.constant 0 : index
    %71 = vector.load %arg7[%c96_54, %c0_55] : memref<144x512xf32, #tpu.memory_space<vmem>>, vector<16x512xf32>
    %72 = arith.mulf %70, %71 : vector<16x512xf32>
    %c96_56 = arith.constant 96 : index
    %c0_57 = arith.constant 0 : index
    %73 = vector.load %arg23[%c96_56, %c0_57] : memref<144x512xf32, #tpu.memory_space<vmem>>, vector<16x512xf32>
    tpu.vector_store %arg23[%c96_56, %c0_57], %72 {strides = array<i32>} : memref<144x512xf32, #tpu.memory_space<vmem>>, vector<16x512xf32>,
    %c448_i32 = arith.constant 448 : i32
    %74 = tpu.dynamic_rotate %46 by %c448_i32 dim 1 : vector<16x512xf32>, i32 -> vector<16x512xf32>
    %c112_58 = arith.constant 112 : index
    %c0_59 = arith.constant 0 : index
    %75 = vector.load %arg7[%c112_58, %c0_59] : memref<144x512xf32, #tpu.memory_space<vmem>>, vector<16x512xf32>
    %76 = arith.mulf %74, %75 : vector<16x512xf32>
    %c112_60 = arith.constant 112 : index
    %c0_61 = arith.constant 0 : index
    %77 = vector.load %arg23[%c112_60, %c0_61] : memref<144x512xf32, #tpu.memory_space<vmem>>, vector<16x512xf32>
    tpu.vector_store %arg23[%c112_60, %c0_61], %76 {strides = array<i32>} : memref<144x512xf32, #tpu.memory_space<vmem>>, vector<16x512xf32>,
    %c440_i32 = arith.constant 440 : i32
    %78 = tpu.dynamic_rotate %46 by %c440_i32 dim 1 : vector<16x512xf32>, i32 -> vector<16x512xf32>
    %c128 = arith.constant 128 : index
    %c0_62 = arith.constant 0 : index
    %79 = vector.load %arg7[%c128, %c0_62] : memref<144x512xf32, #tpu.memory_space<vmem>>, vector<16x512xf32>
    %80 = arith.mulf %78, %79 : vector<16x512xf32>
    %c128_63 = arith.constant 128 : index
    %c0_64 = arith.constant 0 : index
    %81 = vector.load %arg23[%c128_63, %c0_64] : memref<144x512xf32, #tpu.memory_space<vmem>>, vector<16x512xf32>
    tpu.vector_store %arg23[%c128_63, %c0_64], %80 {strides = array<i32>} : memref<144x512xf32, #tpu.memory_space<vmem>>, vector<16x512xf32>,
    %c0_65 = arith.constant 0 : index
    %c0_66 = arith.constant 0 : index
    %82 = vector.load %arg9[%c0_65, %c0_66] : memref<8x144xf32, #tpu.memory_space<vmem>>, vector<8x144xf32>
    %c0_67 = arith.constant 0 : index
    %c0_68 = arith.constant 0 : index
    %83 = vector.load %arg23[%c0_67, %c0_68] : memref<144x512xf32, #tpu.memory_space<vmem>>, vector<144x512xf32>
    %cst_69 = arith.constant dense<0.000000e+00> : vector<8x512xf32>
    %84 = tpu.matmul %82, %83, %cst_69 {dimension_numbers = #tpu.dot_dimension_numbers<[1], [0], [0], [1], [0, 0, 1, 1], [], []>} : vector<8x144xf32>, vector<144x512xf32>, vector<8x512xf32> -> vector<8x512xf32>
    %c0_70 = arith.constant 0 : index
    %c0_71 = arith.constant 0 : index
    %85 = vector.load %arg10[%c0_70, %c0_71] : memref<8x1xf32, #tpu.memory_space<vmem>>, vector<8x1xf32>
    %86 = vector.broadcast %85 : vector<8x1xf32> to vector<8x512xf32>
    %87 = arith.addf %84, %86 : vector<8x512xf32>
    %cst_72 = arith.constant 0.000000e+00 : f32
    %88 = vector.broadcast %cst_72 : f32 to vector<8x512xf32>
    %89 = arith.cmpf ogt, %87, %88 : vector<8x512xf32>
    %cst_73 = arith.constant 2.000000e-01 : f32
    %90 = vector.broadcast %cst_73 : f32 to vector<8x512xf32>
    %91 = arith.mulf %90, %87 : vector<8x512xf32>
    %92 = arith.select %89, %87, %91 : vector<8x512xi1>, vector<8x512xf32>
    %c0_74 = arith.constant 0 : index
    %c0_75 = arith.constant 0 : index
    %93 = vector.load %arg6[%c0_74, %c0_75] : memref<512x2048xf32, #tpu.memory_space<vmem>>, vector<512x2048xf32>
    %cst_76 = arith.constant dense<0.000000e+00> : vector<8x2048xf32>
    %94 = tpu.matmul %92, %93, %cst_76 {dimension_numbers = #tpu.dot_dimension_numbers<[1], [0], [0], [1], [0, 0, 1, 1], [], []>} : vector<8x512xf32>, vector<512x2048xf32>, vector<8x2048xf32> -> vector<8x2048xf32>
    %c136_i32 = arith.constant 136 : i32
    %95 = tpu.dynamic_rotate %94 by %c136_i32 dim 1 : vector<8x2048xf32>, i32 -> vector<8x2048xf32>
    %c0_77 = arith.constant 0 : index
    %c0_78 = arith.constant 0 : index
    %96 = vector.load %arg8[%c0_77, %c0_78] : memref<72x2048xf32, #tpu.memory_space<vmem>>, vector<8x2048xf32>
    %97 = arith.mulf %95, %96 : vector<8x2048xf32>
    %c0_79 = arith.constant 0 : index
    %c0_80 = arith.constant 0 : index
    %98 = vector.load %arg24[%c0_79, %c0_80] : memref<72x2048xf32, #tpu.memory_space<vmem>>, vector<8x2048xf32>
    tpu.vector_store %arg24[%c0_79, %c0_80], %97 {strides = array<i32>} : memref<72x2048xf32, #tpu.memory_space<vmem>>, vector<8x2048xf32>,
    %c128_i32 = arith.constant 128 : i32
    %99 = tpu.dynamic_rotate %94 by %c128_i32 dim 1 : vector<8x2048xf32>, i32 -> vector<8x2048xf32>
    %c8_81 = arith.constant 8 : index
    %c0_82 = arith.constant 0 : index
    %100 = vector.load %arg8[%c8_81, %c0_82] : memref<72x2048xf32, #tpu.memory_space<vmem>>, vector<8x2048xf32>
    %101 = arith.mulf %99, %100 : vector<8x2048xf32>
    %c8_83 = arith.constant 8 : index
    %c0_84 = arith.constant 0 : index
    %102 = vector.load %arg24[%c8_83, %c0_84] : memref<72x2048xf32, #tpu.memory_space<vmem>>, vector<8x2048xf32>
    tpu.vector_store %arg24[%c8_83, %c0_84], %101 {strides = array<i32>} : memref<72x2048xf32, #tpu.memory_space<vmem>>, vector<8x2048xf32>,
    %c120_i32 = arith.constant 120 : i32
    %103 = tpu.dynamic_rotate %94 by %c120_i32 dim 1 : vector<8x2048xf32>, i32 -> vector<8x2048xf32>
    %c16_85 = arith.constant 16 : index
    %c0_86 = arith.constant 0 : index
    %104 = vector.load %arg8[%c16_85, %c0_86] : memref<72x2048xf32, #tpu.memory_space<vmem>>, vector<8x2048xf32>
    %105 = arith.mulf %103, %104 : vector<8x2048xf32>
    %c16_87 = arith.constant 16 : index
    %c0_88 = arith.constant 0 : index
    %106 = vector.load %arg24[%c16_87, %c0_88] : memref<72x2048xf32, #tpu.memory_space<vmem>>, vector<8x2048xf32>
    tpu.vector_store %arg24[%c16_87, %c0_88], %105 {strides = array<i32>} : memref<72x2048xf32, #tpu.memory_space<vmem>>, vector<8x2048xf32>,
    %c8_i32_89 = arith.constant 8 : i32
    %107 = tpu.dynamic_rotate %94 by %c8_i32_89 dim 1 : vector<8x2048xf32>, i32 -> vector<8x2048xf32>
    %c24_90 = arith.constant 24 : index
    %c0_91 = arith.constant 0 : index
    %108 = vector.load %arg8[%c24_90, %c0_91] : memref<72x2048xf32, #tpu.memory_space<vmem>>, vector<8x2048xf32>
    %109 = arith.mulf %107, %108 : vector<8x2048xf32>
    %c24_92 = arith.constant 24 : index
    %c0_93 = arith.constant 0 : index
    %110 = vector.load %arg24[%c24_92, %c0_93] : memref<72x2048xf32, #tpu.memory_space<vmem>>, vector<8x2048xf32>
    tpu.vector_store %arg24[%c24_92, %c0_93], %109 {strides = array<i32>} : memref<72x2048xf32, #tpu.memory_space<vmem>>, vector<8x2048xf32>,
    %c32_94 = arith.constant 32 : index
    %c0_95 = arith.constant 0 : index
    %111 = vector.load %arg8[%c32_94, %c0_95] : memref<72x2048xf32, #tpu.memory_space<vmem>>, vector<8x2048xf32>
    %112 = arith.mulf %94, %111 : vector<8x2048xf32>
    %c32_96 = arith.constant 32 : index
    %c0_97 = arith.constant 0 : index
    %113 = vector.load %arg24[%c32_96, %c0_97] : memref<72x2048xf32, #tpu.memory_space<vmem>>, vector<8x2048xf32>
    tpu.vector_store %arg24[%c32_96, %c0_97], %112 {strides = array<i32>} : memref<72x2048xf32, #tpu.memory_space<vmem>>, vector<8x2048xf32>,
    %c2040_i32 = arith.constant 2040 : i32
    %114 = tpu.dynamic_rotate %94 by %c2040_i32 dim 1 : vector<8x2048xf32>, i32 -> vector<8x2048xf32>
    %c40_98 = arith.constant 40 : index
    %c0_99 = arith.constant 0 : index
    %115 = vector.load %arg8[%c40_98, %c0_99] : memref<72x2048xf32, #tpu.memory_space<vmem>>, vector<8x2048xf32>
    %116 = arith.mulf %114, %115 : vector<8x2048xf32>
    %c40_100 = arith.constant 40 : index
    %c0_101 = arith.constant 0 : index
    %117 = vector.load %arg24[%c40_100, %c0_101] : memref<72x2048xf32, #tpu.memory_space<vmem>>, vector<8x2048xf32>
    tpu.vector_store %arg24[%c40_100, %c0_101], %116 {strides = array<i32>} : memref<72x2048xf32, #tpu.memory_space<vmem>>, vector<8x2048xf32>,
    %c1928_i32 = arith.constant 1928 : i32
    %118 = tpu.dynamic_rotate %94 by %c1928_i32 dim 1 : vector<8x2048xf32>, i32 -> vector<8x2048xf32>
    %c48_102 = arith.constant 48 : index
    %c0_103 = arith.constant 0 : index
    %119 = vector.load %arg8[%c48_102, %c0_103] : memref<72x2048xf32, #tpu.memory_space<vmem>>, vector<8x2048xf32>
    %120 = arith.mulf %118, %119 : vector<8x2048xf32>
    %c48_104 = arith.constant 48 : index
    %c0_105 = arith.constant 0 : index
    %121 = vector.load %arg24[%c48_104, %c0_105] : memref<72x2048xf32, #tpu.memory_space<vmem>>, vector<8x2048xf32>
    tpu.vector_store %arg24[%c48_104, %c0_105], %120 {strides = array<i32>} : memref<72x2048xf32, #tpu.memory_space<vmem>>, vector<8x2048xf32>,
    %c1920_i32 = arith.constant 1920 : i32
    %122 = tpu.dynamic_rotate %94 by %c1920_i32 dim 1 : vector<8x2048xf32>, i32 -> vector<8x2048xf32>
    %c56_106 = arith.constant 56 : index
    %c0_107 = arith.constant 0 : index
    %123 = vector.load %arg8[%c56_106, %c0_107] : memref<72x2048xf32, #tpu.memory_space<vmem>>, vector<8x2048xf32>
    %124 = arith.mulf %122, %123 : vector<8x2048xf32>
    %c56_108 = arith.constant 56 : index
    %c0_109 = arith.constant 0 : index
    %125 = vector.load %arg24[%c56_108, %c0_109] : memref<72x2048xf32, #tpu.memory_space<vmem>>, vector<8x2048xf32>
    tpu.vector_store %arg24[%c56_108, %c0_109], %124 {strides = array<i32>} : memref<72x2048xf32, #tpu.memory_space<vmem>>, vector<8x2048xf32>,
    %c1912_i32 = arith.constant 1912 : i32
    %126 = tpu.dynamic_rotate %94 by %c1912_i32 dim 1 : vector<8x2048xf32>, i32 -> vector<8x2048xf32>
    %c64_110 = arith.constant 64 : index
    %c0_111 = arith.constant 0 : index
    %127 = vector.load %arg8[%c64_110, %c0_111] : memref<72x2048xf32, #tpu.memory_space<vmem>>, vector<8x2048xf32>
    %128 = arith.mulf %126, %127 : vector<8x2048xf32>
    %c64_112 = arith.constant 64 : index
    %c0_113 = arith.constant 0 : index
    %129 = vector.load %arg24[%c64_112, %c0_113] : memref<72x2048xf32, #tpu.memory_space<vmem>>, vector<8x2048xf32>
    tpu.vector_store %arg24[%c64_112, %c0_113], %128 {strides = array<i32>} : memref<72x2048xf32, #tpu.memory_space<vmem>>, vector<8x2048xf32>,
    %c0_114 = arith.constant 0 : index
    %c0_115 = arith.constant 0 : index
    %130 = vector.load %arg11[%c0_114, %c0_115] : memref<8x72xf32, #tpu.memory_space<vmem>>, vector<8x72xf32>
    %c0_116 = arith.constant 0 : index
    %c0_117 = arith.constant 0 : index
    %131 = vector.load %arg24[%c0_116, %c0_117] : memref<72x2048xf32, #tpu.memory_space<vmem>>, vector<72x2048xf32>
    %cst_118 = arith.constant dense<0.000000e+00> : vector<8x2048xf32>
    %132 = tpu.matmul %130, %131, %cst_118 {dimension_numbers = #tpu.dot_dimension_numbers<[1], [0], [0], [1], [0, 0, 1, 1], [], []>} : vector<8x72xf32>, vector<72x2048xf32>, vector<8x2048xf32> -> vector<8x2048xf32>
    %c0_119 = arith.constant 0 : index
    %c0_120 = arith.constant 0 : index
    %133 = vector.load %arg12[%c0_119, %c0_120] : memref<8x1xf32, #tpu.memory_space<vmem>>, vector<8x1xf32>
    %134 = vector.broadcast %133 : vector<8x1xf32> to vector<8x2048xf32>
    %135 = arith.addf %132, %134 : vector<8x2048xf32>
    %136 = math.tanh %135 : vector<8x2048xf32>
    %c0_121 = arith.constant 0 : index
    %c0_122 = arith.constant 0 : index
    %c0_123 = arith.constant 0 : index
    %137 = vector.load %arg19[%c0_121, %c0_122, %c0_123] : memref<1x8x2048xf32, #tpu.memory_space<vmem>>, vector<1x8x2048xf32>
    %138 = vector.shape_cast %137 : vector<1x8x2048xf32> to vector<8x2048xf32>
    %139 = vector.shape_cast %136 : vector<8x2048xf32> to vector<1x8x2048xf32>
    tpu.vector_store %arg19[%c0_121, %c0_122, %c0_123], %139 {strides = array<i32>} : memref<1x8x2048xf32, #tpu.memory_space<vmem>>, vector<1x8x2048xf32>,
    %c136_i32_124 = arith.constant 136 : i32
    %140 = tpu.dynamic_rotate %136 by %c136_i32_124 dim 1 : vector<8x2048xf32>, i32 -> vector<8x2048xf32>
    %c0_125 = arith.constant 0 : index
    %c0_126 = arith.constant 0 : index
    %141 = vector.load %arg8[%c0_125, %c0_126] : memref<72x2048xf32, #tpu.memory_space<vmem>>, vector<8x2048xf32>
    %142 = arith.mulf %140, %141 : vector<8x2048xf32>
    %c0_127 = arith.constant 0 : index
    %c0_128 = arith.constant 0 : index
    %143 = vector.load %arg24[%c0_127, %c0_128] : memref<72x2048xf32, #tpu.memory_space<vmem>>, vector<8x2048xf32>
    tpu.vector_store %arg24[%c0_127, %c0_128], %142 {strides = array<i32>} : memref<72x2048xf32, #tpu.memory_space<vmem>>, vector<8x2048xf32>,
    %c128_i32_129 = arith.constant 128 : i32
    %144 = tpu.dynamic_rotate %136 by %c128_i32_129 dim 1 : vector<8x2048xf32>, i32 -> vector<8x2048xf32>
    %c8_130 = arith.constant 8 : index
    %c0_131 = arith.constant 0 : index
    %145 = vector.load %arg8[%c8_130, %c0_131] : memref<72x2048xf32, #tpu.memory_space<vmem>>, vector<8x2048xf32>
    %146 = arith.mulf %144, %145 : vector<8x2048xf32>
    %c8_132 = arith.constant 8 : index
    %c0_133 = arith.constant 0 : index
    %147 = vector.load %arg24[%c8_132, %c0_133] : memref<72x2048xf32, #tpu.memory_space<vmem>>, vector<8x2048xf32>
    tpu.vector_store %arg24[%c8_132, %c0_133], %146 {strides = array<i32>} : memref<72x2048xf32, #tpu.memory_space<vmem>>, vector<8x2048xf32>,
    %c120_i32_134 = arith.constant 120 : i32
    %148 = tpu.dynamic_rotate %136 by %c120_i32_134 dim 1 : vector<8x2048xf32>, i32 -> vector<8x2048xf32>
    %c16_135 = arith.constant 16 : index
    %c0_136 = arith.constant 0 : index
    %149 = vector.load %arg8[%c16_135, %c0_136] : memref<72x2048xf32, #tpu.memory_space<vmem>>, vector<8x2048xf32>
    %150 = arith.mulf %148, %149 : vector<8x2048xf32>
    %c16_137 = arith.constant 16 : index
    %c0_138 = arith.constant 0 : index
    %151 = vector.load %arg24[%c16_137, %c0_138] : memref<72x2048xf32, #tpu.memory_space<vmem>>, vector<8x2048xf32>
    tpu.vector_store %arg24[%c16_137, %c0_138], %150 {strides = array<i32>} : memref<72x2048xf32, #tpu.memory_space<vmem>>, vector<8x2048xf32>,
    %c8_i32_139 = arith.constant 8 : i32
    %152 = tpu.dynamic_rotate %136 by %c8_i32_139 dim 1 : vector<8x2048xf32>, i32 -> vector<8x2048xf32>
    %c24_140 = arith.constant 24 : index
    %c0_141 = arith.constant 0 : index
    %153 = vector.load %arg8[%c24_140, %c0_141] : memref<72x2048xf32, #tpu.memory_space<vmem>>, vector<8x2048xf32>
    %154 = arith.mulf %152, %153 : vector<8x2048xf32>
    %c24_142 = arith.constant 24 : index
    %c0_143 = arith.constant 0 : index
    %155 = vector.load %arg24[%c24_142, %c0_143] : memref<72x2048xf32, #tpu.memory_space<vmem>>, vector<8x2048xf32>
    tpu.vector_store %arg24[%c24_142, %c0_143], %154 {strides = array<i32>} : memref<72x2048xf32, #tpu.memory_space<vmem>>, vector<8x2048xf32>,
    %c32_144 = arith.constant 32 : index
    %c0_145 = arith.constant 0 : index
    %156 = vector.load %arg8[%c32_144, %c0_145] : memref<72x2048xf32, #tpu.memory_space<vmem>>, vector<8x2048xf32>
    %157 = arith.mulf %136, %156 : vector<8x2048xf32>
    %c32_146 = arith.constant 32 : index
    %c0_147 = arith.constant 0 : index
    %158 = vector.load %arg24[%c32_146, %c0_147] : memref<72x2048xf32, #tpu.memory_space<vmem>>, vector<8x2048xf32>
    tpu.vector_store %arg24[%c32_146, %c0_147], %157 {strides = array<i32>} : memref<72x2048xf32, #tpu.memory_space<vmem>>, vector<8x2048xf32>,
    %c2040_i32_148 = arith.constant 2040 : i32
    %159 = tpu.dynamic_rotate %136 by %c2040_i32_148 dim 1 : vector<8x2048xf32>, i32 -> vector<8x2048xf32>
    %c40_149 = arith.constant 40 : index
    %c0_150 = arith.constant 0 : index
    %160 = vector.load %arg8[%c40_149, %c0_150] : memref<72x2048xf32, #tpu.memory_space<vmem>>, vector<8x2048xf32>
    %161 = arith.mulf %159, %160 : vector<8x2048xf32>
    %c40_151 = arith.constant 40 : index
    %c0_152 = arith.constant 0 : index
    %162 = vector.load %arg24[%c40_151, %c0_152] : memref<72x2048xf32, #tpu.memory_space<vmem>>, vector<8x2048xf32>
    tpu.vector_store %arg24[%c40_151, %c0_152], %161 {strides = array<i32>} : memref<72x2048xf32, #tpu.memory_space<vmem>>, vector<8x2048xf32>,
    %c1928_i32_153 = arith.constant 1928 : i32
    %163 = tpu.dynamic_rotate %136 by %c1928_i32_153 dim 1 : vector<8x2048xf32>, i32 -> vector<8x2048xf32>
    %c48_154 = arith.constant 48 : index
    %c0_155 = arith.constant 0 : index
    %164 = vector.load %arg8[%c48_154, %c0_155] : memref<72x2048xf32, #tpu.memory_space<vmem>>, vector<8x2048xf32>
    %165 = arith.mulf %163, %164 : vector<8x2048xf32>
    %c48_156 = arith.constant 48 : index
    %c0_157 = arith.constant 0 : index
    %166 = vector.load %arg24[%c48_156, %c0_157] : memref<72x2048xf32, #tpu.memory_space<vmem>>, vector<8x2048xf32>
    tpu.vector_store %arg24[%c48_156, %c0_157], %165 {strides = array<i32>} : memref<72x2048xf32, #tpu.memory_space<vmem>>, vector<8x2048xf32>,
    %c1920_i32_158 = arith.constant 1920 : i32
    %167 = tpu.dynamic_rotate %136 by %c1920_i32_158 dim 1 : vector<8x2048xf32>, i32 -> vector<8x2048xf32>
    %c56_159 = arith.constant 56 : index
    %c0_160 = arith.constant 0 : index
    %168 = vector.load %arg8[%c56_159, %c0_160] : memref<72x2048xf32, #tpu.memory_space<vmem>>, vector<8x2048xf32>
    %169 = arith.mulf %167, %168 : vector<8x2048xf32>
    %c56_161 = arith.constant 56 : index
    %c0_162 = arith.constant 0 : index
    %170 = vector.load %arg24[%c56_161, %c0_162] : memref<72x2048xf32, #tpu.memory_space<vmem>>, vector<8x2048xf32>
    tpu.vector_store %arg24[%c56_161, %c0_162], %169 {strides = array<i32>} : memref<72x2048xf32, #tpu.memory_space<vmem>>, vector<8x2048xf32>,
    %c1912_i32_163 = arith.constant 1912 : i32
    %171 = tpu.dynamic_rotate %136 by %c1912_i32_163 dim 1 : vector<8x2048xf32>, i32 -> vector<8x2048xf32>
    %c64_164 = arith.constant 64 : index
    %c0_165 = arith.constant 0 : index
    %172 = vector.load %arg8[%c64_164, %c0_165] : memref<72x2048xf32, #tpu.memory_space<vmem>>, vector<8x2048xf32>
    %173 = arith.mulf %171, %172 : vector<8x2048xf32>
    %c64_166 = arith.constant 64 : index
    %c0_167 = arith.constant 0 : index
    %174 = vector.load %arg24[%c64_166, %c0_167] : memref<72x2048xf32, #tpu.memory_space<vmem>>, vector<8x2048xf32>
    tpu.vector_store %arg24[%c64_166, %c0_167], %173 {strides = array<i32>} : memref<72x2048xf32, #tpu.memory_space<vmem>>, vector<8x2048xf32>,
    %c0_168 = arith.constant 0 : index
    %c0_169 = arith.constant 0 : index
    %175 = vector.load %arg13[%c0_168, %c0_169] : memref<8x72xf32, #tpu.memory_space<vmem>>, vector<8x72xf32>
    %c0_170 = arith.constant 0 : index
    %c0_171 = arith.constant 0 : index
    %176 = vector.load %arg24[%c0_170, %c0_171] : memref<72x2048xf32, #tpu.memory_space<vmem>>, vector<72x2048xf32>
    %cst_172 = arith.constant dense<0.000000e+00> : vector<8x2048xf32>
    %177 = tpu.matmul %175, %176, %cst_172 {dimension_numbers = #tpu.dot_dimension_numbers<[1], [0], [0], [1], [0, 0, 1, 1], [], []>} : vector<8x72xf32>, vector<72x2048xf32>, vector<8x2048xf32> -> vector<8x2048xf32>
    %c0_173 = arith.constant 0 : index
    %c0_174 = arith.constant 0 : index
    %178 = vector.load %arg14[%c0_173, %c0_174] : memref<8x1xf32, #tpu.memory_space<vmem>>, vector<8x1xf32>
    %179 = vector.broadcast %178 : vector<8x1xf32> to vector<8x2048xf32>
    %180 = arith.addf %177, %179 : vector<8x2048xf32>
    %181 = math.tanh %180 : vector<8x2048xf32>
    %c0_175 = arith.constant 0 : index
    %c0_176 = arith.constant 0 : index
    %c0_177 = arith.constant 0 : index
    %182 = vector.load %arg20[%c0_175, %c0_176, %c0_177] : memref<1x8x2048xf32, #tpu.memory_space<vmem>>, vector<1x8x2048xf32>
    %183 = vector.shape_cast %182 : vector<1x8x2048xf32> to vector<8x2048xf32>
    %184 = vector.shape_cast %181 : vector<8x2048xf32> to vector<1x8x2048xf32>
    tpu.vector_store %arg20[%c0_175, %c0_176, %c0_177], %184 {strides = array<i32>} : memref<1x8x2048xf32, #tpu.memory_space<vmem>>, vector<1x8x2048xf32>,
    %c0_178 = arith.constant 0 : index
    %c0_179 = arith.constant 0 : index
    %c0_180 = arith.constant 0 : index
    %185 = vector.load %arg1[%c0_178, %c0_179, %c0_180] : memref<1x8x32xf32, #tpu.memory_space<vmem>>, vector<1x8x32xf32>
    %186 = vector.shape_cast %185 : vector<1x8x32xf32> to vector<8x32xf32>
    %c0_181 = arith.constant 0 : index
    %c0_182 = arith.constant 0 : index
    %187 = vector.load %arg15[%c0_181, %c0_182] : memref<32x32xf32, #tpu.memory_space<vmem>>, vector<32x32xf32>
    %cst_183 = arith.constant dense<0.000000e+00> : vector<8x32xf32>
    %188 = tpu.matmul %186, %187, %cst_183 {dimension_numbers = #tpu.dot_dimension_numbers<[1], [0], [0], [1], [0, 0, 1, 1], [], []>} : vector<8x32xf32>, vector<32x32xf32>, vector<8x32xf32> -> vector<8x32xf32>
    %c0_184 = arith.constant 0 : index
    %c0_185 = arith.constant 0 : index
    %189 = vector.load %arg16[%c0_184, %c0_185] : memref<1x32xf32, #tpu.memory_space<vmem>>, vector<1x32xf32>
    %190 = vector.broadcast %189 : vector<1x32xf32> to vector<8x32xf32>
    %191 = arith.addf %188, %190 : vector<8x32xf32>
    %cst_186 = arith.constant 0.000000e+00 : f32
    %192 = vector.broadcast %cst_186 : f32 to vector<8x32xf32>
    %193 = arith.cmpf ogt, %191, %192 : vector<8x32xf32>
    %cst_187 = arith.constant 2.000000e-01 : f32
    %194 = vector.broadcast %cst_187 : f32 to vector<8x32xf32>
    %195 = arith.mulf %194, %191 : vector<8x32xf32>
    %196 = arith.select %193, %191, %195 : vector<8x32xi1>, vector<8x32xf32>
    %c0_188 = arith.constant 0 : index
    %c0_189 = arith.constant 0 : index
    %197 = vector.load %arg17[%c0_188, %c0_189] : memref<32x128xf32, #tpu.memory_space<vmem>>, vector<32x128xf32>
    %cst_190 = arith.constant dense<0.000000e+00> : vector<8x128xf32>
    %198 = tpu.matmul %196, %197, %cst_190 {dimension_numbers = #tpu.dot_dimension_numbers<[1], [0], [0], [1], [0, 0, 1, 1], [], []>} : vector<8x32xf32>, vector<32x128xf32>, vector<8x128xf32> -> vector<8x128xf32>
    %c0_191 = arith.constant 0 : index
    %c0_192 = arith.constant 0 : index
    %199 = vector.load %arg18[%c0_191, %c0_192] : memref<1x128xf32, #tpu.memory_space<vmem>>, vector<1x128xf32>
    %200 = vector.broadcast %199 : vector<1x128xf32> to vector<8x128xf32>
    %201 = arith.addf %198, %200 : vector<8x128xf32>
    %c0_193 = arith.constant 0 : index
    %c0_194 = arith.constant 0 : index
    %c0_195 = arith.constant 0 : index
    %202 = vector.load %arg21[%c0_193, %c0_194, %c0_195] : memref<1x8x128xf32, #tpu.memory_space<vmem>>, vector<1x8x128xf32>
    %203 = vector.shape_cast %202 : vector<1x8x128xf32> to vector<8x128xf32>
    %204 = vector.shape_cast %201 : vector<8x128xf32> to vector<1x8x128xf32>
    tpu.vector_store %arg21[%c0_193, %c0_194, %c0_195], %204 {strides = array<i32>} : memref<1x8x128xf32, #tpu.memory_space<vmem>>, vector<1x8x128xf32>,
    return
  }
  func.func @transform_0(%arg0: i32) -> (i32, i32, i32) {
    %c0_i32 = arith.constant 0 : i32
    %c0_i32_0 = arith.constant 0 : i32
    %c0_i32_1 = arith.constant 0 : i32
    return %arg0, %c0_i32, %c0_i32_0 : i32, i32, i32
  }
  func.func @transform_1(%arg0: i32) -> (i32, i32, i32) {
    %c0_i32 = arith.constant 0 : i32
    %c0_i32_0 = arith.constant 0 : i32
    %c0_i32_1 = arith.constant 0 : i32
    return %arg0, %c0_i32, %c0_i32_0 : i32, i32, i32
  }
  func.func @transform_2(%arg0: i32) -> (i32, i32) {
    %c0_i32 = arith.constant 0 : i32
    %c0_i32_0 = arith.constant 0 : i32
    %c0_i32_1 = arith.constant 0 : i32
    return %c0_i32, %c0_i32_0 : i32, i32
  }
  func.func @transform_3(%arg0: i32) -> (i32, i32) {
    %c0_i32 = arith.constant 0 : i32
    %c0_i32_0 = arith.constant 0 : i32
    %c0_i32_1 = arith.constant 0 : i32
    return %c0_i32, %c0_i32_0 : i32, i32
  }
  func.func @transform_4(%arg0: i32) -> (i32, i32) {
    %c0_i32 = arith.constant 0 : i32
    %c0_i32_0 = arith.constant 0 : i32
    %c0_i32_1 = arith.constant 0 : i32
    return %c0_i32, %c0_i32_0 : i32, i32
  }
  func.func @transform_5(%arg0: i32) -> (i32, i32) {
    %c0_i32 = arith.constant 0 : i32
    %c0_i32_0 = arith.constant 0 : i32
    %c0_i32_1 = arith.constant 0 : i32
    return %c0_i32, %c0_i32_0 : i32, i32
  }
  func.func @transform_6(%arg0: i32) -> (i32, i32) {
    %c0_i32 = arith.constant 0 : i32
    %c0_i32_0 = arith.constant 0 : i32
    %c0_i32_1 = arith.constant 0 : i32
    return %c0_i32, %c0_i32_0 : i32, i32
  }
  func.func @transform_7(%arg0: i32) -> (i32, i32) {
    %c0_i32 = arith.constant 0 : i32
    %c0_i32_0 = arith.constant 0 : i32
    %c0_i32_1 = arith.constant 0 : i32
    return %c0_i32, %c0_i32_0 : i32, i32
  }
  func.func @transform_8(%arg0: i32) -> (i32, i32) {
    %c0_i32 = arith.constant 0 : i32
    %c0_i32_0 = arith.constant 0 : i32
    %c0_i32_1 = arith.constant 0 : i32
    return %c0_i32, %c0_i32_0 : i32, i32
  }
  func.func @transform_9(%arg0: i32) -> (i32, i32) {
    %c0_i32 = arith.constant 0 : i32
    %c0_i32_0 = arith.constant 0 : i32
    %c0_i32_1 = arith.constant 0 : i32
    return %c0_i32, %c0_i32_0 : i32, i32
  }
  func.func @transform_10(%arg0: i32) -> (i32, i32) {
    %c0_i32 = arith.constant 0 : i32
    %c0_i32_0 = arith.constant 0 : i32
    %c0_i32_1 = arith.constant 0 : i32
    return %c0_i32, %c0_i32_0 : i32, i32
  }
  func.func @transform_11(%arg0: i32) -> (i32, i32) {
    %c0_i32 = arith.constant 0 : i32
    %c0_i32_0 = arith.constant 0 : i32
    %c0_i32_1 = arith.constant 0 : i32
    return %c0_i32, %c0_i32_0 : i32, i32
  }
  func.func @transform_12(%arg0: i32) -> (i32, i32) {
    %c0_i32 = arith.constant 0 : i32
    %c0_i32_0 = arith.constant 0 : i32
    %c0_i32_1 = arith.constant 0 : i32
    return %c0_i32, %c0_i32_0 : i32, i32
  }
  func.func @transform_13(%arg0: i32) -> (i32, i32) {
    %c0_i32 = arith.constant 0 : i32
    %c0_i32_0 = arith.constant 0 : i32
    %c0_i32_1 = arith.constant 0 : i32
    return %c0_i32, %c0_i32_0 : i32, i32
  }
  func.func @transform_14(%arg0: i32) -> (i32, i32) {
    %c0_i32 = arith.constant 0 : i32
    %c0_i32_0 = arith.constant 0 : i32
    %c0_i32_1 = arith.constant 0 : i32
    return %c0_i32, %c0_i32_0 : i32, i32
  }
  func.func @transform_15(%arg0: i32) -> (i32, i32) {
    %c0_i32 = arith.constant 0 : i32
    %c0_i32_0 = arith.constant 0 : i32
    %c0_i32_1 = arith.constant 0 : i32
    return %c0_i32, %c0_i32_0 : i32, i32
  }
  func.func @transform_16(%arg0: i32) -> (i32, i32) {
    %c0_i32 = arith.constant 0 : i32
    %c0_i32_0 = arith.constant 0 : i32
    %c0_i32_1 = arith.constant 0 : i32
    return %c0_i32, %c0_i32_0 : i32, i32
  }
  func.func @transform_17(%arg0: i32) -> (i32, i32) {
    %c0_i32 = arith.constant 0 : i32
    %c0_i32_0 = arith.constant 0 : i32
    %c0_i32_1 = arith.constant 0 : i32
    return %c0_i32, %c0_i32_0 : i32, i32
  }
  func.func @transform_18(%arg0: i32) -> (i32, i32, i32) {
    %c0_i32 = arith.constant 0 : i32
    %c0_i32_0 = arith.constant 0 : i32
    %c0_i32_1 = arith.constant 0 : i32
    return %arg0, %c0_i32, %c0_i32_0 : i32, i32, i32
  }
  func.func @transform_19(%arg0: i32) -> (i32, i32, i32) {
    %c0_i32 = arith.constant 0 : i32
    %c0_i32_0 = arith.constant 0 : i32
    %c0_i32_1 = arith.constant 0 : i32
    return %arg0, %c0_i32, %c0_i32_0 : i32, i32, i32
  }
  func.func @transform_20(%arg0: i32) -> (i32, i32, i32) {
    %c0_i32 = arith.constant 0 : i32
    %c0_i32_0 = arith.constant 0 : i32
    %c0_i32_1 = arith.constant 0 : i32
    return %arg0, %c0_i32, %c0_i32_0 : i32, i32, i32
  }
}

</mosaic_0001>

<bundles_post_ra>
// kernel: decoder_forward.1
= control target key start
LH: loop header
LB: loop body
LE: loop exit
PB: predicated region body
PF: predicated region fallthrough
CT: control target
= control target key end

     0   :  { %s10702_s0 = inlined_call_operand.vmem [shape: f32[1,8,32], index: 0, kind: input, shape index: {}]   ;;  %s10703_s1 = inlined_call_operand.vmem [shape: f32[1,32,8], index: 1, kind: input, shape index: {}]   ;;  %s10704_s2 = inlined_call_operand.vmem [shape: f32[256,32], index: 2, kind: input, shape index: {}]   ;;  %s10705_s3 = inlined_call_operand.vmem [shape: f32[16,1], index: 3, kind: input, shape index: {}]   ;;  %s10706_s4 = inlined_call_operand.hbm [shape: f32[128,512], index: 4, kind: input, shape index: {}]   ;;  %s10707_s5 = inlined_call_operand.hbm [shape: f32[512,2048], index: 5, kind: input, shape index: {}]   ;;  %s10708_s6 = inlined_call_operand.hbm [shape: f32[144,512], index: 6, kind: input, shape index: {}]   ;;  %s10709_s7 = inlined_call_operand.hbm [shape: f32[72,2048], index: 7, kind: input, shape index: {}]   ;;  %s10710_s8 = inlined_call_operand.hbm [shape: f32[8,144], index: 8, kind: input, shape index: {}]   ;;  %s10711_s9 = inlined_call_operand.vmem [shape: f32[8,1], index: 9, kind: input, shape index: {}]   ;;  %s10712_s10 = inlined_call_operand.hbm [shape: f32[8,72], index: 10, kind: input, shape index: {}]   ;;  %s10713_s11 = inlined_call_operand.vmem [shape: f32[8,1], index: 11, kind: input, shape index: {}]   ;;  %s10714_s12 = inlined_call_operand.hbm [shape: f32[8,72], index: 12, kind: input, shape index: {}]   ;;  %s10715_s13 = inlined_call_operand.vmem [shape: f32[8,1], index: 13, kind: input, shape index: {}]   ;;  %s10716_s14 = inlined_call_operand.hbm [shape: f32[32,32], index: 14, kind: input, shape index: {}]   ;;  %s10717_s15 = inlined_call_operand.hbm [shape: f32[1,32], index: 15, kind: input, shape index: {}]   ;;  %s10718_s16 = inlined_call_operand.hbm [shape: f32[32,128], index: 16, kind: input, shape index: {}]   ;;  %s10719_s17 = inlined_call_operand.hbm [shape: f32[1,128], index: 17, kind: input, shape index: {}]   ;;  %s10720_s18 = inlined_call_operand.vmem [shape: f32[1,8,2048], index: 18, kind: output, shape index: {0}]   ;;  %s10721_s19 = inlined_call_operand.vmem [shape: f32[1,8,2048], index: 19, kind: output, shape index: {1}]   ;;  %s10722_s20 = inlined_call_operand.vmem [shape: f32[1,8,128], index: 20, kind: output, shape index: {2}]  }
   0x1   :  { %10740 = sst [smem:[#allocation34_spill]] %s10702_s0 }
   0x2   :  { %10741 = sst [smem:[#allocation35_spill]] %s10703_s1 }
   0x3   :  { %10742 = sst [smem:[#allocation36_spill]] %s10704_s2 }
   0x4   :  { %10743 = sst [smem:[#allocation37_spill]] %s10705_s3 }
   0x5   :  { %10744 = sst [smem:[#allocation38_spill]] %s10706_s4 }
   0x6   :  { %10745 = sst [smem:[#allocation39_spill]] %s10722_s20 }
   0x7   :  { %26 = vsyncpa [#allocation6], 0 }
   0x8   :  { %27 = vsyncpa [#allocation8], 0 }
   0x9   :  { %28 = vsyncpa [#allocation11], 0 }
   0xa   :  { %29 = vsyncpa [#allocation14], 0 }
   0xb   :  { %30 = vsyncpa [#allocation17], 0 }
   0xc   :  { %31 = vsyncpa [#allocation20], 0  ;;  %s8448_s1 = smov [#allocation7]   ;;  %s8194_s2 = scalar_lea.hbm %s10707_s5, 131072 }
   0xd   :  { %s57_s22 = sshll.u32 %s8448_s1, 4  ;;  %p8195_p0 = scmp.ne.s32.totalorder %s10707_s5, %s8194_s2  ;;  %s58_s22 = int_to_ptr.vmem [resolvable:$true] %s57_s22 }
   0xe   :  { %p8198_p1 = scmp.lt.u32.totalorder %s8194_s2, %s10707_s5 }
  0x10   :  { %p8200_p2 = pnand %p8198_p1, %p8195_p0 }
  0x12   :  { %8203 = shalt.err (!%p8200_p2)
}
  0x13   :  { %s8204_s28 = scalar_lea.vmem %s58_s22, 131072  ;;  %p8209_p4 = scmp.lt.s32.totalorder %s58_s22, %s58_s22 }
  0x14   :  { %p8205_p3 = scmp.ne.s32.totalorder %s58_s22, %s8204_s28  ;;  %p8210_p5 = scmp.lt.s32.totalorder %s8204_s28, %s8204_s28 }
  0x16   :  { %p8211_p6 = por %p8210_p5, %p8209_p4 }
  0x18   :  { %p8212_p7 = pnand %p8211_p6, %p8205_p3 }
  0x1a   :  { %8215 = shalt.err (!%p8212_p7)
}
  0x1b   :  { %s8449_s4 = smov 2048   ;;  %s8450_s29 = smov 128  }
  0x1c   :  { %63 = dma.hbm_to_vmem [thread:$0]  %s10707_s5, 131072, %s58_s22, [#allocation8], %s8449_s4, %s8449_s4, %s8450_s29  }
  0x1d   :  { %s8451_s21 = smov [#allocation10]   ;;  %s8452_s23 = smov [#allocation13]  }
  0x1e   :  { %s81_s1 = sshll.u32 %s8451_s21, 4  ;;  %s106_s24 = sshll.u32 %s8452_s23, 4  ;;  %s82_s1 = int_to_ptr.vmem [resolvable:$true] %s81_s1  ;;  %s107_s24 = int_to_ptr.vmem [resolvable:$true] %s106_s24 }
  0x1f   :  { %s8216_s3 = scalar_lea.hbm %s10709_s7, 18432 }
  0x20   :  { %p8217_p8 = scmp.ne.s32.totalorder %s10709_s7, %s8216_s3  ;;  %p8220_p9 = scmp.lt.u32.totalorder %s8216_s3, %s10709_s7 }
  0x22   :  { %p8222_p10 = pnand %p8220_p9, %p8217_p8 }
  0x24   :  { %8225 = shalt.err (!%p8222_p10)
}
  0x25   :  { %s8226_s5 = scalar_lea.vmem %s82_s1, 18432  ;;  %p8231_p12 = scmp.lt.s32.totalorder %s82_s1, %s82_s1 }
  0x26   :  { %p8227_p11 = scmp.ne.s32.totalorder %s82_s1, %s8226_s5  ;;  %p8232_p13 = scmp.lt.s32.totalorder %s8226_s5, %s8226_s5 }
  0x28   :  { %p8233_p0 = por %p8232_p13, %p8231_p12 }
  0x2a   :  { %p8234_p1 = pnand %p8233_p0, %p8227_p11 }
  0x2c   :  { %8237 = shalt.err (!%p8234_p1)
}
  0x2d   :  { %87 = dma.hbm_to_vmem [thread:$0]  %s10709_s7, 18432, %s82_s1, [#allocation11], %s8449_s4, %s8449_s4, %s8450_s29  }
  0x2e   :  { %s8238_s20 = scalar_lea.hbm %s10712_s10, 128 }
  0x2f   :  { %p8239_p2 = scmp.ne.s32.totalorder %s10712_s10, %s8238_s20  ;;  %p8242_p3 = scmp.lt.u32.totalorder %s8238_s20, %s10712_s10 }
  0x31   :  { %p8244_p4 = pnand %p8242_p3, %p8239_p2 }
  0x33   :  { %8247 = shalt.err (!%p8244_p4)
}
  0x34   :  { %s8248_s26 = scalar_lea.vmem %s107_s24, 128  ;;  %p8253_p6 = scmp.lt.s32.totalorder %s107_s24, %s107_s24 }
  0x35   :  { %p8249_p5 = scmp.ne.s32.totalorder %s107_s24, %s8248_s26  ;;  %p8254_p7 = scmp.lt.s32.totalorder %s8248_s26, %s8248_s26 }
  0x37   :  { %p8255_p8 = por %p8254_p7, %p8253_p6 }
  0x39   :  { %p8256_p9 = pnand %p8255_p8, %p8249_p5 }
  0x3b   :  { %8259 = shalt.err (!%p8256_p9)
}
  0x3c   :  { %109 = dma.hbm_to_vmem [thread:$0]  %s10712_s10, 128, %s107_s24, [#allocation14]  }
  0x3d   :  { %s8453_s1 = smov [#allocation16]   ;;  %s8260_s22 = scalar_lea.hbm %s10716_s14, 512 }
  0x3e   :  { %s129_s27 = sshll.u32 %s8453_s1, 4  ;;  %p8261_p10 = scmp.ne.s32.totalorder %s10716_s14, %s8260_s22  ;;  %s130_s27 = int_to_ptr.vmem [resolvable:$true] %s129_s27 }
  0x3f   :  { %p8264_p11 = scmp.lt.u32.totalorder %s8260_s22, %s10716_s14 }
  0x41   :  { %p8266_p12 = pnand %p8264_p11, %p8261_p10 }
  0x43   :  { %8269 = shalt.err (!%p8266_p12)
}
  0x44   :  { %s8270_s23 = scalar_lea.vmem %s130_s27, 512  ;;  %p8275_p0 = scmp.lt.s32.totalorder %s130_s27, %s130_s27 }
  0x45   :  { %p8271_p13 = scmp.ne.s32.totalorder %s130_s27, %s8270_s23  ;;  %p8276_p1 = scmp.lt.s32.totalorder %s8270_s23, %s8270_s23 }
  0x47   :  { %p8277_p2 = por %p8276_p1, %p8275_p0 }
  0x49   :  { %p8278_p3 = pnand %p8277_p2, %p8271_p13 }
  0x4b   :  { %8281 = shalt.err (!%p8278_p3)
}
  0x4c   :  { %s8454_s10 = smov 8   ;;  %s8455_s25 = smov [#allocation19]  }
  0x4d   :  { %135 = dma.hbm_to_vmem [thread:$0]  %s10716_s14, 512, %s130_s27, [#allocation17], %s8450_s29, %s8450_s29, %s8454_s10  }
  0x4e   :  { %s151_s3 = sshll.u32 %s8455_s25, 4  ;;  %s8456_s26 = smov [#allocation5]   ;;  %s152_s3 = int_to_ptr.vmem [resolvable:$true] %s151_s3 }
  0x4f   :  { %s45_s7 = sshll.u32 %s8456_s26, 4  ;;  %s8282_s28 = scalar_lea.hbm %s10718_s16, 512  ;;  %s46_s7 = int_to_ptr.vmem [resolvable:$true] %s45_s7 }
  0x50   :  { %p8283_p4 = scmp.ne.s32.totalorder %s10718_s16, %s8282_s28  ;;  %p8286_p5 = scmp.lt.u32.totalorder %s8282_s28, %s10718_s16 }
  0x52   :  { %p8288_p6 = pnand %p8286_p5, %p8283_p4 }
  0x54   :  { %8291 = shalt.err (!%p8288_p6)
}
  0x55   :  { %s8292_s14 = scalar_lea.vmem %s152_s3, 512  ;;  %p8297_p8 = scmp.lt.s32.totalorder %s152_s3, %s152_s3 }
  0x56   :  { %p8293_p7 = scmp.ne.s32.totalorder %s152_s3, %s8292_s14  ;;  %p8298_p9 = scmp.lt.s32.totalorder %s8292_s14, %s8292_s14 }
  0x58   :  { %p8299_p10 = por %p8298_p9, %p8297_p8 }
  0x5a   :  { %p8300_p11 = pnand %p8299_p10, %p8293_p7 }
  0x5c   :  { %8303 = shalt.err (!%p8300_p11)
}
  0x5d   :  { %157 = dma.hbm_to_vmem [thread:$0]  %s10718_s16, 512, %s152_s3, [#allocation20], %s8450_s29, %s8450_s29, %s8454_s10  }
  0x5e   :  { %s10746_s24 = sld [smem:[#allocation38_spill]] }
  0x64   :  { %s8304_s2 = scalar_lea.hbm %s10746_s24, 8192 }
  0x65   :  { %p8305_p12 = scmp.ne.s32.totalorder %s10746_s24, %s8304_s2  ;;  %p8308_p13 = scmp.lt.u32.totalorder %s8304_s2, %s10746_s24 }
  0x67   :  { %p8310_p0 = pnand %p8308_p13, %p8305_p12 }
  0x69   :  { %8313 = shalt.err (!%p8310_p0)
}
  0x6a   :  { %s8314_s28 = scalar_lea.vmem %s46_s7, 8192  ;;  %p8319_p2 = scmp.lt.s32.totalorder %s46_s7, %s46_s7 }
  0x6b   :  { %p8315_p1 = scmp.ne.s32.totalorder %s46_s7, %s8314_s28  ;;  %p8320_p3 = scmp.lt.s32.totalorder %s8314_s28, %s8314_s28 }
  0x6d   :  { %p8321_p4 = por %p8320_p3, %p8319_p2 }
  0x6f   :  { %p8322_p5 = pnand %p8321_p4, %p8315_p1 }
  0x71   :  { %8325 = shalt.err (!%p8322_p5)
}
  0x72   :  { %s8457_s16 = smov 512   ;;  %s8458_s29 = smov 32  }
  0x73   :  { %51 = dma.hbm_to_vmem [thread:$0]  %s10746_s24, 8192, %s46_s7, [#allocation6], %s8457_s16, %s8457_s16, %s8458_s29  }
  0x74   :  { %s8459_s22 = smov [#allocation9]   ;;  %s8460_s0 = smov [#allocation12]  }
  0x75   :  { %s69_s30 = sshll.u32 %s8459_s22, 4  ;;  %s94_s14 = sshll.u32 %s8460_s0, 4  ;;  %s70_s30 = int_to_ptr.vmem [resolvable:$true] %s69_s30  ;;  %s95_s14 = int_to_ptr.vmem [resolvable:$true] %s94_s14 }
  0x76   :  { %s8326_s20 = scalar_lea.hbm %s10708_s6, 9216 }
  0x77   :  { %p8327_p6 = scmp.ne.s32.totalorder %s10708_s6, %s8326_s20  ;;  %p8330_p7 = scmp.lt.u32.totalorder %s8326_s20, %s10708_s6 }
  0x79   :  { %p8332_p8 = pnand %p8330_p7, %p8327_p6 }
  0x7b   :  { %8335 = shalt.err (!%p8332_p8)
}
  0x7c   :  { %s8336_s7 = scalar_lea.vmem %s70_s30, 9216  ;;  %p8341_p10 = scmp.lt.s32.totalorder %s70_s30, %s70_s30 }
  0x7d   :  { %p8337_p9 = scmp.ne.s32.totalorder %s70_s30, %s8336_s7  ;;  %p8342_p11 = scmp.lt.s32.totalorder %s8336_s7, %s8336_s7 }
  0x7f   :  { %p8343_p12 = por %p8342_p11, %p8341_p10 }
  0x81   :  { %p8344_p13 = pnand %p8343_p12, %p8337_p9 }
  0x83   :  { %8347 = shalt.err (!%p8344_p13)
}
  0x84   :  { %75 = dma.hbm_to_vmem [thread:$0]  %s10708_s6, 9216, %s70_s30, [#allocation8], %s8457_s16, %s8457_s16, %s8458_s29  }
  0x85   :  { %s8348_s3 = scalar_lea.hbm %s10710_s8, 256 }
  0x86   :  { %p8349_p0 = scmp.ne.s32.totalorder %s10710_s8, %s8348_s3  ;;  %p8352_p1 = scmp.lt.u32.totalorder %s8348_s3, %s10710_s8 }
  0x88   :  { %p8354_p2 = pnand %p8352_p1, %p8349_p0 }
  0x8a   :  { %8357 = shalt.err (!%p8354_p2)
}
  0x8b   :  { %s8358_s21 = scalar_lea.vmem %s95_s14, 256  ;;  %p8363_p4 = scmp.lt.s32.totalorder %s95_s14, %s95_s14 }
  0x8c   :  { %p8359_p3 = scmp.ne.s32.totalorder %s95_s14, %s8358_s21  ;;  %p8364_p5 = scmp.lt.s32.totalorder %s8358_s21, %s8358_s21 }
  0x8e   :  { %p8365_p6 = por %p8364_p5, %p8363_p4 }
  0x90   :  { %p8366_p7 = pnand %p8365_p6, %p8359_p3 }
  0x92   :  { %8369 = shalt.err (!%p8366_p7)
}
  0x93   :  { %97 = dma.hbm_to_vmem [thread:$0]  %s10710_s8, 256, %s95_s14, [#allocation11]  }
  0x94   :  { %s8461_s30 = smov [#allocation15]   ;;  %s8462_s23 = smov [#allocation18]  }
  0x95   :  { %s118_s20 = sshll.u32 %s8461_s30, 4  ;;  %s142_s2 = sshll.u32 %s8462_s23, 4  ;;  %s119_s20 = int_to_ptr.vmem [resolvable:$true] %s118_s20  ;;  %s143_s2 = int_to_ptr.vmem [resolvable:$true] %s142_s2 }
  0x96   :  { %s8370_s7 = scalar_lea.hbm %s10714_s12, 128 }
  0x97   :  { %p8371_p8 = scmp.ne.s32.totalorder %s10714_s12, %s8370_s7  ;;  %p8374_p9 = scmp.lt.u32.totalorder %s8370_s7, %s10714_s12 }
  0x99   :  { %p8376_p10 = pnand %p8374_p9, %p8371_p8 }
  0x9b   :  { %8379 = shalt.err (!%p8376_p10)
}
  0x9c   :  { %s8380_s8 = scalar_lea.vmem %s119_s20, 128  ;;  %p8385_p12 = scmp.lt.s32.totalorder %s119_s20, %s119_s20 }
  0x9d   :  { %p8381_p11 = scmp.ne.s32.totalorder %s119_s20, %s8380_s8  ;;  %p8386_p13 = scmp.lt.s32.totalorder %s8380_s8, %s8380_s8 }
  0x9f   :  { %p8387_p0 = por %p8386_p13, %p8385_p12 }
  0xa1   :  { %p8388_p1 = pnand %p8387_p0, %p8381_p11 }
  0xa3   :  { %8391 = shalt.err (!%p8388_p1)
}
  0xa4   :  { %121 = dma.hbm_to_vmem [thread:$0]  %s10714_s12, 128, %s119_s20, [#allocation14]  }
  0xa5   :  { %s8392_s0 = scalar_lea.hbm %s10717_s15, 16 }
  0xa6   :  { %p8393_p2 = scmp.ne.s32.totalorder %s10717_s15, %s8392_s0  ;;  %p8396_p3 = scmp.lt.u32.totalorder %s8392_s0, %s10717_s15 }
  0xa8   :  { %p8398_p4 = pnand %p8396_p3, %p8393_p2 }
  0xaa   :  { %8401 = shalt.err (!%p8398_p4)
}
  0xab   :  { %s8402_s30 = scalar_lea.vmem %s143_s2, 16  ;;  %s8406_s23 = scalar_lea.vmem %s143_s2, 32 }
  0xac   :  { %p8403_p5 = scmp.ne.s32.totalorder %s143_s2, %s8402_s30  ;;  %p8407_p6 = scmp.lt.s32.totalorder %s143_s2, %s143_s2 }
  0xad   :  { %p8408_p7 = scmp.lt.s32.totalorder %s8406_s23, %s8402_s30 }
  0xaf   :  { %p8409_p8 = por %p8408_p7, %p8407_p6 }
  0xb1   :  { %p8410_p9 = pnand %p8409_p8, %p8403_p5 }
  0xb3   :  { %8413 = shalt.err (!%p8410_p9)
}
  0xb4   :  { %145 = dma.hbm_to_vmem [thread:$0]  %s10717_s15, 16, %s143_s2, [#allocation17]  }
  0xb5   :  { %s8463_s25 = smov [#allocation21]   ;;  %s8414_s4 = scalar_lea.hbm %s10719_s17, 16 }
  0xb6   :  { %s164_s26 = sshll.u32 %s8463_s25, 4  ;;  %p8415_p10 = scmp.ne.s32.totalorder %s10719_s17, %s8414_s4  ;;  %s165_s26 = int_to_ptr.vmem [resolvable:$true] %s164_s26 }
  0xb7   :  { %p8418_p11 = scmp.lt.u32.totalorder %s8414_s4, %s10719_s17 }
  0xb9   :  { %p8420_p12 = pnand %p8418_p11, %p8415_p10 }
  0xbb   :  { %8423 = shalt.err (!%p8420_p12)
}
  0xbc   :  { %s8424_s3 = scalar_lea.vmem %s165_s26, 16  ;;  %s8428_s15 = scalar_lea.vmem %s165_s26, 32 }
  0xbd   :  { %p8425_p13 = scmp.ne.s32.totalorder %s165_s26, %s8424_s3  ;;  %p8429_p0 = scmp.lt.s32.totalorder %s165_s26, %s165_s26 }
  0xbe   :  { %p8430_p1 = scmp.lt.s32.totalorder %s8428_s15, %s8424_s3 }
  0xc0   :  { %p8431_p2 = por %p8430_p1, %p8429_p0 }
  0xc2   :  { %p8432_p3 = pnand %p8431_p2, %p8425_p13 }
  0xc4   :  { %8435 = shalt.err (!%p8432_p3)
}
  0xc5   :  { %167 = dma.hbm_to_vmem [thread:$0]  %s10719_s17, 16, %s165_s26, [#allocation20]  }
  0xc6   :  { %8436 = dma.done.wait [#allocation6], 8192  }
  0xc7   :  { %8437 = vsyncadd [#allocation6], 4294959104 }
  0xc8   :  { %8438 = dma.done.wait [#allocation8], 140288  }
  0xc9   :  { %8439 = vsyncadd [#allocation8], 4294827008 }
  0xca   :  { %8440 = dma.done.wait [#allocation11], 18688  }
  0xcb   :  { %8441 = vsyncadd [#allocation11], 4294948608 }
  0xcc   :  { %8442 = dma.done.wait [#allocation14], 256  }
  0xcd   :  { %8443 = vsyncadd [#allocation14], 4294967040 }
  0xce   :  { %8444 = dma.done.wait [#allocation17], 528  }
  0xcf   :  { %8445 = vsyncadd [#allocation17], 4294966768 }
  0xd0   :  { %8446 = dma.done.wait [#allocation20], 528  }
  0xd1   :  { %8447 = vsyncadd [#allocation20], 4294966768  ;;  %v8464_v0 = vmov 0   ;;  %vm237_vm0 = vcmask 261120   ;;  %s10747_s27 = sld [smem:[#allocation35_spill]]  ;;  %s10748_s25 = sld [smem:[#allocation36_spill]] }
  0xd2   :  { %8127 = vset.pattern.permute.xlu1 %v8464_v0  ;;  %8128 = vset.pattern.permute.xlu0 %v8464_v0  ;;  %s10749_s3 = sld [smem:[#allocation37_spill]]  ;;  %vm559_vm1 = vcmask 64512   ;;  %s8465_s12 = smov 16   ;;  %v750_v54 = vld [vmem:[#allocation5 + $0x8] sm:$0xff]  ;;  %v749_v58 = vld [vmem:[#allocation5] sm:$0xff]  ;;  %vm570_vm2 = vcmask 130112  }
  0xd3   :  { %s8467_s20 = smov 40   ;;  %s8468_s26 = smov 48   ;;  %v754_v55 = vld [vmem:[#allocation5 + $0x28] sm:$0xff]  ;;  %v753_v59 = vld [vmem:[#allocation5 + $0x20] sm:$0xff]  ;;  %vm581_vm3 = vcmask 195712   ;;  %vm592_vm4 = vcmask 261312  }
  0xd4   :  { %v6650_v57 = vpack.c.bf16 %v754_v55, %v750_v54  ;;  %v6652_v61 = vpack.c.bf16 %v753_v59, %v749_v58  ;;  %s8469_s7 = smov 56   ;;  %v758_v62 = vld [vmem:[#allocation5 + $0x48] sm:$0xff]  ;;  %s8470_s24 = smov 64   ;;  %v805_v55 = vld [vmem:[#allocation5 + $0x1c0] sm:$0xff]  ;;  %vm603_vm5 = vcmask 326912   ;;  %vm614_vm6 = vcmask 392512  }
  0xd5   :  { %v762_v63 = vld [vmem:[#allocation5 + $0x68] sm:$0xff]  ;;  %s8471_s4 = smov 72   ;;  %s8472_s1 = smov 80   ;;  %vm625_vm7 = vcmask 458112   ;;  %vm636_vm8 = vcmask 523712   ;;  %vm647_vm9 = vcmask 589312  }
  0xd6   :  { %6651 = vmatprep.subr.bf16.mxu1 %v6650_v57  ;;  %s8473_s28 = smov 88   ;;  %s8474_s8 = smov 96   ;;  %v809_v57 = vld [vmem:[#allocation5 + $0x1e0] sm:$0xff]  ;;  %vm658_vm10 = vcmask 654912   ;;  %vm669_vm11 = vcmask 720512   ;;  %vm680_vm12 = vcmask 786112  }
  0xd7   :  { %v233_v1 = vld [vmem:[%s10747_s27] sm:$0xff]  ;;  %v234_v2 = vld [vmem:[%s10747_s27 + $0x8] sm:$0xff]  ;;  %v235_v3 = vld [vmem:[%s10747_s27 + $0x10] sm:$0xff]  ;;  %6653 = vmatpush1.bf16.msra.mxu1 %v6652_v61  ;;  %s8475_s14 = smov 104   ;;  %v6680_v59 = vpack.c.bf16 %v809_v57, %v805_v55  ;;  %s8476_s15 = smov 112   ;;  %vm691_vm13 = vcmask 851712  }
  0xd8   :  { %v6642_v4 = vpack.c.bf16 %v234_v2, %v233_v1  ;;  %v236_v5 = vld [vmem:[%s10747_s27 + $0x18] sm:$0xff]  ;;  %v201_v6 = vld [vmem:[%s10748_s25] sm:$0xff]  ;;  %v202_v8 = vld [vmem:[%s10748_s25 + $0x8] sm:$0xff]  ;;  %v6654_v1 = vpack.c.bf16 %v762_v63, %v758_v62  ;;  %v10727_v62 = vmov 0.0   ;;  %s8478_s2 = smov 120   ;;  %vm702_vm14 = vcmask 917312  }
  0xd9   :  { %v6646_v7 = vpack.c.bf16 %v236_v5, %v235_v3  ;;  %6572 = vmatprep.mubr.msk.f32.mxu0 %vm237_vm0, %v201_v6  ;;  %v203_v9 = vld [vmem:[%s10748_s25 + $0x10] sm:$0xff]  ;;  %v204_v10 = vld [vmem:[%s10748_s25 + $0x18] sm:$0xff]  ;;  %v729_v11 = vld [vmem:[%s10749_s3] sm:$0xff]  ;;  %877 = vmatprep.mubr.f32.mxu1 %v10727_v62  ;;  %vm713_vm15 = vcmask 982912  }
  0xda   :  { %6643 = vmatprep.subr.bf16.mxu0 %v6642_v4  ;;  %v205_v12 = vld [vmem:[%s10748_s25 + $0x20] sm:$0xff]  ;;  %733 = vperm.xlu1 %8127, %v729_v11   ;;  %v206_v13 = vld [vmem:[%s10748_s25 + $0x28] sm:$0xff]  ;;  %v207_v14 = vld [vmem:[%s10748_s25 + $0x30] sm:$0xff] }
  0xdb   :  { %6645 = vmatpush3.bf16.msra.mxu0 %v6642_v4  ;;  %v208_v15 = vld [vmem:[%s10748_s25 + $0x38] sm:$0xff]  ;;  %v209_v16 = vld [vmem:[%s10748_s25 + $0x40] sm:$0xff]  ;;  %v210_v17 = vld [vmem:[%s10748_s25 + $0x48] sm:$0xff]  ;;  %6655 = vmatprep.subr.bf16.mxu1 %v6654_v1 }
  0xdc   :  { %6647 = vmatprep.subr.bf16.mxu0 %v6646_v7  ;;  %v211_v18 = vld [vmem:[%s10748_s25 + $0x50] sm:$0xff]  ;;  %v212_v19 = vld [vmem:[%s10748_s25 + $0x58] sm:$0xff]  ;;  %v213_v20 = vld [vmem:[%s10748_s25 + $0x60] sm:$0xff] }
  0xdd   :  { %v214_v21 = vld [vmem:[%s10748_s25 + $0x68] sm:$0xff]  ;;  %v215_v22 = vld [vmem:[%s10748_s25 + $0x70] sm:$0xff]  ;;  %v216_v23 = vld [vmem:[%s10748_s25 + $0x78] sm:$0xff] }
  0xde   :  { %v217_v24 = vld [vmem:[%s10748_s25 + $0x80] sm:$0xff]  ;;  %v218_v25 = vld [vmem:[%s10748_s25 + $0x88] sm:$0xff]  ;;  %v219_v26 = vld [vmem:[%s10748_s25 + $0x90] sm:$0xff] }
  0xdf   :  { %6649 = vmatpush3.bf16.msra.mxu0 %v6646_v7  ;;  %v220_v27 = vld [vmem:[%s10748_s25 + $0x98] sm:$0xff]  ;;  %v221_v28 = vld [vmem:[%s10748_s25 + $0xa0] sm:$0xff]  ;;  %v222_v29 = vld [vmem:[%s10748_s25 + $0xa8] sm:$0xff] }
  0xe0   :  { %v223_v30 = vld [vmem:[%s10748_s25 + $0xb0] sm:$0xff]  ;;  %v224_v31 = vld [vmem:[%s10748_s25 + $0xb8] sm:$0xff]  ;;  %v225_v32 = vld [vmem:[%s10748_s25 + $0xc0] sm:$0xff] }
  0xe1   :  { %v226_v33 = vld [vmem:[%s10748_s25 + $0xc8] sm:$0xff]  ;;  %v227_v34 = vld [vmem:[%s10748_s25 + $0xd0] sm:$0xff]  ;;  %v228_v35 = vld [vmem:[%s10748_s25 + $0xd8] sm:$0xff] }
  0xe2   :  { %6573 = vmatmul.mubr.msk.f32.vlgmr.msra.gmra.mrb[0].mxu0 %vm237_vm0, %v202_v8  ;;  %v229_v36 = vld [vmem:[%s10748_s25 + $0xe0] sm:$0xff]  ;;  %v230_v37 = vld [vmem:[%s10748_s25 + $0xe8] sm:$0xff]  ;;  %v231_v38 = vld [vmem:[%s10748_s25 + $0xf0] sm:$0xff] }
  0xe3   :  { %6575 = vmatprep.mubr.msk.f32.mxu0 %vm237_vm0, %v203_v9  ;;  %v232_v39 = vld [vmem:[%s10748_s25 + $0xf8] sm:$0xff]  ;;  %s8466_s25 = smov 24   ;;  %v757_v2 = vld [vmem:[#allocation5 + $0x40] sm:$0xff]  ;;  %v752_v63 = vld [vmem:[#allocation5 + $0x18] sm:$0xff] }
  0xe4   :  { %v761_v3 = vld [vmem:[#allocation5 + $0x60] sm:$0xff]  ;;  %v766_v6 = vld [vmem:[#allocation5 + $0x88] sm:$0xff]  ;;  %v756_v1 = vld [vmem:[#allocation5 + $0x38] sm:$0xff] }
  0xe5   :  { %v6656_v5 = vpack.c.bf16 %v761_v3, %v757_v2  ;;  %v770_v7 = vld [vmem:[#allocation5 + $0xa8] sm:$0xff]  ;;  %v769_v11 = vld [vmem:[#allocation5 + $0xa0] sm:$0xff]  ;;  %v6682_v2 = vpack.c.bf16 %v756_v1, %v752_v63  ;;  %v788_v55 = vld [vmem:[#allocation5 + $0x138] sm:$0xff] }
  0xe6   :  { %6576 = vmatmul.mubr.msk.f32.gmra.mrb[2].mxu0 %vm237_vm0, %v204_v10  ;;  %v6658_v9 = vpack.c.bf16 %v770_v7, %v766_v6  ;;  %v765_v10 = vld [vmem:[#allocation5 + $0x80] sm:$0xff]  ;;  %v787_v63 = vld [vmem:[#allocation5 + $0x130] sm:$0xff]  ;;  %v792_v1 = vld [vmem:[#allocation5 + $0x158] sm:$0xff] }
  0xe7   :  { %6578 = vmatprep.mubr.msk.f32.mxu0 %vm237_vm0, %v205_v12  ;;  %6657 = vmatpush1.bf16.msra.mxu1 %v6656_v5 }
  0xe8   :  { %6659 = vmatprep.subr.bf16.mxu1 %v6658_v9 }
  0xea   :  { %6579 = vmatmul.mubr.msk.f32.gmra.mrb[4].mxu0 %vm237_vm0, %v206_v13  ;;  %v6660_v13 = vpack.c.bf16 %v769_v11, %v765_v10 }
  0xeb   :  { %6581 = vmatprep.mubr.msk.f32.mxu0 %vm237_vm0, %v207_v14  ;;  %v774_v14 = vld [vmem:[#allocation5 + $0xc8] sm:$0xff] }
  0xec   :  { %6661 = vmatpush1.bf16.msra.mxu1 %v6660_v13 }
  0xee   :  { %6582 = vmatmul.mubr.msk.f32.gmra.mrb[6].mxu0 %vm237_vm0, %v208_v15  ;;  %v778_v15 = vld [vmem:[#allocation5 + $0xe8] sm:$0xff] }
  0xef   :  { %6584 = vmatprep.mubr.msk.f32.mxu0 %vm237_vm0, %v209_v16 }
  0xf2   :  { %6585 = vmatmul.mubr.msk.f32.gmra.mrb[8].mxu0 %vm237_vm0, %v210_v17  ;;  %v6662_v17 = vpack.c.bf16 %v778_v15, %v774_v14 }
  0xf3   :  { %6587 = vmatprep.mubr.msk.f32.mxu0 %vm237_vm0, %v211_v18  ;;  %v773_v18 = vld [vmem:[#allocation5 + $0xc0] sm:$0xff] }
  0xf4   :  { %6663 = vmatprep.subr.bf16.mxu1 %v6662_v17 }
  0xf6   :  { %6588 = vmatmul.mubr.msk.f32.gmra.mrb[10].mxu0 %vm237_vm0, %v212_v19  ;;  %v777_v19 = vld [vmem:[#allocation5 + $0xe0] sm:$0xff] }
  0xf7   :  { %6590 = vmatprep.mubr.msk.f32.mxu0 %vm237_vm0, %v213_v20 }
  0xfa   :  { %6591 = vmatmul.mubr.msk.f32.gmra.mrb[12].mxu0 %vm237_vm0, %v214_v21  ;;  %v6664_v21 = vpack.c.bf16 %v777_v19, %v773_v18 }
  0xfb   :  { %6593 = vmatprep.mubr.msk.f32.mxu0 %vm237_vm0, %v215_v22  ;;  %v782_v22 = vld [vmem:[#allocation5 + $0x108] sm:$0xff] }
  0xfc   :  { %6665 = vmatpush1.bf16.msra.mxu1 %v6664_v21  ;;  %v755_v21 = vld [vmem:[#allocation5 + $0x30] sm:$0xff] }
  0xfe   :  { %6594 = vmatmul.mubr.msk.f32.gmra.mrb[14].mxu0 %vm237_vm0, %v216_v23  ;;  %v786_v23 = vld [vmem:[#allocation5 + $0x128] sm:$0xff] }
  0xff   :  { %6596 = vmatprep.mubr.msk.f32.mxu0 %vm237_vm0, %v217_v24 }
 0x102   :  { %6597 = vmatmul.mubr.msk.f32.gmra.mrb[16].mxu0 %vm237_vm0, %v218_v25  ;;  %v6666_v25 = vpack.c.bf16 %v786_v23, %v782_v22  ;;  %v760_v23 = vld [vmem:[#allocation5 + $0x58] sm:$0xff] }
 0x103   :  { %6599 = vmatprep.mubr.msk.f32.mxu0 %vm237_vm0, %v219_v26  ;;  %v781_v26 = vld [vmem:[#allocation5 + $0x100] sm:$0xff] }
 0x104   :  { %6667 = vmatprep.subr.bf16.mxu1 %v6666_v25 }
 0x106   :  { %6600 = vmatmul.mubr.msk.f32.gmra.mrb[18].mxu0 %vm237_vm0, %v220_v27  ;;  %v785_v27 = vld [vmem:[#allocation5 + $0x120] sm:$0xff] }
 0x107   :  { %6602 = vmatprep.mubr.msk.f32.mxu0 %vm237_vm0, %v221_v28 }
 0x10a   :  { %6603 = vmatmul.mubr.msk.f32.gmra.mrb[20].mxu0 %vm237_vm0, %v222_v29  ;;  %v6668_v29 = vpack.c.bf16 %v785_v27, %v781_v26 }
 0x10b   :  { %6605 = vmatprep.mubr.msk.f32.mxu0 %vm237_vm0, %v223_v30  ;;  %v790_v30 = vld [vmem:[#allocation5 + $0x148] sm:$0xff] }
 0x10c   :  { %6669 = vmatpush1.bf16.msra.mxu1 %v6668_v29 }
 0x10e   :  { %6606 = vmatmul.mubr.msk.f32.gmra.mrb[22].mxu0 %vm237_vm0, %v224_v31  ;;  %v794_v31 = vld [vmem:[#allocation5 + $0x168] sm:$0xff] }
 0x10f   :  { %6608 = vmatprep.mubr.msk.f32.mxu0 %vm237_vm0, %v225_v32 }
 0x112   :  { %6609 = vmatmul.mubr.msk.f32.gmra.mrb[24].mxu0 %vm237_vm0, %v226_v33  ;;  %v6670_v33 = vpack.c.bf16 %v794_v31, %v790_v30  ;;  %v759_v30 = vld [vmem:[#allocation5 + $0x50] sm:$0xff] }
 0x113   :  { %6611 = vmatprep.mubr.msk.f32.mxu0 %vm237_vm0, %v227_v34  ;;  %v789_v34 = vld [vmem:[#allocation5 + $0x140] sm:$0xff]  ;;  %v763_v31 = vld [vmem:[#allocation5 + $0x70] sm:$0xff] }
 0x114   :  { %6671 = vmatprep.subr.bf16.mxu1 %v6670_v33  ;;  %v768_v33 = vld [vmem:[#allocation5 + $0x98] sm:$0xff] }
 0x116   :  { %6612 = vmatmul.mubr.msk.f32.gmra.mrb[26].mxu0 %vm237_vm0, %v228_v35  ;;  %v793_v35 = vld [vmem:[#allocation5 + $0x160] sm:$0xff] }
 0x117   :  { %6614 = vmatprep.mubr.msk.f32.mxu0 %vm237_vm0, %v229_v36 }
 0x11a   :  { %6615 = vmatmul.mubr.msk.f32.gmra.mrb[28].mxu0 %vm237_vm0, %v230_v37  ;;  %v6672_v37 = vpack.c.bf16 %v793_v35, %v789_v34  ;;  %v772_v34 = vld [vmem:[#allocation5 + $0xb8] sm:$0xff]  ;;  %v6688_v35 = vpack.c.bf16 %v763_v31, %v759_v30 }
 0x11b   :  { %6617 = vmatprep.mubr.msk.f32.mxu0 %vm237_vm0, %v231_v38  ;;  %v798_v38 = vld [vmem:[#allocation5 + $0x188] sm:$0xff] }
 0x11c   :  { %6673 = vmatpush1.bf16.msra.mxu1 %v6672_v37 }
 0x11e   :  { %6618 = vmatmul.mubr.msk.f32.gmra.mrb[30].mxu0 %vm237_vm0, %v232_v39  ;;  %v802_v39 = vld [vmem:[#allocation5 + $0x1a8] sm:$0xff] }
 0x1b5   :  { %v6574_v40 = vpop.f32.mrb[0].mxu0 }
 0x1b6   :  { %561 = vst.msk [vmem:[#allocation2 + $0x8] sm:$0xff] %vm559_vm1, %v6574_v40  ;;  %v400_v41 = vpop.f32.mrb[1].mxu0 }
 0x1b7   :  { %560 = vst.msk [vmem:[#allocation2] sm:$0xff] %vm559_vm1, %v400_v41  ;;  %v6674_v41 = vpack.c.bf16 %v802_v39, %v798_v38  ;;  %vm724_vm1 = vcmask 1048512   ;;  %v6690_v38 = vpack.c.bf16 %v772_v34, %v768_v33  ;;  %v767_v39 = vld [vmem:[#allocation5 + $0x90] sm:$0xff] }
 0x1b9   :  { %v6577_v42 = vpop.f32.mrb[2].mxu0  ;;  %6675 = vmatprep.subr.bf16.mxu1 %v6674_v41  ;;  %v776_v41 = vld [vmem:[#allocation5 + $0xd8] sm:$0xff] }
 0x1ba   :  { %566 = vrot.lane.b32.xlu0 %v6577_v42, %s8454_s10  ;;  %v410_v43 = vpop.f32.mrb[3].mxu0  ;;  %v797_v42 = vld [vmem:[#allocation5 + $0x180] sm:$0xff] }
 0x1bd   :  { %v8872_v44 = vpop.f32.mrb[4].mxu0 }
 0x1be   :  { %564 = vrot.lane.b32.xlu0 %v410_v43, %s8454_s10  ;;  %v420_v45 = vpop.f32.mrb[5].mxu0  ;;  %v801_v43 = vld [vmem:[#allocation5 + $0x1a0] sm:$0xff] }
 0x1c1   :  { %v8875_v46 = vpop.f32.mrb[6].mxu0 }
 0x1c2   :  { %575 = vrot.lane.b32.xlu0 %v420_v45, %s8465_s12  ;;  %v430_v47 = vpop.f32.mrb[7].mxu0 }
 0x1c3   :  { %586 = vrot.lane.b32.xlu1 %v430_v47, %s8466_s25  ;;  %v6676_v47 = vpack.c.bf16 %v801_v43, %v797_v42  ;;  %v780_v42 = vld [vmem:[#allocation5 + $0xf8] sm:$0xff] }
 0x1c5   :  { %v8879_v48 = vpop.f32.mrb[8].mxu0  ;;  %6677 = vmatpush1.bf16.msra.mxu1 %v6676_v47 }
 0x1c6   :  { %v440_v49 = vpop.f32.mrb[9].mxu0 }
 0x1c7   :  { %597 = vrot.lane.b32.xlu1 %v440_v49, %s8458_s29  ;;  %v806_v49 = vld [vmem:[#allocation5 + $0x1c8] sm:$0xff] }
 0x1c9   :  { %v8882_v50 = vpop.f32.mrb[10].mxu0 }
 0x1ca   :  { %v450_v51 = vpop.f32.mrb[11].mxu0 }
 0x1cb   :  { %608 = vrot.lane.b32.xlu0 %v450_v51, %s8467_s20  ;;  %v810_v51 = vld [vmem:[#allocation5 + $0x1e8] sm:$0xff] }
 0x1cc   :  { %v6678_v54 = vpack.c.bf16 %v810_v51, %v806_v49  ;;  %v6694_v49 = vpack.c.bf16 %v780_v42, %v776_v41  ;;  %v775_v51 = vld [vmem:[#allocation5 + $0xd0] sm:$0xff] }
 0x1cd   :  { %v8885_v52 = vpop.f32.mrb[12].mxu0 }
 0x1ce   :  { %v460_v53 = vpop.f32.mrb[13].mxu0  ;;  %6679 = vmatprep.subr.bf16.mxu1 %v6678_v54  ;;  %v784_v54 = vld [vmem:[#allocation5 + $0x118] sm:$0xff] }
 0x1cf   :  { %619 = vrot.lane.b32.xlu1 %v460_v53, %s8468_s26  ;;  %6681 = vmatpush1.bf16.msra.mxu1 %v6680_v59 }
 0x1d0   :  { %6683 = vmatprep.subr.bf16.mxu1 %v6682_v2  ;;  %v796_v2 = vld [vmem:[#allocation5 + $0x178] sm:$0xff] }
 0x1d1   :  { %v8888_v56 = vpop.f32.mrb[14].mxu0 }
 0x1d2   :  { %v470_v60 = vpop.f32.mrb[15].mxu0 }
 0x1d3   :  { %630 = vrot.lane.b32.xlu0 %v470_v60, %s8469_s7 }
 0x1d5   :  { %v8891_v0 = vpop.f32.mrb[16].mxu0 }
 0x1d6   :  { %v480_v4 = vpop.f32.mrb[17].mxu0 }
 0x1d7   :  { %641 = vrot.lane.b32.xlu1 %v480_v4, %s8470_s24 }
 0x1d9   :  { %v8894_v8 = vpop.f32.mrb[18].mxu0 }
 0x1da   :  { %v490_v12 = vpop.f32.mrb[19].mxu0 }
 0x1db   :  { %652 = vrot.lane.b32.xlu0 %v490_v12, %s8471_s4 }
 0x1dd   :  { %v8897_v16 = vpop.f32.mrb[20].mxu0 }
 0x1de   :  { %v500_v20 = vpop.f32.mrb[21].mxu0 }
 0x1df   :  { %663 = vrot.lane.b32.xlu1 %v500_v20, %s8472_s1  ;;  %v751_v20 = vld [vmem:[#allocation5 + $0x10] sm:$0xff] }
 0x1e0   :  { %v6684_v26 = vpack.c.bf16 %v755_v21, %v751_v20  ;;  %v1165_v21 = vld [vmem:[#allocation9 + $0x100] sm:$0xff] }
 0x1e1   :  { %v8900_v24 = vpop.f32.mrb[22].mxu0 }
 0x1e2   :  { %v510_v28 = vpop.f32.mrb[23].mxu0 }
 0x1e3   :  { %674 = vrot.lane.b32.xlu0 %v510_v28, %s8473_s28 }
 0x1e5   :  { %v6610_v32 = vpop.f32.mrb[24].mxu0 }
 0x1e6   :  { %v520_v36 = vpop.f32.mrb[25].mxu0 }
 0x1e7   :  { %685 = vrot.lane.b32.xlu1 %v520_v36, %s8474_s8 }
 0x1e9   :  { %v6613_v40 = vpop.f32.mrb[26].mxu0 }
 0x1ea   :  { %v530_v45 = vpop.f32.mrb[27].mxu0 }
 0x1eb   :  { %696 = vrot.lane.b32.xlu0 %v530_v45, %s8475_s14 }
 0x1ed   :  { %v6616_v53 = vpop.f32.mrb[28].mxu0 }
 0x1ee   :  { %v540_v58 = vpop.f32.mrb[29].mxu0 }
 0x1ef   :  { %707 = vrot.lane.b32.xlu1 %v540_v58, %s8476_s15 }
 0x1f1   :  { %v6619_v60 = vpop.f32.mrb[30].mxu0 }
 0x1f2   :  { %v550_v61 = vpop.f32.mrb[31].mxu0 }
 0x1f3   :  { %577 = vrot.lane.b32.xlu1 %v8872_v44, %s8465_s12  ;;  %718 = vrot.lane.b32.xlu0 %v550_v61, %s8478_s2  ;;  %v730_v44 = vld [vmem:[%s10749_s3 + $0x8] sm:$0xff]  ;;  %v783_v61 = vld [vmem:[#allocation5 + $0x110] sm:$0xff]  ;;  %s10777_s12 = sld [smem:[#allocation34_spill]] }
 0x1f7   :  { %599 = vrot.lane.b32.xlu1 %v8879_v48, %s8458_s29  ;;  %588 = vrot.lane.b32.xlu0 %v8875_v46, %s8466_s25  ;;  %v734_v48 = vpop.permute.xlu1 %733 }
 0x1fb   :  { %621 = vrot.lane.b32.xlu1 %v8885_v52, %s8468_s26  ;;  %610 = vrot.lane.b32.xlu0 %v8882_v50, %s8467_s20 }
 0x1ff   :  { %643 = vrot.lane.b32.xlu1 %v8891_v0, %s8470_s24  ;;  %632 = vrot.lane.b32.xlu0 %v8888_v56, %s8469_s7 }
 0x203   :  { %665 = vrot.lane.b32.xlu1 %v8897_v16, %s8472_s1  ;;  %654 = vrot.lane.b32.xlu0 %v8894_v8, %s8471_s4 }
 0x207   :  { %687 = vrot.lane.b32.xlu1 %v6610_v32, %s8474_s8  ;;  %676 = vrot.lane.b32.xlu0 %v8900_v24, %s8473_s28  ;;  %v764_v24 = vld [vmem:[#allocation5 + $0x78] sm:$0xff] }
 0x208   :  { %v6686_v29 = vpack.c.bf16 %v764_v24, %v760_v23  ;;  %v1166_v23 = vld [vmem:[#allocation9 + $0x108] sm:$0xff] }
 0x209   :  { %v1170_v24 = vld [vmem:[#allocation9 + $0x128] sm:$0xff] }
 0x20b   :  { %709 = vrot.lane.b32.xlu1 %v6616_v53, %s8476_s15  ;;  %698 = vrot.lane.b32.xlu0 %v6613_v40, %s8475_s14  ;;  %v771_v40 = vld [vmem:[#allocation5 + $0xb0] sm:$0xff] }
 0x20c   :  { %v6692_v43 = vpack.c.bf16 %v771_v40, %v767_v39  ;;  %v779_v53 = vld [vmem:[#allocation5 + $0xf0] sm:$0xff] }
 0x20d   :  { %v6696_v57 = vpack.c.bf16 %v779_v53, %v775_v51  ;;  %v1311_v51 = vld [vmem:[#allocation12 + $0x8] sm:$0xff] }
 0x20f   :  { %738 = vperm.xlu1 %8127, %v730_v44   ;;  %720 = vrot.lane.b32.xlu0 %v6619_v60, %s8478_s2  ;;  %v6698_v60 = vpack.c.bf16 %v788_v55, %v784_v54  ;;  %v6700_v44 = vpack.c.bf16 %v787_v63, %v783_v61 }
 0x22c   :  { %v567_v46 = vpop.permute.xlu0 %566 }
 0x22d   :  { %572 = vst.msk [vmem:[#allocation2 + $0x8] sm:$0xff] %vm570_vm2, %v567_v46 }
 0x230   :  { %v565_v50 = vpop.permute.xlu0 %564 }
 0x231   :  { %571 = vst.msk [vmem:[#allocation2] sm:$0xff] %vm570_vm2, %v565_v50  ;;  %v791_v50 = vld [vmem:[#allocation5 + $0x150] sm:$0xff] }
 0x234   :  { %v576_v52 = vpop.permute.xlu0 %575 }
 0x235   :  { %582 = vst.msk [vmem:[#allocation2] sm:$0xff] %vm581_vm3, %v576_v52  ;;  %v587_v56 = vpop.permute.xlu1 %586  ;;  %v795_v52 = vld [vmem:[#allocation5 + $0x170] sm:$0xff] }
 0x236   :  { %593 = vst.msk [vmem:[#allocation2] sm:$0xff] %vm592_vm4, %v587_v56  ;;  %v800_v56 = vld [vmem:[#allocation5 + $0x198] sm:$0xff] }
 0x239   :  { %v598_v0 = vpop.permute.xlu1 %597 }
 0x23a   :  { %604 = vst.msk [vmem:[#allocation2] sm:$0xff] %vm603_vm5, %v598_v0  ;;  %v804_v0 = vld [vmem:[#allocation5 + $0x1b8] sm:$0xff] }
 0x23d   :  { %v609_v3 = vpop.permute.xlu0 %608 }
 0x23e   :  { %615 = vst.msk [vmem:[#allocation2] sm:$0xff] %vm614_vm6, %v609_v3  ;;  %v6704_v3 = vpack.c.bf16 %v795_v52, %v791_v50 }
 0x241   :  { %v620_v4 = vpop.permute.xlu1 %619 }
 0x242   :  { %626 = vst.msk [vmem:[#allocation2] sm:$0xff] %vm625_vm7, %v620_v4  ;;  %v6706_v4 = vpack.c.bf16 %v804_v0, %v800_v56  ;;  %v995_v0 = vld [vmem:[#allocation9 + $0x8] sm:$0xff] }
 0x245   :  { %v631_v5 = vpop.permute.xlu0 %630 }
 0x246   :  { %637 = vst.msk [vmem:[#allocation2] sm:$0xff] %vm636_vm8, %v631_v5  ;;  %v799_v5 = vld [vmem:[#allocation5 + $0x190] sm:$0xff] }
 0x249   :  { %v642_v6 = vpop.permute.xlu1 %641 }
 0x24a   :  { %648 = vst.msk [vmem:[#allocation2] sm:$0xff] %vm647_vm9, %v642_v6  ;;  %v803_v6 = vld [vmem:[#allocation5 + $0x1b0] sm:$0xff] }
 0x24d   :  { %v653_v7 = vpop.permute.xlu0 %652 }
 0x24e   :  { %659 = vst.msk [vmem:[#allocation2] sm:$0xff] %vm658_vm10, %v653_v7  ;;  %v808_v7 = vld [vmem:[#allocation5 + $0x1d8] sm:$0xff] }
 0x251   :  { %v664_v8 = vpop.permute.xlu1 %663 }
 0x252   :  { %670 = vst.msk [vmem:[#allocation2] sm:$0xff] %vm669_vm11, %v664_v8  ;;  %v812_v8 = vld [vmem:[#allocation5 + $0x1f8] sm:$0xff] }
 0x255   :  { %v675_v9 = vpop.permute.xlu0 %674 }
 0x256   :  { %681 = vst.msk [vmem:[#allocation2] sm:$0xff] %vm680_vm12, %v675_v9  ;;  %v6708_v9 = vpack.c.bf16 %v803_v6, %v799_v5 }
 0x259   :  { %v686_v10 = vpop.permute.xlu1 %685 }
 0x25a   :  { %692 = vst.msk [vmem:[#allocation2] sm:$0xff] %vm691_vm13, %v686_v10  ;;  %v6710_v10 = vpack.c.bf16 %v812_v8, %v808_v7 }
 0x25d   :  { %v697_v11 = vpop.permute.xlu0 %696 }
 0x25e   :  { %703 = vst.msk [vmem:[#allocation2] sm:$0xff] %vm702_vm14, %v697_v11  ;;  %v807_v11 = vld [vmem:[#allocation5 + $0x1d0] sm:$0xff] }
 0x261   :  { %v708_v12 = vpop.permute.xlu1 %707 }
 0x262   :  { %714 = vst.msk [vmem:[#allocation2] sm:$0xff] %vm713_vm15, %v708_v12  ;;  %v811_v12 = vld [vmem:[#allocation5 + $0x1f0] sm:$0xff] }
 0x265   :  { %v578_v13 = vpop.permute.xlu1 %577  ;;  %v719_v14 = vpop.permute.xlu0 %718 }
 0x266   :  { %583 = vst.msk [vmem:[#allocation2 + $0x8] sm:$0xff] %vm581_vm3, %v578_v13  ;;  %v6712_v13 = vpack.c.bf16 %v811_v12, %v807_v11 }
 0x267   :  { %725 = vst.msk [vmem:[#allocation2] sm:$0xff] %vm724_vm1, %v719_v14 }
 0x269   :  { %v600_v15 = vpop.permute.xlu1 %599  ;;  %v589_v16 = vpop.permute.xlu0 %588 }
 0x26a   :  { %594 = vst.msk [vmem:[#allocation2 + $0x8] sm:$0xff] %vm592_vm4, %v589_v16  ;;  %vm1390_vm4 = vcmask 130048  }
 0x26b   :  { %605 = vst.msk [vmem:[#allocation2 + $0x8] sm:$0xff] %vm603_vm5, %v600_v15  ;;  %6496 = vmatprep.mubr.msk.f32.mxu0 %vm1390_vm4, %v1311_v51 }
 0x26d   :  { %v622_v17 = vpop.permute.xlu1 %621  ;;  %v611_v18 = vpop.permute.xlu0 %610 }
 0x26e   :  { %v727_v19 = vld [vmem:[#allocation2] sm:$0xff]  ;;  %616 = vst.msk [vmem:[#allocation2 + $0x8] sm:$0xff] %vm614_vm6, %v611_v18 }
 0x26f   :  { %v741_v22 = vadd.f32 %v734_v48, %v727_v19  ;;  %627 = vst.msk [vmem:[#allocation2 + $0x8] sm:$0xff] %vm625_vm7, %v622_v17  ;;  %v6702_v48 = vpack.c.bf16 %v796_v2, %v792_v1  ;;  %v983_v2 = vlaneseq }
 0x271   :  { %vm743_vm2 = vcmp.gt.f32.partialorder %v741_v22, 0.0  ;;  %v745_v25 = vmul.f32 0.2, %v741_v22  ;;  %v644_v27 = vpop.permute.xlu1 %643  ;;  %v633_v28 = vpop.permute.xlu0 %632 }
 0x272   :  { %638 = vst.msk [vmem:[#allocation2 + $0x8] sm:$0xff] %vm636_vm8, %v633_v28 }
 0x273   :  { %v8953_v32 = vsel %vm743_vm2, %v741_v22, %v745_v25  ;;  %649 = vst.msk [vmem:[#allocation2 + $0x8] sm:$0xff] %vm647_vm9, %v644_v27  ;;  %v1169_v22 = vld [vmem:[#allocation9 + $0x120] sm:$0xff] }
 0x274   :  { %878 = vmatmul.mubr.f32.vlgmr.msra.gmra.mrb[0].mxu1 %v8953_v32 }
 0x275   :  { %6685 = vmatpush1.bf16.msra.mxu1 %v6684_v26  ;;  %883 = vmatprep.mubr.f32.mxu1 %v10727_v62  ;;  %v666_v36 = vpop.permute.xlu1 %665  ;;  %v655_v37 = vpop.permute.xlu0 %654 }
 0x276   :  { %6687 = vmatprep.subr.bf16.mxu1 %v6686_v29  ;;  %660 = vst.msk [vmem:[#allocation2 + $0x8] sm:$0xff] %vm658_vm10, %v655_v37  ;;  %v1168_v37 = vld [vmem:[#allocation9 + $0x118] sm:$0xff] }
 0x277   :  { %671 = vst.msk [vmem:[#allocation2 + $0x8] sm:$0xff] %vm669_vm11, %v666_v36  ;;  %v1171_v36 = vld [vmem:[#allocation9 + $0x130] sm:$0xff] }
 0x279   :  { %6689 = vmatpush1.bf16.msra.mxu1 %v6688_v35  ;;  %v688_v45 = vpop.permute.xlu1 %687  ;;  %v677_v47 = vpop.permute.xlu0 %676  ;;  %v1167_v35 = vld [vmem:[#allocation9 + $0x110] sm:$0xff] }
 0x27a   :  { %6691 = vmatprep.subr.bf16.mxu1 %v6690_v38  ;;  %682 = vst.msk [vmem:[#allocation2 + $0x8] sm:$0xff] %vm680_vm12, %v677_v47  ;;  %v1172_v38 = vld [vmem:[#allocation9 + $0x138] sm:$0xff]  ;;  %v1267_v47 = vld [vmem:[#allocation9 + $0x1e8] sm:$0xff] }
 0x27b   :  { %693 = vst.msk [vmem:[#allocation2 + $0x8] sm:$0xff] %vm691_vm13, %v688_v45 }
 0x27d   :  { %6693 = vmatpush1.bf16.msra.mxu1 %v6692_v43  ;;  %v710_v58 = vpop.permute.xlu1 %709  ;;  %v699_v59 = vpop.permute.xlu0 %698 }
 0x27e   :  { %6695 = vmatprep.subr.bf16.mxu1 %v6694_v49  ;;  %704 = vst.msk [vmem:[#allocation2 + $0x8] sm:$0xff] %vm702_vm14, %v699_v59  ;;  %v1290_v49 = vld [vmem:[#allocation9 + $0x220] sm:$0xff]  ;;  %vm4387_vm14 = vcmask 588800  }
 0x27f   :  { %715 = vst.msk [vmem:[#allocation2 + $0x8] sm:$0xff] %vm713_vm15, %v710_v58  ;;  %vm8480_vm15 = vmmov 0  }
 0x281   :  { %6697 = vmatpush1.bf16.msra.mxu1 %v6696_v57  ;;  %v721_v46 = vpop.permute.xlu0 %720  ;;  %v1384_v57 = vld [vmem:[%s10711_s9] sm:$0xff] }
 0x282   :  { %6699 = vmatprep.subr.bf16.mxu1 %v6698_v60  ;;  %726 = vst.msk [vmem:[#allocation2 + $0x8] sm:$0xff] %vm724_vm1, %v721_v46  ;;  %v9047_v46 = vand.u32 127, %v983_v2 }
 0x284   :  { %vm985_vm5 = vcmp.lt.s32.totalorder %v9047_v46, 72  ;;  %vm1034_vm6 = vcmp.lt.s32.totalorder %v9047_v46, 64  ;;  %vm1083_vm7 = vcmp.lt.s32.totalorder %v9047_v46, 56  ;;  %vm1132_vm8 = vcmp.lt.s32.totalorder %v9047_v46, 8 }
 0x285   :  { %6701 = vmatpush1.bf16.msra.mxu1 %v6700_v44  ;;  %vm1205_vm9 = vcmp.lt.s32.totalorder %v9047_v46, 120 }
 0x286   :  { %6703 = vmatprep.subr.bf16.mxu1 %v6702_v48 }
 0x289   :  { %6705 = vmatpush1.bf16.msra.mxu1 %v6704_v3  ;;  %v728_v15 = vld [vmem:[#allocation2 + $0x8] sm:$0xff] }
 0x28a   :  { %6707 = vmatprep.subr.bf16.mxu1 %v6706_v4  ;;  %v999_v4 = vld [vmem:[#allocation9 + $0x28] sm:$0xff] }
 0x28d   :  { %6709 = vmatpush1.bf16.msra.mxu1 %v6708_v9 }
 0x28e   :  { %6711 = vmatprep.subr.bf16.mxu1 %v6710_v10  ;;  %v739_v14 = vpop.permute.xlu1 %738 }
 0x28f   :  { %v742_v16 = vadd.f32 %v739_v14, %v728_v15 }
 0x291   :  { %6713 = vmatpush1.bf16.msra.mxu1 %v6712_v13  ;;  %vm744_vm3 = vcmp.gt.f32.partialorder %v742_v16, 0.0  ;;  %v746_v17 = vmul.f32 0.2, %v742_v16 }
 0x293   :  { %v748_v18 = vsel %vm744_vm3, %v742_v16, %v746_v17  ;;  %v1048_v17 = vld [vmem:[#allocation9 + $0x68] sm:$0xff] }
 0x294   :  { %884 = vmatmul.mubr.f32.gmra.mrb[2].mxu1 %v748_v18 }
 0x295   :  { %954 = vmatprep.mubr.f32.mxu1 %v10727_v62 }
 0x298   :  { %955 = vmatmul.mubr.f32.vlgmr.msra.gmra.mrb[4].mxu1 %v8953_v32 }
 0x299   :  { %960 = vmatprep.mubr.f32.mxu1 %v10727_v62  ;;  %v1141_v62 = vld [vmem:[#allocation9 + $0xc0] sm:$0xff] }
 0x29c   :  { %961 = vmatmul.mubr.f32.gmra.mrb[6].mxu1 %v748_v18 }
 0x29d   :  { %6497 = vmatprep.mubr.msk.f32.mxu1 %vm1390_vm4, %v1311_v51  ;;  %v1047_v51 = vld [vmem:[#allocation9 + $0x60] sm:$0xff] }
 0x347   :  { %v879_v19 = vpop.f32.mrb[0].mxu1 }
 0x348   :  { %967 = vrot.lane.b32.xlu0 %v879_v19, %s8471_s4  ;;  %v881_v20 = vpop.f32.mrb[1].mxu1  ;;  %v8978_v27 = vmul.f32 %v1165_v21, %v879_v19  ;;  %v998_v21 = vld [vmem:[#allocation9 + $0x20] sm:$0xff] }
 0x349   :  { %v8982_v29 = vmul.f32 %v1166_v23, %v881_v20 }
 0x34c   :  { %1018 = vrot.lane.b32.xlu0 %v879_v19, %s8470_s24 }
 0x350   :  { %1067 = vrot.lane.b32.xlu0 %v879_v19, %s8469_s7 }
 0x354   :  { %1116 = vrot.lane.b32.xlu0 %v879_v19, %s8454_s10 }
 0x358   :  { %971 = vrot.lane.b32.xlu0 %v881_v20, %s8471_s4 }
 0x35c   :  { %1022 = vrot.lane.b32.xlu0 %v881_v20, %s8470_s24 }
 0x360   :  { %1071 = vrot.lane.b32.xlu0 %v881_v20, %s8469_s7 }
 0x364   :  { %1120 = vrot.lane.b32.xlu0 %v881_v20, %s8454_s10 }
 0x367   :  { %v885_v25 = vpop.f32.mrb[2].mxu1 }
 0x368   :  { %1193 = vrot.lane.b32.xlu0 %v881_v20, %s8478_s2  ;;  %969 = vrot.lane.b32.xlu1 %v885_v25, %s8471_s4  ;;  %v887_v26 = vpop.f32.mrb[3].mxu1  ;;  %v8980_v28 = vmul.f32 %v1169_v22, %v885_v25  ;;  %v1044_v22 = vld [vmem:[#allocation9 + $0x48] sm:$0xff] }
 0x369   :  { %v8984_v30 = vmul.f32 %v1170_v24, %v887_v26 }
 0x36a   :  { %v6732_v31 = vpack.c.bf16 %v8980_v28, %v8978_v27  ;;  %v1046_v28 = vld [vmem:[#allocation9 + $0x58] sm:$0xff] }
 0x36b   :  { %v956_v32 = vpop.f32.mrb[4].mxu1  ;;  %v6730_v33 = vpack.c.bf16 %v8984_v30, %v8982_v29  ;;  %v1239_v29 = vld [vmem:[#allocation9 + $0x188] sm:$0xff] }
 0x36c   :  { %1020 = vrot.lane.b32.xlu1 %v885_v25, %s8470_s24  ;;  %v958_v34 = vpop.f32.mrb[5].mxu1  ;;  %v8993_v41 = vmul.f32 %v1167_v35, %v956_v32  ;;  %v1097_v35 = vld [vmem:[#allocation9 + $0xa8] sm:$0xff] }
 0x36d   :  { %979 = vrot.lane.b32.xlu0 %v958_v34, %s8471_s4  ;;  %v8998_v43 = vmul.f32 %v1168_v37, %v958_v34 }
 0x36f   :  { %v962_v39 = vpop.f32.mrb[6].mxu1 }
 0x370   :  { %1069 = vrot.lane.b32.xlu1 %v885_v25, %s8469_s7  ;;  %v964_v40 = vpop.f32.mrb[7].mxu1  ;;  %v8995_v42 = vmul.f32 %v1171_v36, %v962_v39 }
 0x371   :  { %1030 = vrot.lane.b32.xlu0 %v958_v34, %s8470_s24  ;;  %v9000_v45 = vmul.f32 %v1172_v38, %v964_v40 }
 0x374   :  { %1118 = vrot.lane.b32.xlu1 %v885_v25, %s8454_s10 }
 0x375   :  { %1079 = vrot.lane.b32.xlu0 %v958_v34, %s8469_s7 }
 0x378   :  { %973 = vrot.lane.b32.xlu1 %v887_v26, %s8471_s4 }
 0x379   :  { %1128 = vrot.lane.b32.xlu0 %v958_v34, %s8454_s10 }
 0x37c   :  { %1024 = vrot.lane.b32.xlu1 %v887_v26, %s8470_s24 }
 0x37d   :  { %1197 = vrot.lane.b32.xlu0 %v956_v32, %s8478_s2 }
 0x380   :  { %1073 = vrot.lane.b32.xlu1 %v887_v26, %s8469_s7 }
 0x381   :  { %1189 = vrot.lane.b32.xlu0 %v879_v19, %s8478_s2  ;;  %v994_v19 = vld [vmem:[#allocation9] sm:$0xff] }
 0x384   :  { %1122 = vrot.lane.b32.xlu1 %v887_v26, %s8454_s10 }
 0x385   :  { %975 = vrot.lane.b32.xlu0 %v956_v32, %s8471_s4 }
 0x388   :  { %1195 = vrot.lane.b32.xlu1 %v887_v26, %s8478_s2 }
 0x389   :  { %1026 = vrot.lane.b32.xlu0 %v956_v32, %s8470_s24 }
 0x38c   :  { %981 = vrot.lane.b32.xlu1 %v964_v40, %s8471_s4 }
 0x38d   :  { %1075 = vrot.lane.b32.xlu0 %v956_v32, %s8469_s7 }
 0x390   :  { %1032 = vrot.lane.b32.xlu1 %v964_v40, %s8470_s24 }
 0x391   :  { %1124 = vrot.lane.b32.xlu0 %v956_v32, %s8454_s10 }
 0x394   :  { %1081 = vrot.lane.b32.xlu1 %v964_v40, %s8469_s7 }
 0x395   :  { %1201 = vrot.lane.b32.xlu0 %v958_v34, %s8478_s2 }
 0x398   :  { %1130 = vrot.lane.b32.xlu1 %v964_v40, %s8454_s10 }
 0x399   :  { %1387 = vperm.xlu0 %8128, %v1384_v57  }
 0x39c   :  { %1199 = vrot.lane.b32.xlu1 %v962_v39, %s8478_s2 }
 0x3a0   :  { %1191 = vrot.lane.b32.xlu1 %v885_v25, %s8478_s2 }
 0x3a4   :  { %977 = vrot.lane.b32.xlu1 %v962_v39, %s8471_s4 }
 0x3a8   :  { %1028 = vrot.lane.b32.xlu1 %v962_v39, %s8470_s24  ;;  %s10782_s24 = sld [smem:[#allocation39_spill]] }
 0x3ac   :  { %1077 = vrot.lane.b32.xlu1 %v962_v39, %s8469_s7 }
 0x3b0   :  { %1126 = vrot.lane.b32.xlu1 %v962_v39, %s8454_s10  ;;  %v1043_v39 = vld [vmem:[#allocation9 + $0x40] sm:$0xff] }
 0x3b4   :  { %1203 = vrot.lane.b32.xlu1 %v964_v40, %s8478_s2 }
 0x3ba   :  { %v968_v53 = vpop.permute.xlu0 %967 }
 0x3be   :  { %v1019_v54 = vpop.permute.xlu0 %1018 }
 0x3c2   :  { %v9032_v55 = vpop.permute.xlu0 %1067 }
 0x3c6   :  { %v9037_v58 = vpop.permute.xlu0 %1116 }
 0x3ca   :  { %v9039_v59 = vpop.permute.xlu0 %971 }
 0x3cb   :  { %v9061_v3 = vsel %vm985_vm5, %v968_v53, %v9039_v59 }
 0x3cc   :  { %v1003_v7 = vmul.f32 %v995_v0, %v9061_v3 }
 0x3ce   :  { %v9041_v60 = vpop.permute.xlu0 %1022 }
 0x3cf   :  { %v9100_v23 = vsel %vm1034_vm6, %v1019_v54, %v9041_v60 }
 0x3d0   :  { %v1052_v38 = vmul.f32 %v1044_v22, %v9100_v23 }
 0x3d2   :  { %v9043_v61 = vpop.permute.xlu0 %1071 }
 0x3d3   :  { %v9131_v57 = vsel %vm1083_vm7, %v9032_v55, %v9043_v61 }
 0x3d6   :  { %v9045_v1 = vpop.permute.xlu0 %1120 }
 0x3da   :  { %v970_v63 = vpop.permute.xlu1 %969  ;;  %v9051_v50 = vpop.permute.xlu0 %1193 }
 0x3de   :  { %v1021_v44 = vpop.permute.xlu1 %1020 }
 0x3df   :  { %v9056_v56 = vpop.permute.xlu0 %979 }
 0x3e0   :  { %v9095_v20 = vsel %vm985_vm5, %v9056_v56, %v968_v53  ;;  %v1093_v53 = vld [vmem:[#allocation9 + $0x88] sm:$0xff] }
 0x3e1   :  { %v1002_v34 = vmul.f32 %v994_v19, %v9095_v20  ;;  %v1101_v19 = vmul.f32 %v1093_v53, %v9131_v57 }
 0x3e2   :  { %v9049_v48 = vpop.permute.xlu1 %1069 }
 0x3e3   :  { %v9072_v9 = vpop.permute.xlu0 %1030 }
 0x3e4   :  { %v9125_v40 = vsel %vm1034_vm6, %v9072_v9, %v1019_v54 }
 0x3e6   :  { %v9054_v52 = vpop.permute.xlu1 %1118 }
 0x3e7   :  { %v9078_v13 = vpop.permute.xlu0 %1079 }
 0x3ea   :  { %v9063_v5 = vpop.permute.xlu1 %973 }
 0x3eb   :  { %v9068_v6 = vsel %vm985_vm5, %v970_v63, %v9063_v5  ;;  %v9082_v15 = vpop.permute.xlu0 %1128 }
 0x3ec   :  { %v1007_v8 = vmul.f32 %v999_v4, %v9068_v6 }
 0x3ee   :  { %v9074_v10 = vpop.permute.xlu1 %1024  ;;  %v6714_v11 = vpack.c.bf16 %v1007_v8, %v1003_v7  ;;  %v1051_v7 = vmul.f32 %v1043_v39, %v9125_v40  ;;  %v1146_v8 = vld [vmem:[#allocation9 + $0xe8] sm:$0xff] }
 0x3ef   :  { %v9090_v18 = vsel %vm1034_vm6, %v1021_v44, %v9074_v10  ;;  %v9106_v26 = vpop.permute.xlu0 %1197 }
 0x3f0   :  { %6715 = vmatprep.subr.bf16.mxu0 %v6714_v11  ;;  %v1056_v25 = vmul.f32 %v1048_v17, %v9090_v18 }
 0x3f2   :  { %v9076_v12 = vpop.permute.xlu1 %1073  ;;  %v6718_v4 = vpack.c.bf16 %v1056_v25, %v1052_v38  ;;  %v1096_v25 = vld [vmem:[#allocation9 + $0xa0] sm:$0xff] }
 0x3f3   :  { %v9118_v36 = vsel %vm1083_vm7, %v9049_v48, %v9076_v12  ;;  %v9155_v22 = vpop.permute.xlu0 %1189 }
 0x3f4   :  { %v1105_v0 = vmul.f32 %v1097_v35, %v9118_v36  ;;  %v1137_v35 = vsel %vm1132_vm8, %v9037_v58, %v9045_v1 }
 0x3f6   :  { %v9080_v14 = vpop.permute.xlu1 %1122 }
 0x3f7   :  { %v1138_v11 = vsel %vm1132_vm8, %v9054_v52, %v9080_v14 }
 0x3f8   :  { %v1154_v39 = vmul.f32 %v1146_v8, %v1138_v11  ;;  %v1145_v8 = vld [vmem:[#allocation9 + $0xe0] sm:$0xff] }
 0x3fa   :  { %v9084_v16 = vpop.permute.xlu1 %1195 }
 0x3fe   :  { %v9102_v24 = vpop.permute.xlu1 %981 }
 0x3ff   :  { %v9111_v32 = vsel %vm985_vm5, %v9102_v24, %v970_v63 }
 0x400   :  { %v1006_v37 = vmul.f32 %v998_v21, %v9111_v32  ;;  %v1092_v21 = vld [vmem:[#allocation9 + $0x80] sm:$0xff] }
 0x402   :  { %v6716_v63 = vpack.c.bf16 %v1006_v37, %v1002_v34  ;;  %v9133_v2 = vpop.permute.xlu1 %1032  ;;  %v1142_v34 = vld [vmem:[#allocation9 + $0xc8] sm:$0xff] }
 0x403   :  { %v9140_v54 = vsel %vm1034_vm6, %v9133_v2, %v1021_v44  ;;  %v9153_v44 = vsel %vm1083_vm7, %v9078_v13, %v9032_v55 }
 0x404   :  { %v1055_v17 = vmul.f32 %v1047_v51, %v9140_v54  ;;  %6717 = vmatpush1.bf16.msra.mxu0 %v6716_v63  ;;  %10750 = vst [vmem:[#allocation28_spill] sm:$0xff] %v9153_v44  ;;  %v6722_v51 = vpack.c.bf16 %v1105_v0, %v1101_v19  ;;  %v1100_v53 = vmul.f32 %v1092_v21, %v9153_v44  ;;  %v976_v0 = vpop.permute.xlu0 %975 }
 0x405   :  { %6719 = vmatprep.subr.bf16.mxu0 %v6718_v4  ;;  %v1150_v4 = vmul.f32 %v1142_v34, %v1137_v35  ;;  %v1215_v34 = vld [vmem:[#allocation9 + $0x148] sm:$0xff]  ;;  %v9211_v30 = vsel %vm985_vm5, %v976_v0, %v9056_v56 }
 0x406   :  { %v6720_v37 = vpack.c.bf16 %v1055_v17, %v1051_v7  ;;  %v9161_v38 = vpop.permute.xlu1 %1081  ;;  %v1139_v7 = vsel %vm1132_vm8, %v9082_v15, %v9037_v58  ;;  %v1208_v58 = vsel %vm1205_vm9, %v9051_v50, %v9106_v26  ;;  %v1219_v35 = vld [vmem:[#allocation9 + $0x168] sm:$0xff] }
 0x407   :  { %v9167_v55 = vsel %vm1083_vm7, %v9161_v38, %v9049_v48  ;;  %v6726_v19 = vpack.c.bf16 %v1154_v39, %v1150_v4  ;;  %v1149_v21 = vmul.f32 %v1141_v62, %v1139_v7  ;;  %v1223_v39 = vmul.f32 %v1215_v34, %v1208_v58  ;;  %v1218_v7 = vld [vmem:[#allocation9 + $0x160] sm:$0xff]  ;;  %v997_v58 = vld [vmem:[#allocation9 + $0x18] sm:$0xff] }
 0x408   :  { %v1104_v63 = vmul.f32 %v1096_v25, %v9167_v55  ;;  %6721 = vmatpush1.bf16.msra.mxu0 %v6720_v37  ;;  %v1027_v4 = vpop.permute.xlu0 %1026  ;;  %v1005_v27 = vmul.f32 %v997_v58, %v9211_v30 }
 0x409   :  { %6723 = vmatprep.subr.bf16.mxu0 %v6722_v51  ;;  %v1037_v56 = vsel %vm1034_vm6, %v9041_v60, %v1027_v4 }
 0x40a   :  { %v6724_v11 = vpack.c.bf16 %v1104_v63, %v1100_v53  ;;  %v9176_v48 = vpop.permute.xlu1 %1130  ;;  %v1214_v53 = vld [vmem:[#allocation9 + $0x140] sm:$0xff]  ;;  %v1210_v63 = vsel %vm1205_vm9, %v9155_v22, %v9051_v50 }
 0x40b   :  { %v1140_v17 = vsel %vm1132_vm8, %v9176_v48, %v9054_v52  ;;  %v1222_v34 = vmul.f32 %v1214_v53, %v1210_v63  ;;  %v1045_v63 = vld [vmem:[#allocation9 + $0x50] sm:$0xff] }
 0x40c   :  { %v1153_v25 = vmul.f32 %v1145_v8, %v1140_v17  ;;  %6725 = vmatpush1.bf16.msra.mxu0 %v6724_v11  ;;  %v1242_v8 = vld [vmem:[#allocation9 + $0x1a0] sm:$0xff]  ;;  %v1053_v58 = vmul.f32 %v1045_v63, %v1037_v56 }
 0x40d   :  { %6727 = vmatprep.subr.bf16.mxu0 %v6726_v19  ;;  %v1238_v19 = vld [vmem:[#allocation9 + $0x180] sm:$0xff] }
 0x40e   :  { %v6728_v37 = vpack.c.bf16 %v1153_v25, %v1149_v21  ;;  %v9186_v51 = vpop.permute.xlu1 %1199  ;;  %v996_v21 = vld [vmem:[#allocation9 + $0x10] sm:$0xff]  ;;  %v988_v25 = vsel %vm985_vm5, %v9039_v59, %v976_v0  ;;  %v1250_v59 = vmul.f32 %v1242_v8, %v9068_v6  ;;  %v1076_v6 = vpop.permute.xlu0 %1075 }
 0x40f   :  { %v1209_v52 = vsel %vm1205_vm9, %v9084_v16, %v9186_v51  ;;  %v1004_v53 = vmul.f32 %v996_v21, %v988_v25  ;;  %v1247_v8 = vmul.f32 %v1239_v29, %v988_v25 }
 0x410   :  { %v1227_v62 = vmul.f32 %v1219_v35, %v1209_v52  ;;  %6729 = vmatpush1.bf16.msra.mxu0 %v6728_v37  ;;  %v1000_v35 = vld [vmem:[#allocation9 + $0x30] sm:$0xff]  ;;  %v1001_v37 = vld [vmem:[#allocation9 + $0x38] sm:$0xff]  ;;  %v1243_v52 = vld [vmem:[#allocation9 + $0x1a8] sm:$0xff] }
 0x411   :  { %6731 = vmatprep.subr.bf16.mxu0 %v6730_v33 }
 0x412   :  { %v9199_v11 = vpop.permute.xlu1 %1191  ;;  %v6734_v17 = vpack.c.bf16 %v1227_v62, %v1223_v39  ;;  %v1262_v39 = vld [vmem:[#allocation9 + $0x1c0] sm:$0xff] }
 0x413   :  { %v1211_v50 = vsel %vm1205_vm9, %v9199_v11, %v9084_v16  ;;  %v1246_v16 = vmul.f32 %v1238_v19, %v9061_v3  ;;  %v1266_v62 = vld [vmem:[#allocation9 + $0x1e0] sm:$0xff] }
 0x414   :  { %v1226_v33 = vmul.f32 %v1218_v7, %v1211_v50  ;;  %6733 = vmatpush1.bf16.msra.mxu0 %v6732_v31  ;;  %v9225_v31 = vsel %vm1034_vm6, %v1027_v4, %v9072_v9  ;;  %v1270_v9 = vmul.f32 %v1262_v39, %v9100_v23  ;;  %v1086_v23 = vsel %vm1083_vm7, %v9043_v61, %v1076_v6 }
 0x415   :  { %6735 = vmatprep.subr.bf16.mxu0 %v6734_v17  ;;  %v1263_v17 = vld [vmem:[#allocation9 + $0x1c8] sm:$0xff]  ;;  %v6740_v4 = vpack.c.bf16 %v1250_v59, %v1246_v16  ;;  %v1054_v44 = vmul.f32 %v1046_v28, %v9225_v31  ;;  %v9253_v39 = vsel %vm1083_vm7, %v1076_v6, %v9078_v13  ;;  %v1286_v28 = vld [vmem:[#allocation9 + $0x200] sm:$0xff] }
 0x416   :  { %v6736_v0 = vpack.c.bf16 %v1226_v33, %v1222_v34  ;;  %v978_v7 = vpop.permute.xlu1 %977  ;;  %v1274_v34 = vmul.f32 %v1266_v62, %v9090_v18  ;;  %v1049_v33 = vld [vmem:[#allocation9 + $0x70] sm:$0xff]  ;;  %v1287_v16 = vld [vmem:[#allocation9 + $0x208] sm:$0xff] }
 0x417   :  { %v9230_v3 = vsel %vm985_vm5, %v978_v7, %v9102_v24  ;;  %v989_v60 = vsel %vm985_vm5, %v9063_v5, %v978_v7  ;;  %v1050_v24 = vld [vmem:[#allocation9 + $0x78] sm:$0xff]  ;;  %v1271_v7 = vmul.f32 %v1263_v17, %v1037_v56  ;;  %v1125_v56 = vpop.permute.xlu0 %1124 }
 0x418   :  { %v1008_v19 = vmul.f32 %v1000_v35, %v989_v60  ;;  %v1009_v21 = vmul.f32 %v1001_v37, %v9230_v3  ;;  %v1251_v50 = vmul.f32 %v1243_v52, %v989_v60  ;;  %6737 = vmatpush1.bf16.msra.mxu0 %v6736_v0  ;;  %v1094_v37 = vld [vmem:[#allocation9 + $0x90] sm:$0xff]  ;;  %v1095_v52 = vld [vmem:[#allocation9 + $0x98] sm:$0xff]  ;;  %v6744_v63 = vpack.c.bf16 %v1274_v34, %v1270_v9 }
 0x419   :  { %v1098_v0 = vld [vmem:[#allocation9 + $0xb0] sm:$0xff]  ;;  %v1102_v60 = vmul.f32 %v1094_v37, %v1086_v23  ;;  %v1548_v37 = vld [vmem:[#allocation7] sm:$0xff] }
 0x41a   :  { %v6752_v5 = vpack.c.bf16 %v1008_v19, %v1004_v53  ;;  %v1029_v25 = vpop.permute.xlu1 %1028  ;;  %v6738_v29 = vpack.c.bf16 %v1251_v50, %v1247_v8  ;;  %v6750_v35 = vpack.c.bf16 %v1009_v21, %v1005_v27  ;;  %v1291_v27 = vld [vmem:[#allocation9 + $0x228] sm:$0xff]  ;;  %v1103_v19 = vmul.f32 %v1095_v52, %v9253_v39  ;;  %v1143_v9 = vld [vmem:[#allocation9 + $0xd0] sm:$0xff] }
 0x41b   :  { %v9245_v18 = vsel %vm1034_vm6, %v1029_v25, %v9133_v2  ;;  %v1038_v59 = vsel %vm1034_vm6, %v9074_v10, %v1029_v25  ;;  %v1298_v2 = vmul.f32 %v1290_v49, %v9118_v36  ;;  %v1099_v10 = vld [vmem:[#allocation9 + $0xb8] sm:$0xff]  ;;  %v1549_v21 = vld [vmem:[#allocation7 + $0x8] sm:$0xff] }
 0x41c   :  { %v1057_v62 = vmul.f32 %v1049_v33, %v1038_v59  ;;  %v1058_v53 = vmul.f32 %v1050_v24, %v9245_v18  ;;  %v1275_v61 = vmul.f32 %v1267_v47, %v1038_v59  ;;  %6739 = vmatprep.subr.bf16.mxu0 %v6738_v29  ;;  %6751 = vmatprep.subr.bf16.mxu1 %v6750_v35  ;;  %v1565_v50 = vld [vmem:[#allocation7 + $0x88] sm:$0xff] }
 0x41d   :  { %6741 = vmatpush1.bf16.msra.mxu0 %v6740_v4  ;;  %6753 = vmatpush1.bf16.msra.mxu1 %v6752_v5  ;;  %v1295_v47 = vmul.f32 %v1287_v16, %v1086_v23  ;;  %v1135_v4 = vsel %vm1132_vm8, %v9045_v1, %v1125_v56  ;;  %v1294_v33 = vmul.f32 %v1286_v28, %v9131_v57  ;;  %v1148_v5 = vld [vmem:[#allocation9 + $0xf8] sm:$0xff]  ;;  %v1564_v23 = vld [vmem:[#allocation7 + $0x80] sm:$0xff]  ;;  %v1581_v16 = vld [vmem:[#allocation7 + $0x108] sm:$0xff] }
 0x41e   :  { %v6756_v8 = vpack.c.bf16 %v1057_v62, %v1053_v58  ;;  %v1078_v13 = vpop.permute.xlu1 %1077  ;;  %v6742_v6 = vpack.c.bf16 %v1275_v61, %v1271_v7  ;;  %v6754_v17 = vpack.c.bf16 %v1058_v53, %v1054_v44  ;;  %v1133_v24 = vsel %vm1132_vm8, %v1125_v56, %v9082_v15  ;;  %v1597_v62 = vld [vmem:[#allocation7 + $0x188] sm:$0xff]  ;;  %v1202_v56 = vpop.permute.xlu0 %1201 }
 0x41f   :  { %v9261_v49 = vsel %vm1083_vm7, %v1078_v13, %v9161_v38  ;;  %v1087_v36 = vsel %vm1083_vm7, %v9076_v12, %v1078_v13  ;;  %v1144_v38 = vld [vmem:[#allocation9 + $0xd8] sm:$0xff]  ;;  %v1147_v12 = vld [vmem:[#allocation9 + $0xf0] sm:$0xff]  ;;  %v6786_v7 = vpack.c.bf16 %v1565_v50, %v1549_v21  ;;  %v6748_v59 = vpack.c.bf16 %v1298_v2, %v1294_v33 }
 0x420   :  { %v1106_v44 = vmul.f32 %v1098_v0, %v1087_v36  ;;  %v1107_v34 = vmul.f32 %v1099_v10, %v9261_v49  ;;  %v1299_v58 = vmul.f32 %v1291_v27, %v1087_v36  ;;  %6743 = vmatprep.subr.bf16.mxu0 %v6742_v6  ;;  %6755 = vmatprep.subr.bf16.mxu1 %v6754_v17  ;;  %v9280_v0 = vld [vmem:[#allocation12] sm:$0xff]  ;;  %v1221_v27 = vld [vmem:[#allocation9 + $0x178] sm:$0xff]  ;;  %v1613_v6 = vld [vmem:[#allocation7 + $0x208] sm:$0xff] }
 0x421   :  { %6745 = vmatpush1.bf16.msra.mxu0 %v6744_v63  ;;  %6757 = vmatpush1.bf16.msra.mxu1 %v6756_v8  ;;  %v1151_v52 = vmul.f32 %v1143_v9, %v1135_v4  ;;  %v1152_v53 = vmul.f32 %v1144_v38, %v1133_v24  ;;  %v6788_v2 = vpack.c.bf16 %v1564_v23, %v1548_v37  ;;  %v1596_v8 = vld [vmem:[#allocation7 + $0x180] sm:$0xff]  ;;  %v1629_v17 = vld [vmem:[#allocation7 + $0x288] sm:$0xff]  ;;  %v1220_v36 = vld [vmem:[#allocation9 + $0x170] sm:$0xff] }
 0x422   :  { %v6760_v25 = vpack.c.bf16 %v1106_v44, %v1102_v60  ;;  %v1127_v29 = vpop.permute.xlu1 %1126  ;;  %v6746_v1 = vpack.c.bf16 %v1299_v58, %v1295_v47  ;;  %v6758_v35 = vpack.c.bf16 %v1107_v34, %v1103_v19  ;;  %v6790_v60 = vpack.c.bf16 %v1597_v62, %v1581_v16  ;;  %v1217_v19 = vld [vmem:[#allocation9 + $0x158] sm:$0xff]  ;;  %v1612_v44 = vld [vmem:[#allocation7 + $0x200] sm:$0xff]  ;;  %v1216_v58 = vld [vmem:[#allocation9 + $0x150] sm:$0xff] }
 0x423   :  { %v1134_v57 = vsel %vm1132_vm8, %v1127_v29, %v9176_v48  ;;  %v1136_v15 = vsel %vm1132_vm8, %v9080_v14, %v1127_v29  ;;  %v1580_v14 = vld [vmem:[#allocation7 + $0x100] sm:$0xff]  ;;  %v1212_v47 = vsel %vm1205_vm9, %v1202_v56, %v9155_v22  ;;  %v1245_v4 = vld [vmem:[#allocation9 + $0x1b8] sm:$0xff]  ;;  %v1206_v22 = vsel %vm1205_vm9, %v9106_v26, %v1202_v56  ;;  %v1661_v24 = vld [vmem:[#allocation7 + $0x388] sm:$0xff] }
 0x424   :  { %v1155_v61 = vmul.f32 %v1147_v12, %v1136_v15  ;;  %v1156_v63 = vmul.f32 %v1148_v5, %v1134_v57  ;;  %6747 = vmatprep.subr.bf16.mxu0 %v6746_v1  ;;  %6759 = vmatprep.subr.bf16.mxu1 %v6758_v35  ;;  %v6792_v9 = vpack.c.bf16 %v1596_v8, %v1580_v14  ;;  %v1628_v34 = vld [vmem:[#allocation7 + $0x280] sm:$0xff]  ;;  %v1241_v12 = vld [vmem:[#allocation9 + $0x198] sm:$0xff]  ;;  %v1244_v29 = vld [vmem:[#allocation9 + $0x1b0] sm:$0xff] }
 0x425   :  { %6749 = vmatpush1.bf16.msra.mxu0 %v6748_v59  ;;  %6761 = vmatpush1.bf16.msra.mxu1 %v6760_v25  ;;  %v1225_v33 = vmul.f32 %v1217_v19, %v1212_v47  ;;  %v10751_v38 = vpack.c.bf16 %v9000_v45, %v8998_v43  ;;  %v1253_v25 = vmul.f32 %v1245_v4, %v9111_v32  ;;  %v1644_v43 = vld [vmem:[#allocation7 + $0x300] sm:$0xff]  ;;  %v1677_v57 = vld [vmem:[#allocation7 + $0x408] sm:$0xff]  ;;  %v1265_v15 = vld [vmem:[#allocation9 + $0x1d8] sm:$0xff] }
 0x426   :  { %v6764_v10 = vpack.c.bf16 %v1155_v61, %v1151_v52  ;;  %v1204_v48 = vpop.permute.xlu1 %1203  ;;  %v6762_v28 = vpack.c.bf16 %v1156_v63, %v1152_v53  ;;  %6787 = vmatprep.subr.bf16.mxu0 %v6786_v7  ;;  %v6796_v35 = vpack.c.bf16 %v1628_v34, %v1612_v44  ;;  %v1269_v7 = vld [vmem:[#allocation9 + $0x1f8] sm:$0xff]  ;;  %v1224_v37 = vmul.f32 %v1216_v58, %v1206_v22  ;;  %v1660_v45 = vld [vmem:[#allocation7 + $0x380] sm:$0xff]  ;;  %v1240_v52 = vld [vmem:[#allocation9 + $0x190] sm:$0xff] }
 0x427   :  { %v1213_v13 = vsel %vm1205_vm9, %v1204_v48, %v9199_v11  ;;  %v1207_v21 = vsel %vm1205_vm9, %v9186_v51, %v1204_v48  ;;  %v6794_v11 = vpack.c.bf16 %v1629_v17, %v1613_v6  ;;  %v1645_v51 = vld [vmem:[#allocation7 + $0x308] sm:$0xff]  ;;  %v10752_v26 = vpack.c.bf16 %v8995_v42, %v8993_v41  ;;  %v1268_v61 = vld [vmem:[#allocation9 + $0x1f0] sm:$0xff]  ;;  %v1293_v56 = vld [vmem:[#allocation9 + $0x238] sm:$0xff] }
 0x428   :  { %1459 = vmatmul.mubr.f32.vlgmr.msra.gmra.mrb[32].mxu0 %v9280_v0  ;;  %6763 = vmatprep.subr.bf16.mxu1 %v6762_v28  ;;  %v1229_v50 = vmul.f32 %v1221_v27, %v1213_v13  ;;  %v1228_v5 = vmul.f32 %v1220_v36, %v1207_v21  ;;  %v6798_v23 = vpack.c.bf16 %v1661_v24, %v1645_v51  ;;  %v1693_v32 = vld [vmem:[#allocation7 + $0x488] sm:$0xff]  ;;  %v1264_v48 = vld [vmem:[#allocation9 + $0x1d0] sm:$0xff]  ;;  %v1724_v47 = vld [vmem:[#allocation7 + $0x580] sm:$0xff] }
 0x429   :  { %6789 = vmatpush1.bf16.msra.mxu0 %v6788_v2  ;;  %6765 = vmatpush1.bf16.msra.mxu1 %v6764_v10  ;;  %v1249_v59 = vmul.f32 %v1241_v12, %v9095_v20  ;;  %v1252_v16 = vmul.f32 %v1244_v29, %v9230_v3  ;;  %v1277_v53 = vmul.f32 %v1269_v7, %v9140_v54  ;;  %v1676_v2 = vld [vmem:[#allocation7 + $0x400] sm:$0xff]  ;;  %v1709_v3 = vld [vmem:[#allocation7 + $0x508] sm:$0xff]  ;;  %v1292_v13 = vld [vmem:[#allocation9 + $0x230] sm:$0xff] }
 0x42a   :  { %6791 = vmatprep.subr.bf16.mxu0 %v6790_v60  ;;  %6767 = vmatprep.subr.bf16.mxu1 %v10751_v38  ;;  %v6770_v1 = vpack.c.bf16 %v1229_v50, %v1225_v33  ;;  %v6772_v62 = vpack.c.bf16 %v1228_v5, %v1224_v37  ;;  %v6800_v41 = vpack.c.bf16 %v1660_v45, %v1644_v43  ;;  %v1692_v10 = vld [vmem:[#allocation7 + $0x480] sm:$0xff]  ;;  %v1725_v28 = vld [vmem:[#allocation7 + $0x588] sm:$0xff]  ;;  %v1289_v60 = vld [vmem:[#allocation9 + $0x218] sm:$0xff] }
 0x42b   :  { %v6774_v63 = vpack.c.bf16 %v1253_v25, %v1249_v59  ;;  %v1248_v42 = vmul.f32 %v1240_v52, %v9211_v30  ;;  %v6802_v20 = vpack.c.bf16 %v1693_v32, %v1677_v57  ;;  %v1273_v27 = vmul.f32 %v1265_v15, %v9125_v40  ;;  %v1708_v40 = vld [vmem:[#allocation7 + $0x500] sm:$0xff]  ;;  %v1288_v50 = vld [vmem:[#allocation9 + $0x210] sm:$0xff]  ;;  %v1757_v4 = vld [vmem:[#allocation7 + $0x688] sm:$0xff] }
 0x42c   :  { %v1276_v14 = vmul.f32 %v1268_v61, %v9245_v18  ;;  %v1301_v8 = vmul.f32 %v1293_v56, %v9167_v55  ;;  %v6804_v6 = vpack.c.bf16 %v1692_v10, %v1676_v2  ;;  %v1272_v17 = vmul.f32 %v1264_v48, %v9225_v31  ;;  %v10753_v36 = vld [vmem:[#allocation28_spill] sm:$0xff]  ;;  %v1567_v44 = vld [vmem:[#allocation7 + $0x98] sm:$0xff]  ;;  %v1550_v22 = vld [vmem:[#allocation7 + $0x10] sm:$0xff] }
 0x42d   :  { %6793 = vmatpush1.bf16.msra.mxu0 %v6792_v9  ;;  %6769 = vmatpush1.bf16.msra.mxu1 %v10752_v26  ;;  %v6776_v54 = vpack.c.bf16 %v1252_v16, %v1248_v42  ;;  %v6778_v30 = vpack.c.bf16 %v1277_v53, %v1273_v27  ;;  %v6806_v19 = vpack.c.bf16 %v1725_v28, %v1709_v3  ;;  %v1741_v9 = vld [vmem:[#allocation7 + $0x608] sm:$0xff]  ;;  %v1740_v38 = vld [vmem:[#allocation7 + $0x600] sm:$0xff]  ;;  %v1566_v12 = vld [vmem:[#allocation7 + $0x90] sm:$0xff] }
 0x42e   :  { %6795 = vmatprep.subr.bf16.mxu0 %v6794_v11  ;;  %6771 = vmatprep.subr.bf16.mxu1 %v6770_v1  ;;  %v1297_v21 = vmul.f32 %v1289_v60, %v10753_v36  ;;  %v6780_v18 = vpack.c.bf16 %v1276_v14, %v1272_v17  ;;  %v1300_v55 = vmul.f32 %v1292_v13, %v9261_v49  ;;  %v1551_v11 = vld [vmem:[#allocation7 + $0x18] sm:$0xff]  ;;  %v1756_v51 = vld [vmem:[#allocation7 + $0x680] sm:$0xff]  ;;  %v1773_v5 = vld [vmem:[#allocation7 + $0x708] sm:$0xff] }
 0x42f   :  { %v6808_v58 = vpack.c.bf16 %v1724_v47, %v1708_v40  ;;  %v1296_v31 = vmul.f32 %v1288_v50, %v9253_v39  ;;  %v6810_v33 = vpack.c.bf16 %v1757_v4, %v1741_v9  ;;  %v6914_v24 = vpack.c.bf16 %v1567_v44, %v1551_v11  ;;  %v1789_v25 = vld [vmem:[#allocation7 + $0x788] sm:$0xff]  ;;  %v1583_v49 = vld [vmem:[#allocation7 + $0x118] sm:$0xff]  ;;  %v1582_v37 = vld [vmem:[#allocation7 + $0x110] sm:$0xff] }
 0x430   :  { %v6782_v34 = vpack.c.bf16 %v1301_v8, %v1297_v21  ;;  %v1599_v1 = vld [vmem:[#allocation7 + $0x198] sm:$0xff]  ;;  %v6916_v7 = vpack.c.bf16 %v1566_v12, %v1550_v22  ;;  %v6814_v39 = vpack.c.bf16 %v1789_v25, %v1773_v5  ;;  %v1772_v26 = vld [vmem:[#allocation7 + $0x700] sm:$0xff]  ;;  %v1598_v45 = vld [vmem:[#allocation7 + $0x190] sm:$0xff] }
 0x431   :  { %6797 = vmatpush1.bf16.msra.mxu0 %v6796_v35  ;;  %6773 = vmatpush1.bf16.msra.mxu1 %v6772_v62  ;;  %v6784_v29 = vpack.c.bf16 %v1300_v55, %v1296_v31  ;;  %v6812_v35 = vpack.c.bf16 %v1756_v51, %v1740_v38  ;;  %v6918_v43 = vpack.c.bf16 %v1599_v1, %v1583_v49  ;;  %v1805_v59 = vld [vmem:[#allocation7 + $0x808] sm:$0xff]  ;;  %v1615_v57 = vld [vmem:[#allocation7 + $0x218] sm:$0xff]  ;;  %v1614_v62 = vld [vmem:[#allocation7 + $0x210] sm:$0xff] }
 0x432   :  { %6799 = vmatprep.subr.bf16.mxu0 %v6798_v23  ;;  %6775 = vmatprep.subr.bf16.mxu1 %v6774_v63  ;;  %v1788_v23 = vld [vmem:[#allocation7 + $0x780] sm:$0xff]  ;;  %v1821_v52 = vld [vmem:[#allocation7 + $0x888] sm:$0xff]  ;;  %v1631_v32 = vld [vmem:[#allocation7 + $0x298] sm:$0xff]  ;;  %v6920_v16 = vpack.c.bf16 %v1598_v45, %v1582_v37 }
 0x433   :  { %v6816_v15 = vpack.c.bf16 %v1788_v23, %v1772_v26  ;;  %v6818_v53 = vpack.c.bf16 %v1821_v52, %v1805_v59  ;;  %v1804_v61 = vld [vmem:[#allocation7 + $0x800] sm:$0xff]  ;;  %v1630_v42 = vld [vmem:[#allocation7 + $0x290] sm:$0xff]  ;;  %v1837_v56 = vld [vmem:[#allocation7 + $0x908] sm:$0xff] }
 0x434   :  { %v1820_v63 = vld [vmem:[#allocation7 + $0x880] sm:$0xff]  ;;  %v1647_v2 = vld [vmem:[#allocation7 + $0x318] sm:$0xff]  ;;  %v1646_v48 = vld [vmem:[#allocation7 + $0x310] sm:$0xff] }
 0x435   :  { %6801 = vmatpush1.bf16.msra.mxu0 %v6800_v41  ;;  %6777 = vmatpush1.bf16.msra.mxu1 %v6776_v54  ;;  %v6922_v41 = vpack.c.bf16 %v1631_v32, %v1615_v57  ;;  %v1663_v10 = vld [vmem:[#allocation7 + $0x398] sm:$0xff]  ;;  %v6820_v27 = vpack.c.bf16 %v1820_v63, %v1804_v61  ;;  %v1836_v28 = vld [vmem:[#allocation7 + $0x900] sm:$0xff]  ;;  %v1662_v14 = vld [vmem:[#allocation7 + $0x390] sm:$0xff] }
 0x436   :  { %6803 = vmatprep.subr.bf16.mxu0 %v6802_v20  ;;  %6779 = vmatprep.subr.bf16.mxu1 %v6778_v30  ;;  %v1853_v20 = vld [vmem:[#allocation7 + $0x988] sm:$0xff]  ;;  %v1852_v60 = vld [vmem:[#allocation7 + $0x980] sm:$0xff]  ;;  %v6926_v54 = vpack.c.bf16 %v1663_v10, %v1647_v2  ;;  %v1679_v30 = vld [vmem:[#allocation7 + $0x418] sm:$0xff] }
 0x437   :  { %v6822_v3 = vpack.c.bf16 %v1853_v20, %v1837_v56  ;;  %v1869_v8 = vld [vmem:[#allocation7 + $0xa08] sm:$0xff]  ;;  %v6824_v17 = vpack.c.bf16 %v1852_v60, %v1836_v28  ;;  %v1678_v40 = vld [vmem:[#allocation7 + $0x410] sm:$0xff]  ;;  %v1868_v36 = vld [vmem:[#allocation7 + $0xa00] sm:$0xff] }
 0x438   :  { %v1885_v13 = vld [vmem:[#allocation7 + $0xa88] sm:$0xff]  ;;  %v1884_v21 = vld [vmem:[#allocation7 + $0xa80] sm:$0xff]  ;;  %v1694_v9 = vld [vmem:[#allocation7 + $0x490] sm:$0xff] }
 0x439   :  { %6805 = vmatpush1.bf16.msra.mxu0 %v6804_v6  ;;  %6781 = vmatpush1.bf16.msra.mxu1 %v6780_v18  ;;  %v1695_v6 = vld [vmem:[#allocation7 + $0x498] sm:$0xff]  ;;  %v6826_v47 = vpack.c.bf16 %v1885_v13, %v1869_v8  ;;  %v1901_v4 = vld [vmem:[#allocation7 + $0xb08] sm:$0xff]  ;;  %v6828_v44 = vpack.c.bf16 %v1884_v21, %v1868_v36  ;;  %v1900_v22 = vld [vmem:[#allocation7 + $0xb00] sm:$0xff] }
 0x43a   :  { %6807 = vmatprep.subr.bf16.mxu0 %v6806_v19  ;;  %6783 = vmatprep.subr.bf16.mxu1 %v6782_v34  ;;  %v6928_v19 = vpack.c.bf16 %v1662_v14, %v1646_v48  ;;  %v6930_v50 = vpack.c.bf16 %v1695_v6, %v1679_v30  ;;  %v1917_v18 = vld [vmem:[#allocation7 + $0xb88] sm:$0xff]  ;;  %v1711_v55 = vld [vmem:[#allocation7 + $0x518] sm:$0xff]  ;;  %v6932_v34 = vpack.c.bf16 %v1694_v9, %v1678_v40  ;;  %v1726_v51 = vld [vmem:[#allocation7 + $0x590] sm:$0xff] }
 0x43b   :  { %v1727_v11 = vld [vmem:[#allocation7 + $0x598] sm:$0xff]  ;;  %v6830_v31 = vpack.c.bf16 %v1917_v18, %v1901_v4  ;;  %v1949_v12 = vld [vmem:[#allocation7 + $0xc88] sm:$0xff]  ;;  %v1742_v1 = vld [vmem:[#allocation7 + $0x610] sm:$0xff] }
 0x43c   :  { %v6934_v38 = vpack.c.bf16 %v1727_v11, %v1711_v55  ;;  %v1743_v5 = vld [vmem:[#allocation7 + $0x618] sm:$0xff]  ;;  %v1948_v37 = vld [vmem:[#allocation7 + $0xc80] sm:$0xff]  ;;  %v1758_v26 = vld [vmem:[#allocation7 + $0x690] sm:$0xff] }
 0x43d   :  { %6809 = vmatpush1.bf16.msra.mxu0 %v6808_v58  ;;  %6785 = vmatpush1.bf16.msra.mxu1 %v6784_v29  ;;  %v1710_v58 = vld [vmem:[#allocation7 + $0x510] sm:$0xff]  ;;  %v1759_v25 = vld [vmem:[#allocation7 + $0x698] sm:$0xff]  ;;  %v1965_v23 = vld [vmem:[#allocation7 + $0xd08] sm:$0xff]  ;;  %v6940_v57 = vpack.c.bf16 %v1758_v26, %v1742_v1 }
 0x43e   :  { %6811 = vmatprep.subr.bf16.mxu0 %v6810_v33  ;;  %6915 = vmatprep.subr.bf16.mxu1 %v6914_v24  ;;  %v1916_v33 = vld [vmem:[#allocation7 + $0xb80] sm:$0xff]  ;;  %v1933_v24 = vld [vmem:[#allocation7 + $0xc08] sm:$0xff]  ;;  %v6936_v49 = vpack.c.bf16 %v1726_v51, %v1710_v58  ;;  %v1775_v45 = vld [vmem:[#allocation7 + $0x718] sm:$0xff] }
 0x43f   :  { %v6832_v29 = vpack.c.bf16 %v1916_v33, %v1900_v22  ;;  %v1791_v59 = vld [vmem:[#allocation7 + $0x798] sm:$0xff]  ;;  %v1774_v32 = vld [vmem:[#allocation7 + $0x710] sm:$0xff]  ;;  %v1997_v63 = vld [vmem:[#allocation7 + $0xe08] sm:$0xff] }
 0x440   :  { %1530 = vmatmul.mubr.f32.vlgmr.msra.gmra.mrb[8].mxu1 %v9280_v0  ;;  %v6924_v0 = vpack.c.bf16 %v1630_v42, %v1614_v62  ;;  %v1980_v62 = vld [vmem:[#allocation7 + $0xd80] sm:$0xff]  ;;  %v1790_v61 = vld [vmem:[#allocation7 + $0x790] sm:$0xff]  ;;  %v1807_v42 = vld [vmem:[#allocation7 + $0x818] sm:$0xff] }
 0x441   :  { %6813 = vmatpush1.bf16.msra.mxu0 %v6812_v35  ;;  %6917 = vmatpush1.bf16.msra.mxu1 %v6916_v7  ;;  %v6834_v35 = vpack.c.bf16 %v1949_v12, %v1933_v24  ;;  %v1932_v7 = vld [vmem:[#allocation7 + $0xc00] sm:$0xff]  ;;  %v1823_v56 = vld [vmem:[#allocation7 + $0x898] sm:$0xff]  ;;  %v6944_v2 = vpack.c.bf16 %v1790_v61, %v1774_v32  ;;  %v1822_v48 = vld [vmem:[#allocation7 + $0x890] sm:$0xff] }
 0x442   :  { %6815 = vmatprep.subr.bf16.mxu0 %v6814_v39  ;;  %6919 = vmatprep.subr.bf16.mxu1 %v6918_v43  ;;  %v6938_v39 = vpack.c.bf16 %v1759_v25, %v1743_v5  ;;  %v1981_v43 = vld [vmem:[#allocation7 + $0xd88] sm:$0xff]  ;;  %v6836_v52 = vpack.c.bf16 %v1948_v37, %v1932_v7  ;;  %v1855_v28 = vld [vmem:[#allocation7 + $0x998] sm:$0xff]  ;;  %v1838_v14 = vld [vmem:[#allocation7 + $0x910] sm:$0xff] }
 0x443   :  { %v1854_v8 = vld [vmem:[#allocation7 + $0x990] sm:$0xff]  ;;  %v1871_v13 = vld [vmem:[#allocation7 + $0xa18] sm:$0xff]  ;;  %v2012_v1 = vld [vmem:[#allocation7 + $0xe80] sm:$0xff] }
 0x444   :  { %v1887_v30 = vld [vmem:[#allocation7 + $0xa98] sm:$0xff]  ;;  %v6952_v6 = vpack.c.bf16 %v1854_v8, %v1838_v14  ;;  %v1886_v40 = vld [vmem:[#allocation7 + $0xa90] sm:$0xff]  ;;  %v2029_v26 = vld [vmem:[#allocation7 + $0xf08] sm:$0xff] }
 0x445   :  { %6817 = vmatpush1.bf16.msra.mxu0 %v6816_v15  ;;  %6921 = vmatpush1.bf16.msra.mxu1 %v6920_v16  ;;  %v6838_v15 = vpack.c.bf16 %v1981_v43, %v1965_v23  ;;  %v1964_v16 = vld [vmem:[#allocation7 + $0xd00] sm:$0xff]  ;;  %v1919_v36 = vld [vmem:[#allocation7 + $0xb98] sm:$0xff]  ;;  %v1902_v9 = vld [vmem:[#allocation7 + $0xb10] sm:$0xff] }
 0x446   :  { %6819 = vmatprep.subr.bf16.mxu0 %v6818_v53  ;;  %6923 = vmatprep.subr.bf16.mxu1 %v6922_v41  ;;  %v6942_v53 = vpack.c.bf16 %v1791_v59, %v1775_v45  ;;  %v2013_v41 = vld [vmem:[#allocation7 + $0xe88] sm:$0xff]  ;;  %v6840_v20 = vpack.c.bf16 %v1980_v62, %v1964_v16  ;;  %v1918_v4 = vld [vmem:[#allocation7 + $0xb90] sm:$0xff]  ;;  %v1935_v18 = vld [vmem:[#allocation7 + $0xc18] sm:$0xff] }
 0x447   :  { %v6842_v10 = vpack.c.bf16 %v2013_v41, %v1997_v63  ;;  %v1951_v55 = vld [vmem:[#allocation7 + $0xc98] sm:$0xff]  ;;  %v6960_v11 = vpack.c.bf16 %v1918_v4, %v1902_v9  ;;  %v1950_v58 = vld [vmem:[#allocation7 + $0xc90] sm:$0xff]  ;;  %v2045_v23 = vld [vmem:[#allocation7 + $0xf88] sm:$0xff] }
 0x448   :  { %v1983_v22 = vld [vmem:[#allocation7 + $0xd98] sm:$0xff]  ;;  %v1966_v51 = vld [vmem:[#allocation7 + $0xd10] sm:$0xff]  ;;  %v6846_v45 = vpack.c.bf16 %v2045_v23, %v2029_v26  ;;  %v2061_v61 = vld [vmem:[#allocation7 + $0x1008] sm:$0xff] }
 0x449   :  { %6821 = vmatpush1.bf16.msra.mxu0 %v6820_v27  ;;  %6925 = vmatpush1.bf16.msra.mxu1 %v6924_v0  ;;  %v6946_v27 = vpack.c.bf16 %v1823_v56, %v1807_v42  ;;  %v1806_v0 = vld [vmem:[#allocation7 + $0x810] sm:$0xff]  ;;  %v1999_v12 = vld [vmem:[#allocation7 + $0xe18] sm:$0xff]  ;;  %v2077_v63 = vld [vmem:[#allocation7 + $0x1088] sm:$0xff] }
 0x44a   :  { %6823 = vmatprep.subr.bf16.mxu0 %v6822_v3  ;;  %6927 = vmatprep.subr.bf16.mxu1 %v6926_v54  ;;  %v1839_v3 = vld [vmem:[#allocation7 + $0x918] sm:$0xff]  ;;  %v6948_v60 = vpack.c.bf16 %v1822_v48, %v1806_v0  ;;  %v1982_v24 = vld [vmem:[#allocation7 + $0xd90] sm:$0xff]  ;;  %v6850_v42 = vpack.c.bf16 %v2077_v63, %v2061_v61  ;;  %v2060_v48 = vld [vmem:[#allocation7 + $0x1000] sm:$0xff] }
 0x44b   :  { %v6950_v54 = vpack.c.bf16 %v1855_v28, %v1839_v3  ;;  %v2015_v5 = vld [vmem:[#allocation7 + $0xe98] sm:$0xff]  ;;  %v6968_v25 = vpack.c.bf16 %v1982_v24, %v1966_v51  ;;  %v2014_v37 = vld [vmem:[#allocation7 + $0xe90] sm:$0xff]  ;;  %v2076_v3 = vld [vmem:[#allocation7 + $0x1080] sm:$0xff] }
 0x44c   :  { %v2031_v43 = vld [vmem:[#allocation7 + $0xf18] sm:$0xff]  ;;  %v2030_v16 = vld [vmem:[#allocation7 + $0xf10] sm:$0xff]  ;;  %v2093_v14 = vld [vmem:[#allocation7 + $0x1108] sm:$0xff] }
 0x44d   :  { %6825 = vmatpush1.bf16.msra.mxu0 %v6824_v17  ;;  %6929 = vmatpush1.bf16.msra.mxu1 %v6928_v19  ;;  %v6954_v17 = vpack.c.bf16 %v1887_v30, %v1871_v13  ;;  %v1870_v19 = vld [vmem:[#allocation7 + $0xa10] sm:$0xff]  ;;  %v2047_v59 = vld [vmem:[#allocation7 + $0xf98] sm:$0xff]  ;;  %v2109_v13 = vld [vmem:[#allocation7 + $0x1188] sm:$0xff] }
 0x44e   :  { %6827 = vmatprep.subr.bf16.mxu0 %v6826_v47  ;;  %6931 = vmatprep.subr.bf16.mxu1 %v6930_v50  ;;  %v1903_v47 = vld [vmem:[#allocation7 + $0xb18] sm:$0xff]  ;;  %v6956_v21 = vpack.c.bf16 %v1886_v40, %v1870_v19  ;;  %v6974_v32 = vpack.c.bf16 %v2047_v59, %v2031_v43  ;;  %v2046_v62 = vld [vmem:[#allocation7 + $0xf90] sm:$0xff]  ;;  %v6852_v19 = vpack.c.bf16 %v2076_v3, %v2060_v48  ;;  %v2189_v59 = vld [vmem:[#allocation7 + $0x1408] sm:$0xff] }
 0x44f   :  { %v6958_v50 = vpack.c.bf16 %v1919_v36, %v1903_v47  ;;  %v2063_v41 = vld [vmem:[#allocation7 + $0x1018] sm:$0xff]  ;;  %v2092_v47 = vld [vmem:[#allocation7 + $0x1100] sm:$0xff]  ;;  %v2094_v4 = vld [vmem:[#allocation7 + $0x1110] sm:$0xff] }
 0x450   :  { %v2079_v56 = vld [vmem:[#allocation7 + $0x1098] sm:$0xff]  ;;  %v2108_v36 = vld [vmem:[#allocation7 + $0x1180] sm:$0xff]  ;;  %v2158_v43 = vld [vmem:[#allocation7 + $0x1310] sm:$0xff] }
 0x451   :  { %6829 = vmatpush1.bf16.msra.mxu0 %v6828_v44  ;;  %6933 = vmatpush1.bf16.msra.mxu1 %v6932_v34  ;;  %v6962_v44 = vpack.c.bf16 %v1951_v55, %v1935_v18  ;;  %v1934_v34 = vld [vmem:[#allocation7 + $0xc10] sm:$0xff]  ;;  %v2095_v30 = vld [vmem:[#allocation7 + $0x1118] sm:$0xff]  ;;  %v2125_v55 = vld [vmem:[#allocation7 + $0x1208] sm:$0xff] }
 0x452   :  { %6831 = vmatprep.subr.bf16.mxu0 %v6830_v31  ;;  %6935 = vmatprep.subr.bf16.mxu1 %v6934_v38  ;;  %v1967_v31 = vld [vmem:[#allocation7 + $0xd18] sm:$0xff]  ;;  %v6964_v33 = vpack.c.bf16 %v1950_v58, %v1934_v34  ;;  %v2110_v18 = vld [vmem:[#allocation7 + $0x1190] sm:$0xff]  ;;  %v2220_v3 = vld [vmem:[#allocation7 + $0x1500] sm:$0xff] }
 0x453   :  { %v6966_v38 = vpack.c.bf16 %v1983_v22, %v1967_v31  ;;  %v2127_v34 = vld [vmem:[#allocation7 + $0x1218] sm:$0xff]  ;;  %v6856_v31 = vpack.c.bf16 %v2108_v36, %v2092_v47  ;;  %v6984_v22 = vpack.c.bf16 %v2110_v18, %v2094_v4  ;;  %v2252_v36 = vld [vmem:[#allocation7 + $0x1600] sm:$0xff] }
 0x454   :  { %v2143_v58 = vld [vmem:[#allocation7 + $0x1298] sm:$0xff] }
 0x455   :  { %6833 = vmatpush1.bf16.msra.mxu0 %v6832_v29  ;;  %6937 = vmatpush1.bf16.msra.mxu1 %v6936_v49  ;;  %v6970_v29 = vpack.c.bf16 %v2015_v5, %v1999_v12  ;;  %v1996_v49 = vld [vmem:[#allocation7 + $0xe00] sm:$0xff]  ;;  %v6986_v24 = vpack.c.bf16 %v2143_v58, %v2127_v34  ;;  %v2126_v12 = vld [vmem:[#allocation7 + $0x1210] sm:$0xff]  ;;  %v2285_v34 = vld [vmem:[#allocation7 + $0x1708] sm:$0xff] }
 0x456   :  { %6835 = vmatprep.subr.bf16.mxu0 %v6834_v35  ;;  %6939 = vmatprep.subr.bf16.mxu1 %v6938_v39  ;;  %v1998_v35 = vld [vmem:[#allocation7 + $0xe10] sm:$0xff]  ;;  %v6844_v7 = vpack.c.bf16 %v2012_v1, %v1996_v49  ;;  %v2159_v49 = vld [vmem:[#allocation7 + $0x1318] sm:$0xff] }
 0x457   :  { %v6972_v39 = vpack.c.bf16 %v2014_v37, %v1998_v35  ;;  %v2142_v5 = vld [vmem:[#allocation7 + $0x1290] sm:$0xff]  ;;  %v2175_v1 = vld [vmem:[#allocation7 + $0x1398] sm:$0xff]  ;;  %v2156_v37 = vld [vmem:[#allocation7 + $0x1300] sm:$0xff] }
 0x458   :  { %v6990_v23 = vpack.c.bf16 %v2175_v1, %v2159_v49  ;;  %v2286_v49 = vld [vmem:[#allocation7 + $0x1710] sm:$0xff] }
 0x459   :  { %6837 = vmatpush1.bf16.msra.mxu0 %v6836_v52  ;;  %6941 = vmatpush1.bf16.msra.mxu1 %v6940_v57  ;;  %v2028_v52 = vld [vmem:[#allocation7 + $0xf00] sm:$0xff]  ;;  %v2302_v1 = vld [vmem:[#allocation7 + $0x1790] sm:$0xff] }
 0x45a   :  { %6839 = vmatprep.subr.bf16.mxu0 %v6838_v15  ;;  %6943 = vmatprep.subr.bf16.mxu1 %v6942_v53  ;;  %v2044_v57 = vld [vmem:[#allocation7 + $0xf80] sm:$0xff]  ;;  %v6976_v53 = vpack.c.bf16 %v2046_v62, %v2030_v16 }
 0x45b   :  { %v6848_v15 = vpack.c.bf16 %v2044_v57, %v2028_v52  ;;  %v2205_v52 = vld [vmem:[#allocation7 + $0x1488] sm:$0xff]  ;;  %v2191_v57 = vld [vmem:[#allocation7 + $0x1418] sm:$0xff]  ;;  %v2188_v62 = vld [vmem:[#allocation7 + $0x1400] sm:$0xff] }
 0x45c   :  { %v6866_v61 = vpack.c.bf16 %v2205_v52, %v2189_v59  ;;  %v2332_v59 = vld [vmem:[#allocation7 + $0x1880] sm:$0xff] }
 0x45d   :  { %6841 = vmatpush1.bf16.msra.mxu0 %v6840_v20  ;;  %6945 = vmatpush1.bf16.msra.mxu1 %v6944_v2  ;;  %v6978_v20 = vpack.c.bf16 %v2079_v56, %v2063_v41  ;;  %v9314_v2 = vpop.permute.xlu0 %1387  ;;  %v2190_v41 = vld [vmem:[#allocation7 + $0x1410] sm:$0xff]  ;;  %v2221_v56 = vld [vmem:[#allocation7 + $0x1508] sm:$0xff] }
 0x45e   :  { %6843 = vmatprep.subr.bf16.mxu0 %v6842_v10  ;;  %6947 = vmatprep.subr.bf16.mxu1 %v6946_v27 }
 0x461   :  { %6949 = vmatpush1.bf16.msra.mxu1 %v6948_v60  ;;  %6845 = vmatpush1.bf16.msra.mxu0 %v6844_v7  ;;  %v2062_v60 = vld [vmem:[#allocation7 + $0x1010] sm:$0xff]  ;;  %v6988_v7 = vpack.c.bf16 %v2142_v5, %v2126_v12  ;;  %v2284_v12 = vld [vmem:[#allocation7 + $0x1700] sm:$0xff] }
 0x462   :  { %6951 = vmatprep.subr.bf16.mxu1 %v6950_v54  ;;  %6847 = vmatprep.subr.bf16.mxu0 %v6846_v45  ;;  %v2078_v54 = vld [vmem:[#allocation7 + $0x1090] sm:$0xff]  ;;  %v2300_v5 = vld [vmem:[#allocation7 + $0x1780] sm:$0xff] }
 0x463   :  { %v6980_v40 = vpack.c.bf16 %v2078_v54, %v2062_v60  ;;  %v2174_v45 = vld [vmem:[#allocation7 + $0x1390] sm:$0xff] }
 0x464   :  { %v6992_v16 = vpack.c.bf16 %v2174_v45, %v2158_v43  ;;  %v7008_v43 = vpack.c.bf16 %v2302_v1, %v2286_v49  ;;  %v2316_v45 = vld [vmem:[#allocation7 + $0x1800] sm:$0xff] }
 0x465   :  { %6953 = vmatpush1.bf16.msra.mxu1 %v6952_v6  ;;  %6849 = vmatpush1.bf16.msra.mxu0 %v6848_v15  ;;  %v2111_v6 = vld [vmem:[#allocation7 + $0x1198] sm:$0xff] }
 0x466   :  { %6955 = vmatprep.subr.bf16.mxu1 %v6954_v17  ;;  %6851 = vmatprep.subr.bf16.mxu0 %v6850_v42  ;;  %v6982_v9 = vpack.c.bf16 %v2111_v6, %v2095_v30  ;;  %v2206_v42 = vld [vmem:[#allocation7 + $0x1490] sm:$0xff]  ;;  %v2269_v30 = vld [vmem:[#allocation7 + $0x1688] sm:$0xff]  ;;  %v2255_v6 = vld [vmem:[#allocation7 + $0x1618] sm:$0xff] }
 0x467   :  { %v6996_v48 = vpack.c.bf16 %v2206_v42, %v2190_v41  ;;  %v2348_v42 = vld [vmem:[#allocation7 + $0x1900] sm:$0xff] }
 0x469   :  { %6957 = vmatpush1.bf16.msra.mxu1 %v6956_v21 }
 0x46a   :  { %6959 = vmatprep.subr.bf16.mxu1 %v6958_v50  ;;  %v6854_v50 = vpack.c.bf16 %v2109_v13, %v2093_v14  ;;  %v2222_v14 = vld [vmem:[#allocation7 + $0x1510] sm:$0xff]  ;;  %v2253_v13 = vld [vmem:[#allocation7 + $0x1608] sm:$0xff] }
 0x46b   :  { %v6874_v4 = vpack.c.bf16 %v2269_v30, %v2253_v13  ;;  %v2396_v13 = vld [vmem:[#allocation7 + $0x1a80] sm:$0xff] }
 0x46d   :  { %6961 = vmatpush1.bf16.msra.mxu1 %v6960_v11 }
 0x46e   :  { %6963 = vmatprep.subr.bf16.mxu1 %v6962_v44  ;;  %v2141_v44 = vld [vmem:[#allocation7 + $0x1288] sm:$0xff] }
 0x46f   :  { %v6858_v51 = vpack.c.bf16 %v2141_v44, %v2125_v55  ;;  %v2254_v55 = vld [vmem:[#allocation7 + $0x1610] sm:$0xff] }
 0x470   :  { %v2270_v44 = vld [vmem:[#allocation7 + $0x1690] sm:$0xff] }
 0x471   :  { %6965 = vmatpush1.bf16.msra.mxu1 %v6964_v33  ;;  %v2124_v33 = vld [vmem:[#allocation7 + $0x1200] sm:$0xff] }
 0x472   :  { %6967 = vmatprep.subr.bf16.mxu1 %v6966_v38  ;;  %v2140_v38 = vld [vmem:[#allocation7 + $0x1280] sm:$0xff] }
 0x473   :  { %v6860_v35 = vpack.c.bf16 %v2140_v38, %v2124_v33  ;;  %v2303_v33 = vld [vmem:[#allocation7 + $0x1798] sm:$0xff] }
 0x475   :  { %6969 = vmatpush1.bf16.msra.mxu1 %v6968_v25  ;;  %v2157_v25 = vld [vmem:[#allocation7 + $0x1308] sm:$0xff] }
 0x476   :  { %6971 = vmatprep.subr.bf16.mxu1 %v6970_v29  ;;  %v2173_v29 = vld [vmem:[#allocation7 + $0x1388] sm:$0xff] }
 0x477   :  { %v6862_v26 = vpack.c.bf16 %v2173_v29, %v2157_v25 }
 0x479   :  { %6973 = vmatpush1.bf16.msra.mxu1 %v6972_v39  ;;  %v2172_v39 = vld [vmem:[#allocation7 + $0x1380] sm:$0xff] }
 0x47a   :  { %6975 = vmatprep.subr.bf16.mxu1 %v6974_v32  ;;  %v2207_v32 = vld [vmem:[#allocation7 + $0x1498] sm:$0xff]  ;;  %v6864_v15 = vpack.c.bf16 %v2172_v39, %v2156_v37  ;;  %v2333_v37 = vld [vmem:[#allocation7 + $0x1888] sm:$0xff] }
 0x47b   :  { %v6994_v63 = vpack.c.bf16 %v2207_v32, %v2191_v57  ;;  %v2319_v39 = vld [vmem:[#allocation7 + $0x1818] sm:$0xff]  ;;  %v2318_v32 = vld [vmem:[#allocation7 + $0x1810] sm:$0xff] }
 0x47d   :  { %6977 = vmatpush1.bf16.msra.mxu1 %v6976_v53  ;;  %v2204_v53 = vld [vmem:[#allocation7 + $0x1480] sm:$0xff] }
 0x47e   :  { %6979 = vmatprep.subr.bf16.mxu1 %v6978_v20  ;;  %v2237_v20 = vld [vmem:[#allocation7 + $0x1588] sm:$0xff] }
 0x47f   :  { %v6870_v60 = vpack.c.bf16 %v2237_v20, %v2221_v56  ;;  %v2364_v56 = vld [vmem:[#allocation7 + $0x1980] sm:$0xff] }
 0x4fb   :  { %v1460_v10 = vpop.f32.mrb[32].mxu0 }
 0x4fc   :  { %v1462_v27 = vpop.f32.mrb[33].mxu0  ;;  %v1461_v0 = vadd.f32 %v1460_v10, %v9314_v2  ;;  %v2223_v10 = vld [vmem:[#allocation7 + $0x1518] sm:$0xff] }
 0x4fd   :  { %v1463_v28 = vadd.f32 %v1462_v27, %v9314_v2  ;;  %v2239_v27 = vld [vmem:[#allocation7 + $0x1598] sm:$0xff] }
 0x4fe   :  { %v1540_v8 = vmul.f32 0.2, %v1461_v0  ;;  %vm1536_vm10 = vcmp.gt.f32.partialorder %v1461_v0, 0.0  ;;  %v6998_v54 = vpack.c.bf16 %v2239_v27, %v2223_v10  ;;  %v2350_v27 = vld [vmem:[#allocation7 + $0x1910] sm:$0xff] }
 0x4ff   :  { %vm1537_vm11 = vcmp.gt.f32.partialorder %v1463_v28, 0.0  ;;  %v1541_v17 = vmul.f32 0.2, %v1463_v28 }
 0x500   :  { %v9320_v11 = vsel %vm1536_vm10, %v1461_v0, %v1540_v8  ;;  %v6868_v0 = vpack.c.bf16 %v2204_v53, %v2188_v62  ;;  %v2238_v8 = vld [vmem:[#allocation7 + $0x1590] sm:$0xff]  ;;  %v2365_v62 = vld [vmem:[#allocation7 + $0x1988] sm:$0xff]  ;;  %v2351_v53 = vld [vmem:[#allocation7 + $0x1918] sm:$0xff] }
 0x501   :  { %v9318_v21 = vsel %vm1537_vm11, %v1463_v28, %v1541_v17  ;;  %v2236_v28 = vld [vmem:[#allocation7 + $0x1580] sm:$0xff]  ;;  %v2271_v17 = vld [vmem:[#allocation7 + $0x1698] sm:$0xff]  ;;  %v7000_v47 = vpack.c.bf16 %v2238_v8, %v2222_v14 }
 0x502   :  { %2636 = vmatprep.mubr.f32.mxu0 %v9318_v21  ;;  %2778 = vmatprep.mubr.f32.mxu1 %v9318_v21  ;;  %v7002_v18 = vpack.c.bf16 %v2271_v17, %v2255_v6  ;;  %v2380_v8 = vld [vmem:[#allocation7 + $0x1a00] sm:$0xff]  ;;  %v2382_v17 = vld [vmem:[#allocation7 + $0x1a10] sm:$0xff] }
 0x503   :  { %2637 = vmatmul.mubr.f32.vlgmr.msra.gmra.mrb[34].mxu0 %v9320_v11  ;;  %2779 = vmatmul.mubr.f32.vlgmr.msra.gmra.mrb[10].mxu1 %v9320_v11 }
 0x504   :  { %6853 = vmatpush1.bf16.msra.mxu0 %v6852_v19  ;;  %6981 = vmatpush1.bf16.msra.mxu1 %v6980_v40  ;;  %v6872_v40 = vpack.c.bf16 %v2236_v28, %v2220_v3  ;;  %v2397_v3 = vld [vmem:[#allocation7 + $0x1a88] sm:$0xff]  ;;  %v2383_v28 = vld [vmem:[#allocation7 + $0x1a18] sm:$0xff] }
 0x505   :  { %6855 = vmatprep.subr.bf16.mxu0 %v6854_v50  ;;  %6983 = vmatprep.subr.bf16.mxu1 %v6982_v9  ;;  %v2268_v50 = vld [vmem:[#allocation7 + $0x1680] sm:$0xff] }
 0x508   :  { %6857 = vmatpush1.bf16.msra.mxu0 %v6856_v31  ;;  %6985 = vmatpush1.bf16.msra.mxu1 %v6984_v22  ;;  %v2301_v31 = vld [vmem:[#allocation7 + $0x1788] sm:$0xff]  ;;  %v2287_v22 = vld [vmem:[#allocation7 + $0x1718] sm:$0xff] }
 0x509   :  { %6859 = vmatprep.subr.bf16.mxu0 %v6858_v51  ;;  %6987 = vmatprep.subr.bf16.mxu1 %v6986_v24  ;;  %v6876_v51 = vpack.c.bf16 %v2268_v50, %v2252_v36  ;;  %v7004_v24 = vpack.c.bf16 %v2270_v44, %v2254_v55  ;;  %v6878_v25 = vpack.c.bf16 %v2301_v31, %v2285_v34  ;;  %v2429_v36 = vld [vmem:[#allocation7 + $0x1b88] sm:$0xff]  ;;  %v2415_v50 = vld [vmem:[#allocation7 + $0x1b18] sm:$0xff]  ;;  %v2412_v55 = vld [vmem:[#allocation7 + $0x1b00] sm:$0xff] }
 0x50a   :  { %v7006_v29 = vpack.c.bf16 %v2303_v33, %v2287_v22  ;;  %v2428_v44 = vld [vmem:[#allocation7 + $0x1b80] sm:$0xff]  ;;  %v2414_v31 = vld [vmem:[#allocation7 + $0x1b10] sm:$0xff]  ;;  %v2445_v33 = vld [vmem:[#allocation7 + $0x1c08] sm:$0xff] }
 0x50b   :  { %v2430_v22 = vld [vmem:[#allocation7 + $0x1b90] sm:$0xff] }
 0x50c   :  { %6861 = vmatpush1.bf16.msra.mxu0 %v6860_v35  ;;  %6989 = vmatpush1.bf16.msra.mxu1 %v6988_v7  ;;  %v2317_v35 = vld [vmem:[#allocation7 + $0x1808] sm:$0xff] }
 0x50d   :  { %6863 = vmatprep.subr.bf16.mxu0 %v6862_v26  ;;  %6991 = vmatprep.subr.bf16.mxu1 %v6990_v23  ;;  %v2335_v26 = vld [vmem:[#allocation7 + $0x1898] sm:$0xff]  ;;  %v6880_v23 = vpack.c.bf16 %v2300_v5, %v2284_v12  ;;  %v6882_v52 = vpack.c.bf16 %v2333_v37, %v2317_v35  ;;  %v6896_v12 = vpack.c.bf16 %v2428_v44, %v2412_v55  ;;  %v2446_v35 = vld [vmem:[#allocation7 + $0x1c10] sm:$0xff] }
 0x50e   :  { %v7010_v57 = vpack.c.bf16 %v2335_v26, %v2319_v39  ;;  %v7024_v5 = vpack.c.bf16 %v2430_v22, %v2414_v31  ;;  %v2462_v37 = vld [vmem:[#allocation7 + $0x1c90] sm:$0xff]  ;;  %v2477_v39 = vld [vmem:[#allocation7 + $0x1d08] sm:$0xff]  ;;  %v1571_v55 = vld [vmem:[#allocation7 + $0xb8] sm:$0xff] }
 0x50f   :  { %v2493_v26 = vld [vmem:[#allocation7 + $0x1d88] sm:$0xff]  ;;  %v1552_v22 = vld [vmem:[#allocation7 + $0x20] sm:$0xff] }
 0x510   :  { %6865 = vmatpush1.bf16.msra.mxu0 %v6864_v15  ;;  %6993 = vmatpush1.bf16.msra.mxu1 %v6992_v16  ;;  %v2334_v15 = vld [vmem:[#allocation7 + $0x1890] sm:$0xff]  ;;  %v2349_v16 = vld [vmem:[#allocation7 + $0x1908] sm:$0xff] }
 0x511   :  { %6867 = vmatprep.subr.bf16.mxu0 %v6866_v61  ;;  %6995 = vmatprep.subr.bf16.mxu1 %v6994_v63  ;;  %v2367_v61 = vld [vmem:[#allocation7 + $0x1998] sm:$0xff]  ;;  %v6884_v63 = vpack.c.bf16 %v2332_v59, %v2316_v45  ;;  %v7012_v41 = vpack.c.bf16 %v2334_v15, %v2318_v32  ;;  %v6886_v20 = vpack.c.bf16 %v2365_v62, %v2349_v16  ;;  %v2478_v16 = vld [vmem:[#allocation7 + $0x1d10] sm:$0xff] }
 0x512   :  { %v7014_v10 = vpack.c.bf16 %v2367_v61, %v2351_v53  ;;  %v7028_v59 = vpack.c.bf16 %v2462_v37, %v2446_v35  ;;  %v6902_v32 = vpack.c.bf16 %v2493_v26, %v2477_v39  ;;  %v2494_v62 = vld [vmem:[#allocation7 + $0x1d90] sm:$0xff]  ;;  %v2509_v53 = vld [vmem:[#allocation7 + $0x1e08] sm:$0xff] }
 0x513   :  { %v9326_v19 = vpop.f32.mrb[8].mxu1  ;;  %v2525_v61 = vld [vmem:[#allocation7 + $0x1e88] sm:$0xff]  ;;  %v1586_v35 = vld [vmem:[#allocation7 + $0x130] sm:$0xff] }
 0x514   :  { %6869 = vmatpush1.bf16.msra.mxu0 %v6868_v0  ;;  %6997 = vmatpush1.bf16.msra.mxu1 %v6996_v48  ;;  %v1533_v9 = vpop.f32.mrb[9].mxu1  ;;  %v2366_v0 = vld [vmem:[#allocation7 + $0x1990] sm:$0xff]  ;;  %v2381_v48 = vld [vmem:[#allocation7 + $0x1a08] sm:$0xff] }
 0x515   :  { %6871 = vmatprep.subr.bf16.mxu0 %v6870_v60  ;;  %6999 = vmatprep.subr.bf16.mxu1 %v6998_v54  ;;  %v1534_v58 = vadd.f32 %v1533_v9, %v9314_v2  ;;  %v2399_v60 = vld [vmem:[#allocation7 + $0x1a98] sm:$0xff]  ;;  %v6888_v54 = vpack.c.bf16 %v2364_v56, %v2348_v42  ;;  %v7016_v14 = vpack.c.bf16 %v2366_v0, %v2350_v27 }
 0x516   :  { %v6890_v30 = vpack.c.bf16 %v2397_v3, %v2381_v48  ;;  %v7018_v6 = vpack.c.bf16 %v2399_v60, %v2383_v28  ;;  %v2431_v9 = vld [vmem:[#allocation7 + $0x1b98] sm:$0xff]  ;;  %v7032_v56 = vpack.c.bf16 %v2494_v62, %v2478_v16  ;;  %v6906_v27 = vpack.c.bf16 %v2525_v61, %v2509_v53  ;;  %v2510_v48 = vld [vmem:[#allocation7 + $0x1e10] sm:$0xff]  ;;  %v2541_v28 = vld [vmem:[#allocation7 + $0x1f08] sm:$0xff] }
 0x517   :  { %vm1539_vm12 = vcmp.gt.f32.partialorder %v1534_v58, 0.0  ;;  %v1543_v38 = vmul.f32 0.2, %v1534_v58  ;;  %v2526_v3 = vld [vmem:[#allocation7 + $0x1e90] sm:$0xff]  ;;  %v2557_v60 = vld [vmem:[#allocation7 + $0x1f88] sm:$0xff]  ;;  %v1616_v16 = vld [vmem:[#allocation7 + $0x220] sm:$0xff] }
 0x518   :  { %6873 = vmatpush1.bf16.msra.mxu0 %v6872_v40  ;;  %7001 = vmatpush1.bf16.msra.mxu1 %v7000_v47  ;;  %v2398_v40 = vld [vmem:[#allocation7 + $0x1a90] sm:$0xff]  ;;  %v2413_v47 = vld [vmem:[#allocation7 + $0x1b08] sm:$0xff]  ;;  %v1632_v62 = vld [vmem:[#allocation7 + $0x2a0] sm:$0xff] }
 0x519   :  { %6875 = vmatprep.subr.bf16.mxu0 %v6874_v4  ;;  %7003 = vmatprep.subr.bf16.mxu1 %v7002_v18  ;;  %v9329_v7 = vsel %vm1539_vm12, %v1534_v58, %v1543_v38  ;;  %v6892_v4 = vpack.c.bf16 %v2396_v13, %v2380_v8  ;;  %v7020_v18 = vpack.c.bf16 %v2398_v40, %v2382_v17  ;;  %v2461_v38 = vld [vmem:[#allocation7 + $0x1c88] sm:$0xff]  ;;  %v1618_v53 = vld [vmem:[#allocation7 + $0x230] sm:$0xff] }
 0x51a   :  { %2707 = vmatprep.mubr.f32.mxu0 %v9329_v7  ;;  %2849 = vmatprep.mubr.f32.mxu1 %v9329_v7  ;;  %v6894_v34 = vpack.c.bf16 %v2429_v36, %v2413_v47  ;;  %v7022_v58 = vpack.c.bf16 %v2431_v9, %v2415_v50  ;;  %v6898_v49 = vpack.c.bf16 %v2461_v38, %v2445_v33  ;;  %v2542_v47 = vld [vmem:[#allocation7 + $0x1f10] sm:$0xff]  ;;  %v1553_v50 = vld [vmem:[#allocation7 + $0x28] sm:$0xff]  ;;  %v1568_v33 = vld [vmem:[#allocation7 + $0xa0] sm:$0xff] }
 0x51b   :  { %v7036_v13 = vpack.c.bf16 %v2526_v3, %v2510_v48  ;;  %v6910_v17 = vpack.c.bf16 %v2557_v60, %v2541_v28  ;;  %v2558_v36 = vld [vmem:[#allocation7 + $0x1f90] sm:$0xff]  ;;  %v1532_v9 = vadd.f32 %v9326_v19, %v9314_v2  ;;  %v1587_v2 = vld [vmem:[#allocation7 + $0x138] sm:$0xff]  ;;  %v1648_v48 = vld [vmem:[#allocation7 + $0x320] sm:$0xff] }
 0x51c   :  { %6877 = vmatpush1.bf16.msra.mxu0 %v6876_v51  ;;  %7005 = vmatpush1.bf16.msra.mxu1 %v7004_v24  ;;  %v2447_v51 = vld [vmem:[#allocation7 + $0x1c18] sm:$0xff]  ;;  %v1664_v3 = vld [vmem:[#allocation7 + $0x3a0] sm:$0xff]  ;;  %v1650_v28 = vld [vmem:[#allocation7 + $0x330] sm:$0xff] }
 0x51d   :  { %6879 = vmatprep.subr.bf16.mxu0 %v6878_v25  ;;  %7007 = vmatprep.subr.bf16.mxu1 %v7006_v29  ;;  %v2463_v24 = vld [vmem:[#allocation7 + $0x1c98] sm:$0xff]  ;;  %v2444_v25 = vld [vmem:[#allocation7 + $0x1c00] sm:$0xff]  ;;  %v1542_v38 = vmul.f32 0.2, %v1532_v9  ;;  %vm1538_vm13 = vcmp.gt.f32.partialorder %v1532_v9, 0.0 }
 0x51e   :  { %v2460_v29 = vld [vmem:[#allocation7 + $0x1c80] sm:$0xff]  ;;  %v7026_v1 = vpack.c.bf16 %v2463_v24, %v2447_v51  ;;  %v1554_v51 = vld [vmem:[#allocation7 + $0x30] sm:$0xff]  ;;  %v1603_v19 = vld [vmem:[#allocation7 + $0x1b8] sm:$0xff] }
 0x51f   :  { %v6900_v45 = vpack.c.bf16 %v2460_v29, %v2444_v25  ;;  %v1570_v24 = vld [vmem:[#allocation7 + $0xb0] sm:$0xff]  ;;  %v7044_v25 = vpack.c.bf16 %v1568_v33, %v1552_v22  ;;  %v9335_v37 = vsel %vm1538_vm13, %v1532_v9, %v1542_v38  ;;  %v7174_v26 = vpack.c.bf16 %v1603_v19, %v1587_v2  ;;  %v1712_v33 = vld [vmem:[#allocation7 + $0x520] sm:$0xff]  ;;  %v1761_v2 = vld [vmem:[#allocation7 + $0x6a8] sm:$0xff] }
 0x520   :  { %6881 = vmatpush1.bf16.msra.mxu0 %v6880_v23  ;;  %7009 = vmatpush1.bf16.msra.mxu1 %v7008_v43  ;;  %v2479_v23 = vld [vmem:[#allocation7 + $0x1d18] sm:$0xff]  ;;  %v7172_v29 = vpack.c.bf16 %v1570_v24, %v1554_v51  ;;  %v1728_v38 = vld [vmem:[#allocation7 + $0x5a0] sm:$0xff]  ;;  %v1714_v51 = vld [vmem:[#allocation7 + $0x530] sm:$0xff] }
 0x521   :  { %6883 = vmatprep.subr.bf16.mxu0 %v6882_v52  ;;  %7011 = vmatprep.subr.bf16.mxu1 %v7010_v57  ;;  %v2495_v43 = vld [vmem:[#allocation7 + $0x1d98] sm:$0xff]  ;;  %v2476_v52 = vld [vmem:[#allocation7 + $0x1d00] sm:$0xff] }
 0x522   :  { %v2492_v57 = vld [vmem:[#allocation7 + $0x1d80] sm:$0xff]  ;;  %v7030_v15 = vpack.c.bf16 %v2495_v43, %v2479_v23  ;;  %v1602_v23 = vld [vmem:[#allocation7 + $0x1b0] sm:$0xff]  ;;  %v1617_v43 = vld [vmem:[#allocation7 + $0x228] sm:$0xff] }
 0x523   :  { %v6904_v42 = vpack.c.bf16 %v2492_v57, %v2476_v52  ;;  %v1635_v52 = vld [vmem:[#allocation7 + $0x2b8] sm:$0xff] }
 0x524   :  { %6885 = vmatpush1.bf16.msra.mxu0 %v6884_v63  ;;  %7013 = vmatpush1.bf16.msra.mxu1 %v7012_v41  ;;  %v2511_v63 = vld [vmem:[#allocation7 + $0x1e18] sm:$0xff] }
 0x525   :  { %6887 = vmatprep.subr.bf16.mxu0 %v6886_v20  ;;  %7015 = vmatprep.subr.bf16.mxu1 %v7014_v10  ;;  %v2527_v41 = vld [vmem:[#allocation7 + $0x1e98] sm:$0xff]  ;;  %v2508_v20 = vld [vmem:[#allocation7 + $0x1e00] sm:$0xff] }
 0x526   :  { %v2524_v10 = vld [vmem:[#allocation7 + $0x1e80] sm:$0xff]  ;;  %v7034_v0 = vpack.c.bf16 %v2527_v41, %v2511_v63  ;;  %v1634_v63 = vld [vmem:[#allocation7 + $0x2b0] sm:$0xff]  ;;  %v1649_v41 = vld [vmem:[#allocation7 + $0x328] sm:$0xff] }
 0x527   :  { %v6908_v8 = vpack.c.bf16 %v2524_v10, %v2508_v20  ;;  %v1667_v20 = vld [vmem:[#allocation7 + $0x3b8] sm:$0xff]  ;;  %v7052_v10 = vpack.c.bf16 %v1632_v62, %v1616_v16  ;;  %v1776_v62 = vld [vmem:[#allocation7 + $0x720] sm:$0xff] }
 0x528   :  { %6889 = vmatpush1.bf16.msra.mxu0 %v6888_v54  ;;  %7017 = vmatpush1.bf16.msra.mxu1 %v7016_v14  ;;  %v2543_v54 = vld [vmem:[#allocation7 + $0x1f18] sm:$0xff] }
 0x529   :  { %6891 = vmatprep.subr.bf16.mxu0 %v6890_v30  ;;  %7019 = vmatprep.subr.bf16.mxu1 %v7018_v6  ;;  %v2559_v14 = vld [vmem:[#allocation7 + $0x1f98] sm:$0xff]  ;;  %v2540_v30 = vld [vmem:[#allocation7 + $0x1f00] sm:$0xff] }
 0x52a   :  { %v2556_v6 = vld [vmem:[#allocation7 + $0x1f80] sm:$0xff]  ;;  %v7038_v40 = vpack.c.bf16 %v2559_v14, %v2543_v54  ;;  %v1666_v54 = vld [vmem:[#allocation7 + $0x3b0] sm:$0xff]  ;;  %v1681_v14 = vld [vmem:[#allocation7 + $0x428] sm:$0xff] }
 0x52b   :  { %v6912_v44 = vpack.c.bf16 %v2556_v6, %v2540_v30  ;;  %v1699_v30 = vld [vmem:[#allocation7 + $0x4b8] sm:$0xff]  ;;  %v7056_v6 = vpack.c.bf16 %v1664_v3, %v1648_v48  ;;  %v1808_v3 = vld [vmem:[#allocation7 + $0x820] sm:$0xff] }
 0x52c   :  { %6893 = vmatpush1.bf16.msra.mxu0 %v6892_v4  ;;  %7021 = vmatpush1.bf16.msra.mxu1 %v7020_v18  ;;  %v1569_v4 = vld [vmem:[#allocation7 + $0xa8] sm:$0xff]  ;;  %v1555_v18 = vld [vmem:[#allocation7 + $0x38] sm:$0xff] }
 0x52d   :  { %6895 = vmatprep.subr.bf16.mxu0 %v6894_v34  ;;  %7023 = vmatprep.subr.bf16.mxu1 %v7022_v58  ;;  %v7040_v34 = vpack.c.bf16 %v2558_v36, %v2542_v47  ;;  %v7042_v58 = vpack.c.bf16 %v1569_v4, %v1553_v50  ;;  %v7170_v31 = vpack.c.bf16 %v1571_v55, %v1555_v18  ;;  %v1680_v47 = vld [vmem:[#allocation7 + $0x420] sm:$0xff]  ;;  %v1682_v50 = vld [vmem:[#allocation7 + $0x430] sm:$0xff]  ;;  %v1713_v18 = vld [vmem:[#allocation7 + $0x528] sm:$0xff] }
 0x52e   :  { %v1696_v36 = vld [vmem:[#allocation7 + $0x4a0] sm:$0xff]  ;;  %v1698_v4 = vld [vmem:[#allocation7 + $0x4b0] sm:$0xff]  ;;  %v1729_v55 = vld [vmem:[#allocation7 + $0x5a8] sm:$0xff] }
 0x52f   :  { %v7062_v22 = vpack.c.bf16 %v1729_v55, %v1713_v18  ;;  %v1747_v19 = vld [vmem:[#allocation7 + $0x638] sm:$0xff]  ;;  %v1858_v18 = vld [vmem:[#allocation7 + $0x9b0] sm:$0xff]  ;;  %v1873_v55 = vld [vmem:[#allocation7 + $0xa28] sm:$0xff] }
 0x530   :  { %6897 = vmatpush1.bf16.msra.mxu0 %v6896_v12  ;;  %7025 = vmatpush1.bf16.msra.mxu1 %v7024_v5  ;;  %v1585_v12 = vld [vmem:[#allocation7 + $0x128] sm:$0xff] }
 0x531   :  { %6899 = vmatprep.subr.bf16.mxu0 %v6898_v49  ;;  %7027 = vmatprep.subr.bf16.mxu1 %v7026_v1  ;;  %v1601_v5 = vld [vmem:[#allocation7 + $0x1a8] sm:$0xff]  ;;  %v1584_v49 = vld [vmem:[#allocation7 + $0x120] sm:$0xff] }
 0x532   :  { %v1600_v1 = vld [vmem:[#allocation7 + $0x1a0] sm:$0xff]  ;;  %v7046_v39 = vpack.c.bf16 %v1601_v5, %v1585_v12  ;;  %v1730_v12 = vld [vmem:[#allocation7 + $0x5b0] sm:$0xff]  ;;  %v1745_v5 = vld [vmem:[#allocation7 + $0x628] sm:$0xff] }
 0x533   :  { %v7048_v57 = vpack.c.bf16 %v1600_v1, %v1584_v49  ;;  %v7192_v49 = vpack.c.bf16 %v1730_v12, %v1714_v51  ;;  %v7066_v1 = vpack.c.bf16 %v1761_v2, %v1745_v5  ;;  %v1888_v51 = vld [vmem:[#allocation7 + $0xaa0] sm:$0xff]  ;;  %v1890_v5 = vld [vmem:[#allocation7 + $0xab0] sm:$0xff]  ;;  %v1905_v2 = vld [vmem:[#allocation7 + $0xb28] sm:$0xff] }
 0x534   :  { %6901 = vmatpush1.bf16.msra.mxu0 %v6900_v45  ;;  %7029 = vmatpush1.bf16.msra.mxu1 %v7028_v59  ;;  %v1633_v45 = vld [vmem:[#allocation7 + $0x2a8] sm:$0xff]  ;;  %v1619_v59 = vld [vmem:[#allocation7 + $0x238] sm:$0xff] }
 0x535   :  { %6903 = vmatprep.subr.bf16.mxu0 %v6902_v32  ;;  %7031 = vmatprep.subr.bf16.mxu1 %v7030_v15  ;;  %v7176_v32 = vpack.c.bf16 %v1602_v23, %v1586_v35  ;;  %v7050_v15 = vpack.c.bf16 %v1633_v45, %v1617_v43  ;;  %v7178_v61 = vpack.c.bf16 %v1635_v52, %v1619_v59  ;;  %v1744_v35 = vld [vmem:[#allocation7 + $0x620] sm:$0xff]  ;;  %v1762_v43 = vld [vmem:[#allocation7 + $0x6b0] sm:$0xff]  ;;  %v1777_v45 = vld [vmem:[#allocation7 + $0x728] sm:$0xff] }
 0x536   :  { %v1793_v59 = vld [vmem:[#allocation7 + $0x7a8] sm:$0xff]  ;;  %v1779_v52 = vld [vmem:[#allocation7 + $0x738] sm:$0xff] }
 0x537   :  { %v7070_v16 = vpack.c.bf16 %v1793_v59, %v1777_v45  ;;  %v1922_v45 = vld [vmem:[#allocation7 + $0xbb0] sm:$0xff]  ;;  %v1937_v59 = vld [vmem:[#allocation7 + $0xc28] sm:$0xff] }
 0x538   :  { %6905 = vmatpush1.bf16.msra.mxu0 %v6904_v42  ;;  %7033 = vmatpush1.bf16.msra.mxu1 %v7032_v56  ;;  %v1665_v42 = vld [vmem:[#allocation7 + $0x3a8] sm:$0xff]  ;;  %v1651_v56 = vld [vmem:[#allocation7 + $0x338] sm:$0xff] }
 0x539   :  { %6907 = vmatprep.subr.bf16.mxu0 %v6906_v27  ;;  %7035 = vmatprep.subr.bf16.mxu1 %v7034_v0  ;;  %v7180_v27 = vpack.c.bf16 %v1634_v63, %v1618_v53  ;;  %v7054_v0 = vpack.c.bf16 %v1665_v42, %v1649_v41  ;;  %v7182_v60 = vpack.c.bf16 %v1667_v20, %v1651_v56  ;;  %v1792_v53 = vld [vmem:[#allocation7 + $0x7a0] sm:$0xff]  ;;  %v1794_v41 = vld [vmem:[#allocation7 + $0x7b0] sm:$0xff]  ;;  %v1809_v42 = vld [vmem:[#allocation7 + $0x828] sm:$0xff] }
 0x53a   :  { %v1825_v56 = vld [vmem:[#allocation7 + $0x8a8] sm:$0xff]  ;;  %v1811_v20 = vld [vmem:[#allocation7 + $0x838] sm:$0xff] }
 0x53b   :  { %v7074_v48 = vpack.c.bf16 %v1825_v56, %v1809_v42  ;;  %v1954_v42 = vld [vmem:[#allocation7 + $0xcb0] sm:$0xff]  ;;  %v1969_v56 = vld [vmem:[#allocation7 + $0xd28] sm:$0xff] }
 0x53c   :  { %6909 = vmatpush1.bf16.msra.mxu0 %v6908_v8  ;;  %7037 = vmatpush1.bf16.msra.mxu1 %v7036_v13  ;;  %v1697_v8 = vld [vmem:[#allocation7 + $0x4a8] sm:$0xff]  ;;  %v1683_v13 = vld [vmem:[#allocation7 + $0x438] sm:$0xff] }
 0x53d   :  { %6911 = vmatprep.subr.bf16.mxu0 %v6910_v17  ;;  %7039 = vmatprep.subr.bf16.mxu1 %v7038_v40  ;;  %v7184_v17 = vpack.c.bf16 %v1666_v54, %v1650_v28  ;;  %v7058_v40 = vpack.c.bf16 %v1697_v8, %v1681_v14  ;;  %v7186_v9 = vpack.c.bf16 %v1699_v30, %v1683_v13  ;;  %v1824_v28 = vld [vmem:[#allocation7 + $0x8a0] sm:$0xff]  ;;  %v1826_v14 = vld [vmem:[#allocation7 + $0x8b0] sm:$0xff]  ;;  %v1841_v8 = vld [vmem:[#allocation7 + $0x928] sm:$0xff] }
 0x53e   :  { %v1857_v13 = vld [vmem:[#allocation7 + $0x9a8] sm:$0xff]  ;;  %v1843_v30 = vld [vmem:[#allocation7 + $0x938] sm:$0xff] }
 0x540   :  { %6913 = vmatpush1.bf16.msra.mxu0 %v6912_v44  ;;  %7041 = vmatpush1.bf16.msra.mxu1 %v7040_v34  ;;  %v1715_v44 = vld [vmem:[#allocation7 + $0x538] sm:$0xff] }
 0x541   :  { %7043 = vmatprep.subr.bf16.mxu0 %v7042_v58  ;;  %7171 = vmatprep.subr.bf16.mxu1 %v7170_v31  ;;  %v1731_v34 = vld [vmem:[#allocation7 + $0x5b8] sm:$0xff]  ;;  %v7060_v58 = vpack.c.bf16 %v1696_v36, %v1680_v47  ;;  %v7188_v31 = vpack.c.bf16 %v1698_v4, %v1682_v50  ;;  %v7078_v47 = vpack.c.bf16 %v1857_v13, %v1841_v8  ;;  %v1840_v36 = vld [vmem:[#allocation7 + $0x920] sm:$0xff]  ;;  %v1986_v8 = vld [vmem:[#allocation7 + $0xdb0] sm:$0xff] }
 0x542   :  { %v7190_v24 = vpack.c.bf16 %v1731_v34, %v1715_v44  ;;  %v1856_v50 = vld [vmem:[#allocation7 + $0x9a0] sm:$0xff]  ;;  %v1889_v44 = vld [vmem:[#allocation7 + $0xaa8] sm:$0xff]  ;;  %v1875_v34 = vld [vmem:[#allocation7 + $0xa38] sm:$0xff] }
 0x543   :  { %2708 = vmatmul.mubr.f32.vlgmr.msra.gmra.mrb[34].mxu0 %v9335_v37  ;;  %2850 = vmatmul.mubr.f32.vlgmr.msra.gmra.mrb[10].mxu1 %v9335_v37  ;;  %v2001_v13 = vld [vmem:[#allocation7 + $0xe28] sm:$0xff] }
 0x544   :  { %7045 = vmatpush1.bf16.msra.mxu0 %v7044_v25  ;;  %2920 = vmatprep.mubr.f32.mxu0 %v9318_v21  ;;  %v1763_v25 = vld [vmem:[#allocation7 + $0x6b8] sm:$0xff] }
 0x545   :  { %7173 = vmatpush1.bf16.msra.mxu1 %v7172_v29  ;;  %3062 = vmatprep.mubr.f32.mxu1 %v9318_v21  ;;  %v7064_v29 = vpack.c.bf16 %v1728_v38, %v1712_v33  ;;  %v7194_v23 = vpack.c.bf16 %v1763_v25, %v1747_v19  ;;  %v7082_v33 = vpack.c.bf16 %v1889_v44, %v1873_v55  ;;  %v1872_v38 = vld [vmem:[#allocation7 + $0xa20] sm:$0xff]  ;;  %v1921_v19 = vld [vmem:[#allocation7 + $0xba8] sm:$0xff]  ;;  %v1907_v25 = vld [vmem:[#allocation7 + $0xb38] sm:$0xff] }
 0x546   :  { %7047 = vmatprep.subr.bf16.mxu0 %v7046_v39  ;;  %7175 = vmatprep.subr.bf16.mxu1 %v7174_v26  ;;  %v1760_v39 = vld [vmem:[#allocation7 + $0x6a0] sm:$0xff]  ;;  %v1746_v26 = vld [vmem:[#allocation7 + $0x630] sm:$0xff]  ;;  %v2033_v44 = vld [vmem:[#allocation7 + $0xf28] sm:$0xff] }
 0x547   :  { %v2018_v55 = vld [vmem:[#allocation7 + $0xeb0] sm:$0xff] }
 0x548   :  { %7049 = vmatpush1.bf16.msra.mxu0 %v7048_v57  ;;  %v1795_v57 = vld [vmem:[#allocation7 + $0x7b8] sm:$0xff] }
 0x549   :  { %7177 = vmatpush1.bf16.msra.mxu1 %v7176_v32  ;;  %7051 = vmatprep.subr.bf16.mxu0 %v7050_v15  ;;  %v7068_v32 = vpack.c.bf16 %v1760_v39, %v1744_v35  ;;  %v7196_v15 = vpack.c.bf16 %v1762_v43, %v1746_v26  ;;  %v7198_v63 = vpack.c.bf16 %v1795_v57, %v1779_v52  ;;  %v1904_v39 = vld [vmem:[#allocation7 + $0xb20] sm:$0xff]  ;;  %v1953_v52 = vld [vmem:[#allocation7 + $0xca8] sm:$0xff]  ;;  %v1939_v57 = vld [vmem:[#allocation7 + $0xc38] sm:$0xff] }
 0x54a   :  { %7179 = vmatprep.subr.bf16.mxu1 %v7178_v61  ;;  %v1778_v61 = vld [vmem:[#allocation7 + $0x730] sm:$0xff]  ;;  %v7086_v35 = vpack.c.bf16 %v1921_v19, %v1905_v2  ;;  %v1920_v26 = vld [vmem:[#allocation7 + $0xba0] sm:$0xff]  ;;  %v2065_v19 = vld [vmem:[#allocation7 + $0x1028] sm:$0xff] }
 0x54b   :  { %v2050_v2 = vld [vmem:[#allocation7 + $0xfb0] sm:$0xff] }
 0x54c   :  { %7053 = vmatpush1.bf16.msra.mxu0 %v7052_v10  ;;  %v1827_v10 = vld [vmem:[#allocation7 + $0x8b8] sm:$0xff] }
 0x54d   :  { %7181 = vmatpush1.bf16.msra.mxu1 %v7180_v27  ;;  %7055 = vmatprep.subr.bf16.mxu0 %v7054_v0  ;;  %v7072_v27 = vpack.c.bf16 %v1792_v53, %v1776_v62  ;;  %v7200_v0 = vpack.c.bf16 %v1794_v41, %v1778_v61  ;;  %v7202_v54 = vpack.c.bf16 %v1827_v10, %v1811_v20  ;;  %v1936_v53 = vld [vmem:[#allocation7 + $0xc20] sm:$0xff]  ;;  %v1985_v20 = vld [vmem:[#allocation7 + $0xda8] sm:$0xff]  ;;  %v1971_v10 = vld [vmem:[#allocation7 + $0xd38] sm:$0xff] }
 0x54e   :  { %7183 = vmatprep.subr.bf16.mxu1 %v7182_v60  ;;  %v1810_v60 = vld [vmem:[#allocation7 + $0x830] sm:$0xff]  ;;  %v7090_v62 = vpack.c.bf16 %v1953_v52, %v1937_v59  ;;  %v1952_v61 = vld [vmem:[#allocation7 + $0xca0] sm:$0xff]  ;;  %v2097_v52 = vld [vmem:[#allocation7 + $0x1128] sm:$0xff] }
 0x54f   :  { %v2082_v59 = vld [vmem:[#allocation7 + $0x10b0] sm:$0xff] }
 0x550   :  { %7057 = vmatpush1.bf16.msra.mxu0 %v7056_v6  ;;  %v1859_v6 = vld [vmem:[#allocation7 + $0x9b8] sm:$0xff] }
 0x551   :  { %7185 = vmatpush1.bf16.msra.mxu1 %v7184_v17  ;;  %7059 = vmatprep.subr.bf16.mxu0 %v7058_v40  ;;  %v7076_v17 = vpack.c.bf16 %v1824_v28, %v1808_v3  ;;  %v7204_v40 = vpack.c.bf16 %v1826_v14, %v1810_v60  ;;  %v7206_v4 = vpack.c.bf16 %v1859_v6, %v1843_v30  ;;  %v1968_v28 = vld [vmem:[#allocation7 + $0xd20] sm:$0xff]  ;;  %v2017_v30 = vld [vmem:[#allocation7 + $0xea8] sm:$0xff]  ;;  %v2003_v6 = vld [vmem:[#allocation7 + $0xe38] sm:$0xff] }
 0x552   :  { %7187 = vmatprep.subr.bf16.mxu1 %v7186_v9  ;;  %v1842_v9 = vld [vmem:[#allocation7 + $0x930] sm:$0xff]  ;;  %v7094_v3 = vpack.c.bf16 %v1985_v20, %v1969_v56  ;;  %v1984_v60 = vld [vmem:[#allocation7 + $0xda0] sm:$0xff]  ;;  %v2129_v56 = vld [vmem:[#allocation7 + $0x1228] sm:$0xff] }
 0x553   :  { %v2145_v20 = vld [vmem:[#allocation7 + $0x12a8] sm:$0xff] }
 0x554   :  { %7061 = vmatpush1.bf16.msra.mxu0 %v7060_v58  ;;  %v1891_v58 = vld [vmem:[#allocation7 + $0xab8] sm:$0xff] }
 0x555   :  { %7189 = vmatpush1.bf16.msra.mxu1 %v7188_v31  ;;  %7063 = vmatprep.subr.bf16.mxu0 %v7062_v22  ;;  %v7080_v31 = vpack.c.bf16 %v1856_v50, %v1840_v36  ;;  %v7208_v22 = vpack.c.bf16 %v1858_v18, %v1842_v9  ;;  %v7210_v12 = vpack.c.bf16 %v1891_v58, %v1875_v34  ;;  %v2000_v50 = vld [vmem:[#allocation7 + $0xe20] sm:$0xff]  ;;  %v2049_v34 = vld [vmem:[#allocation7 + $0xfa8] sm:$0xff]  ;;  %v2035_v58 = vld [vmem:[#allocation7 + $0xf38] sm:$0xff] }
 0x556   :  { %7191 = vmatprep.subr.bf16.mxu1 %v7190_v24  ;;  %v1874_v24 = vld [vmem:[#allocation7 + $0xa30] sm:$0xff]  ;;  %v7098_v36 = vpack.c.bf16 %v2017_v30, %v2001_v13  ;;  %v2016_v9 = vld [vmem:[#allocation7 + $0xea0] sm:$0xff]  ;;  %v2161_v30 = vld [vmem:[#allocation7 + $0x1328] sm:$0xff] }
 0x557   :  { %v2146_v13 = vld [vmem:[#allocation7 + $0x12b0] sm:$0xff] }
 0x558   :  { %7065 = vmatpush1.bf16.msra.mxu0 %v7064_v29  ;;  %v1923_v29 = vld [vmem:[#allocation7 + $0xbb8] sm:$0xff] }
 0x559   :  { %7193 = vmatpush1.bf16.msra.mxu1 %v7192_v49  ;;  %7067 = vmatprep.subr.bf16.mxu0 %v7066_v1  ;;  %v7084_v49 = vpack.c.bf16 %v1888_v51, %v1872_v38  ;;  %v7212_v1 = vpack.c.bf16 %v1890_v5, %v1874_v24  ;;  %v7214_v43 = vpack.c.bf16 %v1923_v29, %v1907_v25  ;;  %v2032_v51 = vld [vmem:[#allocation7 + $0xf20] sm:$0xff]  ;;  %v2081_v25 = vld [vmem:[#allocation7 + $0x10a8] sm:$0xff]  ;;  %v2067_v29 = vld [vmem:[#allocation7 + $0x1038] sm:$0xff] }
 0x55a   :  { %7195 = vmatprep.subr.bf16.mxu1 %v7194_v23  ;;  %v1906_v23 = vld [vmem:[#allocation7 + $0xb30] sm:$0xff]  ;;  %v7102_v38 = vpack.c.bf16 %v2049_v34, %v2033_v44  ;;  %v2048_v24 = vld [vmem:[#allocation7 + $0xfa0] sm:$0xff]  ;;  %v2193_v34 = vld [vmem:[#allocation7 + $0x1428] sm:$0xff] }
 0x55b   :  { %v2178_v44 = vld [vmem:[#allocation7 + $0x13b0] sm:$0xff] }
 0x55c   :  { %7069 = vmatpush1.bf16.msra.mxu0 %v7068_v32  ;;  %v1955_v32 = vld [vmem:[#allocation7 + $0xcb8] sm:$0xff] }
 0x55d   :  { %7197 = vmatpush1.bf16.msra.mxu1 %v7196_v15  ;;  %7071 = vmatprep.subr.bf16.mxu0 %v7070_v16  ;;  %v7088_v15 = vpack.c.bf16 %v1920_v26, %v1904_v39  ;;  %v7216_v16 = vpack.c.bf16 %v1922_v45, %v1906_v23  ;;  %v7218_v41 = vpack.c.bf16 %v1955_v32, %v1939_v57  ;;  %v2064_v26 = vld [vmem:[#allocation7 + $0x1020] sm:$0xff]  ;;  %v2066_v45 = vld [vmem:[#allocation7 + $0x1030] sm:$0xff]  ;;  %v2113_v57 = vld [vmem:[#allocation7 + $0x11a8] sm:$0xff] }
 0x55e   :  { %7199 = vmatprep.subr.bf16.mxu1 %v7198_v63  ;;  %v1938_v63 = vld [vmem:[#allocation7 + $0xc30] sm:$0xff]  ;;  %v7106_v39 = vpack.c.bf16 %v2081_v25, %v2065_v19  ;;  %v2080_v23 = vld [vmem:[#allocation7 + $0x10a0] sm:$0xff]  ;;  %v2225_v25 = vld [vmem:[#allocation7 + $0x1528] sm:$0xff] }
 0x55f   :  { %v7108_v32 = vpack.c.bf16 %v2080_v23, %v2064_v26  ;;  %v2210_v19 = vld [vmem:[#allocation7 + $0x14b0] sm:$0xff]  ;;  %v2224_v23 = vld [vmem:[#allocation7 + $0x1520] sm:$0xff] }
 0x560   :  { %7073 = vmatpush1.bf16.msra.mxu0 %v7072_v27  ;;  %v1987_v27 = vld [vmem:[#allocation7 + $0xdb8] sm:$0xff] }
 0x561   :  { %7201 = vmatpush1.bf16.msra.mxu1 %v7200_v0  ;;  %7075 = vmatprep.subr.bf16.mxu0 %v7074_v48  ;;  %v7092_v0 = vpack.c.bf16 %v1952_v61, %v1936_v53  ;;  %v7220_v48 = vpack.c.bf16 %v1954_v42, %v1938_v63  ;;  %v7222_v14 = vpack.c.bf16 %v1987_v27, %v1971_v10  ;;  %v2096_v53 = vld [vmem:[#allocation7 + $0x1120] sm:$0xff]  ;;  %v2098_v63 = vld [vmem:[#allocation7 + $0x1130] sm:$0xff]  ;;  %v2131_v27 = vld [vmem:[#allocation7 + $0x1238] sm:$0xff] }
 0x562   :  { %7203 = vmatprep.subr.bf16.mxu1 %v7202_v54  ;;  %v1970_v54 = vld [vmem:[#allocation7 + $0xd30] sm:$0xff]  ;;  %v2112_v61 = vld [vmem:[#allocation7 + $0x11a0] sm:$0xff] }
 0x563   :  { %v2114_v42 = vld [vmem:[#allocation7 + $0x11b0] sm:$0xff] }
 0x564   :  { %7077 = vmatpush1.bf16.msra.mxu0 %v7076_v17  ;;  %v2019_v17 = vld [vmem:[#allocation7 + $0xeb8] sm:$0xff] }
 0x565   :  { %7205 = vmatpush1.bf16.msra.mxu1 %v7204_v40  ;;  %7079 = vmatprep.subr.bf16.mxu0 %v7078_v47  ;;  %v7096_v40 = vpack.c.bf16 %v1984_v60, %v1968_v28  ;;  %v7224_v47 = vpack.c.bf16 %v1986_v8, %v1970_v54  ;;  %v7226_v18 = vpack.c.bf16 %v2019_v17, %v2003_v6  ;;  %v2128_v60 = vld [vmem:[#allocation7 + $0x1220] sm:$0xff]  ;;  %v2177_v6 = vld [vmem:[#allocation7 + $0x13a8] sm:$0xff]  ;;  %v2163_v17 = vld [vmem:[#allocation7 + $0x1338] sm:$0xff] }
 0x566   :  { %7207 = vmatprep.subr.bf16.mxu1 %v7206_v4  ;;  %v2002_v4 = vld [vmem:[#allocation7 + $0xe30] sm:$0xff]  ;;  %v7114_v28 = vpack.c.bf16 %v2145_v20, %v2129_v56  ;;  %v2144_v54 = vld [vmem:[#allocation7 + $0x12a0] sm:$0xff] }
 0x567   :  { %v2274_v20 = vld [vmem:[#allocation7 + $0x16b0] sm:$0xff] }
 0x568   :  { %7081 = vmatpush1.bf16.msra.mxu0 %v7080_v31  ;;  %v2051_v31 = vld [vmem:[#allocation7 + $0xfb8] sm:$0xff] }
 0x569   :  { %7209 = vmatpush1.bf16.msra.mxu1 %v7208_v22  ;;  %7083 = vmatprep.subr.bf16.mxu0 %v7082_v33  ;;  %v7100_v22 = vpack.c.bf16 %v2016_v9, %v2000_v50  ;;  %v7228_v33 = vpack.c.bf16 %v2018_v55, %v2002_v4  ;;  %v7230_v5 = vpack.c.bf16 %v2051_v31, %v2035_v58  ;;  %v2160_v9 = vld [vmem:[#allocation7 + $0x1320] sm:$0xff]  ;;  %v2209_v58 = vld [vmem:[#allocation7 + $0x14a8] sm:$0xff]  ;;  %v2195_v31 = vld [vmem:[#allocation7 + $0x1438] sm:$0xff] }
 0x56a   :  { %7211 = vmatprep.subr.bf16.mxu1 %v7210_v12  ;;  %v2034_v12 = vld [vmem:[#allocation7 + $0xf30] sm:$0xff]  ;;  %v7118_v50 = vpack.c.bf16 %v2177_v6, %v2161_v30  ;;  %v2176_v4 = vld [vmem:[#allocation7 + $0x13a0] sm:$0xff]  ;;  %v2321_v6 = vld [vmem:[#allocation7 + $0x1828] sm:$0xff] }
 0x56b   :  { %v2306_v30 = vld [vmem:[#allocation7 + $0x17b0] sm:$0xff] }
 0x56c   :  { %7085 = vmatpush1.bf16.msra.mxu0 %v7084_v49  ;;  %v2083_v49 = vld [vmem:[#allocation7 + $0x10b8] sm:$0xff] }
 0x56d   :  { %7213 = vmatpush1.bf16.msra.mxu1 %v7212_v1  ;;  %7087 = vmatprep.subr.bf16.mxu0 %v7086_v35  ;;  %v7104_v1 = vpack.c.bf16 %v2048_v24, %v2032_v51  ;;  %v7232_v35 = vpack.c.bf16 %v2050_v2, %v2034_v12  ;;  %v7122_v51 = vpack.c.bf16 %v2209_v58, %v2193_v34  ;;  %v2192_v24 = vld [vmem:[#allocation7 + $0x1420] sm:$0xff]  ;;  %v2338_v34 = vld [vmem:[#allocation7 + $0x18b0] sm:$0xff]  ;;  %v2353_v58 = vld [vmem:[#allocation7 + $0x1928] sm:$0xff] }
 0x56e   :  { %7215 = vmatprep.subr.bf16.mxu1 %v7214_v43  ;;  %v7234_v43 = vpack.c.bf16 %v2083_v49, %v2067_v29  ;;  %v2208_v12 = vld [vmem:[#allocation7 + $0x14a0] sm:$0xff]  ;;  %v2241_v29 = vld [vmem:[#allocation7 + $0x15a8] sm:$0xff]  ;;  %v2227_v49 = vld [vmem:[#allocation7 + $0x1538] sm:$0xff] }
 0x56f   :  { %v7126_v26 = vpack.c.bf16 %v2241_v29, %v2225_v25  ;;  %v2370_v25 = vld [vmem:[#allocation7 + $0x19b0] sm:$0xff]  ;;  %v2385_v29 = vld [vmem:[#allocation7 + $0x1a28] sm:$0xff] }
 0x570   :  { %7089 = vmatpush1.bf16.msra.mxu0 %v7088_v15  ;;  %v2099_v15 = vld [vmem:[#allocation7 + $0x1138] sm:$0xff] }
 0x571   :  { %7217 = vmatpush1.bf16.msra.mxu1 %v7216_v16  ;;  %7091 = vmatprep.subr.bf16.mxu0 %v7090_v62  ;;  %v2115_v16 = vld [vmem:[#allocation7 + $0x11b8] sm:$0xff]  ;;  %v7236_v62 = vpack.c.bf16 %v2082_v59, %v2066_v45  ;;  %v2226_v45 = vld [vmem:[#allocation7 + $0x1530] sm:$0xff] }
 0x572   :  { %7219 = vmatprep.subr.bf16.mxu1 %v7218_v41  ;;  %v7110_v41 = vpack.c.bf16 %v2113_v57, %v2097_v52  ;;  %v7238_v10 = vpack.c.bf16 %v2115_v16, %v2099_v15  ;;  %v2242_v52 = vld [vmem:[#allocation7 + $0x15b0] sm:$0xff]  ;;  %v2257_v57 = vld [vmem:[#allocation7 + $0x1628] sm:$0xff]  ;;  %v2259_v15 = vld [vmem:[#allocation7 + $0x1638] sm:$0xff] }
 0x573   :  { %v2275_v16 = vld [vmem:[#allocation7 + $0x16b8] sm:$0xff] }
 0x574   :  { %7093 = vmatpush1.bf16.msra.mxu0 %v7092_v0  ;;  %v2147_v0 = vld [vmem:[#allocation7 + $0x12b8] sm:$0xff]  ;;  %v7258_v56 = vpack.c.bf16 %v2275_v16, %v2259_v15  ;;  %v2433_v15 = vld [vmem:[#allocation7 + $0x1ba8] sm:$0xff] }
 0x575   :  { %7221 = vmatpush1.bf16.msra.mxu1 %v7220_v48  ;;  %7095 = vmatprep.subr.bf16.mxu0 %v7094_v3  ;;  %v7112_v48 = vpack.c.bf16 %v2112_v61, %v2096_v53  ;;  %v7240_v3 = vpack.c.bf16 %v2114_v42, %v2098_v63  ;;  %v7242_v8 = vpack.c.bf16 %v2147_v0, %v2131_v27  ;;  %v2256_v63 = vld [vmem:[#allocation7 + $0x1620] sm:$0xff]  ;;  %v2258_v42 = vld [vmem:[#allocation7 + $0x1630] sm:$0xff]  ;;  %v2305_v27 = vld [vmem:[#allocation7 + $0x17a8] sm:$0xff] }
 0x576   :  { %7223 = vmatprep.subr.bf16.mxu1 %v7222_v14  ;;  %v2130_v14 = vld [vmem:[#allocation7 + $0x1230] sm:$0xff]  ;;  %v7256_v53 = vpack.c.bf16 %v2242_v52, %v2226_v45  ;;  %v2291_v0 = vld [vmem:[#allocation7 + $0x1738] sm:$0xff]  ;;  %v2400_v45 = vld [vmem:[#allocation7 + $0x1aa0] sm:$0xff] }
 0x577   :  { %v2419_v16 = vld [vmem:[#allocation7 + $0x1b38] sm:$0xff] }
 0x578   :  { %7097 = vmatpush1.bf16.msra.mxu0 %v7096_v40  ;;  %v2179_v40 = vld [vmem:[#allocation7 + $0x13b8] sm:$0xff] }
 0x579   :  { %7225 = vmatpush1.bf16.msra.mxu1 %v7224_v47  ;;  %7099 = vmatprep.subr.bf16.mxu0 %v7098_v36  ;;  %v7116_v47 = vpack.c.bf16 %v2144_v54, %v2128_v60  ;;  %v7244_v36 = vpack.c.bf16 %v2146_v13, %v2130_v14  ;;  %v7246_v55 = vpack.c.bf16 %v2179_v40, %v2163_v17  ;;  %v2288_v54 = vld [vmem:[#allocation7 + $0x1720] sm:$0xff]  ;;  %v2337_v17 = vld [vmem:[#allocation7 + $0x18a8] sm:$0xff]  ;;  %v2323_v40 = vld [vmem:[#allocation7 + $0x1838] sm:$0xff] }
 0x57a   :  { %7227 = vmatprep.subr.bf16.mxu1 %v7226_v18  ;;  %v2162_v18 = vld [vmem:[#allocation7 + $0x1330] sm:$0xff]  ;;  %v2304_v14 = vld [vmem:[#allocation7 + $0x17a0] sm:$0xff] }
 0x57c   :  { %7101 = vmatpush1.bf16.msra.mxu0 %v7100_v22  ;;  %v2211_v22 = vld [vmem:[#allocation7 + $0x14b8] sm:$0xff] }
 0x57d   :  { %7229 = vmatpush1.bf16.msra.mxu1 %v7228_v33  ;;  %7103 = vmatprep.subr.bf16.mxu0 %v7102_v38  ;;  %v7120_v33 = vpack.c.bf16 %v2176_v4, %v2160_v9  ;;  %v7248_v38 = vpack.c.bf16 %v2178_v44, %v2162_v18  ;;  %v7250_v2 = vpack.c.bf16 %v2211_v22, %v2195_v31  ;;  %v2320_v4 = vld [vmem:[#allocation7 + $0x1820] sm:$0xff]  ;;  %v2369_v31 = vld [vmem:[#allocation7 + $0x19a8] sm:$0xff]  ;;  %v2355_v22 = vld [vmem:[#allocation7 + $0x1938] sm:$0xff] }
 0x57e   :  { %7231 = vmatprep.subr.bf16.mxu1 %v7230_v5  ;;  %v2194_v5 = vld [vmem:[#allocation7 + $0x1430] sm:$0xff]  ;;  %v7138_v9 = vpack.c.bf16 %v2337_v17, %v2321_v6  ;;  %v2336_v18 = vld [vmem:[#allocation7 + $0x18a0] sm:$0xff]  ;;  %v2481_v17 = vld [vmem:[#allocation7 + $0x1d28] sm:$0xff] }
 0x57f   :  { %v2466_v6 = vld [vmem:[#allocation7 + $0x1cb0] sm:$0xff] }
 0x580   :  { %7105 = vmatpush1.bf16.msra.mxu0 %v7104_v1  ;;  %v2243_v1 = vld [vmem:[#allocation7 + $0x15b8] sm:$0xff] }
 0x581   :  { %7233 = vmatpush1.bf16.msra.mxu1 %v7232_v35  ;;  %7107 = vmatprep.subr.bf16.mxu0 %v7106_v39  ;;  %v7124_v35 = vpack.c.bf16 %v2208_v12, %v2192_v24  ;;  %v7252_v39 = vpack.c.bf16 %v2210_v19, %v2194_v5  ;;  %v7254_v59 = vpack.c.bf16 %v2243_v1, %v2227_v49  ;;  %v2352_v12 = vld [vmem:[#allocation7 + $0x1920] sm:$0xff]  ;;  %v2401_v49 = vld [vmem:[#allocation7 + $0x1aa8] sm:$0xff]  ;;  %v2387_v1 = vld [vmem:[#allocation7 + $0x1a38] sm:$0xff] }
 0x582   :  { %7235 = vmatprep.subr.bf16.mxu1 %v7234_v43  ;;  %v2240_v43 = vld [vmem:[#allocation7 + $0x15a0] sm:$0xff]  ;;  %v7142_v24 = vpack.c.bf16 %v2369_v31, %v2353_v58  ;;  %v2498_v58 = vld [vmem:[#allocation7 + $0x1db0] sm:$0xff]  ;;  %v2513_v31 = vld [vmem:[#allocation7 + $0x1e28] sm:$0xff] }
 0x583   :  { %2921 = vmatmul.mubr.f32.vlgmr.msra.gmra.mrb[36].mxu0 %v9320_v11  ;;  %v2368_v5 = vld [vmem:[#allocation7 + $0x19a0] sm:$0xff] }
 0x584   :  { %3063 = vmatmul.mubr.f32.vlgmr.msra.gmra.mrb[12].mxu1 %v9320_v11  ;;  %7109 = vmatpush1.bf16.msra.mxu0 %v7108_v32  ;;  %v2273_v32 = vld [vmem:[#allocation7 + $0x16a8] sm:$0xff] }
 0x585   :  { %2991 = vmatprep.mubr.f32.mxu0 %v9329_v7  ;;  %7237 = vmatpush1.bf16.msra.mxu1 %v7236_v62  ;;  %v7128_v62 = vpack.c.bf16 %v2240_v43, %v2224_v23  ;;  %v7130_v61 = vpack.c.bf16 %v2273_v32, %v2257_v57  ;;  %v7146_v23 = vpack.c.bf16 %v2401_v49, %v2385_v29  ;;  %v2384_v43 = vld [vmem:[#allocation7 + $0x1a20] sm:$0xff]  ;;  %v2402_v57 = vld [vmem:[#allocation7 + $0x1ab0] sm:$0xff]  ;;  %v2417_v32 = vld [vmem:[#allocation7 + $0x1b28] sm:$0xff] }
 0x586   :  { %3133 = vmatprep.mubr.f32.mxu1 %v9329_v7  ;;  %7111 = vmatprep.subr.bf16.mxu0 %v7110_v41  ;;  %v2272_v41 = vld [vmem:[#allocation7 + $0x16a0] sm:$0xff]  ;;  %v2530_v29 = vld [vmem:[#allocation7 + $0x1eb0] sm:$0xff]  ;;  %v2545_v49 = vld [vmem:[#allocation7 + $0x1f28] sm:$0xff] }
 0x587   :  { %7239 = vmatprep.subr.bf16.mxu1 %v7238_v10  ;;  %v2289_v10 = vld [vmem:[#allocation7 + $0x1728] sm:$0xff] }
 0x588   :  { %7113 = vmatpush1.bf16.msra.mxu0 %v7112_v48  ;;  %v2307_v48 = vld [vmem:[#allocation7 + $0x17b8] sm:$0xff]  ;;  %v7134_v60 = vpack.c.bf16 %v2305_v27, %v2289_v10  ;;  %v2434_v10 = vld [vmem:[#allocation7 + $0x1bb0] sm:$0xff]  ;;  %v2449_v27 = vld [vmem:[#allocation7 + $0x1c28] sm:$0xff] }
 0x589   :  { %7241 = vmatpush1.bf16.msra.mxu1 %v7240_v3  ;;  %7115 = vmatprep.subr.bf16.mxu0 %v7114_v28  ;;  %v7132_v3 = vpack.c.bf16 %v2272_v41, %v2256_v63  ;;  %v7260_v28 = vpack.c.bf16 %v2274_v20, %v2258_v42  ;;  %v7262_v13 = vpack.c.bf16 %v2307_v48, %v2291_v0  ;;  %v2416_v41 = vld [vmem:[#allocation7 + $0x1b20] sm:$0xff]  ;;  %v2465_v0 = vld [vmem:[#allocation7 + $0x1ca8] sm:$0xff]  ;;  %v2451_v48 = vld [vmem:[#allocation7 + $0x1c38] sm:$0xff] }
 0x58a   :  { %7243 = vmatprep.subr.bf16.mxu1 %v7242_v8  ;;  %v2290_v8 = vld [vmem:[#allocation7 + $0x1730] sm:$0xff]  ;;  %v7150_v63 = vpack.c.bf16 %v2433_v15, %v2417_v32  ;;  %v2432_v42 = vld [vmem:[#allocation7 + $0x1ba0] sm:$0xff]  ;;  %v1557_v15 = vld [vmem:[#allocation7 + $0x48] sm:$0xff] }
 0x58b   :  { %v2562_v32 = vld [vmem:[#allocation7 + $0x1fb0] sm:$0xff] }
 0x58c   :  { %7117 = vmatpush1.bf16.msra.mxu0 %v7116_v47  ;;  %v2339_v47 = vld [vmem:[#allocation7 + $0x18b8] sm:$0xff] }
 0x58d   :  { %7245 = vmatpush1.bf16.msra.mxu1 %v7244_v36  ;;  %7119 = vmatprep.subr.bf16.mxu0 %v7118_v50  ;;  %v7136_v36 = vpack.c.bf16 %v2304_v14, %v2288_v54  ;;  %v7264_v50 = vpack.c.bf16 %v2306_v30, %v2290_v8  ;;  %v7266_v44 = vpack.c.bf16 %v2339_v47, %v2323_v40  ;;  %v2448_v14 = vld [vmem:[#allocation7 + $0x1c20] sm:$0xff]  ;;  %v2497_v40 = vld [vmem:[#allocation7 + $0x1da8] sm:$0xff]  ;;  %v2483_v47 = vld [vmem:[#allocation7 + $0x1d38] sm:$0xff] }
 0x58e   :  { %7247 = vmatprep.subr.bf16.mxu1 %v7246_v55  ;;  %v2322_v55 = vld [vmem:[#allocation7 + $0x1830] sm:$0xff]  ;;  %v7154_v54 = vpack.c.bf16 %v2465_v0, %v2449_v27  ;;  %v2464_v8 = vld [vmem:[#allocation7 + $0x1ca0] sm:$0xff]  ;;  %v1589_v0 = vld [vmem:[#allocation7 + $0x148] sm:$0xff] }
 0x58f   :  { %v1574_v27 = vld [vmem:[#allocation7 + $0xd0] sm:$0xff] }
 0x590   :  { %7121 = vmatpush1.bf16.msra.mxu0 %v7120_v33  ;;  %v2371_v33 = vld [vmem:[#allocation7 + $0x19b8] sm:$0xff] }
 0x591   :  { %7249 = vmatpush1.bf16.msra.mxu1 %v7248_v38  ;;  %7123 = vmatprep.subr.bf16.mxu0 %v7122_v51  ;;  %v7140_v38 = vpack.c.bf16 %v2336_v18, %v2320_v4  ;;  %v7268_v51 = vpack.c.bf16 %v2338_v34, %v2322_v55  ;;  %v7270_v19 = vpack.c.bf16 %v2371_v33, %v2355_v22  ;;  %v2480_v18 = vld [vmem:[#allocation7 + $0x1d20] sm:$0xff]  ;;  %v2529_v22 = vld [vmem:[#allocation7 + $0x1ea8] sm:$0xff]  ;;  %v2515_v33 = vld [vmem:[#allocation7 + $0x1e38] sm:$0xff] }
 0x592   :  { %7251 = vmatprep.subr.bf16.mxu1 %v7250_v2  ;;  %v2354_v2 = vld [vmem:[#allocation7 + $0x1930] sm:$0xff]  ;;  %v7158_v4 = vpack.c.bf16 %v2497_v40, %v2481_v17  ;;  %v2496_v55 = vld [vmem:[#allocation7 + $0x1da0] sm:$0xff]  ;;  %v1621_v17 = vld [vmem:[#allocation7 + $0x248] sm:$0xff] }
 0x593   :  { %v1637_v40 = vld [vmem:[#allocation7 + $0x2c8] sm:$0xff] }
 0x594   :  { %7125 = vmatpush1.bf16.msra.mxu0 %v7124_v35  ;;  %v2403_v35 = vld [vmem:[#allocation7 + $0x1ab8] sm:$0xff] }
 0x595   :  { %7253 = vmatpush1.bf16.msra.mxu1 %v7252_v39  ;;  %7127 = vmatprep.subr.bf16.mxu0 %v7126_v26  ;;  %v7144_v39 = vpack.c.bf16 %v2368_v5, %v2352_v12  ;;  %v7272_v26 = vpack.c.bf16 %v2370_v25, %v2354_v2  ;;  %v7274_v52 = vpack.c.bf16 %v2403_v35, %v2387_v1  ;;  %v2512_v5 = vld [vmem:[#allocation7 + $0x1e20] sm:$0xff]  ;;  %v2561_v1 = vld [vmem:[#allocation7 + $0x1fa8] sm:$0xff]  ;;  %v2547_v35 = vld [vmem:[#allocation7 + $0x1f38] sm:$0xff] }
 0x596   :  { %7255 = vmatprep.subr.bf16.mxu1 %v7254_v59  ;;  %v2386_v59 = vld [vmem:[#allocation7 + $0x1a30] sm:$0xff]  ;;  %v7162_v12 = vpack.c.bf16 %v2529_v22, %v2513_v31  ;;  %v2528_v2 = vld [vmem:[#allocation7 + $0x1ea0] sm:$0xff]  ;;  %v1653_v22 = vld [vmem:[#allocation7 + $0x348] sm:$0xff] }
 0x597   :  { %v1638_v31 = vld [vmem:[#allocation7 + $0x2d0] sm:$0xff] }
 0x598   :  { %7129 = vmatpush1.bf16.msra.mxu0 %v7128_v62  ;;  %v2435_v62 = vld [vmem:[#allocation7 + $0x1bb8] sm:$0xff] }
 0x599   :  { %7257 = vmatpush1.bf16.msra.mxu1 %v7256_v53  ;;  %7131 = vmatprep.subr.bf16.mxu0 %v7130_v61  ;;  %v7148_v53 = vpack.c.bf16 %v2400_v45, %v2384_v43  ;;  %v7276_v61 = vpack.c.bf16 %v2402_v57, %v2386_v59  ;;  %v7278_v20 = vpack.c.bf16 %v2435_v62, %v2419_v16  ;;  %v2544_v45 = vld [vmem:[#allocation7 + $0x1f20] sm:$0xff]  ;;  %v1573_v16 = vld [vmem:[#allocation7 + $0xc8] sm:$0xff]  ;;  %v1559_v62 = vld [vmem:[#allocation7 + $0x58] sm:$0xff] }
 0x59a   :  { %7259 = vmatprep.subr.bf16.mxu1 %v7258_v56  ;;  %v2418_v56 = vld [vmem:[#allocation7 + $0x1b30] sm:$0xff]  ;;  %v7166_v43 = vpack.c.bf16 %v2561_v1, %v2545_v49  ;;  %v2560_v59 = vld [vmem:[#allocation7 + $0x1fa0] sm:$0xff]  ;;  %v1685_v1 = vld [vmem:[#allocation7 + $0x448] sm:$0xff] }
 0x59b   :  { %v1670_v49 = vld [vmem:[#allocation7 + $0x3d0] sm:$0xff] }
 0x59c   :  { %7133 = vmatpush1.bf16.msra.mxu0 %v7132_v3  ;;  %v2467_v3 = vld [vmem:[#allocation7 + $0x1cb8] sm:$0xff] }
 0x59d   :  { %7261 = vmatpush1.bf16.msra.mxu1 %v7260_v28  ;;  %7135 = vmatprep.subr.bf16.mxu0 %v7134_v60  ;;  %v7152_v28 = vpack.c.bf16 %v2432_v42, %v2416_v41  ;;  %v7280_v60 = vpack.c.bf16 %v2434_v10, %v2418_v56  ;;  %v7282_v30 = vpack.c.bf16 %v2467_v3, %v2451_v48  ;;  %v1556_v42 = vld [vmem:[#allocation7 + $0x40] sm:$0xff]  ;;  %v1558_v10 = vld [vmem:[#allocation7 + $0x50] sm:$0xff]  ;;  %v1605_v48 = vld [vmem:[#allocation7 + $0x1c8] sm:$0xff] }
 0x59e   :  { %7263 = vmatprep.subr.bf16.mxu1 %v7262_v13  ;;  %v2450_v13 = vld [vmem:[#allocation7 + $0x1c30] sm:$0xff]  ;;  %v7298_v41 = vpack.c.bf16 %v1573_v16, %v1557_v15  ;;  %v1572_v56 = vld [vmem:[#allocation7 + $0xc0] sm:$0xff]  ;;  %v1717_v16 = vld [vmem:[#allocation7 + $0x548] sm:$0xff] }
 0x59f   :  { %v7300_v3 = vpack.c.bf16 %v1572_v56, %v1556_v42  ;;  %v1702_v15 = vld [vmem:[#allocation7 + $0x4d0] sm:$0xff]  ;;  %v1716_v56 = vld [vmem:[#allocation7 + $0x540] sm:$0xff] }
 0x5a0   :  { %7137 = vmatpush1.bf16.msra.mxu0 %v7136_v36  ;;  %v2499_v36 = vld [vmem:[#allocation7 + $0x1db8] sm:$0xff] }
 0x5a1   :  { %7265 = vmatpush1.bf16.msra.mxu1 %v7264_v50  ;;  %7139 = vmatprep.subr.bf16.mxu0 %v7138_v9  ;;  %v7156_v50 = vpack.c.bf16 %v2464_v8, %v2448_v14  ;;  %v7284_v9 = vpack.c.bf16 %v2466_v6, %v2450_v13  ;;  %v7286_v34 = vpack.c.bf16 %v2499_v36, %v2483_v47  ;;  %v1588_v14 = vld [vmem:[#allocation7 + $0x140] sm:$0xff]  ;;  %v1590_v13 = vld [vmem:[#allocation7 + $0x150] sm:$0xff]  ;;  %v1623_v36 = vld [vmem:[#allocation7 + $0x258] sm:$0xff] }
 0x5a2   :  { %7267 = vmatprep.subr.bf16.mxu1 %v7266_v44  ;;  %v2482_v44 = vld [vmem:[#allocation7 + $0x1d30] sm:$0xff]  ;;  %v1604_v8 = vld [vmem:[#allocation7 + $0x1c0] sm:$0xff] }
 0x5a3   :  { %v1606_v6 = vld [vmem:[#allocation7 + $0x1d0] sm:$0xff] }
 0x5a4   :  { %7141 = vmatpush1.bf16.msra.mxu0 %v7140_v38  ;;  %v2531_v38 = vld [vmem:[#allocation7 + $0x1eb8] sm:$0xff] }
 0x5a5   :  { %7269 = vmatpush1.bf16.msra.mxu1 %v7268_v51  ;;  %7143 = vmatprep.subr.bf16.mxu0 %v7142_v24  ;;  %v7160_v51 = vpack.c.bf16 %v2496_v55, %v2480_v18  ;;  %v7288_v24 = vpack.c.bf16 %v2498_v58, %v2482_v44  ;;  %v7290_v25 = vpack.c.bf16 %v2531_v38, %v2515_v33  ;;  %v1620_v55 = vld [vmem:[#allocation7 + $0x240] sm:$0xff]  ;;  %v1669_v33 = vld [vmem:[#allocation7 + $0x3c8] sm:$0xff]  ;;  %v1655_v38 = vld [vmem:[#allocation7 + $0x358] sm:$0xff] }
 0x5a6   :  { %7271 = vmatprep.subr.bf16.mxu1 %v7270_v19  ;;  %v2514_v19 = vld [vmem:[#allocation7 + $0x1e30] sm:$0xff]  ;;  %v7306_v18 = vpack.c.bf16 %v1637_v40, %v1621_v17  ;;  %v1636_v44 = vld [vmem:[#allocation7 + $0x2c0] sm:$0xff] }
 0x5a7   :  { %v1766_v40 = vld [vmem:[#allocation7 + $0x6d0] sm:$0xff] }
 0x5a8   :  { %7145 = vmatpush1.bf16.msra.mxu0 %v7144_v39  ;;  %v2563_v39 = vld [vmem:[#allocation7 + $0x1fb8] sm:$0xff] }
 0x5a9   :  { %7273 = vmatpush1.bf16.msra.mxu1 %v7272_v26  ;;  %7147 = vmatprep.subr.bf16.mxu0 %v7146_v23  ;;  %v7164_v26 = vpack.c.bf16 %v2528_v2, %v2512_v5  ;;  %v7292_v23 = vpack.c.bf16 %v2530_v29, %v2514_v19  ;;  %v7294_v57 = vpack.c.bf16 %v2563_v39, %v2547_v35  ;;  %v1652_v2 = vld [vmem:[#allocation7 + $0x340] sm:$0xff]  ;;  %v1701_v35 = vld [vmem:[#allocation7 + $0x4c8] sm:$0xff]  ;;  %v1687_v39 = vld [vmem:[#allocation7 + $0x458] sm:$0xff] }
 0x5aa   :  { %7275 = vmatprep.subr.bf16.mxu1 %v7274_v52  ;;  %v2546_v52 = vld [vmem:[#allocation7 + $0x1f30] sm:$0xff]  ;;  %v7310_v5 = vpack.c.bf16 %v1669_v33, %v1653_v22  ;;  %v1668_v19 = vld [vmem:[#allocation7 + $0x3c0] sm:$0xff]  ;;  %v1813_v33 = vld [vmem:[#allocation7 + $0x848] sm:$0xff] }
 0x5ab   :  { %v1798_v22 = vld [vmem:[#allocation7 + $0x7d0] sm:$0xff] }
 0x5ac   :  { %7149 = vmatpush1.bf16.msra.mxu0 %v7148_v53  ;;  %v1575_v53 = vld [vmem:[#allocation7 + $0xd8] sm:$0xff] }
 0x5ad   :  { %7277 = vmatpush1.bf16.msra.mxu1 %v7276_v61  ;;  %7151 = vmatprep.subr.bf16.mxu0 %v7150_v63  ;;  %v7168_v61 = vpack.c.bf16 %v2560_v59, %v2544_v45  ;;  %v7296_v63 = vpack.c.bf16 %v2562_v32, %v2546_v52  ;;  %v7314_v45 = vpack.c.bf16 %v1701_v35, %v1685_v1  ;;  %v1684_v59 = vld [vmem:[#allocation7 + $0x440] sm:$0xff]  ;;  %v1830_v1 = vld [vmem:[#allocation7 + $0x8d0] sm:$0xff]  ;;  %v1845_v35 = vld [vmem:[#allocation7 + $0x948] sm:$0xff] }
 0x5ae   :  { %7279 = vmatprep.subr.bf16.mxu1 %v7278_v20  ;;  %v7426_v20 = vpack.c.bf16 %v1575_v53, %v1559_v62  ;;  %v1700_v52 = vld [vmem:[#allocation7 + $0x4c0] sm:$0xff]  ;;  %v1733_v62 = vld [vmem:[#allocation7 + $0x5c8] sm:$0xff]  ;;  %v1719_v53 = vld [vmem:[#allocation7 + $0x558] sm:$0xff] }
 0x5af   :  { %v7318_v42 = vpack.c.bf16 %v1733_v62, %v1717_v16  ;;  %v1862_v16 = vld [vmem:[#allocation7 + $0x9d0] sm:$0xff]  ;;  %v1877_v62 = vld [vmem:[#allocation7 + $0xa48] sm:$0xff] }
 0x5b0   :  { %7153 = vmatpush1.bf16.msra.mxu0 %v7152_v28  ;;  %v1591_v28 = vld [vmem:[#allocation7 + $0x158] sm:$0xff] }
 0x5b1   :  { %7281 = vmatpush1.bf16.msra.mxu1 %v7280_v60  ;;  %7155 = vmatprep.subr.bf16.mxu0 %v7154_v54  ;;  %v1607_v60 = vld [vmem:[#allocation7 + $0x1d8] sm:$0xff]  ;;  %v7428_v54 = vpack.c.bf16 %v1574_v27, %v1558_v10  ;;  %v1718_v10 = vld [vmem:[#allocation7 + $0x550] sm:$0xff] }
 0x5b2   :  { %7283 = vmatprep.subr.bf16.mxu1 %v7282_v30  ;;  %v7302_v30 = vpack.c.bf16 %v1605_v48, %v1589_v0  ;;  %v7430_v47 = vpack.c.bf16 %v1607_v60, %v1591_v28  ;;  %v1734_v0 = vld [vmem:[#allocation7 + $0x5d0] sm:$0xff]  ;;  %v1749_v48 = vld [vmem:[#allocation7 + $0x648] sm:$0xff]  ;;  %v1751_v28 = vld [vmem:[#allocation7 + $0x658] sm:$0xff] }
 0x5b3   :  { %v1767_v60 = vld [vmem:[#allocation7 + $0x6d8] sm:$0xff] }
 0x5b4   :  { %7157 = vmatpush1.bf16.msra.mxu0 %v7156_v50  ;;  %v1639_v50 = vld [vmem:[#allocation7 + $0x2d8] sm:$0xff]  ;;  %v7450_v17 = vpack.c.bf16 %v1767_v60, %v1751_v28  ;;  %v1925_v28 = vld [vmem:[#allocation7 + $0xbc8] sm:$0xff] }
 0x5b5   :  { %7285 = vmatpush1.bf16.msra.mxu1 %v7284_v9  ;;  %7159 = vmatprep.subr.bf16.mxu0 %v7158_v4  ;;  %v7304_v9 = vpack.c.bf16 %v1604_v8, %v1588_v14  ;;  %v7432_v4 = vpack.c.bf16 %v1606_v6, %v1590_v13  ;;  %v7434_v58 = vpack.c.bf16 %v1639_v50, %v1623_v36  ;;  %v1748_v13 = vld [vmem:[#allocation7 + $0x640] sm:$0xff]  ;;  %v1750_v6 = vld [vmem:[#allocation7 + $0x650] sm:$0xff]  ;;  %v1797_v36 = vld [vmem:[#allocation7 + $0x7c8] sm:$0xff] }
 0x5b6   :  { %7287 = vmatprep.subr.bf16.mxu1 %v7286_v34  ;;  %v1622_v34 = vld [vmem:[#allocation7 + $0x250] sm:$0xff]  ;;  %v7448_v14 = vpack.c.bf16 %v1734_v0, %v1718_v10  ;;  %v1783_v50 = vld [vmem:[#allocation7 + $0x758] sm:$0xff]  ;;  %v1892_v10 = vld [vmem:[#allocation7 + $0xac0] sm:$0xff] }
 0x5b7   :  { %v1911_v60 = vld [vmem:[#allocation7 + $0xb58] sm:$0xff] }
 0x5b8   :  { %7161 = vmatpush1.bf16.msra.mxu0 %v7160_v51  ;;  %v1671_v51 = vld [vmem:[#allocation7 + $0x3d8] sm:$0xff] }
 0x5b9   :  { %7289 = vmatpush1.bf16.msra.mxu1 %v7288_v24  ;;  %7163 = vmatprep.subr.bf16.mxu0 %v7162_v12  ;;  %v7308_v24 = vpack.c.bf16 %v1636_v44, %v1620_v55  ;;  %v7436_v12 = vpack.c.bf16 %v1638_v31, %v1622_v34  ;;  %v7438_v29 = vpack.c.bf16 %v1671_v51, %v1655_v38  ;;  %v1780_v44 = vld [vmem:[#allocation7 + $0x740] sm:$0xff]  ;;  %v1829_v38 = vld [vmem:[#allocation7 + $0x8c8] sm:$0xff]  ;;  %v1815_v51 = vld [vmem:[#allocation7 + $0x858] sm:$0xff] }
 0x5ba   :  { %7291 = vmatprep.subr.bf16.mxu1 %v7290_v25  ;;  %v1654_v25 = vld [vmem:[#allocation7 + $0x350] sm:$0xff]  ;;  %v1796_v34 = vld [vmem:[#allocation7 + $0x7c0] sm:$0xff] }
 0x5bc   :  { %7165 = vmatpush1.bf16.msra.mxu0 %v7164_v26  ;;  %v1703_v26 = vld [vmem:[#allocation7 + $0x4d8] sm:$0xff] }
 0x5bd   :  { %7293 = vmatpush1.bf16.msra.mxu1 %v7292_v23  ;;  %7167 = vmatprep.subr.bf16.mxu0 %v7166_v43  ;;  %v7312_v23 = vpack.c.bf16 %v1668_v19, %v1652_v2  ;;  %v7440_v43 = vpack.c.bf16 %v1670_v49, %v1654_v25  ;;  %v7442_v32 = vpack.c.bf16 %v1703_v26, %v1687_v39  ;;  %v1812_v19 = vld [vmem:[#allocation7 + $0x840] sm:$0xff]  ;;  %v1861_v39 = vld [vmem:[#allocation7 + $0x9c8] sm:$0xff]  ;;  %v1847_v26 = vld [vmem:[#allocation7 + $0x958] sm:$0xff] }
 0x5be   :  { %7295 = vmatprep.subr.bf16.mxu1 %v7294_v57  ;;  %v1686_v57 = vld [vmem:[#allocation7 + $0x450] sm:$0xff]  ;;  %v7330_v2 = vpack.c.bf16 %v1829_v38, %v1813_v33  ;;  %v1828_v25 = vld [vmem:[#allocation7 + $0x8c0] sm:$0xff]  ;;  %v1973_v38 = vld [vmem:[#allocation7 + $0xd48] sm:$0xff] }
 0x5bf   :  { %v1958_v33 = vld [vmem:[#allocation7 + $0xcd0] sm:$0xff] }
 0x5c0   :  { %7169 = vmatpush1.bf16.msra.mxu0 %v7168_v61  ;;  %v1735_v61 = vld [vmem:[#allocation7 + $0x5d8] sm:$0xff] }
 0x5c1   :  { %7297 = vmatpush1.bf16.msra.mxu1 %v7296_v63  ;;  %7299 = vmatprep.subr.bf16.mxu0 %v7298_v41  ;;  %v7316_v63 = vpack.c.bf16 %v1700_v52, %v1684_v59  ;;  %v7444_v41 = vpack.c.bf16 %v1702_v15, %v1686_v57  ;;  %v7446_v27 = vpack.c.bf16 %v1735_v61, %v1719_v53  ;;  %v1844_v52 = vld [vmem:[#allocation7 + $0x940] sm:$0xff]  ;;  %v1893_v53 = vld [vmem:[#allocation7 + $0xac8] sm:$0xff]  ;;  %v1879_v61 = vld [vmem:[#allocation7 + $0xa58] sm:$0xff] }
 0x5c2   :  { %7427 = vmatprep.subr.bf16.mxu1 %v7426_v20  ;;  %v1732_v20 = vld [vmem:[#allocation7 + $0x5c0] sm:$0xff]  ;;  %v7334_v59 = vpack.c.bf16 %v1861_v39, %v1845_v35  ;;  %v1990_v35 = vld [vmem:[#allocation7 + $0xdd0] sm:$0xff]  ;;  %v2005_v39 = vld [vmem:[#allocation7 + $0xe48] sm:$0xff] }
 0x5c3   :  { %2992 = vmatmul.mubr.f32.vlgmr.msra.gmra.mrb[36].mxu0 %v9335_v37  ;;  %v1860_v57 = vld [vmem:[#allocation7 + $0x9c0] sm:$0xff] }
 0x5c4   :  { %3134 = vmatmul.mubr.f32.vlgmr.msra.gmra.mrb[12].mxu1 %v9335_v37  ;;  %7301 = vmatpush1.bf16.msra.mxu0 %v7300_v3  ;;  %v1765_v3 = vld [vmem:[#allocation7 + $0x6c8] sm:$0xff] }
 0x5c5   :  { %3204 = vmatprep.mubr.f32.mxu0 %v9318_v21  ;;  %7429 = vmatpush1.bf16.msra.mxu1 %v7428_v54  ;;  %v7320_v54 = vpack.c.bf16 %v1732_v20, %v1716_v56  ;;  %v7322_v8 = vpack.c.bf16 %v1765_v3, %v1749_v48  ;;  %v7338_v56 = vpack.c.bf16 %v1893_v53, %v1877_v62  ;;  %v1876_v20 = vld [vmem:[#allocation7 + $0xa40] sm:$0xff]  ;;  %v1894_v48 = vld [vmem:[#allocation7 + $0xad0] sm:$0xff]  ;;  %v1909_v3 = vld [vmem:[#allocation7 + $0xb48] sm:$0xff] }
 0x5c6   :  { %3346 = vmatprep.mubr.f32.mxu1 %v9318_v21  ;;  %7303 = vmatprep.subr.bf16.mxu0 %v7302_v30  ;;  %v1764_v30 = vld [vmem:[#allocation7 + $0x6c0] sm:$0xff]  ;;  %v2022_v62 = vld [vmem:[#allocation7 + $0xed0] sm:$0xff]  ;;  %v2037_v53 = vld [vmem:[#allocation7 + $0xf48] sm:$0xff] }
 0x5c7   :  { %7431 = vmatprep.subr.bf16.mxu1 %v7430_v47  ;;  %v1781_v47 = vld [vmem:[#allocation7 + $0x748] sm:$0xff] }
 0x5c8   :  { %7305 = vmatpush1.bf16.msra.mxu0 %v7304_v9  ;;  %v1799_v9 = vld [vmem:[#allocation7 + $0x7d8] sm:$0xff]  ;;  %v7326_v55 = vpack.c.bf16 %v1797_v36, %v1781_v47  ;;  %v1926_v47 = vld [vmem:[#allocation7 + $0xbd0] sm:$0xff]  ;;  %v1941_v36 = vld [vmem:[#allocation7 + $0xc48] sm:$0xff] }
 0x5c9   :  { %7433 = vmatpush1.bf16.msra.mxu1 %v7432_v4  ;;  %7307 = vmatprep.subr.bf16.mxu0 %v7306_v18  ;;  %v7324_v4 = vpack.c.bf16 %v1764_v30, %v1748_v13  ;;  %v7452_v18 = vpack.c.bf16 %v1766_v40, %v1750_v6  ;;  %v7454_v31 = vpack.c.bf16 %v1799_v9, %v1783_v50  ;;  %v1908_v30 = vld [vmem:[#allocation7 + $0xb40] sm:$0xff]  ;;  %v1957_v50 = vld [vmem:[#allocation7 + $0xcc8] sm:$0xff]  ;;  %v1943_v9 = vld [vmem:[#allocation7 + $0xc58] sm:$0xff] }
 0x5ca   :  { %7435 = vmatprep.subr.bf16.mxu1 %v7434_v58  ;;  %v1782_v58 = vld [vmem:[#allocation7 + $0x750] sm:$0xff]  ;;  %v7342_v13 = vpack.c.bf16 %v1925_v28, %v1909_v3  ;;  %v1924_v6 = vld [vmem:[#allocation7 + $0xbc0] sm:$0xff]  ;;  %v2069_v28 = vld [vmem:[#allocation7 + $0x1048] sm:$0xff] }
 0x5cb   :  { %v2054_v3 = vld [vmem:[#allocation7 + $0xfd0] sm:$0xff] }
 0x5cc   :  { %7309 = vmatpush1.bf16.msra.mxu0 %v7308_v24  ;;  %v1831_v24 = vld [vmem:[#allocation7 + $0x8d8] sm:$0xff] }
 0x5cd   :  { %7437 = vmatpush1.bf16.msra.mxu1 %v7436_v12  ;;  %7311 = vmatprep.subr.bf16.mxu0 %v7310_v5  ;;  %v7328_v12 = vpack.c.bf16 %v1796_v34, %v1780_v44  ;;  %v7456_v5 = vpack.c.bf16 %v1798_v22, %v1782_v58  ;;  %v7458_v49 = vpack.c.bf16 %v1831_v24, %v1815_v51  ;;  %v1940_v34 = vld [vmem:[#allocation7 + $0xc40] sm:$0xff]  ;;  %v1989_v51 = vld [vmem:[#allocation7 + $0xdc8] sm:$0xff]  ;;  %v1975_v24 = vld [vmem:[#allocation7 + $0xd58] sm:$0xff] }
 0x5ce   :  { %7439 = vmatprep.subr.bf16.mxu1 %v7438_v29  ;;  %v1814_v29 = vld [vmem:[#allocation7 + $0x850] sm:$0xff]  ;;  %v7346_v44 = vpack.c.bf16 %v1957_v50, %v1941_v36  ;;  %v1956_v58 = vld [vmem:[#allocation7 + $0xcc0] sm:$0xff]  ;;  %v2101_v50 = vld [vmem:[#allocation7 + $0x1148] sm:$0xff] }
 0x5cf   :  { %v2086_v36 = vld [vmem:[#allocation7 + $0x10d0] sm:$0xff] }
 0x5d0   :  { %7313 = vmatpush1.bf16.msra.mxu0 %v7312_v23  ;;  %v1863_v23 = vld [vmem:[#allocation7 + $0x9d8] sm:$0xff] }
 0x5d1   :  { %7441 = vmatpush1.bf16.msra.mxu1 %v7440_v43  ;;  %7315 = vmatprep.subr.bf16.mxu0 %v7314_v45  ;;  %v7332_v43 = vpack.c.bf16 %v1828_v25, %v1812_v19  ;;  %v7460_v45 = vpack.c.bf16 %v1830_v1, %v1814_v29  ;;  %v7462_v15 = vpack.c.bf16 %v1863_v23, %v1847_v26  ;;  %v1972_v25 = vld [vmem:[#allocation7 + $0xd40] sm:$0xff]  ;;  %v2021_v26 = vld [vmem:[#allocation7 + $0xec8] sm:$0xff]  ;;  %v2007_v23 = vld [vmem:[#allocation7 + $0xe58] sm:$0xff] }
 0x5d2   :  { %7443 = vmatprep.subr.bf16.mxu1 %v7442_v32  ;;  %v1846_v32 = vld [vmem:[#allocation7 + $0x950] sm:$0xff]  ;;  %v7350_v19 = vpack.c.bf16 %v1989_v51, %v1973_v38  ;;  %v1988_v29 = vld [vmem:[#allocation7 + $0xdc0] sm:$0xff]  ;;  %v2133_v38 = vld [vmem:[#allocation7 + $0x1248] sm:$0xff] }
 0x5d3   :  { %v2149_v51 = vld [vmem:[#allocation7 + $0x12c8] sm:$0xff] }
 0x5d4   :  { %7317 = vmatpush1.bf16.msra.mxu0 %v7316_v63  ;;  %v1895_v63 = vld [vmem:[#allocation7 + $0xad8] sm:$0xff] }
 0x5d5   :  { %7445 = vmatpush1.bf16.msra.mxu1 %v7444_v41  ;;  %7319 = vmatprep.subr.bf16.mxu0 %v7318_v42  ;;  %v7336_v41 = vpack.c.bf16 %v1860_v57, %v1844_v52  ;;  %v7464_v42 = vpack.c.bf16 %v1862_v16, %v1846_v32  ;;  %v7466_v0 = vpack.c.bf16 %v1895_v63, %v1879_v61  ;;  %v2004_v57 = vld [vmem:[#allocation7 + $0xe40] sm:$0xff]  ;;  %v2053_v61 = vld [vmem:[#allocation7 + $0xfc8] sm:$0xff]  ;;  %v2039_v63 = vld [vmem:[#allocation7 + $0xf58] sm:$0xff] }
 0x5d6   :  { %7447 = vmatprep.subr.bf16.mxu1 %v7446_v27  ;;  %v1878_v27 = vld [vmem:[#allocation7 + $0xa50] sm:$0xff]  ;;  %v7354_v52 = vpack.c.bf16 %v2021_v26, %v2005_v39  ;;  %v2020_v32 = vld [vmem:[#allocation7 + $0xec0] sm:$0xff]  ;;  %v2165_v26 = vld [vmem:[#allocation7 + $0x1348] sm:$0xff] }
 0x5d7   :  { %v2150_v39 = vld [vmem:[#allocation7 + $0x12d0] sm:$0xff] }
 0x5d8   :  { %7321 = vmatpush1.bf16.msra.mxu0 %v7320_v54  ;;  %v1927_v54 = vld [vmem:[#allocation7 + $0xbd8] sm:$0xff] }
 0x5d9   :  { %7449 = vmatpush1.bf16.msra.mxu1 %v7448_v14  ;;  %7323 = vmatprep.subr.bf16.mxu0 %v7322_v8  ;;  %v7340_v14 = vpack.c.bf16 %v1892_v10, %v1876_v20  ;;  %v7468_v8 = vpack.c.bf16 %v1894_v48, %v1878_v27  ;;  %v7470_v40 = vpack.c.bf16 %v1927_v54, %v1911_v60  ;;  %v2036_v10 = vld [vmem:[#allocation7 + $0xf40] sm:$0xff]  ;;  %v2085_v60 = vld [vmem:[#allocation7 + $0x10c8] sm:$0xff]  ;;  %v2071_v54 = vld [vmem:[#allocation7 + $0x1058] sm:$0xff] }
 0x5da   :  { %7451 = vmatprep.subr.bf16.mxu1 %v7450_v17  ;;  %v1910_v17 = vld [vmem:[#allocation7 + $0xb50] sm:$0xff]  ;;  %v7358_v20 = vpack.c.bf16 %v2053_v61, %v2037_v53  ;;  %v2052_v27 = vld [vmem:[#allocation7 + $0xfc0] sm:$0xff]  ;;  %v2197_v61 = vld [vmem:[#allocation7 + $0x1448] sm:$0xff] }
 0x5db   :  { %v2182_v53 = vld [vmem:[#allocation7 + $0x13d0] sm:$0xff] }
 0x5dc   :  { %7325 = vmatpush1.bf16.msra.mxu0 %v7324_v4  ;;  %v1959_v4 = vld [vmem:[#allocation7 + $0xcd8] sm:$0xff] }
 0x5dd   :  { %7453 = vmatpush1.bf16.msra.mxu1 %v7452_v18  ;;  %7327 = vmatprep.subr.bf16.mxu0 %v7326_v55  ;;  %v7344_v18 = vpack.c.bf16 %v1924_v6, %v1908_v30  ;;  %v7472_v55 = vpack.c.bf16 %v1926_v47, %v1910_v17  ;;  %v7474_v22 = vpack.c.bf16 %v1959_v4, %v1943_v9  ;;  %v2068_v6 = vld [vmem:[#allocation7 + $0x1040] sm:$0xff]  ;;  %v2070_v47 = vld [vmem:[#allocation7 + $0x1050] sm:$0xff]  ;;  %v2117_v9 = vld [vmem:[#allocation7 + $0x11c8] sm:$0xff] }
 0x5de   :  { %7455 = vmatprep.subr.bf16.mxu1 %v7454_v31  ;;  %v1942_v31 = vld [vmem:[#allocation7 + $0xc50] sm:$0xff]  ;;  %v7362_v30 = vpack.c.bf16 %v2085_v60, %v2069_v28  ;;  %v2084_v17 = vld [vmem:[#allocation7 + $0x10c0] sm:$0xff]  ;;  %v2229_v60 = vld [vmem:[#allocation7 + $0x1548] sm:$0xff] }
 0x5df   :  { %v7364_v4 = vpack.c.bf16 %v2084_v17, %v2068_v6  ;;  %v2214_v28 = vld [vmem:[#allocation7 + $0x14d0] sm:$0xff]  ;;  %v2228_v17 = vld [vmem:[#allocation7 + $0x1540] sm:$0xff] }
 0x5e0   :  { %7329 = vmatpush1.bf16.msra.mxu0 %v7328_v12  ;;  %v1991_v12 = vld [vmem:[#allocation7 + $0xdd8] sm:$0xff] }
 0x5e1   :  { %7457 = vmatpush1.bf16.msra.mxu1 %v7456_v5  ;;  %7331 = vmatprep.subr.bf16.mxu0 %v7330_v2  ;;  %v7348_v5 = vpack.c.bf16 %v1956_v58, %v1940_v34  ;;  %v7476_v2 = vpack.c.bf16 %v1958_v33, %v1942_v31  ;;  %v7478_v1 = vpack.c.bf16 %v1991_v12, %v1975_v24  ;;  %v2100_v34 = vld [vmem:[#allocation7 + $0x1140] sm:$0xff]  ;;  %v2102_v31 = vld [vmem:[#allocation7 + $0x1150] sm:$0xff]  ;;  %v2135_v12 = vld [vmem:[#allocation7 + $0x1258] sm:$0xff] }
 0x5e2   :  { %7459 = vmatprep.subr.bf16.mxu1 %v7458_v49  ;;  %v1974_v49 = vld [vmem:[#allocation7 + $0xd50] sm:$0xff]  ;;  %v2116_v58 = vld [vmem:[#allocation7 + $0x11c0] sm:$0xff] }
 0x5e3   :  { %v2118_v33 = vld [vmem:[#allocation7 + $0x11d0] sm:$0xff] }
 0x5e4   :  { %7333 = vmatpush1.bf16.msra.mxu0 %v7332_v43  ;;  %v2023_v43 = vld [vmem:[#allocation7 + $0xed8] sm:$0xff] }
 0x5e5   :  { %7461 = vmatpush1.bf16.msra.mxu1 %v7460_v45  ;;  %7335 = vmatprep.subr.bf16.mxu0 %v7334_v59  ;;  %v7352_v45 = vpack.c.bf16 %v1988_v29, %v1972_v25  ;;  %v7480_v59 = vpack.c.bf16 %v1990_v35, %v1974_v49  ;;  %v7482_v16 = vpack.c.bf16 %v2023_v43, %v2007_v23  ;;  %v2132_v29 = vld [vmem:[#allocation7 + $0x1240] sm:$0xff]  ;;  %v2181_v23 = vld [vmem:[#allocation7 + $0x13c8] sm:$0xff]  ;;  %v2167_v43 = vld [vmem:[#allocation7 + $0x1358] sm:$0xff] }
 0x5e6   :  { %7463 = vmatprep.subr.bf16.mxu1 %v7462_v15  ;;  %v2006_v15 = vld [vmem:[#allocation7 + $0xe50] sm:$0xff]  ;;  %v7370_v25 = vpack.c.bf16 %v2149_v51, %v2133_v38  ;;  %v2148_v49 = vld [vmem:[#allocation7 + $0x12c0] sm:$0xff] }
 0x5e8   :  { %7337 = vmatpush1.bf16.msra.mxu0 %v7336_v41  ;;  %v2055_v41 = vld [vmem:[#allocation7 + $0xfd8] sm:$0xff] }
 0x5e9   :  { %7465 = vmatpush1.bf16.msra.mxu1 %v7464_v42  ;;  %7339 = vmatprep.subr.bf16.mxu0 %v7338_v56  ;;  %v7356_v42 = vpack.c.bf16 %v2020_v32, %v2004_v57  ;;  %v7484_v56 = vpack.c.bf16 %v2022_v62, %v2006_v15  ;;  %v7486_v48 = vpack.c.bf16 %v2055_v41, %v2039_v63  ;;  %v2164_v32 = vld [vmem:[#allocation7 + $0x1340] sm:$0xff]  ;;  %v2213_v63 = vld [vmem:[#allocation7 + $0x14c8] sm:$0xff]  ;;  %v2199_v41 = vld [vmem:[#allocation7 + $0x1458] sm:$0xff] }
 0x5ea   :  { %7467 = vmatprep.subr.bf16.mxu1 %v7466_v0  ;;  %v2038_v0 = vld [vmem:[#allocation7 + $0xf50] sm:$0xff]  ;;  %v7374_v57 = vpack.c.bf16 %v2181_v23, %v2165_v26  ;;  %v2180_v15 = vld [vmem:[#allocation7 + $0x13c0] sm:$0xff] }
 0x5eb   :  { %v2292_v26 = vld [vmem:[#allocation7 + $0x1740] sm:$0xff] }
 0x5ec   :  { %7341 = vmatpush1.bf16.msra.mxu0 %v7340_v14  ;;  %v2087_v14 = vld [vmem:[#allocation7 + $0x10d8] sm:$0xff]  ;;  %v2308_v23 = vld [vmem:[#allocation7 + $0x17c0] sm:$0xff] }
 0x5ed   :  { %7469 = vmatpush1.bf16.msra.mxu1 %v7468_v8  ;;  %7343 = vmatprep.subr.bf16.mxu0 %v7342_v13  ;;  %v7360_v8 = vpack.c.bf16 %v2052_v27, %v2036_v10  ;;  %v7488_v13 = vpack.c.bf16 %v2054_v3, %v2038_v0  ;;  %v7378_v10 = vpack.c.bf16 %v2213_v63, %v2197_v61  ;;  %v2196_v27 = vld [vmem:[#allocation7 + $0x1440] sm:$0xff] }
 0x5ee   :  { %7471 = vmatprep.subr.bf16.mxu1 %v7470_v40  ;;  %v7490_v40 = vpack.c.bf16 %v2087_v14, %v2071_v54  ;;  %v2212_v0 = vld [vmem:[#allocation7 + $0x14c0] sm:$0xff]  ;;  %v2245_v54 = vld [vmem:[#allocation7 + $0x15c8] sm:$0xff]  ;;  %v2231_v14 = vld [vmem:[#allocation7 + $0x1558] sm:$0xff] }
 0x5ef   :  { %v7382_v6 = vpack.c.bf16 %v2245_v54, %v2229_v60  ;;  %v2324_v61 = vld [vmem:[#allocation7 + $0x1840] sm:$0xff] }
 0x5f0   :  { %7345 = vmatpush1.bf16.msra.mxu0 %v7344_v18  ;;  %v2103_v18 = vld [vmem:[#allocation7 + $0x1158] sm:$0xff]  ;;  %v2340_v63 = vld [vmem:[#allocation7 + $0x18c0] sm:$0xff] }
 0x5f1   :  { %7473 = vmatpush1.bf16.msra.mxu1 %v7472_v55  ;;  %7347 = vmatprep.subr.bf16.mxu0 %v7346_v44  ;;  %v2119_v55 = vld [vmem:[#allocation7 + $0x11d8] sm:$0xff]  ;;  %v7492_v44 = vpack.c.bf16 %v2086_v36, %v2070_v47  ;;  %v2230_v47 = vld [vmem:[#allocation7 + $0x1550] sm:$0xff]  ;;  %v2356_v60 = vld [vmem:[#allocation7 + $0x1940] sm:$0xff] }
 0x5f2   :  { %7475 = vmatprep.subr.bf16.mxu1 %v7474_v22  ;;  %v7366_v22 = vpack.c.bf16 %v2117_v9, %v2101_v50  ;;  %v7494_v24 = vpack.c.bf16 %v2119_v55, %v2103_v18  ;;  %v2246_v50 = vld [vmem:[#allocation7 + $0x15d0] sm:$0xff]  ;;  %v2261_v9 = vld [vmem:[#allocation7 + $0x1648] sm:$0xff]  ;;  %v2263_v18 = vld [vmem:[#allocation7 + $0x1658] sm:$0xff] }
 0x5f3   :  { %v2279_v55 = vld [vmem:[#allocation7 + $0x16d8] sm:$0xff]  ;;  %v2372_v54 = vld [vmem:[#allocation7 + $0x19c0] sm:$0xff] }
 0x5f4   :  { %7349 = vmatpush1.bf16.msra.mxu0 %v7348_v5  ;;  %v2151_v5 = vld [vmem:[#allocation7 + $0x12d8] sm:$0xff] }
 0x5f5   :  { %7477 = vmatpush1.bf16.msra.mxu1 %v7476_v2  ;;  %7351 = vmatprep.subr.bf16.mxu0 %v7350_v19  ;;  %v7368_v2 = vpack.c.bf16 %v2116_v58, %v2100_v34  ;;  %v7496_v19 = vpack.c.bf16 %v2118_v33, %v2102_v31  ;;  %v7498_v35 = vpack.c.bf16 %v2151_v5, %v2135_v12  ;;  %v2260_v31 = vld [vmem:[#allocation7 + $0x1640] sm:$0xff]  ;;  %v2262_v33 = vld [vmem:[#allocation7 + $0x1650] sm:$0xff]  ;;  %v2293_v5 = vld [vmem:[#allocation7 + $0x1748] sm:$0xff] }
 0x5f6   :  { %7479 = vmatprep.subr.bf16.mxu1 %v7478_v1  ;;  %v2134_v1 = vld [vmem:[#allocation7 + $0x1250] sm:$0xff]  ;;  %v7512_v34 = vpack.c.bf16 %v2246_v50, %v2230_v47  ;;  %v7400_v47 = vpack.c.bf16 %v2372_v54, %v2356_v60  ;;  %v2519_v60 = vld [vmem:[#allocation7 + $0x1e58] sm:$0xff] }
 0x5f7   :  { %v2278_v12 = vld [vmem:[#allocation7 + $0x16d0] sm:$0xff]  ;;  %v2535_v54 = vld [vmem:[#allocation7 + $0x1ed8] sm:$0xff] }
 0x5f8   :  { %7353 = vmatpush1.bf16.msra.mxu0 %v7352_v45  ;;  %v2183_v45 = vld [vmem:[#allocation7 + $0x13d8] sm:$0xff] }
 0x5f9   :  { %7481 = vmatpush1.bf16.msra.mxu1 %v7480_v59  ;;  %7355 = vmatprep.subr.bf16.mxu0 %v7354_v52  ;;  %v7372_v59 = vpack.c.bf16 %v2148_v49, %v2132_v29  ;;  %v7500_v52 = vpack.c.bf16 %v2150_v39, %v2134_v1  ;;  %v7502_v62 = vpack.c.bf16 %v2183_v45, %v2167_v43  ;;  %v2295_v29 = vld [vmem:[#allocation7 + $0x1758] sm:$0xff]  ;;  %v2294_v43 = vld [vmem:[#allocation7 + $0x1750] sm:$0xff] }
 0x5fa   :  { %7483 = vmatprep.subr.bf16.mxu1 %v7482_v16  ;;  %v2166_v16 = vld [vmem:[#allocation7 + $0x1350] sm:$0xff]  ;;  %v2311_v49 = vld [vmem:[#allocation7 + $0x17d8] sm:$0xff] }
 0x5fb   :  { %v7518_v45 = vpack.c.bf16 %v2311_v49, %v2295_v29  ;;  %v2422_v29 = vld [vmem:[#allocation7 + $0x1b50] sm:$0xff] }
 0x5fc   :  { %7357 = vmatpush1.bf16.msra.mxu0 %v7356_v42  ;;  %v2215_v42 = vld [vmem:[#allocation7 + $0x14d8] sm:$0xff] }
 0x5fd   :  { %7485 = vmatpush1.bf16.msra.mxu1 %v7484_v56  ;;  %7359 = vmatprep.subr.bf16.mxu0 %v7358_v20  ;;  %v7376_v56 = vpack.c.bf16 %v2180_v15, %v2164_v32  ;;  %v7504_v20 = vpack.c.bf16 %v2182_v53, %v2166_v16  ;;  %v7506_v3 = vpack.c.bf16 %v2215_v42, %v2199_v41  ;;  %v2327_v32 = vld [vmem:[#allocation7 + $0x1858] sm:$0xff]  ;;  %v2326_v41 = vld [vmem:[#allocation7 + $0x1850] sm:$0xff] }
 0x5fe   :  { %7487 = vmatprep.subr.bf16.mxu1 %v7486_v48  ;;  %v2198_v48 = vld [vmem:[#allocation7 + $0x1450] sm:$0xff]  ;;  %v2343_v15 = vld [vmem:[#allocation7 + $0x18d8] sm:$0xff]  ;;  %v7392_v16 = vpack.c.bf16 %v2308_v23, %v2292_v26 }
 0x5ff   :  { %v7522_v42 = vpack.c.bf16 %v2343_v15, %v2327_v32  ;;  %v2455_v26 = vld [vmem:[#allocation7 + $0x1c58] sm:$0xff]  ;;  %v2454_v32 = vld [vmem:[#allocation7 + $0x1c50] sm:$0xff] }
 0x600   :  { %7361 = vmatpush1.bf16.msra.mxu0 %v7360_v8  ;;  %v2247_v8 = vld [vmem:[#allocation7 + $0x15d8] sm:$0xff] }
 0x601   :  { %7489 = vmatpush1.bf16.msra.mxu1 %v7488_v13  ;;  %7363 = vmatprep.subr.bf16.mxu0 %v7362_v30  ;;  %v7380_v13 = vpack.c.bf16 %v2212_v0, %v2196_v27  ;;  %v7508_v30 = vpack.c.bf16 %v2214_v28, %v2198_v48  ;;  %v7510_v36 = vpack.c.bf16 %v2247_v8, %v2231_v14  ;;  %v2359_v27 = vld [vmem:[#allocation7 + $0x1958] sm:$0xff]  ;;  %v2358_v14 = vld [vmem:[#allocation7 + $0x1950] sm:$0xff] }
 0x602   :  { %7491 = vmatprep.subr.bf16.mxu1 %v7490_v40  ;;  %v2244_v40 = vld [vmem:[#allocation7 + $0x15c0] sm:$0xff]  ;;  %v2375_v0 = vld [vmem:[#allocation7 + $0x19d8] sm:$0xff]  ;;  %v7396_v48 = vpack.c.bf16 %v2340_v63, %v2324_v61 }
 0x603   :  { %3205 = vmatmul.mubr.f32.vlgmr.msra.gmra.mrb[38].mxu0 %v9320_v11  ;;  %v7526_v8 = vpack.c.bf16 %v2375_v0, %v2359_v27  ;;  %v2471_v23 = vld [vmem:[#allocation7 + $0x1cd8] sm:$0xff]  ;;  %v2486_v27 = vld [vmem:[#allocation7 + $0x1d50] sm:$0xff] }
 0x604   :  { %3347 = vmatmul.mubr.f32.vlgmr.msra.gmra.mrb[14].mxu1 %v9320_v11  ;;  %7365 = vmatpush1.bf16.msra.mxu0 %v7364_v4  ;;  %v2277_v4 = vld [vmem:[#allocation7 + $0x16c8] sm:$0xff]  ;;  %v7538_v15 = vpack.c.bf16 %v2471_v23, %v2455_v26  ;;  %v2487_v61 = vld [vmem:[#allocation7 + $0x1d58] sm:$0xff]  ;;  %v1562_v23 = vld [vmem:[#allocation7 + $0x70] sm:$0xff] }
 0x605   :  { %3275 = vmatprep.mubr.f32.mxu0 %v9329_v7  ;;  %7493 = vmatpush1.bf16.msra.mxu1 %v7492_v44  ;;  %v7384_v44 = vpack.c.bf16 %v2244_v40, %v2228_v17  ;;  %v7386_v58 = vpack.c.bf16 %v2277_v4, %v2261_v9  ;;  %v2391_v17 = vld [vmem:[#allocation7 + $0x1a58] sm:$0xff]  ;;  %v2388_v9 = vld [vmem:[#allocation7 + $0x1a40] sm:$0xff] }
 0x606   :  { %3417 = vmatprep.mubr.f32.mxu1 %v9329_v7  ;;  %7367 = vmatprep.subr.bf16.mxu0 %v7366_v22  ;;  %v2276_v22 = vld [vmem:[#allocation7 + $0x16c0] sm:$0xff]  ;;  %v2407_v40 = vld [vmem:[#allocation7 + $0x1ad8] sm:$0xff] }
 0x607   :  { %7495 = vmatprep.subr.bf16.mxu1 %v7494_v24  ;;  %v7514_v24 = vpack.c.bf16 %v2279_v55, %v2263_v18  ;;  %v7388_v1 = vpack.c.bf16 %v2276_v22, %v2260_v31  ;;  %v2404_v4 = vld [vmem:[#allocation7 + $0x1ac0] sm:$0xff]  ;;  %v2390_v18 = vld [vmem:[#allocation7 + $0x1a50] sm:$0xff]  ;;  %v7530_v55 = vpack.c.bf16 %v2407_v40, %v2391_v17  ;;  %v2423_v31 = vld [vmem:[#allocation7 + $0x1b58] sm:$0xff]  ;;  %v7546_v40 = vpack.c.bf16 %v2535_v54, %v2519_v60 }
 0x608   :  { %7369 = vmatpush1.bf16.msra.mxu0 %v7368_v2  ;;  %v2309_v2 = vld [vmem:[#allocation7 + $0x17c8] sm:$0xff]  ;;  %v2439_v22 = vld [vmem:[#allocation7 + $0x1bd8] sm:$0xff]  ;;  %v2518_v17 = vld [vmem:[#allocation7 + $0x1e50] sm:$0xff] }
 0x609   :  { %7497 = vmatpush1.bf16.msra.mxu1 %v7496_v19  ;;  %7371 = vmatprep.subr.bf16.mxu0 %v7370_v25  ;;  %v7390_v39 = vpack.c.bf16 %v2309_v2, %v2293_v5  ;;  %v2420_v5 = vld [vmem:[#allocation7 + $0x1b40] sm:$0xff]  ;;  %v7534_v49 = vpack.c.bf16 %v2439_v22, %v2423_v31  ;;  %v2503_v63 = vld [vmem:[#allocation7 + $0x1dd8] sm:$0xff]  ;;  %v2550_v31 = vld [vmem:[#allocation7 + $0x1f50] sm:$0xff] }
 0x60a   :  { %7499 = vmatprep.subr.bf16.mxu1 %v7498_v35  ;;  %v7516_v35 = vpack.c.bf16 %v2278_v12, %v2262_v33  ;;  %v7404_v33 = vpack.c.bf16 %v2404_v4, %v2388_v9  ;;  %v2436_v2 = vld [vmem:[#allocation7 + $0x1bc0] sm:$0xff]  ;;  %v7542_v0 = vpack.c.bf16 %v2503_v63, %v2487_v61  ;;  %v2551_v9 = vld [vmem:[#allocation7 + $0x1f58] sm:$0xff]  ;;  %v1610_v63 = vld [vmem:[#allocation7 + $0x1f0] sm:$0xff] }
 0x60b   :  { %v2567_v4 = vld [vmem:[#allocation7 + $0x1fd8] sm:$0xff]  ;;  %v1626_v60 = vld [vmem:[#allocation7 + $0x270] sm:$0xff] }
 0x60c   :  { %7373 = vmatpush1.bf16.msra.mxu0 %v7372_v59  ;;  %v2310_v59 = vld [vmem:[#allocation7 + $0x17d0] sm:$0xff]  ;;  %v7550_v22 = vpack.c.bf16 %v2567_v4, %v2551_v9 }
 0x60d   :  { %7501 = vmatpush1.bf16.msra.mxu1 %v7500_v52  ;;  %7375 = vmatprep.subr.bf16.mxu0 %v7374_v57  ;;  %v2325_v52 = vld [vmem:[#allocation7 + $0x1848] sm:$0xff]  ;;  %v1658_v9 = vld [vmem:[#allocation7 + $0x370] sm:$0xff] }
 0x60e   :  { %7503 = vmatprep.subr.bf16.mxu1 %v7502_v62  ;;  %v2341_v57 = vld [vmem:[#allocation7 + $0x18c8] sm:$0xff]  ;;  %v7520_v62 = vpack.c.bf16 %v2310_v59, %v2294_v43  ;;  %v7408_v43 = vpack.c.bf16 %v2436_v2, %v2420_v5  ;;  %v1563_v5 = vld [vmem:[#allocation7 + $0x78] sm:$0xff] }
 0x60f   :  { %v7394_v53 = vpack.c.bf16 %v2341_v57, %v2325_v52  ;;  %v2452_v52 = vld [vmem:[#allocation7 + $0x1c40] sm:$0xff]  ;;  %v1579_v2 = vld [vmem:[#allocation7 + $0xf8] sm:$0xff] }
 0x610   :  { %7377 = vmatpush1.bf16.msra.mxu0 %v7376_v56  ;;  %v2342_v56 = vld [vmem:[#allocation7 + $0x18d0] sm:$0xff]  ;;  %v2468_v57 = vld [vmem:[#allocation7 + $0x1cc0] sm:$0xff]  ;;  %v7682_v26 = vpack.c.bf16 %v1579_v2, %v1563_v5 }
 0x611   :  { %7505 = vmatpush1.bf16.msra.mxu1 %v7504_v20  ;;  %7379 = vmatprep.subr.bf16.mxu0 %v7378_v10  ;;  %v2357_v20 = vld [vmem:[#allocation7 + $0x1948] sm:$0xff]  ;;  %v1706_v2 = vld [vmem:[#allocation7 + $0x4f0] sm:$0xff] }
 0x612   :  { %7507 = vmatprep.subr.bf16.mxu1 %v7506_v3  ;;  %v2373_v10 = vld [vmem:[#allocation7 + $0x19c8] sm:$0xff]  ;;  %v7524_v3 = vpack.c.bf16 %v2342_v56, %v2326_v41  ;;  %v7412_v41 = vpack.c.bf16 %v2468_v57, %v2452_v52  ;;  %v1595_v57 = vld [vmem:[#allocation7 + $0x178] sm:$0xff] }
 0x613   :  { %v7398_v28 = vpack.c.bf16 %v2373_v10, %v2357_v20  ;;  %v2484_v20 = vld [vmem:[#allocation7 + $0x1d40] sm:$0xff] }
 0x614   :  { %7381 = vmatpush1.bf16.msra.mxu0 %v7380_v13  ;;  %v2374_v13 = vld [vmem:[#allocation7 + $0x19d0] sm:$0xff]  ;;  %v2500_v10 = vld [vmem:[#allocation7 + $0x1dc0] sm:$0xff] }
 0x615   :  { %7509 = vmatpush1.bf16.msra.mxu1 %v7508_v30  ;;  %7383 = vmatprep.subr.bf16.mxu0 %v7382_v6  ;;  %v2389_v30 = vld [vmem:[#allocation7 + $0x1a48] sm:$0xff] }
 0x616   :  { %v9353_v38 = vpop.f32.mrb[34].mxu0  ;;  %v9355_v51 = vpop.f32.mrb[10].mxu1  ;;  %7511 = vmatprep.subr.bf16.mxu1 %v7510_v36  ;;  %v2405_v6 = vld [vmem:[#allocation7 + $0x1ac8] sm:$0xff]  ;;  %v7528_v36 = vpack.c.bf16 %v2374_v13, %v2358_v14  ;;  %v7416_v14 = vpack.c.bf16 %v2500_v10, %v2484_v20  ;;  %v1627_v20 = vld [vmem:[#allocation7 + $0x278] sm:$0xff] }
 0x617   :  { %v9357_v19 = vpop.f32.mrb[11].mxu1  ;;  %3852 = vrot.lane.b32.xlu0 %v9353_v38, %s8478_s2  ;;  %3708 = vrot.lane.b32.xlu1 %v9353_v38, %s8454_s10  ;;  %v9363_v25 = vpop.f32.mrb[35].mxu0  ;;  %v7402_v50 = vpack.c.bf16 %v2405_v6, %v2389_v30  ;;  %v2516_v30 = vld [vmem:[#allocation7 + $0x1e40] sm:$0xff]  ;;  %v1643_v10 = vld [vmem:[#allocation7 + $0x2f8] sm:$0xff] }
 0x618   :  { %7385 = vmatpush1.bf16.msra.mxu0 %v7384_v44  ;;  %v2406_v44 = vld [vmem:[#allocation7 + $0x1ad0] sm:$0xff]  ;;  %v2532_v6 = vld [vmem:[#allocation7 + $0x1ec0] sm:$0xff]  ;;  %v7690_v54 = vpack.c.bf16 %v1643_v10, %v1627_v20 }
 0x619   :  { %7513 = vmatpush1.bf16.msra.mxu1 %v7512_v34  ;;  %7387 = vmatprep.subr.bf16.mxu0 %v7386_v58  ;;  %v2421_v34 = vld [vmem:[#allocation7 + $0x1b48] sm:$0xff]  ;;  %v1770_v10 = vld [vmem:[#allocation7 + $0x6f0] sm:$0xff] }
 0x61a   :  { %7515 = vmatprep.subr.bf16.mxu1 %v7514_v24  ;;  %v2437_v58 = vld [vmem:[#allocation7 + $0x1bc8] sm:$0xff]  ;;  %v7532_v24 = vpack.c.bf16 %v2406_v44, %v2390_v18  ;;  %v7420_v18 = vpack.c.bf16 %v2532_v6, %v2516_v30  ;;  %v1659_v30 = vld [vmem:[#allocation7 + $0x378] sm:$0xff] }
 0x61b   :  { %3710 = vrot.lane.b32.xlu1 %v9363_v25, %s8454_s10  ;;  %v7406_v12 = vpack.c.bf16 %v2437_v58, %v2421_v34  ;;  %v2548_v34 = vld [vmem:[#allocation7 + $0x1f40] sm:$0xff]  ;;  %v1675_v6 = vld [vmem:[#allocation7 + $0x3f8] sm:$0xff] }
 0x61c   :  { %7389 = vmatpush1.bf16.msra.mxu0 %v7388_v1  ;;  %v2438_v1 = vld [vmem:[#allocation7 + $0x1bd0] sm:$0xff]  ;;  %v2564_v58 = vld [vmem:[#allocation7 + $0x1fc0] sm:$0xff]  ;;  %v7694_v4 = vpack.c.bf16 %v1675_v6, %v1659_v30 }
 0x61d   :  { %7517 = vmatpush1.bf16.msra.mxu1 %v7516_v35  ;;  %7391 = vmatprep.subr.bf16.mxu0 %v7390_v39  ;;  %v2453_v35 = vld [vmem:[#allocation7 + $0x1c48] sm:$0xff]  ;;  %v1802_v6 = vld [vmem:[#allocation7 + $0x7f0] sm:$0xff] }
 0x61e   :  { %7519 = vmatprep.subr.bf16.mxu1 %v7518_v45  ;;  %v2469_v39 = vld [vmem:[#allocation7 + $0x1cc8] sm:$0xff]  ;;  %v7536_v45 = vpack.c.bf16 %v2438_v1, %v2422_v29  ;;  %v7424_v29 = vpack.c.bf16 %v2564_v58, %v2548_v34  ;;  %v1707_v34 = vld [vmem:[#allocation7 + $0x4f8] sm:$0xff] }
 0x61f   :  { %v7410_v59 = vpack.c.bf16 %v2469_v39, %v2453_v35  ;;  %v1560_v35 = vld [vmem:[#allocation7 + $0x60] sm:$0xff] }
 0x620   :  { %7393 = vmatpush1.bf16.msra.mxu0 %v7392_v16  ;;  %v2470_v16 = vld [vmem:[#allocation7 + $0x1cd0] sm:$0xff]  ;;  %v1576_v39 = vld [vmem:[#allocation7 + $0xe0] sm:$0xff] }
 0x621   :  { %7521 = vmatpush1.bf16.msra.mxu1 %v7520_v62  ;;  %7395 = vmatprep.subr.bf16.mxu0 %v7394_v53  ;;  %v2485_v62 = vld [vmem:[#allocation7 + $0x1d48] sm:$0xff]  ;;  %v7556_v52 = vpack.c.bf16 %v1576_v39, %v1560_v35  ;;  %v1739_v35 = vld [vmem:[#allocation7 + $0x5f8] sm:$0xff] }
 0x622   :  { %7523 = vmatprep.subr.bf16.mxu1 %v7522_v42  ;;  %v2501_v53 = vld [vmem:[#allocation7 + $0x1dc8] sm:$0xff]  ;;  %v7540_v42 = vpack.c.bf16 %v2470_v16, %v2454_v32  ;;  %v1611_v32 = vld [vmem:[#allocation7 + $0x1f8] sm:$0xff]  ;;  %v1592_v16 = vld [vmem:[#allocation7 + $0x160] sm:$0xff] }
 0x623   :  { %v7414_v56 = vpack.c.bf16 %v2501_v53, %v2485_v62  ;;  %v1608_v62 = vld [vmem:[#allocation7 + $0x1e0] sm:$0xff]  ;;  %v1594_v53 = vld [vmem:[#allocation7 + $0x170] sm:$0xff] }
 0x624   :  { %7397 = vmatpush1.bf16.msra.mxu0 %v7396_v48  ;;  %v2502_v48 = vld [vmem:[#allocation7 + $0x1dd0] sm:$0xff] }
 0x625   :  { %7525 = vmatpush1.bf16.msra.mxu1 %v7524_v3  ;;  %7399 = vmatprep.subr.bf16.mxu0 %v7398_v28  ;;  %v2517_v3 = vld [vmem:[#allocation7 + $0x1e48] sm:$0xff] }
 0x626   :  { %7527 = vmatprep.subr.bf16.mxu1 %v7526_v8  ;;  %v2533_v28 = vld [vmem:[#allocation7 + $0x1ec8] sm:$0xff]  ;;  %v7544_v8 = vpack.c.bf16 %v2502_v48, %v2486_v27  ;;  %v7560_v27 = vpack.c.bf16 %v1608_v62, %v1592_v16  ;;  %v1755_v16 = vld [vmem:[#allocation7 + $0x678] sm:$0xff] }
 0x627   :  { %v7418_v13 = vpack.c.bf16 %v2533_v28, %v2517_v3  ;;  %v1624_v3 = vld [vmem:[#allocation7 + $0x260] sm:$0xff]  ;;  %v1771_v62 = vld [vmem:[#allocation7 + $0x6f8] sm:$0xff] }
 0x628   :  { %7401 = vmatpush1.bf16.msra.mxu0 %v7400_v47  ;;  %v2534_v47 = vld [vmem:[#allocation7 + $0x1ed0] sm:$0xff]  ;;  %v1640_v28 = vld [vmem:[#allocation7 + $0x2e0] sm:$0xff]  ;;  %v7706_v20 = vpack.c.bf16 %v1771_v62, %v1755_v16 }
 0x629   :  { %7529 = vmatpush1.bf16.msra.mxu1 %v7528_v36  ;;  %7403 = vmatprep.subr.bf16.mxu0 %v7402_v50  ;;  %v2549_v36 = vld [vmem:[#allocation7 + $0x1f48] sm:$0xff]  ;;  %v1898_v62 = vld [vmem:[#allocation7 + $0xaf0] sm:$0xff] }
 0x62a   :  { %7531 = vmatprep.subr.bf16.mxu1 %v7530_v55  ;;  %v2565_v50 = vld [vmem:[#allocation7 + $0x1fc8] sm:$0xff]  ;;  %v7548_v55 = vpack.c.bf16 %v2534_v47, %v2518_v17  ;;  %v7564_v17 = vpack.c.bf16 %v1640_v28, %v1624_v3  ;;  %v1803_v3 = vld [vmem:[#allocation7 + $0x7f8] sm:$0xff] }
 0x62b   :  { %v7422_v44 = vpack.c.bf16 %v2565_v50, %v2549_v36  ;;  %v1656_v36 = vld [vmem:[#allocation7 + $0x360] sm:$0xff] }
 0x62c   :  { %7405 = vmatpush1.bf16.msra.mxu0 %v7404_v33  ;;  %v2566_v33 = vld [vmem:[#allocation7 + $0x1fd0] sm:$0xff]  ;;  %v1672_v50 = vld [vmem:[#allocation7 + $0x3e0] sm:$0xff] }
 0x62d   :  { %7533 = vmatpush1.bf16.msra.mxu1 %v7532_v24  ;;  %7407 = vmatprep.subr.bf16.mxu0 %v7406_v12  ;;  %v1561_v24 = vld [vmem:[#allocation7 + $0x68] sm:$0xff]  ;;  %v7568_v58 = vpack.c.bf16 %v1672_v50, %v1656_v36  ;;  %v1835_v36 = vld [vmem:[#allocation7 + $0x8f8] sm:$0xff] }
 0x62e   :  { %7535 = vmatprep.subr.bf16.mxu1 %v7534_v49  ;;  %v1577_v12 = vld [vmem:[#allocation7 + $0xe8] sm:$0xff]  ;;  %v7552_v49 = vpack.c.bf16 %v2566_v33, %v2550_v31  ;;  %v1688_v33 = vld [vmem:[#allocation7 + $0x460] sm:$0xff] }
 0x62f   :  { %v7554_v1 = vpack.c.bf16 %v1577_v12, %v1561_v24  ;;  %v1704_v24 = vld [vmem:[#allocation7 + $0x4e0] sm:$0xff]  ;;  %v1690_v12 = vld [vmem:[#allocation7 + $0x470] sm:$0xff] }
 0x630   :  { %7409 = vmatpush1.bf16.msra.mxu0 %v7408_v43  ;;  %v1578_v43 = vld [vmem:[#allocation7 + $0xf0] sm:$0xff]  ;;  %v7572_v39 = vpack.c.bf16 %v1704_v24, %v1688_v33  ;;  %v1867_v33 = vld [vmem:[#allocation7 + $0x9f8] sm:$0xff] }
 0x631   :  { %7537 = vmatpush1.bf16.msra.mxu1 %v7536_v45  ;;  %7411 = vmatprep.subr.bf16.mxu0 %v7410_v59  ;;  %v1593_v45 = vld [vmem:[#allocation7 + $0x168] sm:$0xff] }
 0x632   :  { %7539 = vmatprep.subr.bf16.mxu1 %v7538_v15  ;;  %v1609_v59 = vld [vmem:[#allocation7 + $0x1e8] sm:$0xff]  ;;  %v7684_v15 = vpack.c.bf16 %v1578_v43, %v1562_v23  ;;  %v1720_v43 = vld [vmem:[#allocation7 + $0x560] sm:$0xff] }
 0x633   :  { %v7558_v61 = vpack.c.bf16 %v1609_v59, %v1593_v45  ;;  %v1736_v45 = vld [vmem:[#allocation7 + $0x5e0] sm:$0xff]  ;;  %v1722_v59 = vld [vmem:[#allocation7 + $0x570] sm:$0xff] }
 0x634   :  { %7413 = vmatpush1.bf16.msra.mxu0 %v7412_v41  ;;  %v1625_v41 = vld [vmem:[#allocation7 + $0x268] sm:$0xff] }
 0x635   :  { %7541 = vmatpush1.bf16.msra.mxu1 %v7540_v42  ;;  %7415 = vmatprep.subr.bf16.mxu0 %v7414_v56  ;;  %v1641_v42 = vld [vmem:[#allocation7 + $0x2e8] sm:$0xff]  ;;  %v7686_v56 = vpack.c.bf16 %v1611_v32, %v1595_v57  ;;  %v1738_v57 = vld [vmem:[#allocation7 + $0x5f0] sm:$0xff] }
 0x636   :  { %7543 = vmatprep.subr.bf16.mxu1 %v7542_v0  ;;  %v7688_v0 = vpack.c.bf16 %v1610_v63, %v1594_v53  ;;  %v7562_v48 = vpack.c.bf16 %v1641_v42, %v1625_v41  ;;  %v1753_v32 = vld [vmem:[#allocation7 + $0x668] sm:$0xff]  ;;  %v7576_v53 = vpack.c.bf16 %v1736_v45, %v1720_v43  ;;  %v1752_v41 = vld [vmem:[#allocation7 + $0x660] sm:$0xff]  ;;  %v1899_v43 = vld [vmem:[#allocation7 + $0xaf8] sm:$0xff] }
 0x637   :  { %v1768_v42 = vld [vmem:[#allocation7 + $0x6e0] sm:$0xff] }
 0x638   :  { %7417 = vmatpush1.bf16.msra.mxu0 %v7416_v14  ;;  %v1642_v14 = vld [vmem:[#allocation7 + $0x2f0] sm:$0xff]  ;;  %v7580_v28 = vpack.c.bf16 %v1768_v42, %v1752_v41  ;;  %v1931_v41 = vld [vmem:[#allocation7 + $0xbf8] sm:$0xff] }
 0x639   :  { %7545 = vmatpush1.bf16.msra.mxu1 %v7544_v8  ;;  %7419 = vmatprep.subr.bf16.mxu0 %v7418_v13  ;;  %v1657_v8 = vld [vmem:[#allocation7 + $0x368] sm:$0xff] }
 0x63a   :  { %7547 = vmatprep.subr.bf16.mxu1 %v7546_v40  ;;  %v1673_v13 = vld [vmem:[#allocation7 + $0x3e8] sm:$0xff]  ;;  %v7692_v40 = vpack.c.bf16 %v1642_v14, %v1626_v60  ;;  %v1784_v14 = vld [vmem:[#allocation7 + $0x760] sm:$0xff] }
 0x63b   :  { %v7566_v47 = vpack.c.bf16 %v1673_v13, %v1657_v8  ;;  %v1800_v8 = vld [vmem:[#allocation7 + $0x7e0] sm:$0xff]  ;;  %v1786_v13 = vld [vmem:[#allocation7 + $0x770] sm:$0xff] }
 0x63c   :  { %7421 = vmatpush1.bf16.msra.mxu0 %v7420_v18  ;;  %v1689_v18 = vld [vmem:[#allocation7 + $0x468] sm:$0xff]  ;;  %v7584_v50 = vpack.c.bf16 %v1800_v8, %v1784_v14  ;;  %v1963_v14 = vld [vmem:[#allocation7 + $0xcf8] sm:$0xff] }
 0x63d   :  { %7549 = vmatpush1.bf16.msra.mxu1 %v7548_v55  ;;  %7423 = vmatprep.subr.bf16.mxu0 %v7422_v44  ;;  %v1705_v55 = vld [vmem:[#allocation7 + $0x4e8] sm:$0xff]  ;;  %v1691_v44 = vld [vmem:[#allocation7 + $0x478] sm:$0xff] }
 0x63e   :  { %7551 = vmatprep.subr.bf16.mxu1 %v7550_v22  ;;  %v7570_v22 = vpack.c.bf16 %v1705_v55, %v1689_v18  ;;  %v7698_v5 = vpack.c.bf16 %v1707_v34, %v1691_v44  ;;  %v1832_v18 = vld [vmem:[#allocation7 + $0x8e0] sm:$0xff]  ;;  %v1818_v55 = vld [vmem:[#allocation7 + $0x870] sm:$0xff] }
 0x63f   :  { %v1834_v34 = vld [vmem:[#allocation7 + $0x8f0] sm:$0xff] }
 0x640   :  { %7425 = vmatpush1.bf16.msra.mxu0 %v7424_v29  ;;  %v1721_v29 = vld [vmem:[#allocation7 + $0x568] sm:$0xff] }
 0x641   :  { %7553 = vmatpush1.bf16.msra.mxu1 %v7552_v49  ;;  %7555 = vmatprep.subr.bf16.mxu0 %v7554_v1  ;;  %v1737_v49 = vld [vmem:[#allocation7 + $0x5e8] sm:$0xff]  ;;  %v1723_v1 = vld [vmem:[#allocation7 + $0x578] sm:$0xff] }
 0x642   :  { %7683 = vmatprep.subr.bf16.mxu1 %v7682_v26  ;;  %v7700_v26 = vpack.c.bf16 %v1706_v2, %v1690_v12  ;;  %v7574_v23 = vpack.c.bf16 %v1737_v49, %v1721_v29  ;;  %v7716_v12 = vpack.c.bf16 %v1834_v34, %v1818_v55  ;;  %v1848_v2 = vld [vmem:[#allocation7 + $0x960] sm:$0xff]  ;;  %v1850_v49 = vld [vmem:[#allocation7 + $0x970] sm:$0xff] }
 0x643   :  { %3276 = vmatmul.mubr.f32.vlgmr.msra.gmra.mrb[38].mxu0 %v9335_v37  ;;  %v1864_v29 = vld [vmem:[#allocation7 + $0x9e0] sm:$0xff] }
 0x644   :  { %3418 = vmatmul.mubr.f32.vlgmr.msra.gmra.mrb[14].mxu1 %v9335_v37  ;;  %7557 = vmatpush1.bf16.msra.mxu0 %v7556_v52  ;;  %v7702_v52 = vpack.c.bf16 %v1739_v35, %v1723_v1  ;;  %v1866_v35 = vld [vmem:[#allocation7 + $0x9f0] sm:$0xff]  ;;  %v7592_v45 = vpack.c.bf16 %v1864_v29, %v1848_v2  ;;  %v1976_v34 = vld [vmem:[#allocation7 + $0xd60] sm:$0xff]  ;;  %v2027_v2 = vld [vmem:[#allocation7 + $0xef8] sm:$0xff] }
 0x645   :  { %3488 = vmatprep.mubr.f32.mxu0 %v9318_v21  ;;  %7685 = vmatpush1.bf16.msra.mxu1 %v7684_v15  ;;  %v1769_v15 = vld [vmem:[#allocation7 + $0x6e8] sm:$0xff] }
 0x646   :  { %3630 = vmatprep.mubr.f32.mxu1 %v9318_v21  ;;  %7559 = vmatprep.subr.bf16.mxu0 %v7558_v61  ;;  %v1674_v21 = vld [vmem:[#allocation7 + $0x3f0] sm:$0xff]  ;;  %v7704_v61 = vpack.c.bf16 %v1738_v57, %v1722_v59  ;;  %v7578_v63 = vpack.c.bf16 %v1769_v15, %v1753_v32  ;;  %v7720_v59 = vpack.c.bf16 %v1866_v35, %v1850_v49  ;;  %v1880_v57 = vld [vmem:[#allocation7 + $0xa60] sm:$0xff] }
 0x647   :  { %7687 = vmatprep.subr.bf16.mxu1 %v7686_v56  ;;  %v7696_v31 = vpack.c.bf16 %v1674_v21, %v1658_v9  ;;  %v1754_v56 = vld [vmem:[#allocation7 + $0x670] sm:$0xff]  ;;  %v7712_v9 = vpack.c.bf16 %v1802_v6, %v1786_v13  ;;  %v1816_v21 = vld [vmem:[#allocation7 + $0x860] sm:$0xff] }
 0x648   :  { %7561 = vmatpush1.bf16.msra.mxu0 %v7560_v27  ;;  %v1785_v27 = vld [vmem:[#allocation7 + $0x768] sm:$0xff]  ;;  %v7708_v60 = vpack.c.bf16 %v1770_v10, %v1754_v56  ;;  %v7588_v24 = vpack.c.bf16 %v1832_v18, %v1816_v21  ;;  %v1896_v32 = vld [vmem:[#allocation7 + $0xae0] sm:$0xff]  ;;  %v1882_v15 = vld [vmem:[#allocation7 + $0xa70] sm:$0xff] }
 0x649   :  { %7689 = vmatpush1.bf16.msra.mxu1 %v7688_v0  ;;  %7563 = vmatprep.subr.bf16.mxu0 %v7562_v48  ;;  %v1801_v0 = vld [vmem:[#allocation7 + $0x7e8] sm:$0xff]  ;;  %v1787_v48 = vld [vmem:[#allocation7 + $0x778] sm:$0xff]  ;;  %v7596_v42 = vpack.c.bf16 %v1896_v32, %v1880_v57  ;;  %v7724_v56 = vpack.c.bf16 %v1898_v62, %v1882_v15  ;;  %v1912_v10 = vld [vmem:[#allocation7 + $0xb60] sm:$0xff] }
 0x64a   :  { %7691 = vmatprep.subr.bf16.mxu1 %v7690_v54  ;;  %v7582_v54 = vpack.c.bf16 %v1801_v0, %v1785_v27  ;;  %v7710_v30 = vpack.c.bf16 %v1803_v3, %v1787_v48  ;;  %v1928_v27 = vld [vmem:[#allocation7 + $0xbe0] sm:$0xff]  ;;  %v1914_v0 = vld [vmem:[#allocation7 + $0xb70] sm:$0xff]  ;;  %v1995_v21 = vld [vmem:[#allocation7 + $0xdf8] sm:$0xff] }
 0x64b   :  { %v1930_v3 = vld [vmem:[#allocation7 + $0xbf0] sm:$0xff]  ;;  %v7600_v8 = vpack.c.bf16 %v1928_v27, %v1912_v10  ;;  %v1944_v6 = vld [vmem:[#allocation7 + $0xc60] sm:$0xff]  ;;  %v2059_v57 = vld [vmem:[#allocation7 + $0xff8] sm:$0xff] }
 0x64c   :  { %7565 = vmatpush1.bf16.msra.mxu0 %v7564_v17  ;;  %v1817_v17 = vld [vmem:[#allocation7 + $0x868] sm:$0xff]  ;;  %v7728_v13 = vpack.c.bf16 %v1930_v3, %v1914_v0  ;;  %v2008_v35 = vld [vmem:[#allocation7 + $0xe60] sm:$0xff]  ;;  %v2091_v10 = vld [vmem:[#allocation7 + $0x10f8] sm:$0xff] }
 0x64d   :  { %7693 = vmatpush1.bf16.msra.mxu1 %v7692_v40  ;;  %7567 = vmatprep.subr.bf16.mxu0 %v7566_v47  ;;  %v1833_v40 = vld [vmem:[#allocation7 + $0x8e8] sm:$0xff]  ;;  %v1819_v47 = vld [vmem:[#allocation7 + $0x878] sm:$0xff]  ;;  %v2040_v62 = vld [vmem:[#allocation7 + $0xf60] sm:$0xff] }
 0x64e   :  { %7695 = vmatprep.subr.bf16.mxu1 %v7694_v4  ;;  %v7586_v4 = vpack.c.bf16 %v1833_v40, %v1817_v17  ;;  %v7714_v44 = vpack.c.bf16 %v1835_v36, %v1819_v47  ;;  %v1960_v17 = vld [vmem:[#allocation7 + $0xce0] sm:$0xff]  ;;  %v1946_v40 = vld [vmem:[#allocation7 + $0xc70] sm:$0xff] }
 0x64f   :  { %v1962_v36 = vld [vmem:[#allocation7 + $0xcf0] sm:$0xff]  ;;  %v7604_v18 = vpack.c.bf16 %v1960_v17, %v1944_v6  ;;  %v2072_v3 = vld [vmem:[#allocation7 + $0x1060] sm:$0xff]  ;;  %v2107_v6 = vld [vmem:[#allocation7 + $0x1178] sm:$0xff] }
 0x650   :  { %7569 = vmatpush1.bf16.msra.mxu0 %v7568_v58  ;;  %v1849_v58 = vld [vmem:[#allocation7 + $0x968] sm:$0xff]  ;;  %v7732_v55 = vpack.c.bf16 %v1962_v36, %v1946_v40  ;;  %v2123_v17 = vld [vmem:[#allocation7 + $0x11f8] sm:$0xff]  ;;  %v2120_v36 = vld [vmem:[#allocation7 + $0x11e0] sm:$0xff] }
 0x651   :  { %7697 = vmatpush1.bf16.msra.mxu1 %v7696_v31  ;;  %7571 = vmatprep.subr.bf16.mxu0 %v7570_v22  ;;  %v1865_v31 = vld [vmem:[#allocation7 + $0x9e8] sm:$0xff]  ;;  %v1851_v22 = vld [vmem:[#allocation7 + $0x978] sm:$0xff] }
 0x652   :  { %7699 = vmatprep.subr.bf16.mxu1 %v7698_v5  ;;  %v7590_v5 = vpack.c.bf16 %v1865_v31, %v1849_v58  ;;  %v7718_v1 = vpack.c.bf16 %v1867_v33, %v1851_v22  ;;  %v1992_v58 = vld [vmem:[#allocation7 + $0xde0] sm:$0xff]  ;;  %v1978_v31 = vld [vmem:[#allocation7 + $0xd70] sm:$0xff] }
 0x653   :  { %v1994_v33 = vld [vmem:[#allocation7 + $0xdf0] sm:$0xff]  ;;  %v7608_v29 = vpack.c.bf16 %v1992_v58, %v1976_v34  ;;  %v2155_v34 = vld [vmem:[#allocation7 + $0x12f8] sm:$0xff] }
 0x654   :  { %7573 = vmatpush1.bf16.msra.mxu0 %v7572_v39  ;;  %v1881_v39 = vld [vmem:[#allocation7 + $0xa68] sm:$0xff]  ;;  %v7736_v49 = vpack.c.bf16 %v1994_v33, %v1978_v31  ;;  %v2136_v33 = vld [vmem:[#allocation7 + $0x1260] sm:$0xff] }
 0x655   :  { %7701 = vmatpush1.bf16.msra.mxu1 %v7700_v26  ;;  %7575 = vmatprep.subr.bf16.mxu0 %v7574_v23  ;;  %v1897_v26 = vld [vmem:[#allocation7 + $0xae8] sm:$0xff]  ;;  %v1883_v23 = vld [vmem:[#allocation7 + $0xa78] sm:$0xff] }
 0x656   :  { %7703 = vmatprep.subr.bf16.mxu1 %v7702_v52  ;;  %v7594_v52 = vpack.c.bf16 %v1897_v26, %v1881_v39  ;;  %v7722_v16 = vpack.c.bf16 %v1899_v43, %v1883_v23  ;;  %v2024_v39 = vld [vmem:[#allocation7 + $0xee0] sm:$0xff]  ;;  %v2010_v26 = vld [vmem:[#allocation7 + $0xe70] sm:$0xff] }
 0x657   :  { %v2026_v43 = vld [vmem:[#allocation7 + $0xef0] sm:$0xff]  ;;  %v7612_v32 = vpack.c.bf16 %v2024_v39, %v2008_v35 }
 0x658   :  { %7577 = vmatpush1.bf16.msra.mxu0 %v7576_v53  ;;  %v1913_v53 = vld [vmem:[#allocation7 + $0xb68] sm:$0xff]  ;;  %v7740_v15 = vpack.c.bf16 %v2026_v43, %v2010_v26  ;;  %v2184_v43 = vld [vmem:[#allocation7 + $0x13e0] sm:$0xff] }
 0x659   :  { %7705 = vmatpush1.bf16.msra.mxu1 %v7704_v61  ;;  %7579 = vmatprep.subr.bf16.mxu0 %v7578_v63  ;;  %v1929_v61 = vld [vmem:[#allocation7 + $0xbe8] sm:$0xff]  ;;  %v1915_v63 = vld [vmem:[#allocation7 + $0xb78] sm:$0xff] }
 0x65a   :  { %7707 = vmatprep.subr.bf16.mxu1 %v7706_v20  ;;  %v7598_v20 = vpack.c.bf16 %v1929_v61, %v1913_v53  ;;  %v7726_v48 = vpack.c.bf16 %v1931_v41, %v1915_v63  ;;  %v2056_v53 = vld [vmem:[#allocation7 + $0xfe0] sm:$0xff]  ;;  %v2042_v61 = vld [vmem:[#allocation7 + $0xf70] sm:$0xff] }
 0x65b   :  { %v2058_v41 = vld [vmem:[#allocation7 + $0xff0] sm:$0xff]  ;;  %v7616_v27 = vpack.c.bf16 %v2056_v53, %v2040_v62 }
 0x65c   :  { %7581 = vmatpush1.bf16.msra.mxu0 %v7580_v28  ;;  %v1945_v28 = vld [vmem:[#allocation7 + $0xc68] sm:$0xff]  ;;  %v7744_v0 = vpack.c.bf16 %v2058_v41, %v2042_v61  ;;  %v2200_v61 = vld [vmem:[#allocation7 + $0x1460] sm:$0xff]  ;;  %v2202_v41 = vld [vmem:[#allocation7 + $0x1470] sm:$0xff] }
 0x65d   :  { %7709 = vmatpush1.bf16.msra.mxu1 %v7708_v60  ;;  %7583 = vmatprep.subr.bf16.mxu0 %v7582_v54  ;;  %v1961_v60 = vld [vmem:[#allocation7 + $0xce8] sm:$0xff]  ;;  %v1947_v54 = vld [vmem:[#allocation7 + $0xc78] sm:$0xff] }
 0x65e   :  { %7711 = vmatprep.subr.bf16.mxu1 %v7710_v30  ;;  %v7602_v30 = vpack.c.bf16 %v1961_v60, %v1945_v28  ;;  %v7730_v47 = vpack.c.bf16 %v1963_v14, %v1947_v54  ;;  %v2088_v28 = vld [vmem:[#allocation7 + $0x10e0] sm:$0xff]  ;;  %v2074_v54 = vld [vmem:[#allocation7 + $0x1070] sm:$0xff] }
 0x65f   :  { %v2090_v14 = vld [vmem:[#allocation7 + $0x10f0] sm:$0xff] }
 0x660   :  { %7585 = vmatpush1.bf16.msra.mxu0 %v7584_v50  ;;  %v1977_v50 = vld [vmem:[#allocation7 + $0xd68] sm:$0xff]  ;;  %v7748_v40 = vpack.c.bf16 %v2090_v14, %v2074_v54  ;;  %v2248_v54 = vld [vmem:[#allocation7 + $0x15e0] sm:$0xff]  ;;  %v2234_v14 = vld [vmem:[#allocation7 + $0x1570] sm:$0xff] }
 0x661   :  { %7713 = vmatpush1.bf16.msra.mxu1 %v7712_v9  ;;  %7587 = vmatprep.subr.bf16.mxu0 %v7586_v4  ;;  %v1993_v9 = vld [vmem:[#allocation7 + $0xde8] sm:$0xff]  ;;  %v1979_v4 = vld [vmem:[#allocation7 + $0xd78] sm:$0xff] }
 0x662   :  { %7715 = vmatprep.subr.bf16.mxu1 %v7714_v44  ;;  %v7606_v44 = vpack.c.bf16 %v1993_v9, %v1977_v50  ;;  %v7734_v22 = vpack.c.bf16 %v1995_v21, %v1979_v4  ;;  %v2106_v50 = vld [vmem:[#allocation7 + $0x1170] sm:$0xff]  ;;  %v2137_v21 = vld [vmem:[#allocation7 + $0x1268] sm:$0xff] }
 0x663   :  { %v2122_v4 = vld [vmem:[#allocation7 + $0x11f0] sm:$0xff] }
 0x664   :  { %7589 = vmatpush1.bf16.msra.mxu0 %v7588_v24  ;;  %v2009_v24 = vld [vmem:[#allocation7 + $0xe68] sm:$0xff]  ;;  %v7752_v31 = vpack.c.bf16 %v2122_v4, %v2106_v50  ;;  %v2280_v4 = vld [vmem:[#allocation7 + $0x16e0] sm:$0xff] }
 0x665   :  { %7717 = vmatpush1.bf16.msra.mxu1 %v7716_v12  ;;  %7591 = vmatprep.subr.bf16.mxu0 %v7590_v5  ;;  %v2025_v12 = vld [vmem:[#allocation7 + $0xee8] sm:$0xff]  ;;  %v2011_v5 = vld [vmem:[#allocation7 + $0xe78] sm:$0xff] }
 0x666   :  { %7719 = vmatprep.subr.bf16.mxu1 %v7718_v1  ;;  %v7610_v1 = vpack.c.bf16 %v2025_v12, %v2009_v24  ;;  %v7738_v23 = vpack.c.bf16 %v2027_v2, %v2011_v5  ;;  %v2152_v24 = vld [vmem:[#allocation7 + $0x12e0] sm:$0xff]  ;;  %v2138_v12 = vld [vmem:[#allocation7 + $0x1270] sm:$0xff] }
 0x667   :  { %v2154_v2 = vld [vmem:[#allocation7 + $0x12f0] sm:$0xff]  ;;  %v7628_v35 = vpack.c.bf16 %v2152_v24, %v2136_v33  ;;  %v2299_v33 = vld [vmem:[#allocation7 + $0x1778] sm:$0xff] }
 0x668   :  { %7593 = vmatpush1.bf16.msra.mxu0 %v7592_v45  ;;  %v2041_v45 = vld [vmem:[#allocation7 + $0xf68] sm:$0xff]  ;;  %v7756_v39 = vpack.c.bf16 %v2154_v2, %v2138_v12  ;;  %v2315_v24 = vld [vmem:[#allocation7 + $0x17f8] sm:$0xff] }
 0x669   :  { %7721 = vmatpush1.bf16.msra.mxu1 %v7720_v59  ;;  %7595 = vmatprep.subr.bf16.mxu0 %v7594_v52  ;;  %v2057_v59 = vld [vmem:[#allocation7 + $0xfe8] sm:$0xff]  ;;  %v2043_v52 = vld [vmem:[#allocation7 + $0xf78] sm:$0xff] }
 0x66a   :  { %7723 = vmatprep.subr.bf16.mxu1 %v7722_v16  ;;  %v7614_v16 = vpack.c.bf16 %v2057_v59, %v2041_v45  ;;  %v7742_v63 = vpack.c.bf16 %v2059_v57, %v2043_v52  ;;  %v2170_v45 = vld [vmem:[#allocation7 + $0x1370] sm:$0xff]  ;;  %v2201_v52 = vld [vmem:[#allocation7 + $0x1468] sm:$0xff] }
 0x66b   :  { %v2217_v57 = vld [vmem:[#allocation7 + $0x14e8] sm:$0xff] }
 0x66c   :  { %7597 = vmatpush1.bf16.msra.mxu0 %v7596_v42  ;;  %v2073_v42 = vld [vmem:[#allocation7 + $0x1068] sm:$0xff]  ;;  %v7634_v53 = vpack.c.bf16 %v2217_v57, %v2201_v52  ;;  %v2328_v57 = vld [vmem:[#allocation7 + $0x1860] sm:$0xff] }
 0x66d   :  { %7725 = vmatpush1.bf16.msra.mxu1 %v7724_v56  ;;  %7599 = vmatprep.subr.bf16.mxu0 %v7598_v20  ;;  %v2089_v56 = vld [vmem:[#allocation7 + $0x10e8] sm:$0xff]  ;;  %v2075_v20 = vld [vmem:[#allocation7 + $0x1078] sm:$0xff] }
 0x66e   :  { %7727 = vmatprep.subr.bf16.mxu1 %v7726_v48  ;;  %v7618_v48 = vpack.c.bf16 %v2089_v56, %v2073_v42  ;;  %v7746_v60 = vpack.c.bf16 %v2091_v10, %v2075_v20  ;;  %v2218_v56 = vld [vmem:[#allocation7 + $0x14f0] sm:$0xff]  ;;  %v2233_v20 = vld [vmem:[#allocation7 + $0x1568] sm:$0xff] }
 0x66f   :  { %v2249_v10 = vld [vmem:[#allocation7 + $0x15e8] sm:$0xff] }
 0x670   :  { %7601 = vmatpush1.bf16.msra.mxu0 %v7600_v8  ;;  %v2105_v8 = vld [vmem:[#allocation7 + $0x1168] sm:$0xff] }
 0x671   :  { %7729 = vmatpush1.bf16.msra.mxu1 %v7728_v13  ;;  %7603 = vmatprep.subr.bf16.mxu0 %v7602_v30  ;;  %v2121_v13 = vld [vmem:[#allocation7 + $0x11e8] sm:$0xff]  ;;  %v7620_v30 = vpack.c.bf16 %v2088_v28, %v2072_v3  ;;  %v7764_v3 = vpack.c.bf16 %v2218_v56, %v2202_v41  ;;  %v7638_v28 = vpack.c.bf16 %v2249_v10, %v2233_v20  ;;  %v2379_v41 = vld [vmem:[#allocation7 + $0x19f8] sm:$0xff]  ;;  %v2360_v10 = vld [vmem:[#allocation7 + $0x1960] sm:$0xff] }
 0x672   :  { %7731 = vmatprep.subr.bf16.mxu1 %v7730_v47  ;;  %v2104_v47 = vld [vmem:[#allocation7 + $0x1160] sm:$0xff]  ;;  %v7622_v9 = vpack.c.bf16 %v2121_v13, %v2105_v8  ;;  %v2250_v13 = vld [vmem:[#allocation7 + $0x15f0] sm:$0xff] }
 0x673   :  { %v7624_v58 = vpack.c.bf16 %v2120_v36, %v2104_v47  ;;  %v7768_v36 = vpack.c.bf16 %v2250_v13, %v2234_v14  ;;  %v2411_v14 = vld [vmem:[#allocation7 + $0x1af8] sm:$0xff] }
 0x674   :  { %7605 = vmatpush1.bf16.msra.mxu0 %v7604_v18  ;;  %v2153_v18 = vld [vmem:[#allocation7 + $0x12e8] sm:$0xff] }
 0x675   :  { %7733 = vmatpush1.bf16.msra.mxu1 %v7732_v55  ;;  %7607 = vmatprep.subr.bf16.mxu0 %v7606_v44  ;;  %v7750_v55 = vpack.c.bf16 %v2123_v17, %v2107_v6  ;;  %v2139_v44 = vld [vmem:[#allocation7 + $0x1278] sm:$0xff]  ;;  %v2281_v6 = vld [vmem:[#allocation7 + $0x16e8] sm:$0xff] }
 0x676   :  { %7735 = vmatprep.subr.bf16.mxu1 %v7734_v22  ;;  %v7626_v22 = vpack.c.bf16 %v2153_v18, %v2137_v21  ;;  %v7754_v5 = vpack.c.bf16 %v2155_v34, %v2139_v44  ;;  %v2267_v17 = vld [vmem:[#allocation7 + $0x1678] sm:$0xff]  ;;  %v2266_v21 = vld [vmem:[#allocation7 + $0x1670] sm:$0xff]  ;;  %v2297_v34 = vld [vmem:[#allocation7 + $0x1768] sm:$0xff] }
 0x677   :  { %v2282_v44 = vld [vmem:[#allocation7 + $0x16f0] sm:$0xff] }
 0x678   :  { %7609 = vmatpush1.bf16.msra.mxu0 %v7608_v29  ;;  %v2169_v29 = vld [vmem:[#allocation7 + $0x1368] sm:$0xff]  ;;  %v7772_v2 = vpack.c.bf16 %v2282_v44, %v2266_v21  ;;  %v2443_v21 = vld [vmem:[#allocation7 + $0x1bf8] sm:$0xff] }
 0x679   :  { %7737 = vmatpush1.bf16.msra.mxu1 %v7736_v49  ;;  %7611 = vmatprep.subr.bf16.mxu0 %v7610_v1  ;;  %v2185_v49 = vld [vmem:[#allocation7 + $0x13e8] sm:$0xff]  ;;  %v2171_v1 = vld [vmem:[#allocation7 + $0x1378] sm:$0xff] }
 0x67a   :  { %7739 = vmatprep.subr.bf16.mxu1 %v7738_v23  ;;  %v7630_v26 = vpack.c.bf16 %v2185_v49, %v2169_v29  ;;  %v2168_v23 = vld [vmem:[#allocation7 + $0x1360] sm:$0xff] }
 0x67b   :  { %v2296_v49 = vld [vmem:[#allocation7 + $0x1760] sm:$0xff] }
 0x67c   :  { %7613 = vmatpush1.bf16.msra.mxu0 %v7612_v32  ;;  %v2203_v32 = vld [vmem:[#allocation7 + $0x1478] sm:$0xff] }
 0x67d   :  { %7741 = vmatpush1.bf16.msra.mxu1 %v7740_v15  ;;  %7615 = vmatprep.subr.bf16.mxu0 %v7614_v16  ;;  %v2219_v15 = vld [vmem:[#allocation7 + $0x14f8] sm:$0xff]  ;;  %v7632_v16 = vpack.c.bf16 %v2184_v43, %v2168_v23  ;;  %v2345_v23 = vld [vmem:[#allocation7 + $0x18e8] sm:$0xff] }
 0x67e   :  { %7743 = vmatprep.subr.bf16.mxu1 %v7742_v63  ;;  %v2216_v63 = vld [vmem:[#allocation7 + $0x14e0] sm:$0xff]  ;;  %v7762_v42 = vpack.c.bf16 %v2219_v15, %v2203_v32  ;;  %v2331_v43 = vld [vmem:[#allocation7 + $0x1878] sm:$0xff]  ;;  %v2330_v15 = vld [vmem:[#allocation7 + $0x1870] sm:$0xff] }
 0x67f   :  { %v2344_v32 = vld [vmem:[#allocation7 + $0x18e0] sm:$0xff] }
 0x680   :  { %7617 = vmatpush1.bf16.msra.mxu0 %v7616_v27  ;;  %v2235_v27 = vld [vmem:[#allocation7 + $0x1578] sm:$0xff] }
 0x681   :  { %7745 = vmatpush1.bf16.msra.mxu1 %v7744_v0  ;;  %7619 = vmatprep.subr.bf16.mxu0 %v7618_v48  ;;  %v2251_v0 = vld [vmem:[#allocation7 + $0x15f8] sm:$0xff]  ;;  %v7636_v48 = vpack.c.bf16 %v2216_v63, %v2200_v61  ;;  %v2377_v61 = vld [vmem:[#allocation7 + $0x19e8] sm:$0xff] }
 0x682   :  { %7747 = vmatprep.subr.bf16.mxu1 %v7746_v60  ;;  %v2232_v60 = vld [vmem:[#allocation7 + $0x1560] sm:$0xff]  ;;  %v7766_v8 = vpack.c.bf16 %v2251_v0, %v2235_v27  ;;  %v2363_v63 = vld [vmem:[#allocation7 + $0x1978] sm:$0xff]  ;;  %v2362_v0 = vld [vmem:[#allocation7 + $0x1970] sm:$0xff] }
 0x683   :  { %3489 = vmatmul.mubr.f32.vlgmr.msra.gmra.mrb[40].mxu0 %v9320_v11  ;;  %v7640_v47 = vpack.c.bf16 %v2248_v54, %v2232_v60  ;;  %v2376_v27 = vld [vmem:[#allocation7 + $0x19e0] sm:$0xff]  ;;  %v2409_v60 = vld [vmem:[#allocation7 + $0x1ae8] sm:$0xff]  ;;  %v2395_v54 = vld [vmem:[#allocation7 + $0x1a78] sm:$0xff] }
 0x684   :  { %3631 = vmatmul.mubr.f32.vlgmr.msra.gmra.mrb[16].mxu1 %v9320_v11  ;;  %7621 = vmatpush1.bf16.msra.mxu0 %v7620_v30  ;;  %v2187_v11 = vld [vmem:[#allocation7 + $0x13f8] sm:$0xff]  ;;  %v2265_v30 = vld [vmem:[#allocation7 + $0x1668] sm:$0xff] }
 0x685   :  { %3559 = vmatprep.mubr.f32.mxu0 %v9329_v7  ;;  %7749 = vmatpush1.bf16.msra.mxu1 %v7748_v40  ;;  %v7758_v59 = vpack.c.bf16 %v2187_v11, %v2171_v1  ;;  %v2283_v40 = vld [vmem:[#allocation7 + $0x16f8] sm:$0xff]  ;;  %v7642_v50 = vpack.c.bf16 %v2281_v6, %v2265_v30  ;;  %v2312_v1 = vld [vmem:[#allocation7 + $0x17e0] sm:$0xff]  ;;  %v2298_v11 = vld [vmem:[#allocation7 + $0x1770] sm:$0xff] }
 0x686   :  { %3701 = vmatprep.mubr.f32.mxu1 %v9329_v7  ;;  %7623 = vmatprep.subr.bf16.mxu0 %v7622_v9  ;;  %v2186_v7 = vld [vmem:[#allocation7 + $0x13f0] sm:$0xff]  ;;  %v2264_v9 = vld [vmem:[#allocation7 + $0x1660] sm:$0xff] }
 0x687   :  { %7751 = vmatprep.subr.bf16.mxu1 %v7750_v55  ;;  %v7760_v62 = vpack.c.bf16 %v2186_v7, %v2170_v45  ;;  %v7770_v55 = vpack.c.bf16 %v2283_v40, %v2267_v17  ;;  %v2347_v45 = vld [vmem:[#allocation7 + $0x18f8] sm:$0xff]  ;;  %v2392_v6 = vld [vmem:[#allocation7 + $0x1a60] sm:$0xff]  ;;  %v2394_v40 = vld [vmem:[#allocation7 + $0x1a70] sm:$0xff] }
 0x688   :  { %7625 = vmatpush1.bf16.msra.mxu0 %v7624_v58  ;;  %v2313_v58 = vld [vmem:[#allocation7 + $0x17e8] sm:$0xff]  ;;  %v2408_v17 = vld [vmem:[#allocation7 + $0x1ae0] sm:$0xff] }
 0x689   :  { %7753 = vmatpush1.bf16.msra.mxu1 %v7752_v31  ;;  %7627 = vmatprep.subr.bf16.mxu0 %v7626_v22  ;;  %v7646_v29 = vpack.c.bf16 %v2313_v58, %v2297_v34  ;;  %v2424_v58 = vld [vmem:[#allocation7 + $0x1b60] sm:$0xff] }
 0x68a   :  { %7755 = vmatprep.subr.bf16.mxu1 %v7754_v5  ;;  %v7644_v5 = vpack.c.bf16 %v2280_v4, %v2264_v9  ;;  %v2441_v9 = vld [vmem:[#allocation7 + $0x1be8] sm:$0xff]  ;;  %v2427_v4 = vld [vmem:[#allocation7 + $0x1b78] sm:$0xff] }
 0x68c   :  { %7629 = vmatpush1.bf16.msra.mxu0 %v7628_v35  ;;  %v7774_v35 = vpack.c.bf16 %v2315_v24, %v2299_v33  ;;  %v2440_v33 = vld [vmem:[#allocation7 + $0x1be0] sm:$0xff]  ;;  %v2426_v24 = vld [vmem:[#allocation7 + $0x1b70] sm:$0xff] }
 0x68d   :  { %7757 = vmatpush1.bf16.msra.mxu1 %v7756_v39  ;;  %7631 = vmatprep.subr.bf16.mxu0 %v7630_v26  ;;  %v2314_v39 = vld [vmem:[#allocation7 + $0x17f0] sm:$0xff]  ;;  %v2329_v26 = vld [vmem:[#allocation7 + $0x1868] sm:$0xff] }
 0x68e   :  { %7759 = vmatprep.subr.bf16.mxu1 %v7758_v59  ;;  %v7648_v59 = vpack.c.bf16 %v2312_v1, %v2296_v49  ;;  %v7776_v7 = vpack.c.bf16 %v2314_v39, %v2298_v11  ;;  %v7650_v52 = vpack.c.bf16 %v2345_v23, %v2329_v26  ;;  %v2473_v49 = vld [vmem:[#allocation7 + $0x1ce8] sm:$0xff]  ;;  %v2459_v1 = vld [vmem:[#allocation7 + $0x1c78] sm:$0xff]  ;;  %v2456_v23 = vld [vmem:[#allocation7 + $0x1c60] sm:$0xff] }
 0x68f   :  { %v2475_v11 = vld [vmem:[#allocation7 + $0x1cf8] sm:$0xff] }
 0x690   :  { %7633 = vmatpush1.bf16.msra.mxu0 %v7632_v16  ;;  %v7778_v16 = vpack.c.bf16 %v2347_v45, %v2331_v43  ;;  %v2472_v43 = vld [vmem:[#allocation7 + $0x1ce0] sm:$0xff]  ;;  %v2458_v45 = vld [vmem:[#allocation7 + $0x1c70] sm:$0xff] }
 0x691   :  { %7761 = vmatpush1.bf16.msra.mxu1 %v7760_v62  ;;  %7635 = vmatprep.subr.bf16.mxu0 %v7634_v53  ;;  %v2346_v62 = vld [vmem:[#allocation7 + $0x18f0] sm:$0xff]  ;;  %v2361_v53 = vld [vmem:[#allocation7 + $0x1968] sm:$0xff] }
 0x692   :  { %7763 = vmatprep.subr.bf16.mxu1 %v7762_v42  ;;  %v7652_v42 = vpack.c.bf16 %v2344_v32, %v2328_v57  ;;  %v7780_v56 = vpack.c.bf16 %v2346_v62, %v2330_v15  ;;  %v7654_v20 = vpack.c.bf16 %v2377_v61, %v2361_v53  ;;  %v2505_v57 = vld [vmem:[#allocation7 + $0x1de8] sm:$0xff]  ;;  %v2491_v32 = vld [vmem:[#allocation7 + $0x1d78] sm:$0xff]  ;;  %v2488_v61 = vld [vmem:[#allocation7 + $0x1d60] sm:$0xff] }
 0x693   :  { %v2507_v15 = vld [vmem:[#allocation7 + $0x1df8] sm:$0xff] }
 0x694   :  { %7637 = vmatpush1.bf16.msra.mxu0 %v7636_v48  ;;  %v7782_v48 = vpack.c.bf16 %v2379_v41, %v2363_v63  ;;  %v2504_v63 = vld [vmem:[#allocation7 + $0x1de0] sm:$0xff]  ;;  %v2490_v41 = vld [vmem:[#allocation7 + $0x1d70] sm:$0xff] }
 0x695   :  { %7765 = vmatpush1.bf16.msra.mxu1 %v7764_v3  ;;  %7639 = vmatprep.subr.bf16.mxu0 %v7638_v28  ;;  %v2378_v3 = vld [vmem:[#allocation7 + $0x19f0] sm:$0xff]  ;;  %v2393_v28 = vld [vmem:[#allocation7 + $0x1a68] sm:$0xff] }
 0x696   :  { %v9375_v18 = vpop.f32.mrb[36].mxu0  ;;  %7767 = vmatprep.subr.bf16.mxu1 %v7766_v8  ;;  %v7656_v8 = vpack.c.bf16 %v2376_v27, %v2360_v10  ;;  %v7784_v13 = vpack.c.bf16 %v2378_v3, %v2362_v0  ;;  %v7658_v30 = vpack.c.bf16 %v2409_v60, %v2393_v28  ;;  %v2537_v10 = vld [vmem:[#allocation7 + $0x1ee8] sm:$0xff]  ;;  %v2523_v27 = vld [vmem:[#allocation7 + $0x1e78] sm:$0xff]  ;;  %v2520_v60 = vld [vmem:[#allocation7 + $0x1e60] sm:$0xff] }
 0x697   :  { %v9377_v31 = vpop.f32.mrb[12].mxu1  ;;  %v9379_v22 = vpop.f32.mrb[37].mxu0  ;;  %v2539_v0 = vld [vmem:[#allocation7 + $0x1ef8] sm:$0xff] }
 0x698   :  { %v9381_v12 = vpop.f32.mrb[13].mxu1  ;;  %7641 = vmatpush1.bf16.msra.mxu0 %v7640_v47  ;;  %v7786_v47 = vpack.c.bf16 %v2411_v14, %v2395_v54  ;;  %v2536_v54 = vld [vmem:[#allocation7 + $0x1ee0] sm:$0xff]  ;;  %v2522_v14 = vld [vmem:[#allocation7 + $0x1e70] sm:$0xff] }
 0x699   :  { %7769 = vmatpush1.bf16.msra.mxu1 %v7768_v36  ;;  %7643 = vmatprep.subr.bf16.mxu0 %v7642_v50  ;;  %v2410_v36 = vld [vmem:[#allocation7 + $0x1af0] sm:$0xff]  ;;  %v2425_v50 = vld [vmem:[#allocation7 + $0x1b68] sm:$0xff] }
 0x69a   :  { %7771 = vmatprep.subr.bf16.mxu1 %v7770_v55  ;;  %v7660_v55 = vpack.c.bf16 %v2408_v17, %v2392_v6  ;;  %v7788_v44 = vpack.c.bf16 %v2410_v36, %v2394_v40  ;;  %v7662_v34 = vpack.c.bf16 %v2441_v9, %v2425_v50  ;;  %v2569_v6 = vld [vmem:[#allocation7 + $0x1fe8] sm:$0xff]  ;;  %v2555_v17 = vld [vmem:[#allocation7 + $0x1f78] sm:$0xff]  ;;  %v2552_v9 = vld [vmem:[#allocation7 + $0x1f60] sm:$0xff] }
 0x69b   :  { %v2571_v40 = vld [vmem:[#allocation7 + $0x1ff8] sm:$0xff] }
 0x69c   :  { %7645 = vmatpush1.bf16.msra.mxu0 %v7644_v5  ;;  %v7790_v5 = vpack.c.bf16 %v2443_v21, %v2427_v4  ;;  %v2568_v4 = vld [vmem:[#allocation7 + $0x1fe0] sm:$0xff]  ;;  %v7806_v21 = vpack.c.bf16 %v2571_v40, %v2555_v17  ;;  %v3902_v40 = vld [vmem:[#allocation10 + $0x110] sm:$0xff] }
 0x69d   :  { %7773 = vmatpush1.bf16.msra.mxu1 %v7772_v2  ;;  %7647 = vmatprep.subr.bf16.mxu0 %v7646_v29  ;;  %v2442_v2 = vld [vmem:[#allocation7 + $0x1bf0] sm:$0xff]  ;;  %v2457_v29 = vld [vmem:[#allocation7 + $0x1c68] sm:$0xff] }
 0x69e   :  { %7775 = vmatprep.subr.bf16.mxu1 %v7774_v35  ;;  %v7664_v35 = vpack.c.bf16 %v2440_v33, %v2424_v58  ;;  %v7792_v39 = vpack.c.bf16 %v2442_v2, %v2426_v24  ;;  %v7666_v26 = vpack.c.bf16 %v2473_v49, %v2457_v29  ;;  %v10754_v33 = vmov 0.0  }
 0x6a0   :  { %7649 = vmatpush1.bf16.msra.mxu0 %v7648_v59  ;;  %v7794_v59 = vpack.c.bf16 %v2475_v11, %v2459_v1 }
 0x6a1   :  { %7777 = vmatpush1.bf16.msra.mxu1 %v7776_v7  ;;  %7651 = vmatprep.subr.bf16.mxu0 %v7650_v52  ;;  %v2474_v7 = vld [vmem:[#allocation7 + $0x1cf0] sm:$0xff]  ;;  %v2489_v52 = vld [vmem:[#allocation7 + $0x1d68] sm:$0xff] }
 0x6a2   :  { %7779 = vmatprep.subr.bf16.mxu1 %v7778_v16  ;;  %v7668_v16 = vpack.c.bf16 %v2472_v43, %v2456_v23  ;;  %v7796_v62 = vpack.c.bf16 %v2474_v7, %v2458_v45  ;;  %v7670_v53 = vpack.c.bf16 %v2505_v57, %v2489_v52  ;;  %v3805_v43 = vld [vmem:[#allocation10 + $0x88] sm:$0xff]  ;;  %v3804_v52 = vld [vmem:[#allocation10 + $0x80] sm:$0xff]  ;;  %v4106_v57 = vld [vmem:[#allocation10 + $0x370] sm:$0xff] }
 0x6a3   :  { %v3757_v7 = vld [vmem:[#allocation10 + $0x8] sm:$0xff] }
 0x6a4   :  { %7653 = vmatpush1.bf16.msra.mxu0 %v7652_v42  ;;  %v7798_v42 = vpack.c.bf16 %v2507_v15, %v2491_v32  ;;  %v4107_v32 = vld [vmem:[#allocation10 + $0x378] sm:$0xff]  ;;  %v4154_v15 = vld [vmem:[#allocation10 + $0x3f0] sm:$0xff] }
 0x6a5   :  { %7781 = vmatpush1.bf16.msra.mxu1 %v7780_v56  ;;  %7655 = vmatprep.subr.bf16.mxu0 %v7654_v20  ;;  %v2506_v56 = vld [vmem:[#allocation7 + $0x1df0] sm:$0xff]  ;;  %v2521_v20 = vld [vmem:[#allocation7 + $0x1e68] sm:$0xff] }
 0x6a6   :  { %7783 = vmatprep.subr.bf16.mxu1 %v7782_v48  ;;  %v7672_v48 = vpack.c.bf16 %v2504_v63, %v2488_v61  ;;  %v7800_v3 = vpack.c.bf16 %v2506_v56, %v2490_v41  ;;  %v7674_v28 = vpack.c.bf16 %v2537_v10, %v2521_v20  ;;  %v4155_v61 = vld [vmem:[#allocation10 + $0x3f8] sm:$0xff]  ;;  %v3821_v20 = vmul.f32 %v3805_v43, %v9353_v38  ;;  %v4093_v43 = vld [vmem:[#allocation10 + $0x308] sm:$0xff] }
 0x6a7   :  { %v4059_v56 = vld [vmem:[#allocation10 + $0x2f8] sm:$0xff] }
 0x6a8   :  { %7657 = vmatpush1.bf16.msra.mxu0 %v7656_v8  ;;  %v7802_v8 = vpack.c.bf16 %v2539_v0, %v2523_v27  ;;  %v4011_v10 = vld [vmem:[#allocation10 + $0x278] sm:$0xff] }
 0x6a9   :  { %7785 = vmatpush1.bf16.msra.mxu1 %v7784_v13  ;;  %7659 = vmatprep.subr.bf16.mxu0 %v7658_v30  ;;  %v2538_v13 = vld [vmem:[#allocation7 + $0x1ef0] sm:$0xff]  ;;  %v2553_v30 = vld [vmem:[#allocation7 + $0x1f68] sm:$0xff] }
 0x6aa   :  { %7787 = vmatprep.subr.bf16.mxu1 %v7786_v47  ;;  %v7676_v47 = vpack.c.bf16 %v2536_v54, %v2520_v60  ;;  %v7804_v36 = vpack.c.bf16 %v2538_v13, %v2522_v14  ;;  %v7678_v50 = vpack.c.bf16 %v2569_v6, %v2553_v30  ;;  %v3900_v60 = vld [vmem:[#allocation10 + $0x100] sm:$0xff]  ;;  %v3901_v14 = vld [vmem:[#allocation10 + $0x108] sm:$0xff]  ;;  %v9492_v30 = vmul.f32 %v4155_v61, %v9353_v38 }
 0x6ab   :  { %v3949_v6 = vld [vmem:[#allocation10 + $0x188] sm:$0xff] }
 0x6ac   :  { %7661 = vmatpush1.bf16.msra.mxu0 %v7660_v55  ;;  %v2554_v55 = vld [vmem:[#allocation7 + $0x1f70] sm:$0xff]  ;;  %10759 = vst [vmem:[#allocation32_spill] sm:$0xff] %v9492_v30 }
 0x6ad   :  { %7789 = vmatpush1.bf16.msra.mxu1 %v7788_v44  ;;  %7663 = vmatprep.subr.bf16.mxu0 %v7662_v34  ;;  %v2570_v44 = vld [vmem:[#allocation7 + $0x1ff0] sm:$0xff]  ;;  %v7680_v34 = vpack.c.bf16 %v2568_v4, %v2552_v9 }
 0x6ae   :  { %7791 = vmatprep.subr.bf16.mxu1 %v7790_v5  ;;  %v7808_v58 = vpack.c.bf16 %v2570_v44, %v2554_v55 }
 0x6b0   :  { %7665 = vmatpush1.bf16.msra.mxu0 %v7664_v35 }
 0x6b1   :  { %7793 = vmatpush1.bf16.msra.mxu1 %v7792_v39  ;;  %7667 = vmatprep.subr.bf16.mxu0 %v7666_v26  ;;  %v3709_v39 = vpop.permute.xlu1 %3708  ;;  %v3853_v26 = vpop.permute.xlu0 %3852 }
 0x6b2   :  { %7795 = vmatprep.subr.bf16.mxu1 %v7794_v59  ;;  %v3756_v59 = vld [vmem:[#allocation10] sm:$0xff] }
 0x6b4   :  { %7669 = vmatpush1.bf16.msra.mxu0 %v7668_v16 }
 0x6b5   :  { %7797 = vmatpush1.bf16.msra.mxu1 %v7796_v62  ;;  %7671 = vmatprep.subr.bf16.mxu0 %v7670_v53  ;;  %v3711_v23 = vpop.permute.xlu1 %3710 }
 0x6b6   :  { %7799 = vmatprep.subr.bf16.mxu1 %v7798_v42  ;;  %v9496_v17 = vsel %vm1132_vm8, %v3709_v39, %v3711_v23 }
 0x6b8   :  { %7673 = vmatpush1.bf16.msra.mxu0 %v7672_v48 }
 0x6b9   :  { %7801 = vmatpush1.bf16.msra.mxu1 %v7800_v3  ;;  %7675 = vmatprep.subr.bf16.mxu0 %v7674_v28 }
 0x6ba   :  { %7803 = vmatprep.subr.bf16.mxu1 %v7802_v8 }
 0x6bc   :  { %7677 = vmatpush1.bf16.msra.mxu0 %v7676_v47 }
 0x6bd   :  { %7805 = vmatpush1.bf16.msra.mxu1 %v7804_v36  ;;  %7679 = vmatprep.subr.bf16.mxu0 %v7678_v50  ;;  %v3948_v50 = vld [vmem:[#allocation10 + $0x180] sm:$0xff] }
 0x6be   :  { %7807 = vmatprep.subr.bf16.mxu1 %v7806_v21 }
 0x6c0   :  { %7681 = vmatpush1.bf16.msra.mxu0 %v7680_v34  ;;  %v3810_v34 = vld [vmem:[#allocation10 + $0xb0] sm:$0xff] }
 0x6c1   :  { %7809 = vmatpush1.bf16.msra.mxu1 %v7808_v58  ;;  %v3965_v58 = vmul.f32 %v3949_v6, %v9496_v17  ;;  %v3809_v6 = vld [vmem:[#allocation10 + $0xa8] sm:$0xff] }
 0x6c3   :  { %3560 = vmatmul.mubr.f32.vlgmr.msra.gmra.mrb[40].mxu0 %v9335_v37 }
 0x6c4   :  { %3702 = vmatmul.mubr.f32.vlgmr.msra.gmra.mrb[16].mxu1 %v9335_v37  ;;  %4455 = vmatprep.mubr.f32.mxu0 %v10754_v33  ;;  %v4381_v37 = vld [vmem:[%s10713_s11] sm:$0xff] }
 0x6c5   :  { %4597 = vmatprep.mubr.f32.mxu1 %v10754_v33 }
 0x716   :  { %v9387_v24 = vpop.f32.mrb[38].mxu0 }
 0x717   :  { %v9389_v5 = vpop.f32.mrb[14].mxu1  ;;  %v9391_v2 = vpop.f32.mrb[39].mxu0 }
 0x718   :  { %v9393_v29 = vpop.f32.mrb[15].mxu1 }
 0x796   :  { %v9395_v49 = vpop.f32.mrb[40].mxu0 }
 0x797   :  { %v9397_v1 = vpop.f32.mrb[16].mxu1  ;;  %v9399_v11 = vpop.f32.mrb[41].mxu0 }
 0x798   :  { %v9401_v35 = vpop.f32.mrb[17].mxu1  ;;  %3736 = vrot.lane.b32.xlu0 %v9397_v1, %s8454_s10 }
 0x799   :  { %3738 = vrot.lane.b32.xlu1 %v9401_v35, %s8454_s10  ;;  %v3820_v63 = vmul.f32 %v3804_v52, %v9401_v35  ;;  %v9477_v27 = vmul.f32 %v4154_v15, %v9401_v35  ;;  %v9504_v36 = vmul.f32 %v4011_v10, %v9401_v35  ;;  %v3996_v52 = vld [vmem:[#allocation10 + $0x200] sm:$0xff] }
 0x79a   :  { %v4012_v10 = vmul.f32 %v3996_v52, %v9353_v38 }
 0x79b   :  { %10755 = vst [vmem:[#allocation28_spill] sm:$0xff] %v9477_v27  ;;  %v3811_v27 = vld [vmem:[#allocation10 + $0xb8] sm:$0xff] }
 0x79c   :  { %3882 = vrot.lane.b32.xlu0 %v9401_v35, %s8478_s2  ;;  %v4044_v35 = vld [vmem:[#allocation10 + $0x280] sm:$0xff] }
 0x79d   :  { %3854 = vrot.lane.b32.xlu1 %v9363_v25, %s8478_s2 }
 0x7a0   :  { %3712 = vrot.lane.b32.xlu0 %v9355_v51, %s8454_s10 }
 0x7a1   :  { %3856 = vrot.lane.b32.xlu1 %v9355_v51, %s8478_s2 }
 0x7a4   :  { %3714 = vrot.lane.b32.xlu0 %v9357_v19, %s8454_s10 }
 0x7a5   :  { %3858 = vrot.lane.b32.xlu1 %v9357_v19, %s8478_s2 }
 0x7a8   :  { %3716 = vrot.lane.b32.xlu0 %v9375_v18, %s8454_s10 }
 0x7a9   :  { %3860 = vrot.lane.b32.xlu1 %v9375_v18, %s8478_s2 }
 0x7ac   :  { %3720 = vrot.lane.b32.xlu0 %v9377_v31, %s8454_s10 }
 0x7ad   :  { %3718 = vrot.lane.b32.xlu1 %v9379_v22, %s8454_s10 }
 0x7b0   :  { %3722 = vrot.lane.b32.xlu0 %v9381_v12, %s8454_s10 }
 0x7b1   :  { %3862 = vrot.lane.b32.xlu1 %v9379_v22, %s8478_s2 }
 0x7b4   :  { %3866 = vrot.lane.b32.xlu0 %v9381_v12, %s8478_s2 }
 0x7b5   :  { %3864 = vrot.lane.b32.xlu1 %v9377_v31, %s8478_s2 }
 0x7b8   :  { %3724 = vrot.lane.b32.xlu0 %v9387_v24, %s8454_s10 }
 0x7b9   :  { %3868 = vrot.lane.b32.xlu1 %v9387_v24, %s8478_s2 }
 0x7bc   :  { %3728 = vrot.lane.b32.xlu0 %v9389_v5, %s8454_s10 }
 0x7bd   :  { %3726 = vrot.lane.b32.xlu1 %v9391_v2, %s8454_s10 }
 0x7c0   :  { %3730 = vrot.lane.b32.xlu0 %v9393_v29, %s8454_s10 }
 0x7c1   :  { %3870 = vrot.lane.b32.xlu1 %v9391_v2, %s8478_s2 }
 0x7c4   :  { %3874 = vrot.lane.b32.xlu0 %v9393_v29, %s8478_s2 }
 0x7c5   :  { %3872 = vrot.lane.b32.xlu1 %v9389_v5, %s8478_s2 }
 0x7c8   :  { %3732 = vrot.lane.b32.xlu0 %v9395_v49, %s8454_s10 }
 0x7c9   :  { %3876 = vrot.lane.b32.xlu1 %v9395_v49, %s8478_s2 }
 0x7cc   :  { %3878 = vrot.lane.b32.xlu0 %v9399_v11, %s8478_s2 }
 0x7cd   :  { %3734 = vrot.lane.b32.xlu1 %v9399_v11, %s8454_s10 }
 0x7d0   :  { %4384 = vperm.xlu0 %8128, %v4381_v37   ;;  %v4045_v37 = vld [vmem:[#allocation10 + $0x288] sm:$0xff] }
 0x7d1   :  { %3880 = vrot.lane.b32.xlu1 %v9397_v1, %s8478_s2 }
 0x80a   :  { %v9464_v45 = vpop.permute.xlu0 %3736 }
 0x80b   :  { %v3739_v16 = vpop.permute.xlu1 %3738 }
 0x80c   :  { %v9469_v62 = vsel %vm1132_vm8, %v9464_v45, %v3739_v16  ;;  %v3755_v53 = vsel %vm1132_vm8, %v3739_v16, %v3709_v39 }
 0x80d   :  { %v3772_v41 = vmul.f32 %v3756_v59, %v9469_v62  ;;  %v3773_v42 = vmul.f32 %v3757_v7, %v3755_v53  ;;  %v9480_v0 = vmul.f32 %v4106_v57, %v9469_v62  ;;  %v9482_v48 = vmul.f32 %v4107_v32, %v3755_v53  ;;  %v3997_v7 = vld [vmem:[#allocation10 + $0x208] sm:$0xff] }
 0x80e   :  { %v9484_v3 = vpop.permute.xlu0 %3882 }
 0x80f   :  { %10756 = vst [vmem:[#allocation29_spill] sm:$0xff] %v9480_v0  ;;  %10757 = vst [vmem:[#allocation30_spill] sm:$0xff] %v9482_v48  ;;  %v7812_v28 = vpack.c.bf16 %v3820_v63, %v3772_v41  ;;  %v9489_v54 = vsel %vm1205_vm9, %v9484_v3, %v3853_v26  ;;  %v3855_v8 = vpop.permute.xlu1 %3854  ;;  %v7810_v13 = vpack.c.bf16 %v3821_v20, %v3773_v42  ;;  %v4141_v41 = vld [vmem:[#allocation10 + $0x388] sm:$0xff]  ;;  %v4140_v20 = vld [vmem:[#allocation10 + $0x380] sm:$0xff] }
 0x810   :  { %10758 = vst [vmem:[#allocation31_spill] sm:$0xff] %v9489_v54  ;;  %v9501_v47 = vmul.f32 %v4059_v56, %v9489_v54  ;;  %v9508_v9 = vsel %vm1205_vm9, %v3853_v26, %v3855_v8  ;;  %v3916_v21 = vmul.f32 %v3900_v60, %v9489_v54  ;;  %v3964_v26 = vmul.f32 %v3948_v50, %v3755_v53  ;;  %v4092_v53 = vld [vmem:[#allocation10 + $0x300] sm:$0xff] }
 0x811   :  { %10760 = vst [vmem:[#allocation33_spill] sm:$0xff] %v9508_v9  ;;  %7811 = vmatprep.subr.bf16.mxu0 %v7810_v13  ;;  %v3917_v55 = vmul.f32 %v3901_v14, %v9508_v9  ;;  %v4060_v16 = vmul.f32 %v4044_v35, %v9508_v9  ;;  %v4013_v56 = vmul.f32 %v3997_v7, %v9363_v25  ;;  %v3808_v35 = vld [vmem:[#allocation10 + $0xa0] sm:$0xff] }
 0x812   :  { %v3713_v44 = vpop.permute.xlu0 %3712  ;;  %7813 = vmatpush1.bf16.msra.mxu0 %v7812_v28  ;;  %v7816_v15 = vpack.c.bf16 %v3964_v26, %v3916_v21  ;;  %v3760_v28 = vld [vmem:[#allocation10 + $0x20] sm:$0xff]  ;;  %v4157_v13 = vmul.f32 %v4141_v41, %v9355_v51  ;;  %v4108_v50 = vmul.f32 %v4092_v53, %v9496_v17  ;;  %v3758_v26 = vld [vmem:[#allocation10 + $0x10] sm:$0xff] }
 0x813   :  { %v3857_v39 = vpop.permute.xlu1 %3856  ;;  %v9519_v59 = vsel %vm1132_vm8, %v3711_v23, %v3713_v44  ;;  %v7814_v32 = vpack.c.bf16 %v3965_v58, %v3917_v55  ;;  %v7820_v21 = vpack.c.bf16 %v4060_v16, %v4012_v10  ;;  %v4156_v58 = vmul.f32 %v4140_v20, %v9363_v25  ;;  %v3806_v41 = vld [vmem:[#allocation10 + $0x90] sm:$0xff]  ;;  %v4144_v54 = vld [vmem:[#allocation10 + $0x3a0] sm:$0xff] }
 0x814   :  { %v9523_v57 = vsel %vm1205_vm9, %v3855_v8, %v3857_v39  ;;  %v4109_v42 = vmul.f32 %v4093_v43, %v9519_v59  ;;  %v3761_v8 = vld [vmem:[#allocation10 + $0x28] sm:$0xff]  ;;  %v3759_v43 = vld [vmem:[#allocation10 + $0x18] sm:$0xff]  ;;  %v3825_v16 = vmul.f32 %v3809_v6, %v9375_v18 }
 0x815   :  { %v4061_v61 = vmul.f32 %v4045_v37, %v9523_v57  ;;  %7815 = vmatprep.subr.bf16.mxu0 %v7814_v32  ;;  %v7824_v53 = vpack.c.bf16 %v4156_v58, %v4108_v50 }
 0x816   :  { %v3715_v63 = vpop.permute.xlu0 %3714  ;;  %7817 = vmatpush1.bf16.msra.mxu0 %v7816_v15  ;;  %v7822_v37 = vpack.c.bf16 %v4157_v13, %v4109_v42  ;;  %v4189_v15 = vld [vmem:[#allocation10 + $0x408] sm:$0xff]  ;;  %v3824_v42 = vmul.f32 %v3808_v35, %v9357_v19  ;;  %v3998_v13 = vld [vmem:[#allocation10 + $0x210] sm:$0xff] }
 0x817   :  { %v9528_v23 = vpop.permute.xlu1 %3858  ;;  %v9534_v60 = vsel %vm1132_vm8, %v3713_v44, %v3715_v63  ;;  %v7818_v14 = vpack.c.bf16 %v4061_v61, %v4013_v56  ;;  %v3951_v61 = vld [vmem:[#allocation10 + $0x198] sm:$0xff]  ;;  %v4142_v56 = vld [vmem:[#allocation10 + $0x390] sm:$0xff] }
 0x818   :  { %v3776_v7 = vmul.f32 %v3760_v28, %v9534_v60  ;;  %v9549_v52 = vsel %vm1205_vm9, %v3857_v39, %v9528_v23  ;;  %v3807_v28 = vld [vmem:[#allocation10 + $0x98] sm:$0xff]  ;;  %v3774_v39 = vmul.f32 %v3758_v26, %v9496_v17  ;;  %v3967_v50 = vmul.f32 %v3951_v61, %v9534_v60  ;;  %v3952_v26 = vld [vmem:[#allocation10 + $0x1a0] sm:$0xff] }
 0x819   :  { %7819 = vmatprep.subr.bf16.mxu0 %v7818_v14  ;;  %v3775_v14 = vmul.f32 %v3759_v43, %v9519_v59  ;;  %v4205_v6 = vmul.f32 %v4189_v15, %v9549_v52  ;;  %v9565_v17 = vmul.f32 %v4142_v56, %v9357_v19  ;;  %v3823_v43 = vmul.f32 %v3807_v28, %v9355_v51  ;;  %v4000_v15 = vld [vmem:[#allocation10 + $0x220] sm:$0xff] }
 0x81a   :  { %v3717_v55 = vpop.permute.xlu0 %3716  ;;  %7821 = vmatpush1.bf16.msra.mxu0 %v7820_v21  ;;  %v7844_v58 = vpack.c.bf16 %v3824_v42, %v3776_v7  ;;  %v9570_v61 = vmul.f32 %v3998_v13, %v9355_v51  ;;  %v3904_v7 = vld [vmem:[#allocation10 + $0x120] sm:$0xff]  ;;  %v3918_v56 = vmul.f32 %v3902_v40, %v9523_v57  ;;  %v3953_v51 = vld [vmem:[#allocation10 + $0x1a8] sm:$0xff]  ;;  %v4143_v13 = vld [vmem:[#allocation10 + $0x398] sm:$0xff] }
 0x81b   :  { %v9541_v38 = vsel %vm1132_vm8, %v3715_v63, %v3717_v55  ;;  %v9543_v44 = vpop.permute.xlu1 %3860  ;;  %v3903_v63 = vld [vmem:[#allocation10 + $0x118] sm:$0xff]  ;;  %7823 = vmatprep.subr.bf16.mxu0 %v7822_v37  ;;  %v3950_v37 = vld [vmem:[#allocation10 + $0x190] sm:$0xff]  ;;  %v7826_v28 = vpack.c.bf16 %v3823_v43, %v3775_v14  ;;  %v9602_v14 = vmul.f32 %v4000_v15, %v9375_v18  ;;  %v9611_v43 = vmul.f32 %v3810_v34, %v9379_v22  ;;  %v3812_v34 = vld [vmem:[#allocation10 + $0xc0] sm:$0xff] }
 0x81c   :  { %v3777_v32 = vmul.f32 %v3761_v8, %v9541_v38  ;;  %v4188_v8 = vld [vmem:[#allocation10 + $0x400] sm:$0xff]  ;;  %v3919_v35 = vmul.f32 %v3903_v63, %v9549_v52  ;;  %v4047_v63 = vld [vmem:[#allocation10 + $0x298] sm:$0xff]  ;;  %v3966_v42 = vmul.f32 %v3950_v37, %v9519_v59  ;;  %v4046_v40 = vld [vmem:[#allocation10 + $0x290] sm:$0xff] }
 0x81d   :  { %v4204_v4 = vmul.f32 %v4188_v8, %v9523_v57  ;;  %v3905_v8 = vld [vmem:[#allocation10 + $0x128] sm:$0xff]  ;;  %v4002_v15 = vld [vmem:[#allocation10 + $0x230] sm:$0xff] }
 0x81e   :  { %v9554_v20 = vpop.permute.xlu0 %3720  ;;  %v7842_v10 = vpack.c.bf16 %v3825_v16, %v3777_v32  ;;  %7825 = vmatpush1.bf16.msra.mxu0 %v7824_v53  ;;  %v3822_v32 = vmul.f32 %v3806_v41, %v9363_v25  ;;  %v3999_v16 = vld [vmem:[#allocation10 + $0x218] sm:$0xff]  ;;  %v9576_v25 = vsel %vm1205_vm9, %v9528_v23, %v9543_v44  ;;  %v9580_v53 = vld [vmem:[#allocation13] sm:$0xff]  ;;  %v7830_v0 = vpack.c.bf16 %v3967_v50, %v3919_v35  ;;  %v4049_v35 = vld [vmem:[#allocation10 + $0x2a8] sm:$0xff] }
 0x81f   :  { %v9559_v21 = vpop.permute.xlu1 %3718  ;;  %4407 = vmatprep.subr.mxu0 %v4205_v6  ;;  %v4015_v59 = vmul.f32 %v3999_v16, %v9357_v19  ;;  %v3920_v57 = vmul.f32 %v3904_v7, %v9576_v25  ;;  %v4063_v37 = vmul.f32 %v4047_v63, %v9576_v25  ;;  %v4048_v16 = vld [vmem:[#allocation10 + $0x2a0] sm:$0xff]  ;;  %v4001_v63 = vld [vmem:[#allocation10 + $0x228] sm:$0xff]  ;;  %v9635_v9 = vmul.f32 %v4002_v15, %v9377_v31  ;;  %v3814_v15 = vld [vmem:[#allocation10 + $0xd0] sm:$0xff] }
 0x820   :  { %7843 = vmatprep.subr.bf16.mxu1 %v7842_v10  ;;  %v9587_v10 = vsel %vm1132_vm8, %v3717_v55, %v9559_v21  ;;  %v7828_v6 = vpack.c.bf16 %v3822_v32, %v3774_v39  ;;  %v4095_v39 = vld [vmem:[#allocation10 + $0x318] sm:$0xff]  ;;  %v9608_v32 = vmul.f32 %v4143_v13, %v9375_v18  ;;  %v9624_v18 = vsel %vm1132_vm8, %v9559_v21, %v9554_v20 }
 0x821   :  { %7845 = vmatpush1.bf16.msra.mxu1 %v7844_v58  ;;  %v3968_v58 = vmul.f32 %v3952_v26, %v9541_v38  ;;  %v7832_v26 = vpack.c.bf16 %v3966_v42, %v3918_v56  ;;  %v4094_v56 = vld [vmem:[#allocation10 + $0x310] sm:$0xff] }
 0x822   :  { %v9578_v41 = vpop.permute.xlu0 %3722  ;;  %4408 = vmatpush1.msra.mxu0 %v4204_v4  ;;  %v3969_v4 = vmul.f32 %v3953_v51, %v9587_v10  ;;  %v4062_v51 = vmul.f32 %v4046_v40, %v9549_v52  ;;  %v4145_v40 = vld [vmem:[#allocation10 + $0x3a8] sm:$0xff] }
 0x823   :  { %v3863_v23 = vpop.permute.xlu1 %3862  ;;  %6498 = vmatmul.mubr.msk.f32.vlgmr.msra.gmra.mrb[42].mxu0 %vm4387_vm14, %v9580_v53  ;;  %7827 = vmatprep.subr.bf16.mxu0 %v7826_v28  ;;  %v4097_v28 = vld [vmem:[#allocation10 + $0x328] sm:$0xff]  ;;  %v7848_v13 = vpack.c.bf16 %v3968_v58, %v3920_v57 }
 0x824   :  { %v9598_v55 = vsel %vm1205_vm9, %v9543_v44, %v3863_v23  ;;  %7829 = vmatpush1.bf16.msra.mxu0 %v7828_v6  ;;  %v9614_v44 = vmul.f32 %v4144_v54, %v9379_v22  ;;  %4526 = vmatprep.mubr.f32.mxu0 %v10754_v33  ;;  %v4146_v54 = vld [vmem:[#allocation10 + $0x3b0] sm:$0xff]  ;;  %v7834_v6 = vpack.c.bf16 %v4063_v37, %v4015_v59 }
 0x825   :  { %v3921_v19 = vmul.f32 %v3905_v8, %v9598_v55  ;;  %7831 = vmatprep.subr.bf16.mxu0 %v7830_v0  ;;  %v4111_v8 = vmul.f32 %v4095_v39, %v9541_v38  ;;  %v4064_v21 = vmul.f32 %v4048_v16, %v9598_v55  ;;  %v4096_v38 = vld [vmem:[#allocation10 + $0x320] sm:$0xff]  ;;  %v4113_v58 = vmul.f32 %v4097_v28, %v9624_v18  ;;  %v3813_v39 = vld [vmem:[#allocation10 + $0xc8] sm:$0xff] }
 0x826   :  { %v9605_v50 = vpop.permute.xlu0 %3866  ;;  %v9642_v59 = vmul.f32 %v3812_v34, %v9381_v12  ;;  %v9645_v57 = vmul.f32 %v4146_v54, %v9381_v12  ;;  %v4161_v16 = vmul.f32 %v4145_v40, %v9377_v31  ;;  %v9653_v28 = vmul.f32 %v3811_v27, %v9377_v31  ;;  %v3762_v34 = vld [vmem:[#allocation10 + $0x30] sm:$0xff]  ;;  %v3763_v54 = vld [vmem:[#allocation10 + $0x38] sm:$0xff]  ;;  %v3816_v27 = vld [vmem:[#allocation10 + $0xe0] sm:$0xff] }
 0x827   :  { %v9616_v7 = vpop.permute.xlu1 %3864  ;;  %v7846_v42 = vpack.c.bf16 %v3969_v4, %v3921_v19  ;;  %v4004_v4 = vld [vmem:[#allocation10 + $0x240] sm:$0xff]  ;;  %v4003_v19 = vld [vmem:[#allocation10 + $0x238] sm:$0xff] }
 0x828   :  { %v9629_v0 = vsel %vm1205_vm9, %v3863_v23, %v9616_v7  ;;  %7833 = vmatpush1.bf16.msra.mxu0 %v7832_v26  ;;  %v4017_v23 = vmul.f32 %v4001_v63, %v9379_v22  ;;  %v4110_v26 = vmul.f32 %v4094_v56, %v9534_v60  ;;  %v7836_v22 = vpack.c.bf16 %v4062_v51, %v9570_v61  ;;  %v4148_v63 = vld [vmem:[#allocation10 + $0x3c0] sm:$0xff]  ;;  %v4191_v31 = vld [vmem:[#allocation10 + $0x418] sm:$0xff] }
 0x829   :  { %v4065_v52 = vmul.f32 %v4049_v35, %v9629_v0  ;;  %7847 = vmatprep.subr.bf16.mxu1 %v7846_v42  ;;  %7835 = vmatprep.subr.bf16.mxu0 %v7834_v6  ;;  %v4147_v35 = vld [vmem:[#allocation10 + $0x3b8] sm:$0xff]  ;;  %v7838_v42 = vpack.c.bf16 %v9608_v32, %v4111_v8  ;;  %v9657_v6 = vmul.f32 %v4004_v4, %v9387_v24  ;;  %v4005_v32 = vld [vmem:[#allocation10 + $0x248] sm:$0xff] }
 0x82a   :  { %v9637_v48 = vpop.permute.xlu0 %3724  ;;  %7849 = vmatpush1.bf16.msra.mxu1 %v7848_v13  ;;  %v9660_v30 = vmul.f32 %v4003_v19, %v9381_v12  ;;  %v4112_v60 = vmul.f32 %v4096_v38, %v9587_v10  ;;  %v7852_v61 = vpack.c.bf16 %v4064_v21, %v9602_v14  ;;  %v9667_v56 = vmul.f32 %v3813_v39, %v9387_v24  ;;  %v3815_v4 = vld [vmem:[#allocation10 + $0xd8] sm:$0xff]  ;;  %v3954_v38 = vld [vmem:[#allocation10 + $0x1b0] sm:$0xff] }
 0x82b   :  { %v9647_v37 = vpop.permute.xlu1 %3868  ;;  %v7850_v13 = vpack.c.bf16 %v4065_v52, %v4017_v23  ;;  %v9670_v8 = vmul.f32 %v4147_v35, %v9387_v24  ;;  %v4190_v52 = vld [vmem:[#allocation10 + $0x410] sm:$0xff]  ;;  %v7854_v12 = vpack.c.bf16 %v4161_v16, %v4113_v58  ;;  %v9675_v14 = vmul.f32 %v3814_v15, %v9391_v2  ;;  %v4149_v23 = vld [vmem:[#allocation10 + $0x3c8] sm:$0xff]  ;;  %v3907_v35 = vld [vmem:[#allocation10 + $0x138] sm:$0xff] }
 0x82c   :  { %7837 = vmatpush1.bf16.msra.mxu0 %v7836_v22  ;;  %v9678_v21 = vmul.f32 %v4148_v63, %v9391_v2  ;;  %v7840_v19 = vpack.c.bf16 %v9565_v17, %v4110_v26  ;;  %v3778_v24 = vmul.f32 %v3762_v34, %v9587_v10  ;;  %v3779_v39 = vmul.f32 %v3763_v54, %v9624_v18  ;;  %v4193_v22 = vld [vmem:[#allocation10 + $0x428] sm:$0xff]  ;;  %v3764_v63 = vld [vmem:[#allocation10 + $0x40] sm:$0xff]  ;;  %v3955_v34 = vld [vmem:[#allocation10 + $0x1b8] sm:$0xff] }
 0x82d   :  { %7839 = vmatprep.subr.bf16.mxu0 %v7838_v42  ;;  %7851 = vmatprep.subr.bf16.mxu1 %v7850_v13  ;;  %v9687_v58 = vsel %vm1205_vm9, %v9616_v7, %v9605_v50  ;;  %v3765_v16 = vld [vmem:[#allocation10 + $0x48] sm:$0xff]  ;;  %v9693_v17 = vsel %vm1132_vm8, %v9578_v41, %v9637_v48  ;;  %v4207_v10 = vmul.f32 %v4191_v31, %v9598_v55  ;;  %v3906_v42 = vld [vmem:[#allocation10 + $0x130] sm:$0xff] }
 0x82e   :  { %v9664_v51 = vpop.permute.xlu0 %3728  ;;  %7853 = vmatpush1.bf16.msra.mxu1 %v7852_v61  ;;  %v9697_v26 = vmul.f32 %v3816_v27, %v9393_v29  ;;  %v9700_v15 = vmul.f32 %v4005_v32, %v9391_v2  ;;  %v7856_v7 = vpack.c.bf16 %v9614_v44, %v4112_v60  ;;  %v9707_v54 = vsel %vm1132_vm8, %v9554_v20, %v9578_v41  ;;  %v4192_v61 = vld [vmem:[#allocation10 + $0x420] sm:$0xff]  ;;  %v3909_v27 = vld [vmem:[#allocation10 + $0x148] sm:$0xff] }
 0x82f   :  { %v9672_v40 = vpop.permute.xlu1 %3726  ;;  %7855 = vmatprep.subr.bf16.mxu1 %v7854_v12  ;;  %v9712_v55 = vmul.f32 %v4149_v23, %v9389_v5  ;;  %v9715_v2 = vmul.f32 %v3815_v4, %v9389_v5  ;;  %v4206_v44 = vmul.f32 %v4190_v52, %v9576_v25  ;;  %v9719_v60 = vmul.f32 %v3954_v38, %v9624_v18  ;;  %v3956_v20 = vld [vmem:[#allocation10 + $0x1c0] sm:$0xff] }
 0x830   :  { %7841 = vmatpush1.bf16.msra.mxu0 %v7840_v19  ;;  %v3923_v31 = vmul.f32 %v3907_v35, %v9687_v58  ;;  %v4209_v41 = vmul.f32 %v4193_v22, %v9687_v58  ;;  %v7860_v12 = vpack.c.bf16 %v9611_v43, %v3778_v24  ;;  %v3781_v23 = vmul.f32 %v3765_v16, %v9693_v17  ;;  %v3908_v4 = vld [vmem:[#allocation10 + $0x140] sm:$0xff]  ;;  %v4051_v19 = vld [vmem:[#allocation10 + $0x2b8] sm:$0xff]  ;;  %v3957_v35 = vld [vmem:[#allocation10 + $0x1c8] sm:$0xff] }
 0x831   :  { %4478 = vmatprep.subr.mxu0 %v4207_v10  ;;  %v9729_v25 = vsel %vm1205_vm9, %v9605_v50, %v9647_v37  ;;  %v7858_v18 = vpack.c.bf16 %v9653_v28, %v3779_v39  ;;  %v3780_v52 = vmul.f32 %v3764_v63, %v9707_v54  ;;  %v3971_v38 = vmul.f32 %v3955_v34, %v9707_v54  ;;  %v4007_v10 = vld [vmem:[#allocation10 + $0x258] sm:$0xff] }
 0x832   :  { %v9709_v13 = vpop.permute.xlu0 %3730  ;;  %7857 = vmatpush1.bf16.msra.mxu1 %v7856_v7  ;;  %v9738_v43 = vsel %vm1132_vm8, %v9637_v48, %v9672_v40  ;;  %v3922_v24 = vmul.f32 %v3906_v42, %v9629_v0  ;;  %v4208_v28 = vmul.f32 %v4192_v61, %v9629_v0  ;;  %v9748_v39 = vmul.f32 %v3956_v20, %v9693_v17  ;;  %v4053_v48 = vld [vmem:[#allocation10 + $0x2c8] sm:$0xff]  ;;  %v4050_v7 = vld [vmem:[#allocation10 + $0x2b0] sm:$0xff]  ;;  %v4099_v42 = vld [vmem:[#allocation10 + $0x338] sm:$0xff] }
 0x833   :  { %v3871_v32 = vpop.permute.xlu1 %3870  ;;  %4549 = vmatprep.subr.mxu1 %v4209_v41  ;;  %v3924_v63 = vmul.f32 %v3908_v4, %v9729_v25  ;;  %v7862_v0 = vpack.c.bf16 %v3971_v38, %v3923_v31  ;;  %v3973_v61 = vmul.f32 %v3957_v35, %v9738_v43  ;;  %v3817_v41 = vld [vmem:[#allocation10 + $0xe8] sm:$0xff]  ;;  %v7876_v4 = vpack.c.bf16 %v9642_v59, %v3780_v52  ;;  %v4100_v35 = vld [vmem:[#allocation10 + $0x340] sm:$0xff] }
 0x834   :  { %v9743_v50 = vsel %vm1205_vm9, %v9647_v37, %v3871_v32  ;;  %4479 = vmatpush1.msra.mxu0 %v4206_v44  ;;  %v4067_v37 = vmul.f32 %v4051_v19, %v9729_v25  ;;  %v7874_v44 = vpack.c.bf16 %v9667_v56, %v3781_v23  ;;  %v9771_v19 = vmul.f32 %v4007_v10, %v9393_v29  ;;  %v3766_v23 = vld [vmem:[#allocation10 + $0x50] sm:$0xff] }
 0x835   :  { %v3925_v22 = vmul.f32 %v3909_v27, %v9743_v50  ;;  %6499 = vmatmul.mubr.msk.f32.vlgmr.msra.gmra.mrb[44].mxu0 %vm4387_vm14, %v9580_v53  ;;  %7859 = vmatprep.subr.bf16.mxu0 %v7858_v18  ;;  %v4098_v27 = vld [vmem:[#allocation10 + $0x330] sm:$0xff]  ;;  %v4066_v56 = vmul.f32 %v4050_v7, %v9687_v58  ;;  %v9779_v59 = vsel %vm1132_vm8, %v9672_v40, %v9664_v51  ;;  %v4052_v18 = vld [vmem:[#allocation10 + $0x2c0] sm:$0xff]  ;;  %v4153_v7 = vld [vmem:[#allocation10 + $0x3e8] sm:$0xff] }
 0x836   :  { %v9751_v16 = vpop.permute.xlu0 %3874  ;;  %4550 = vmatpush1.msra.mxu1 %v4208_v28  ;;  %7861 = vmatpush1.bf16.msra.mxu0 %v7860_v12  ;;  %v7864_v12 = vpack.c.bf16 %v9719_v60, %v3922_v24  ;;  %v4115_v38 = vmul.f32 %v4099_v42, %v9693_v17  ;;  %v4101_v28 = vld [vmem:[#allocation10 + $0x348] sm:$0xff]  ;;  %v7866_v58 = vpack.c.bf16 %v4067_v37, %v9660_v30  ;;  %v4010_v24 = vld [vmem:[#allocation10 + $0x270] sm:$0xff]  ;;  %v3963_v42 = vld [vmem:[#allocation10 + $0x1f8] sm:$0xff] }
 0x837   :  { %v9757_v34 = vpop.permute.xlu1 %3872  ;;  %6500 = vmatmul.mubr.msk.f32.vlgmr.msra.gmra.mrb[18].mxu1 %vm4387_vm14, %v9580_v53  ;;  %7863 = vmatprep.subr.bf16.mxu0 %v7862_v0  ;;  %v7878_v52 = vpack.c.bf16 %v3973_v61, %v3925_v22  ;;  %v9789_v40 = vmul.f32 %v3817_v41, %v9395_v49  ;;  %v4114_v10 = vmul.f32 %v4098_v27, %v9707_v54  ;;  %v3819_v0 = vld [vmem:[#allocation10 + $0xf8] sm:$0xff]  ;;  %v4194_v30 = vld [vmem:[#allocation10 + $0x430] sm:$0xff]  ;;  %v3768_v41 = vld [vmem:[#allocation10 + $0x60] sm:$0xff] }
 0x838   :  { %v9764_v20 = vsel %vm1205_vm9, %v3871_v32, %v9757_v34  ;;  %v3767_v32 = vld [vmem:[#allocation10 + $0x58] sm:$0xff]  ;;  %7875 = vmatprep.subr.bf16.mxu1 %v7874_v44  ;;  %4668 = vmatprep.mubr.f32.mxu0 %v10754_v33  ;;  %v7880_v22 = vpack.c.bf16 %v9748_v39, %v3924_v63  ;;  %v9795_v37 = vmul.f32 %v3766_v23, %v9738_v43 }
 0x839   :  { %v4069_v31 = vmul.f32 %v4053_v48, %v9764_v20  ;;  %7877 = vmatpush1.bf16.msra.mxu1 %v7876_v4  ;;  %v9798_v61 = vmul.f32 %v3767_v32, %v9779_v59  ;;  %v4068_v44 = vmul.f32 %v4052_v18, %v9743_v50  ;;  %4739 = vmatprep.mubr.f32.mxu1 %v10754_v33  ;;  %v4105_v32 = vld [vmem:[#allocation10 + $0x368] sm:$0xff]  ;;  %v4195_v18 = vld [vmem:[#allocation10 + $0x438] sm:$0xff] }
 0x83a   :  { %v9782_v48 = vpop.permute.xlu0 %3732  ;;  %7879 = vmatprep.subr.bf16.mxu1 %v7878_v52  ;;  %7865 = vmatpush1.bf16.msra.mxu0 %v7864_v12  ;;  %v7868_v54 = vpack.c.bf16 %v4066_v56, %v9635_v9  ;;  %v9804_v39 = vmul.f32 %v4100_v35, %v9738_v43  ;;  %v9808_v63 = vmul.f32 %v4010_v24, %v9397_v1  ;;  %v3959_v52 = vld [vmem:[#allocation10 + $0x1d8] sm:$0xff] }
 0x83b   :  { %v9785_v60 = vpop.permute.xlu1 %3876  ;;  %v7882_v17 = vpack.c.bf16 %v4069_v31, %v9700_v15  ;;  %7867 = vmatprep.subr.bf16.mxu0 %v7866_v58  ;;  %v4117_v15 = vmul.f32 %v4101_v28, %v9779_v59  ;;  %v9814_v27 = vsel %vm1132_vm8, %v9664_v51, %v9709_v13  ;;  %v7870_v4 = vpack.c.bf16 %v9670_v8, %v4115_v38  ;;  %v3771_v51 = vld [vmem:[#allocation10 + $0x78] sm:$0xff] }
 0x83c   :  { %v9818_v9 = vmul.f32 %v4153_v7, %v9397_v1  ;;  %v9821_v43 = vmul.f32 %v3819_v0, %v9397_v1  ;;  %v9824_v56 = vmul.f32 %v3963_v42, %v9469_v62  ;;  %v7872_v12 = vpack.c.bf16 %v9645_v57, %v4114_v10  ;;  %v3911_v28 = vld [vmem:[#allocation10 + $0x158] sm:$0xff]  ;;  %v3769_v10 = vld [vmem:[#allocation10 + $0x68] sm:$0xff]  ;;  %v3910_v0 = vld [vmem:[#allocation10 + $0x150] sm:$0xff] }
 0x83d   :  { %7881 = vmatpush1.bf16.msra.mxu1 %v7880_v22  ;;  %v4210_v23 = vmul.f32 %v4194_v30, %v9729_v25  ;;  %v7892_v8 = vpack.c.bf16 %v9675_v14, %v9795_v37  ;;  %v7884_v38 = vpack.c.bf16 %v4068_v44, %v9657_v6  ;;  %v7890_v57 = vpack.c.bf16 %v9715_v2, %v9798_v61  ;;  %v3915_v24 = vld [vmem:[#allocation10 + $0x178] sm:$0xff]  ;;  %v4196_v42 = vld [vmem:[#allocation10 + $0x440] sm:$0xff]  ;;  %v3913_v30 = vld [vmem:[#allocation10 + $0x168] sm:$0xff] }
 0x83e   :  { %7883 = vmatprep.subr.bf16.mxu1 %v7882_v17  ;;  %7869 = vmatpush1.bf16.msra.mxu0 %v7868_v54  ;;  %v3879_v1 = vpop.permute.xlu0 %3878  ;;  %v7888_v25 = vpack.c.bf16 %v9678_v21, %v9804_v39  ;;  %v9841_v35 = vmul.f32 %v3768_v41, %v9814_v27  ;;  %v3888_v6 = vsel %vm1205_vm9, %v9757_v34, %v9751_v16  ;;  %v4058_v17 = vld [vmem:[#allocation10 + $0x2f0] sm:$0xff]  ;;  %v3961_v44 = vld [vmem:[#allocation10 + $0x1e8] sm:$0xff] }
 0x83f   :  { %v3735_v31 = vpop.permute.xlu1 %3734  ;;  %7871 = vmatprep.subr.bf16.mxu0 %v7870_v4  ;;  %v7886_v58 = vpack.c.bf16 %v9712_v55, %v4117_v15  ;;  %v9852_v2 = vsel %vm1132_vm8, %v9709_v13, %v9782_v48  ;;  %v4211_v34 = vmul.f32 %v4195_v18, %v9743_v50  ;;  %v3975_v7 = vmul.f32 %v3959_v52, %v9814_v27  ;;  %v4055_v4 = vld [vmem:[#allocation10 + $0x2d8] sm:$0xff]  ;;  %v4102_v37 = vld [vmem:[#allocation10 + $0x350] sm:$0xff] }
 0x840   :  { %v9834_v62 = vsel %vm1132_vm8, %v3735_v31, %v9464_v45  ;;  %v4197_v45 = vld [vmem:[#allocation10 + $0x448] sm:$0xff]  ;;  %v9865_v13 = vsel %vm1205_vm9, %v9785_v60, %v3879_v1  ;;  %v3927_v50 = vmul.f32 %v3911_v28, %v3888_v6  ;;  %v9875_v54 = vsel %vm1132_vm8, %v9782_v48, %v3735_v31  ;;  %v3958_v31 = vld [vmem:[#allocation10 + $0x1d0] sm:$0xff] }
 0x841   :  { %v9855_v21 = vmul.f32 %v3771_v51, %v9834_v62  ;;  %v9858_v22 = vmul.f32 %v4105_v32, %v9834_v62  ;;  %7885 = vmatpush1.bf16.msra.mxu1 %v7884_v38  ;;  %v4213_v15 = vmul.f32 %v4197_v45, %v3888_v6  ;;  %v3785_v41 = vmul.f32 %v3769_v10, %v9852_v2  ;;  %v4054_v38 = vld [vmem:[#allocation10 + $0x2d0] sm:$0xff]  ;;  %v4057_v45 = vld [vmem:[#allocation10 + $0x2e8] sm:$0xff] }
 0x842   :  { %7887 = vmatprep.subr.bf16.mxu1 %v7886_v58  ;;  %7873 = vmatpush1.bf16.msra.mxu0 %v7872_v12  ;;  %v3926_v51 = vmul.f32 %v3910_v0, %v9764_v20  ;;  %v4212_v32 = vmul.f32 %v4196_v42, %v9764_v20  ;;  %v3929_v18 = vmul.f32 %v3913_v30, %v9865_v13 }
 0x843   :  { %v3881_v55 = vpop.permute.xlu1 %3880  ;;  %4620 = vmatprep.subr.mxu0 %v4211_v34  ;;  %v7918_v48 = vpack.c.bf16 %v9818_v9, %v9858_v22  ;;  %v7922_v52 = vpack.c.bf16 %v9821_v43, %v9855_v21  ;;  %v3977_v28 = vmul.f32 %v3961_v44, %v9875_v54  ;;  %v7894_v10 = vpack.c.bf16 %v3975_v7, %v3927_v50  ;;  %v4008_v50 = vld [vmem:[#allocation10 + $0x260] sm:$0xff] }
 0x844   :  { %v9870_v61 = vsel %vm1205_vm9, %v3881_v55, %v9484_v3  ;;  %v9885_v3 = vsel %vm1205_vm9, %v9751_v16, %v9785_v60  ;;  %v3960_v16 = vld [vmem:[#allocation10 + $0x1e0] sm:$0xff]  ;;  %v3974_v34 = vmul.f32 %v3958_v31, %v9779_v59  ;;  %v7906_v0 = vpack.c.bf16 %v9789_v40, %v3785_v41  ;;  %v4009_v59 = vld [vmem:[#allocation10 + $0x268] sm:$0xff]  ;;  %v4151_v40 = vld [vmem:[#allocation10 + $0x3d8] sm:$0xff] }
 0x845   :  { %v9878_v39 = vmul.f32 %v3915_v24, %v9870_v61  ;;  %v9888_v12 = vmul.f32 %v4058_v17, %v9870_v61  ;;  %7889 = vmatpush1.bf16.msra.mxu1 %v7888_v25  ;;  %v3912_v60 = vld [vmem:[#allocation10 + $0x160] sm:$0xff]  ;;  %v4071_v20 = vmul.f32 %v4055_v4, %v9885_v3  ;;  %v9905_v25 = vsel %vm1205_vm9, %v3879_v1, %v3881_v55  ;;  %v4103_v17 = vld [vmem:[#allocation10 + $0x358] sm:$0xff]  ;;  %v4006_v1 = vld [vmem:[#allocation10 + $0x250] sm:$0xff] }
 0x846   :  { %4691 = vmatprep.subr.mxu1 %v4213_v15  ;;  %4621 = vmatpush1.msra.mxu0 %v4210_v23  ;;  %v7908_v23 = vpack.c.bf16 %v9697_v26, %v9841_v35  ;;  %v4070_v55 = vmul.f32 %v4054_v38, %v3888_v6  ;;  %v3976_v42 = vmul.f32 %v3960_v16, %v9852_v2  ;;  %v4056_v26 = vld [vmem:[#allocation10 + $0x2e0] sm:$0xff]  ;;  %v4150_v15 = vld [vmem:[#allocation10 + $0x3d0] sm:$0xff] }
 0x847   :  { %v7932_v58 = vpack.c.bf16 %v9888_v12, %v9808_v63  ;;  %v7926_v24 = vpack.c.bf16 %v9824_v56, %v9878_v39  ;;  %6501 = vmatmul.mubr.msk.f32.vlgmr.msra.gmra.mrb[46].mxu0 %vm4387_vm14, %v9580_v53  ;;  %7891 = vmatprep.subr.bf16.mxu0 %v7890_v57  ;;  %v3928_v57 = vmul.f32 %v3912_v60, %v9885_v3  ;;  %v4152_v16 = vld [vmem:[#allocation10 + $0x3e0] sm:$0xff]  ;;  %v4199_v60 = vld [vmem:[#allocation10 + $0x458] sm:$0xff]  ;;  %v4202_v39 = vld [vmem:[#allocation10 + $0x470] sm:$0xff] }
 0x848   :  { %7893 = vmatpush1.bf16.msra.mxu0 %v7892_v8  ;;  %4810 = vmatprep.mubr.f32.mxu0 %v10754_v33  ;;  %v7896_v7 = vpack.c.bf16 %v3974_v34, %v3926_v51  ;;  %v4073_v35 = vmul.f32 %v4057_v45, %v9905_v25  ;;  %v7910_v14 = vpack.c.bf16 %v3977_v28, %v3929_v18  ;;  %v3818_v34 = vld [vmem:[#allocation10 + $0xf0] sm:$0xff]  ;;  %v10762_v21 = vld [vmem:[#allocation32_spill] sm:$0xff] }
 0x849   :  { %4692 = vmatpush1.msra.mxu1 %v4212_v32  ;;  %7895 = vmatprep.subr.bf16.mxu0 %v7894_v10  ;;  %v4119_v8 = vmul.f32 %v4103_v17, %v9852_v2  ;;  %v7898_v6 = vpack.c.bf16 %v4071_v20, %v9771_v19  ;;  %v4022_v30 = vmul.f32 %v4006_v1, %v9389_v5  ;;  %v4104_v19 = vld [vmem:[#allocation10 + $0x360] sm:$0xff]  ;;  %v3770_v20 = vld [vmem:[#allocation10 + $0x70] sm:$0xff]  ;;  %v4201_v17 = vld [vmem:[#allocation10 + $0x468] sm:$0xff] }
 0x84a   :  { %6502 = vmatmul.mubr.msk.f32.vlgmr.msra.gmra.mrb[20].mxu1 %vm4387_vm14, %v9580_v53  ;;  %7907 = vmatprep.subr.bf16.mxu1 %v7906_v0  ;;  %v4025_v44 = vmul.f32 %v4009_v59, %v9399_v11  ;;  %v7912_v41 = vpack.c.bf16 %v3976_v42, %v3928_v57  ;;  %v4072_v4 = vmul.f32 %v4056_v26, %v9865_v13  ;;  %v3914_v1 = vld [vmem:[#allocation10 + $0x170] sm:$0xff]  ;;  %v4200_v57 = vld [vmem:[#allocation10 + $0x460] sm:$0xff] }
 0x84b   :  { %7909 = vmatpush1.bf16.msra.mxu1 %v7908_v23  ;;  %4881 = vmatprep.mubr.f32.mxu1 %v10754_v33  ;;  %v4167_v31 = vmul.f32 %v4151_v40, %v9395_v49  ;;  %v4118_v2 = vmul.f32 %v4102_v37, %v9814_v27  ;;  %v7900_v51 = vpack.c.bf16 %v4070_v55, %v4022_v30  ;;  %v4198_v27 = vld [vmem:[#allocation10 + $0x450] sm:$0xff]  ;;  %v10769_v26 = vld [vmem:[#allocation31_spill] sm:$0xff] }
 0x84c   :  { %7911 = vmatprep.subr.bf16.mxu1 %v7910_v14  ;;  %7897 = vmatpush1.bf16.msra.mxu0 %v7896_v7  ;;  %v7914_v32 = vpack.c.bf16 %v4073_v35, %v4025_v44  ;;  %v4024_v18 = vmul.f32 %v4008_v50, %v9395_v49  ;;  %v4166_v38 = vmul.f32 %v4150_v15, %v9393_v29  ;;  %v3962_v7 = vld [vmem:[#allocation10 + $0x1f0] sm:$0xff] }
 0x84d   :  { %7899 = vmatprep.subr.bf16.mxu0 %v7898_v6  ;;  %v7902_v5 = vpack.c.bf16 %v4167_v31, %v4119_v8  ;;  %v4120_v45 = vmul.f32 %v4104_v19, %v9875_v54  ;;  %v4168_v23 = vmul.f32 %v4152_v16, %v9399_v11  ;;  %v4215_v49 = vmul.f32 %v4199_v60, %v9865_v13 }
 0x84e   :  { %v7916_v28 = vpack.c.bf16 %v4072_v4, %v4024_v18  ;;  %v7904_v10 = vpack.c.bf16 %v4166_v38, %v4118_v2  ;;  %v3786_v29 = vmul.f32 %v3770_v20, %v9875_v54  ;;  %v4214_v55 = vmul.f32 %v4198_v27, %v9885_v3  ;;  %v10765_v3 = vld [vmem:[#allocation33_spill] sm:$0xff] }
 0x84f   :  { %7913 = vmatpush1.bf16.msra.mxu1 %v7912_v41  ;;  %v7920_v0 = vpack.c.bf16 %v4168_v23, %v4120_v45  ;;  %v3834_v42 = vmul.f32 %v3818_v34, %v9399_v11  ;;  %v4217_v59 = vmul.f32 %v4201_v17, %v9870_v61  ;;  %v3930_v54 = vmul.f32 %v3914_v1, %v9905_v25  ;;  %v10763_v61 = vld [vmem:[#allocation30_spill] sm:$0xff] }
 0x850   :  { %7915 = vmatprep.subr.bf16.mxu1 %v7914_v32  ;;  %7901 = vmatpush1.bf16.msra.mxu0 %v7900_v51  ;;  %v4216_v9 = vmul.f32 %v4200_v57, %v9905_v25  ;;  %v3978_v11 = vmul.f32 %v3962_v7, %v9834_v62  ;;  %v10761_v43 = vpack.c.bf16 %v9501_v47, %v9504_v36  ;;  %v4203_v62 = vld [vmem:[#allocation10 + $0x478] sm:$0xff]  ;;  %v9974_v36 = vpop.permute.xlu0 %4384 }
 0x851   :  { %7903 = vmatprep.subr.bf16.mxu0 %v7902_v5  ;;  %v7924_v13 = vpack.c.bf16 %v3834_v42, %v3786_v29  ;;  %v10764_v56 = vpack.c.bf16 %v10762_v21, %v10763_v61  ;;  %v4218_v47 = vmul.f32 %v4202_v39, %v10769_v26  ;;  %v5437_v26 = vld [vmem:[#allocation10 + $0x3f0] sm:$0xff] }
 0x852   :  { %v7928_v22 = vpack.c.bf16 %v3978_v11, %v3930_v54 }
 0x853   :  { %7917 = vmatpush1.bf16.msra.mxu1 %v7916_v28 }
 0x854   :  { %7919 = vmatprep.subr.bf16.mxu1 %v7918_v48  ;;  %7905 = vmatpush1.bf16.msra.mxu0 %v7904_v10  ;;  %v4219_v48 = vmul.f32 %v4203_v62, %v10765_v3  ;;  %v5039_v3 = vld [vmem:[#allocation10] sm:$0xff] }
 0x855   :  { %4762 = vmatprep.subr.mxu0 %v4215_v49 }
 0x857   :  { %7921 = vmatpush1.bf16.msra.mxu1 %v7920_v0 }
 0x858   :  { %4833 = vmatprep.subr.mxu1 %v4217_v59  ;;  %4763 = vmatpush1.msra.mxu0 %v4214_v55 }
 0x859   :  { %6503 = vmatmul.mubr.msk.f32.vlgmr.msra.gmra.mrb[48].mxu0 %vm4387_vm14, %v9580_v53  ;;  %7923 = vmatprep.subr.bf16.mxu0 %v7922_v52  ;;  %v10766_v52 = vld [vmem:[#allocation28_spill] sm:$0xff] }
 0x85a   :  { %7925 = vmatpush1.bf16.msra.mxu0 %v7924_v13  ;;  %4952 = vmatprep.mubr.f32.mxu0 %v10754_v33 }
 0x85b   :  { %4834 = vmatpush1.msra.mxu1 %v4216_v9  ;;  %7927 = vmatprep.subr.bf16.mxu0 %v7926_v24  ;;  %v10767_v24 = vld [vmem:[#allocation29_spill] sm:$0xff] }
 0x85c   :  { %6504 = vmatmul.mubr.msk.f32.vlgmr.msra.gmra.mrb[22].mxu1 %vm4387_vm14, %v9580_v53  ;;  %v10768_v25 = vpack.c.bf16 %v10766_v52, %v10767_v24  ;;  %v5087_v52 = vld [vmem:[#allocation10 + $0x80] sm:$0xff]  ;;  %v5389_v24 = vld [vmem:[#allocation10 + $0x370] sm:$0xff] }
 0x85d   :  { %5737 = vmatprep.mubr.f32.mxu1 %v10754_v33 }
 0x85e   :  { %7929 = vmatpush1.bf16.msra.mxu0 %v7928_v22 }
 0x85f   :  { %7931 = vmatprep.subr.bf16.mxu0 %v10761_v43  ;;  %v5664_v43 = vld [vmem:[%s10715_s13] sm:$0xff] }
 0x862   :  { %7933 = vmatpush1.bf16.msra.mxu0 %v7932_v58 }
 0x863   :  { %7935 = vmatprep.subr.bf16.mxu0 %v10764_v56  ;;  %v5088_v56 = vld [vmem:[#allocation10 + $0x88] sm:$0xff] }
 0x866   :  { %7937 = vmatpush1.bf16.msra.mxu0 %v10768_v25  ;;  %v5390_v25 = vld [vmem:[#allocation10 + $0x378] sm:$0xff] }
 0x867   :  { %4904 = vmatprep.subr.mxu0 %v4219_v48  ;;  %v5040_v48 = vld [vmem:[#allocation10 + $0x8] sm:$0xff] }
 0x86a   :  { %4905 = vmatpush1.msra.mxu0 %v4218_v47 }
 0x86b   :  { %6505 = vmatmul.mubr.msk.f32.vlgmr.msra.gmra.mrb[50].mxu0 %vm4387_vm14, %v9580_v53 }
 0x86c   :  { %5808 = vmatprep.mubr.f32.mxu0 %v10754_v33 }
 0x8f6   :  { %v4457_v63 = vpop.f32.mrb[42].mxu0 }
 0x8f7   :  { %v4458_v12 = vadd.f32 %v4457_v63, %v9974_v36  ;;  %v4459_v58 = vpop.f32.mrb[43].mxu0 }
 0x8f8   :  { %v4460_v35 = vadd.f32 %v4459_v58, %v9974_v36 }
 0x8f9   :  { %8129 = vtanh.f32 %v4458_v12  ;;  %v5438_v12 = vld [vmem:[#allocation10 + $0x3f8] sm:$0xff] }
 0x8fa   :  { %8131 = vtanh.f32 %v4460_v35 }
 0x903   :  { %v9978_v14 = vpop.eup %8129 }
 0x904   :  { %v9980_v40 = vpop.eup %8131  ;;  %4975 = vst [vmem:[%s10720_s18] sm:$0xff] %v9978_v14  ;;  %4991 = vrot.lane.b32.xlu1 %v9978_v14, %s8454_s10 }
 0x905   :  { %4976 = vst [vmem:[%s10720_s18 + $0x8] sm:$0xff] %v9980_v40  ;;  %4993 = vrot.lane.b32.xlu0 %v9980_v40, %s8454_s10 }
 0x908   :  { %v4528_v53 = vpop.f32.mrb[44].mxu0  ;;  %5135 = vrot.lane.b32.xlu1 %v9978_v14, %s8478_s2 }
 0x909   :  { %v4529_v37 = vadd.f32 %v4528_v53, %v9974_v36  ;;  %v4530_v8 = vpop.f32.mrb[45].mxu0 }
 0x90a   :  { %v4531_v6 = vadd.f32 %v4530_v8, %v9974_v36  ;;  %v4599_v30 = vpop.f32.mrb[18].mxu1  ;;  %v5104_v8 = vmul.f32 %v9978_v14, %v5088_v56 }
 0x90b   :  { %8133 = vtanh.f32 %v4529_v37  ;;  %v4600_v50 = vadd.f32 %v4599_v30, %v9974_v36  ;;  %v4601_v44 = vpop.f32.mrb[19].mxu1  ;;  %v5342_v37 = vld [vmem:[#allocation10 + $0x2f8] sm:$0xff] }
 0x90c   :  { %8135 = vtanh.f32 %v4531_v6  ;;  %v4602_v15 = vadd.f32 %v4601_v44, %v9974_v36  ;;  %v5294_v6 = vld [vmem:[#allocation10 + $0x278] sm:$0xff] }
 0x90d   :  { %8137 = vtanh.f32 %v4600_v50 }
 0x90e   :  { %8139 = vtanh.f32 %v4602_v15 }
 0x915   :  { %v10000_v41 = vpop.eup %8133 }
 0x916   :  { %v10002_v4 = vpop.eup %8135  ;;  %4977 = vst [vmem:[%s10720_s18 + $0x10] sm:$0xff] %v10000_v41 }
 0x917   :  { %v10008_v31 = vpop.eup %8137  ;;  %4978 = vst [vmem:[%s10720_s18 + $0x18] sm:$0xff] %v10002_v4 }
 0x918   :  { %v10014_v2 = vpop.eup %8139  ;;  %4979 = vst [vmem:[%s10720_s18 + $0x20] sm:$0xff] %v10008_v31 }
 0x919   :  { %4980 = vst [vmem:[%s10720_s18 + $0x28] sm:$0xff] %v10014_v2 }
 0x91a   :  { %v4670_v51 = vpop.f32.mrb[46].mxu0 }
 0x91b   :  { %v4671_v19 = vadd.f32 %v4670_v51, %v9974_v36  ;;  %v4672_v32 = vpop.f32.mrb[47].mxu0 }
 0x91c   :  { %v4673_v18 = vadd.f32 %v4672_v32, %v9974_v36 }
 0x91d   :  { %8141 = vtanh.f32 %v4671_v19  ;;  %v4741_v5 = vpop.f32.mrb[20].mxu1  ;;  %v5183_v19 = vld [vmem:[#allocation10 + $0x100] sm:$0xff] }
 0x91e   :  { %8143 = vtanh.f32 %v4673_v18  ;;  %v4742_v38 = vadd.f32 %v4741_v5, %v9974_v36  ;;  %v4743_v16 = vpop.f32.mrb[21].mxu1  ;;  %v5184_v18 = vld [vmem:[#allocation10 + $0x108] sm:$0xff] }
 0x91f   :  { %v4744_v60 = vadd.f32 %v4743_v16, %v9974_v36  ;;  %v10183_v16 = vmul.f32 %v9978_v14, %v5438_v12 }
 0x920   :  { %8145 = vtanh.f32 %v4742_v38 }
 0x921   :  { %8147 = vtanh.f32 %v4744_v60  ;;  %v5041_v60 = vld [vmem:[#allocation10 + $0x10] sm:$0xff] }
 0x927   :  { %v10028_v28 = vpop.eup %8141 }
 0x928   :  { %v10030_v20 = vpop.eup %8143  ;;  %4981 = vst [vmem:[%s10720_s18 + $0x30] sm:$0xff] %v10028_v28 }
 0x929   :  { %4982 = vst [vmem:[%s10720_s18 + $0x38] sm:$0xff] %v10030_v20 }
 0x92a   :  { %v10040_v45 = vpop.eup %8145 }
 0x92b   :  { %v10042_v10 = vpop.eup %8147  ;;  %4983 = vst [vmem:[%s10720_s18 + $0x40] sm:$0xff] %v10040_v45 }
 0x92c   :  { %4984 = vst [vmem:[%s10720_s18 + $0x48] sm:$0xff] %v10042_v10  ;;  %v4812_v27 = vpop.f32.mrb[48].mxu0 }
 0x92d   :  { %v4813_v34 = vadd.f32 %v4812_v27, %v9974_v36  ;;  %v4814_v23 = vpop.f32.mrb[49].mxu0  ;;  %v5232_v27 = vld [vmem:[#allocation10 + $0x188] sm:$0xff] }
 0x92e   :  { %v4815_v49 = vadd.f32 %v4814_v23, %v9974_v36 }
 0x92f   :  { %8149 = vtanh.f32 %v4813_v34  ;;  %v4883_v17 = vpop.f32.mrb[22].mxu1 }
 0x930   :  { %8151 = vtanh.f32 %v4815_v49  ;;  %v4884_v29 = vadd.f32 %v4883_v17, %v9974_v36  ;;  %v4885_v0 = vpop.f32.mrb[23].mxu1 }
 0x931   :  { %v4886_v1 = vadd.f32 %v4885_v0, %v9974_v36 }
 0x932   :  { %8153 = vtanh.f32 %v4884_v29  ;;  %v5231_v29 = vld [vmem:[#allocation10 + $0x180] sm:$0xff] }
 0x933   :  { %8155 = vtanh.f32 %v4886_v1  ;;  %v5042_v1 = vld [vmem:[#allocation10 + $0x18] sm:$0xff] }
 0x939   :  { %v10056_v55 = vpop.eup %8149 }
 0x93a   :  { %v10058_v42 = vpop.eup %8151  ;;  %4985 = vst [vmem:[%s10720_s18 + $0x50] sm:$0xff] %v10056_v55 }
 0x93b   :  { %4986 = vst [vmem:[%s10720_s18 + $0x58] sm:$0xff] %v10058_v42 }
 0x93c   :  { %v10068_v57 = vpop.eup %8153 }
 0x93d   :  { %v10070_v59 = vpop.eup %8155  ;;  %4987 = vst [vmem:[%s10720_s18 + $0x60] sm:$0xff] %v10068_v57 }
 0x93e   :  { %4988 = vst [vmem:[%s10720_s18 + $0x68] sm:$0xff] %v10070_v59  ;;  %v4954_v7 = vpop.f32.mrb[50].mxu0 }
 0x93f   :  { %v4955_v13 = vadd.f32 %v4954_v7, %v9974_v36  ;;  %v4956_v54 = vpop.f32.mrb[51].mxu0  ;;  %v5090_v7 = vld [vmem:[#allocation10 + $0x98] sm:$0xff] }
 0x940   :  { %v4957_v9 = vadd.f32 %v4956_v54, %v9974_v36  ;;  %v5089_v54 = vld [vmem:[#allocation10 + $0x90] sm:$0xff] }
 0x941   :  { %8157 = vtanh.f32 %v4955_v13  ;;  %v5105_v12 = vmul.f32 %v9980_v40, %v5089_v54  ;;  %v5425_v54 = vld [vmem:[#allocation10 + $0x390] sm:$0xff]  ;;  %v5284_v13 = vld [vmem:[#allocation10 + $0x228] sm:$0xff] }
 0x942   :  { %8159 = vtanh.f32 %v4957_v9 }
 0x94b   :  { %v10082_v11 = vpop.eup %8157 }
 0x94c   :  { %v10084_v22 = vpop.eup %8159  ;;  %4989 = vst [vmem:[%s10720_s18 + $0x70] sm:$0xff] %v10082_v11  ;;  %5019 = vrot.lane.b32.xlu1 %v10082_v11, %s8454_s10 }
 0x94d   :  { %4990 = vst [vmem:[%s10720_s18 + $0x78] sm:$0xff] %v10084_v22  ;;  %5021 = vrot.lane.b32.xlu0 %v10084_v22, %s8454_s10  ;;  %v5103_v53 = vmul.f32 %v10084_v22, %v5087_v52  ;;  %v10173_v44 = vmul.f32 %v10084_v22, %v5437_v26  ;;  %v10195_v17 = vmul.f32 %v10084_v22, %v5294_v6  ;;  %v5279_v6 = vld [vmem:[#allocation10 + $0x200] sm:$0xff] }
 0x94f   :  { %10771 = vst [vmem:[#allocation30_spill] sm:$0xff] %v10173_v44  ;;  %v5187_v44 = vld [vmem:[#allocation10 + $0x120] sm:$0xff] }
 0x950   :  { %5165 = vrot.lane.b32.xlu1 %v10084_v22, %s8478_s2  ;;  %v5471_v22 = vld [vmem:[#allocation10 + $0x400] sm:$0xff] }
 0x951   :  { %5137 = vrot.lane.b32.xlu0 %v9980_v40, %s8478_s2 }
 0x954   :  { %4995 = vrot.lane.b32.xlu1 %v10000_v41, %s8454_s10 }
 0x955   :  { %5139 = vrot.lane.b32.xlu0 %v10000_v41, %s8478_s2 }
 0x958   :  { %4999 = vrot.lane.b32.xlu1 %v10008_v31, %s8454_s10 }
 0x959   :  { %4997 = vrot.lane.b32.xlu0 %v10002_v4, %s8454_s10 }
 0x95c   :  { %5001 = vrot.lane.b32.xlu1 %v10014_v2, %s8454_s10 }
 0x95d   :  { %5141 = vrot.lane.b32.xlu0 %v10002_v4, %s8478_s2 }
 0x960   :  { %5145 = vrot.lane.b32.xlu1 %v10014_v2, %s8478_s2 }
 0x961   :  { %5143 = vrot.lane.b32.xlu0 %v10008_v31, %s8478_s2 }
 0x964   :  { %5003 = vrot.lane.b32.xlu1 %v10028_v28, %s8454_s10 }
 0x965   :  { %5147 = vrot.lane.b32.xlu0 %v10028_v28, %s8478_s2 }
 0x968   :  { %5007 = vrot.lane.b32.xlu1 %v10040_v45, %s8454_s10 }
 0x969   :  { %5005 = vrot.lane.b32.xlu0 %v10030_v20, %s8454_s10 }
 0x96c   :  { %5009 = vrot.lane.b32.xlu1 %v10042_v10, %s8454_s10 }
 0x96d   :  { %5149 = vrot.lane.b32.xlu0 %v10030_v20, %s8478_s2 }
 0x970   :  { %5153 = vrot.lane.b32.xlu1 %v10042_v10, %s8478_s2 }
 0x971   :  { %5151 = vrot.lane.b32.xlu0 %v10040_v45, %s8478_s2 }
 0x974   :  { %5011 = vrot.lane.b32.xlu1 %v10056_v55, %s8454_s10 }
 0x975   :  { %5155 = vrot.lane.b32.xlu0 %v10056_v55, %s8478_s2 }
 0x976   :  { %v4992_v62 = vpop.permute.xlu1 %4991 }
 0x977   :  { %v4994_v61 = vpop.permute.xlu0 %4993 }
 0x978   :  { %5015 = vrot.lane.b32.xlu1 %v10068_v57, %s8454_s10  ;;  %v10187_v34 = vsel %vm1132_vm8, %v4992_v62, %v4994_v61 }
 0x979   :  { %5013 = vrot.lane.b32.xlu0 %v10058_v42, %s8454_s10  ;;  %v5057_v56 = vmul.f32 %v5041_v60, %v10187_v34  ;;  %v5091_v60 = vld [vmem:[#allocation10 + $0xa0] sm:$0xff] }
 0x97a   :  { %v5136_v21 = vpop.permute.xlu1 %5135 }
 0x97c   :  { %5017 = vrot.lane.b32.xlu1 %v10070_v59, %s8454_s10 }
 0x97d   :  { %5157 = vrot.lane.b32.xlu0 %v10058_v42, %s8478_s2 }
 0x980   :  { %5161 = vrot.lane.b32.xlu1 %v10070_v59, %s8478_s2 }
 0x981   :  { %5159 = vrot.lane.b32.xlu0 %v10068_v57, %s8478_s2 }
 0x984   :  { %5667 = vperm.xlu1 %8127, %v5664_v43  }
 0x985   :  { %5163 = vrot.lane.b32.xlu0 %v10082_v11, %s8478_s2 }
 0x9be   :  { %v10155_v39 = vpop.permute.xlu1 %5019 }
 0x9bf   :  { %v5022_v47 = vpop.permute.xlu0 %5021 }
 0x9c0   :  { %v10160_v36 = vsel %vm1132_vm8, %v10155_v39, %v5022_v47  ;;  %v5038_v63 = vsel %vm1132_vm8, %v5022_v47, %v4992_v62  ;;  %v5106_v47 = vmul.f32 %v10000_v41, %v5090_v7 }
 0x9c1   :  { %v5055_v58 = vmul.f32 %v5039_v3, %v10160_v36  ;;  %v5056_v35 = vmul.f32 %v5040_v48, %v5038_v63  ;;  %v10168_v30 = vmul.f32 %v5389_v24, %v10160_v36  ;;  %v10170_v50 = vmul.f32 %v5390_v25, %v5038_v63  ;;  %v5328_v48 = vld [vmem:[#allocation10 + $0x288] sm:$0xff]  ;;  %v5327_v25 = vld [vmem:[#allocation10 + $0x280] sm:$0xff] }
 0x9c2   :  { %v10175_v15 = vpop.permute.xlu1 %5165  ;;  %v5247_v24 = vmul.f32 %v5231_v29, %v5038_v63  ;;  %v5281_v29 = vld [vmem:[#allocation10 + $0x210] sm:$0xff] }
 0x9c3   :  { %10770 = vst [vmem:[#allocation32_spill] sm:$0xff] %v10168_v30  ;;  %v7940_v51 = vpack.c.bf16 %v5103_v53, %v5055_v58  ;;  %v10180_v32 = vsel %vm1205_vm9, %v10175_v15, %v5136_v21  ;;  %v5138_v5 = vpop.permute.xlu0 %5137  ;;  %v7938_v38 = vpack.c.bf16 %v5104_v8, %v5056_v35  ;;  %v5376_v58 = vld [vmem:[#allocation10 + $0x308] sm:$0xff]  ;;  %v5423_v8 = vld [vmem:[#allocation10 + $0x380] sm:$0xff] }
 0x9c4   :  { %10772 = vst [vmem:[#allocation33_spill] sm:$0xff] %v10180_v32  ;;  %v10192_v49 = vmul.f32 %v5342_v37, %v10180_v32  ;;  %v10199_v0 = vsel %vm1205_vm9, %v5136_v21, %v5138_v5  ;;  %v5199_v9 = vmul.f32 %v5183_v19, %v10180_v32  ;;  %v5248_v21 = vmul.f32 %v5232_v27, %v10187_v34  ;;  %v5280_v37 = vld [vmem:[#allocation10 + $0x208] sm:$0xff] }
 0x9c5   :  { %10773 = vst [vmem:[#allocation28_spill] sm:$0xff] %v10199_v0  ;;  %7939 = vmatprep.subr.bf16.mxu1 %v7938_v38  ;;  %v5200_v43 = vmul.f32 %v5184_v18, %v10199_v0  ;;  %v7956_v18 = vpack.c.bf16 %v5105_v12, %v5057_v56  ;;  %v5343_v38 = vmul.f32 %v5327_v25, %v10199_v0  ;;  %v5283_v56 = vld [vmem:[#allocation10 + $0x220] sm:$0xff]  ;;  %v5233_v25 = vld [vmem:[#allocation10 + $0x190] sm:$0xff]  ;;  %v5336_v0 = vld [vmem:[#allocation10 + $0x2c8] sm:$0xff] }
 0x9c6   :  { %7941 = vmatpush1.bf16.msra.mxu1 %v7940_v51  ;;  %v4996_v62 = vpop.permute.xlu1 %4995 }
 0x9c7   :  { %v5036_v3 = vsel %vm1132_vm8, %v4994_v61, %v4996_v62  ;;  %v10211_v52 = vpop.permute.xlu0 %5139  ;;  %v7942_v53 = vpack.c.bf16 %v5248_v21, %v5200_v43  ;;  %v7944_v61 = vpack.c.bf16 %v5247_v24, %v5199_v9  ;;  %v5296_v9 = vmul.f32 %v9980_v40, %v5280_v37  ;;  %v5282_v24 = vld [vmem:[#allocation10 + $0x218] sm:$0xff] }
 0x9c8   :  { %v5058_v26 = vmul.f32 %v5042_v1, %v5036_v3  ;;  %v10218_v35 = vsel %vm1205_vm9, %v5138_v5, %v10211_v52  ;;  %v5424_v1 = vld [vmem:[#allocation10 + $0x388] sm:$0xff]  ;;  %v5375_v5 = vld [vmem:[#allocation10 + $0x300] sm:$0xff]  ;;  %v5392_v7 = vmul.f32 %v5376_v58, %v5036_v3  ;;  %v10226_v43 = vmul.f32 %v9980_v40, %v5423_v8  ;;  %v5426_v37 = vld [vmem:[#allocation10 + $0x398] sm:$0xff] }
 0x9c9   :  { %v5344_v51 = vmul.f32 %v5328_v48, %v10218_v35  ;;  %7943 = vmatprep.subr.bf16.mxu1 %v7942_v53  ;;  %v5295_v21 = vmul.f32 %v9978_v14, %v5279_v6  ;;  %v5092_v48 = vld [vmem:[#allocation10 + $0xa8] sm:$0xff]  ;;  %v10235_v53 = vmul.f32 %v10000_v41, %v5281_v29  ;;  %v5440_v40 = vmul.f32 %v10000_v41, %v5424_v1  ;;  %v5427_v29 = vld [vmem:[#allocation10 + $0x3a0] sm:$0xff] }
 0x9ca   :  { %v10221_v63 = vpop.permute.xlu1 %4999  ;;  %v7954_v19 = vpack.c.bf16 %v5106_v47, %v5058_v26  ;;  %7945 = vmatpush1.bf16.msra.mxu1 %v7944_v61  ;;  %v5185_v26 = vld [vmem:[#allocation10 + $0x110] sm:$0xff]  ;;  %v10230_v47 = vmul.f32 %v10002_v4, %v5091_v60  ;;  %v5391_v14 = vmul.f32 %v5375_v5, %v10187_v34  ;;  %v5234_v61 = vld [vmem:[#allocation10 + $0x198] sm:$0xff]  ;;  %v10240_v6 = vmul.f32 %v10002_v4, %v5425_v54  ;;  %v5472_v1 = vld [vmem:[#allocation10 + $0x408] sm:$0xff] }
 0x9cb   :  { %v4998_v27 = vpop.permute.xlu0 %4997  ;;  %v7946_v12 = vpack.c.bf16 %v5344_v51, %v5296_v9  ;;  %v7948_v8 = vpack.c.bf16 %v5343_v38, %v5295_v21  ;;  %v5186_v51 = vld [vmem:[#allocation10 + $0x118] sm:$0xff]  ;;  %v5043_v9 = vld [vmem:[#allocation10 + $0x20] sm:$0xff]  ;;  %v7950_v23 = vpack.c.bf16 %v5440_v40, %v5392_v7  ;;  %v10245_v41 = vmul.f32 %v10008_v31, %v5283_v56 }
 0x9cc   :  { %7955 = vmatprep.subr.bf16.mxu0 %v7954_v19  ;;  %v5035_v19 = vsel %vm1132_vm8, %v4996_v62, %v4998_v27  ;;  %v10248_v34 = vmul.f32 %v10008_v31, %v5092_v48  ;;  %v5298_v38 = vmul.f32 %v10002_v4, %v5282_v24  ;;  %v5249_v5 = vmul.f32 %v5233_v25, %v5036_v3  ;;  %v5044_v62 = vld [vmem:[#allocation10 + $0x28] sm:$0xff]  ;;  %v5330_v24 = vld [vmem:[#allocation10 + $0x298] sm:$0xff] }
 0x9cd   :  { %7957 = vmatpush1.bf16.msra.mxu0 %v7956_v18  ;;  %v5093_v18 = vld [vmem:[#allocation10 + $0xb0] sm:$0xff]  ;;  %7947 = vmatprep.subr.bf16.mxu1 %v7946_v12  ;;  %v5201_v54 = vmul.f32 %v5185_v26, %v10218_v35  ;;  %v10255_v21 = vsel %vm1132_vm8, %v4998_v27, %v10221_v63  ;;  %v5250_v56 = vmul.f32 %v5234_v61, %v5035_v19  ;;  %v5378_v26 = vld [vmem:[#allocation10 + $0x318] sm:$0xff] }
 0x9ce   :  { %v10232_v58 = vpop.permute.xlu1 %5001  ;;  %7949 = vmatpush1.bf16.msra.mxu1 %v7948_v8  ;;  %v10261_v48 = vmul.f32 %v10014_v2, %v5093_v18  ;;  %v5329_v12 = vld [vmem:[#allocation10 + $0x290] sm:$0xff]  ;;  %v10264_v25 = vmul.f32 %v10008_v31, %v5426_v37  ;;  %v7952_v27 = vpack.c.bf16 %v10226_v43, %v5391_v14  ;;  %v10267_v40 = vmul.f32 %v5043_v9, %v5035_v19 }
 0x9cf   :  { %v5142_v60 = vpop.permute.xlu0 %5141  ;;  %7951 = vmatprep.subr.bf16.mxu1 %v7950_v23  ;;  %v10270_v8 = vmul.f32 %v10014_v2, %v5427_v29  ;;  %v5060_v23 = vmul.f32 %v5044_v62, %v10255_v21  ;;  %v5285_v14 = vld [vmem:[#allocation10 + $0x230] sm:$0xff]  ;;  %v7960_v9 = vpack.c.bf16 %v5249_v5, %v5201_v54  ;;  %v5236_v29 = vld [vmem:[#allocation10 + $0x1a8] sm:$0xff]  ;;  %v5394_v30 = vmul.f32 %v5378_v26, %v10255_v21 }
 0x9d0   :  { %v5179_v7 = vsel %vm1205_vm9, %v10211_v52, %v5142_v60  ;;  %v5188_v52 = vld [vmem:[#allocation10 + $0x128] sm:$0xff]  ;;  %v10293_v54 = vmul.f32 %v10014_v2, %v5284_v13 }
 0x9d1   :  { %v5202_v4 = vmul.f32 %v5186_v51, %v5179_v7  ;;  %v5488_v18 = vmul.f32 %v5472_v1, %v5179_v7  ;;  %v5377_v51 = vld [vmem:[#allocation10 + $0x310] sm:$0xff]  ;;  %v10285_v1 = vsel %vm1132_vm8, %v10221_v63, %v10232_v58  ;;  %v5345_v32 = vmul.f32 %v5329_v12, %v5179_v7  ;;  %v5332_v5 = vld [vmem:[#allocation10 + $0x2a8] sm:$0xff]  ;;  %v10300_v12 = vld [vmem:[#allocation15] sm:$0xff] }
 0x9d2   :  { %v5146_v3 = vpop.permute.xlu1 %5145  ;;  %7953 = vmatpush1.bf16.msra.mxu1 %v7952_v27  ;;  %v5487_v63 = vmul.f32 %v5471_v22, %v10218_v35  ;;  %v10303_v27 = vmul.f32 %v10028_v28, %v5285_v14  ;;  %v5428_v26 = vld [vmem:[#allocation10 + $0x3a8] sm:$0xff]  ;;  %v5252_v2 = vmul.f32 %v5236_v29, %v10285_v1  ;;  %v7970_v22 = vpack.c.bf16 %v10248_v34, %v5060_v23  ;;  %v5094_v35 = vld [vmem:[#allocation10 + $0xb8] sm:$0xff] }
 0x9d3   :  { %v5144_v61 = vpop.permute.xlu0 %5143  ;;  %v7958_v37 = vpack.c.bf16 %v5250_v56, %v5202_v4  ;;  %5689 = vmatprep.subr.mxu1 %v5488_v18  ;;  %v10296_v4 = vmul.f32 %v5377_v51, %v5035_v19  ;;  %v7964_v19 = vpack.c.bf16 %v5345_v32, %v10235_v53  ;;  %v5095_v51 = vld [vmem:[#allocation10 + $0xc0] sm:$0xff]  ;;  %v7966_v34 = vpack.c.bf16 %v10264_v25, %v5394_v30  ;;  %v5096_v53 = vld [vmem:[#allocation10 + $0xc8] sm:$0xff]  ;;  %v5430_v30 = vld [vmem:[#allocation10 + $0x3b8] sm:$0xff] }
 0x9d4   :  { %v10275_v31 = vsel %vm1205_vm9, %v5144_v61, %v5146_v3  ;;  %v10279_v43 = vsel %vm1205_vm9, %v5142_v60, %v5144_v61  ;;  %v7972_v61 = vpack.c.bf16 %v10230_v47, %v10267_v40  ;;  %v5429_v47 = vld [vmem:[#allocation10 + $0x3b0] sm:$0xff]  ;;  %v5286_v40 = vld [vmem:[#allocation10 + $0x238] sm:$0xff]  ;;  %v10323_v32 = vmul.f32 %v10028_v28, %v5428_v26  ;;  %v5380_v29 = vld [vmem:[#allocation10 + $0x328] sm:$0xff] }
 0x9d5   :  { %v5346_v62 = vmul.f32 %v5330_v24, %v10279_v43  ;;  %v5204_v60 = vmul.f32 %v5188_v52, %v10275_v31  ;;  %7959 = vmatprep.subr.bf16.mxu0 %v7958_v37  ;;  %v5235_v52 = vld [vmem:[#allocation10 + $0x1a0] sm:$0xff]  ;;  %v5046_v25 = vld [vmem:[#allocation10 + $0x38] sm:$0xff]  ;;  %v5097_v26 = vld [vmem:[#allocation10 + $0xd0] sm:$0xff] }
 0x9d6   :  { %v10290_v56 = vpop.permute.xlu1 %5003  ;;  %7961 = vmatpush1.bf16.msra.mxu0 %v7960_v9  ;;  %5690 = vmatpush1.msra.mxu1 %v5487_v63  ;;  %v5331_v37 = vld [vmem:[#allocation10 + $0x2a0] sm:$0xff]  ;;  %v5251_v23 = vmul.f32 %v5235_v52, %v10255_v21  ;;  %v5045_v9 = vld [vmem:[#allocation10 + $0x30] sm:$0xff]  ;;  %v10334_v63 = vmul.f32 %v10030_v20, %v5095_v51  ;;  %v10337_v21 = vmul.f32 %v10030_v20, %v5429_v47 }
 0x9d7   :  { %v10298_v7 = vpop.permute.xlu0 %5147  ;;  %v7962_v24 = vpack.c.bf16 %v5346_v62, %v5298_v38  ;;  %v5203_v38 = vmul.f32 %v5187_v44, %v10279_v43  ;;  %6506 = vmatmul.mubr.msk.f32.vlgmr.msra.gmra.mrb[24].mxu1 %vm4387_vm14, %v10300_v12  ;;  %7971 = vmatprep.subr.bf16.mxu1 %v7970_v22  ;;  %v5287_v44 = vld [vmem:[#allocation10 + $0x240] sm:$0xff]  ;;  %v5032_v62 = vsel %vm1132_vm8, %v10232_v58, %v10290_v56  ;;  %v5474_v58 = vld [vmem:[#allocation10 + $0x418] sm:$0xff]  ;;  %v5473_v47 = vld [vmem:[#allocation10 + $0x410] sm:$0xff] }
 0x9d8   :  { %v10311_v13 = vsel %vm1205_vm9, %v5146_v3, %v10298_v7  ;;  %v7974_v3 = vpack.c.bf16 %v5252_v2, %v5204_v60  ;;  %7973 = vmatpush1.bf16.msra.mxu1 %v7972_v61  ;;  %v7968_v52 = vpack.c.bf16 %v10240_v6, %v10296_v4  ;;  %v5379_v61 = vld [vmem:[#allocation10 + $0x320] sm:$0xff]  ;;  %5879 = vmatprep.mubr.f32.mxu1 %v10754_v33 }
 0x9d9   :  { %v5348_v18 = vmul.f32 %v5332_v5, %v10311_v13  ;;  %7963 = vmatprep.subr.bf16.mxu0 %v7962_v24  ;;  %v10331_v5 = vmul.f32 %v10028_v28, %v5094_v35  ;;  %v5347_v28 = vmul.f32 %v5331_v37, %v10275_v31  ;;  %v7976_v2 = vpack.c.bf16 %v5251_v23, %v5203_v38  ;;  %v5431_v22 = vld [vmem:[#allocation10 + $0x3c0] sm:$0xff]  ;;  %v5190_v38 = vld [vmem:[#allocation10 + $0x138] sm:$0xff] }
 0x9da   :  { %v10319_v14 = vpop.permute.xlu1 %5007  ;;  %7965 = vmatpush1.bf16.msra.mxu0 %v7964_v19  ;;  %7975 = vmatprep.subr.bf16.mxu1 %v7974_v3  ;;  %v10345_v35 = vmul.f32 %v10030_v20, %v5286_v40  ;;  %v5288_v19 = vld [vmem:[#allocation10 + $0x248] sm:$0xff]  ;;  %v5061_v51 = vmul.f32 %v5045_v9, %v10285_v1  ;;  %v10351_v3 = vmul.f32 %v10040_v45, %v5287_v44  ;;  %v5237_v9 = vld [vmem:[#allocation10 + $0x1b0] sm:$0xff] }
 0x9db   :  { %v5006_v60 = vpop.permute.xlu0 %5005  ;;  %7967 = vmatprep.subr.bf16.mxu0 %v7966_v34  ;;  %v7978_v24 = vpack.c.bf16 %v5348_v18, %v10293_v54  ;;  %v5396_v54 = vmul.f32 %v5380_v29, %v5032_v62  ;;  %v10354_v6 = vmul.f32 %v10040_v45, %v5096_v53  ;;  %v5062_v4 = vmul.f32 %v5046_v25, %v5032_v62  ;;  %v5432_v34 = vld [vmem:[#allocation10 + $0x3c8] sm:$0xff] }
 0x9dc   :  { %7977 = vmatpush1.bf16.msra.mxu1 %v7976_v2  ;;  %v5490_v20 = vmul.f32 %v5474_v58, %v10275_v31  ;;  %v10358_v40 = vmul.f32 %v10040_v45, %v5430_v30  ;;  %v5395_v23 = vmul.f32 %v5379_v61, %v10285_v1  ;;  %v10362_v44 = vmul.f32 %v10042_v10, %v5097_v26  ;;  %v5189_v45 = vld [vmem:[#allocation10 + $0x130] sm:$0xff]  ;;  %v5238_v30 = vld [vmem:[#allocation10 + $0x1b8] sm:$0xff]  ;;  %v5048_v2 = vld [vmem:[#allocation10 + $0x48] sm:$0xff] }
 0x9dd   :  { %7979 = vmatprep.subr.bf16.mxu1 %v7978_v24  ;;  %v10365_v53 = vmul.f32 %v10042_v10, %v5431_v22  ;;  %v10368_v29 = vmul.f32 %v10042_v10, %v5288_v19  ;;  %v5489_v25 = vmul.f32 %v5473_v47, %v10279_v43  ;;  %v7980_v31 = vpack.c.bf16 %v5347_v28, %v10245_v41  ;;  %v5098_v61 = vld [vmem:[#allocation10 + $0xd8] sm:$0xff]  ;;  %v5476_v22 = vld [vmem:[#allocation10 + $0x428] sm:$0xff]  ;;  %v5047_v19 = vld [vmem:[#allocation10 + $0x40] sm:$0xff] }
 0x9de   :  { %v10348_v18 = vpop.permute.xlu1 %5009  ;;  %7969 = vmatpush1.bf16.msra.mxu0 %v7968_v52  ;;  %v10375_v1 = vsel %vm1132_vm8, %v10290_v56, %v5006_v60  ;;  %v7988_v26 = vpack.c.bf16 %v10261_v48, %v5061_v51  ;;  %v7982_v58 = vpack.c.bf16 %v10323_v32, %v5396_v54  ;;  %v5334_v52 = vld [vmem:[#allocation10 + $0x2b8] sm:$0xff]  ;;  %v10383_v41 = vmul.f32 %v10056_v55, %v5432_v34  ;;  %v5333_v54 = vld [vmem:[#allocation10 + $0x2b0] sm:$0xff] }
 0x9df   :  { %v5150_v37 = vpop.permute.xlu0 %5149  ;;  %5760 = vmatprep.subr.mxu0 %v5490_v20  ;;  %v5253_v28 = vmul.f32 %v5237_v9, %v5032_v62  ;;  %v10388_v56 = vsel %vm1132_vm8, %v5006_v60, %v10319_v14  ;;  %v7986_v48 = vpack.c.bf16 %v10331_v5, %v5062_v4  ;;  %v5205_v32 = vmul.f32 %v5189_v45, %v10311_v13  ;;  %v5099_v60 = vld [vmem:[#allocation10 + $0xe0] sm:$0xff]  ;;  %v5382_v34 = vld [vmem:[#allocation10 + $0x338] sm:$0xff] }
 0x9e0   :  { %v5175_v24 = vsel %vm1205_vm9, %v10298_v7, %v5150_v37  ;;  %7981 = vmatpush1.bf16.msra.mxu1 %v7980_v31  ;;  %v5254_v51 = vmul.f32 %v5238_v30, %v10375_v1  ;;  %v7984_v47 = vpack.c.bf16 %v10270_v8, %v5395_v23  ;;  %v10406_v20 = vmul.f32 %v10056_v55, %v5098_v61  ;;  %v5290_v23 = vld [vmem:[#allocation10 + $0x258] sm:$0xff]  ;;  %v5240_v30 = vld [vmem:[#allocation10 + $0x1c8] sm:$0xff]  ;;  %v5293_v61 = vld [vmem:[#allocation10 + $0x270] sm:$0xff] }
 0x9e1   :  { %v5206_v10 = vmul.f32 %v5190_v38, %v5175_v24  ;;  %7983 = vmatprep.subr.bf16.mxu1 %v7982_v58  ;;  %v5192_v38 = vld [vmem:[#allocation10 + $0x148] sm:$0xff]  ;;  %v5064_v9 = vmul.f32 %v5048_v2, %v10388_v56  ;;  %v5063_v45 = vmul.f32 %v5047_v19, %v10375_v1  ;;  %v5029_v58 = vsel %vm1132_vm8, %v10319_v14, %v10348_v18  ;;  %v5191_v19 = vld [vmem:[#allocation10 + $0x140] sm:$0xff] }
 0x9e2   :  { %v5154_v43 = vpop.permute.xlu1 %5153  ;;  %5761 = vmatpush1.msra.mxu0 %v5489_v25  ;;  %v5492_v25 = vmul.f32 %v5476_v22, %v5175_v24  ;;  %v5100_v2 = vld [vmem:[#allocation10 + $0xe8] sm:$0xff]  ;;  %v5349_v22 = vmul.f32 %v5333_v54, %v5175_v24  ;;  %v5256_v24 = vmul.f32 %v5240_v30, %v5029_v58  ;;  %v5335_v30 = vld [vmem:[#allocation10 + $0x2c0] sm:$0xff] }
 0x9e3   :  { %v5152_v7 = vpop.permute.xlu0 %5151  ;;  %6507 = vmatmul.mubr.msk.f32.vlgmr.msra.gmra.mrb[52].mxu0 %vm4387_vm14, %v10300_v12  ;;  %7987 = vmatprep.subr.bf16.mxu0 %v7986_v48  ;;  %v7990_v31 = vpack.c.bf16 %v5254_v51, %v5206_v10  ;;  %v10421_v10 = vmul.f32 %v10058_v42, %v5099_v60  ;;  %v5381_v48 = vld [vmem:[#allocation10 + $0x330] sm:$0xff]  ;;  %v10432_v60 = vmul.f32 %v10058_v42, %v5290_v23 }
 0x9e4   :  { %v10395_v62 = vsel %vm1205_vm9, %v5150_v37, %v5152_v7  ;;  %v10402_v5 = vsel %vm1205_vm9, %v5152_v7, %v5154_v43  ;;  %v5475_v37 = vld [vmem:[#allocation10 + $0x420] sm:$0xff]  ;;  %7989 = vmatpush1.bf16.msra.mxu0 %v7988_v26  ;;  %5950 = vmatprep.mubr.f32.mxu0 %v10754_v33  ;;  %v7992_v7 = vpack.c.bf16 %v5253_v28, %v5205_v32 }
 0x9e5   :  { %v5350_v4 = vmul.f32 %v5334_v52, %v10395_v62  ;;  %7985 = vmatpush1.bf16.msra.mxu1 %v7984_v47  ;;  %v5208_v51 = vmul.f32 %v5192_v38, %v10402_v5  ;;  %7991 = vmatprep.subr.bf16.mxu0 %v7990_v31  ;;  %v5491_v14 = vmul.f32 %v5475_v37, %v10311_v13  ;;  %v5239_v28 = vld [vmem:[#allocation10 + $0x1c0] sm:$0xff] }
 0x9e6   :  { %v10409_v8 = vpop.permute.xlu1 %5011  ;;  %5831 = vmatprep.subr.mxu1 %v5492_v25  ;;  %v5398_v47 = vmul.f32 %v5382_v34, %v10388_v56  ;;  %v8002_v32 = vpack.c.bf16 %v10354_v6, %v5064_v9  ;;  %v10438_v13 = vmul.f32 %v10082_v11, %v5293_v61  ;;  %v10441_v38 = vmul.f32 %v10068_v57, %v5100_v2  ;;  %v5049_v34 = vld [vmem:[#allocation10 + $0x50] sm:$0xff]  ;;  %v5383_v25 = vld [vmem:[#allocation10 + $0x340] sm:$0xff]  ;;  %v5102_v9 = vld [vmem:[#allocation10 + $0xf8] sm:$0xff] }
 0x9e7   :  { %v10417_v52 = vpop.permute.xlu0 %5155  ;;  %v7994_v26 = vpack.c.bf16 %v5350_v4, %v10345_v35  ;;  %v5436_v4 = vld [vmem:[#allocation10 + $0x3e8] sm:$0xff]  ;;  %v8004_v37 = vpack.c.bf16 %v10334_v63, %v5063_v45  ;;  %v5207_v31 = vmul.f32 %v5191_v19, %v10395_v62  ;;  %v7996_v23 = vpack.c.bf16 %v5349_v22, %v10303_v27  ;;  %v5478_v27 = vld [vmem:[#allocation10 + $0x438] sm:$0xff]  ;;  %v5241_v19 = vld [vmem:[#allocation10 + $0x1d0] sm:$0xff] }
 0x9e8   :  { %v10429_v35 = vsel %vm1205_vm9, %v5154_v43, %v10417_v52  ;;  %7993 = vmatpush1.bf16.msra.mxu0 %v7992_v7  ;;  %v5397_v43 = vmul.f32 %v5381_v48, %v10375_v1  ;;  %v8006_v1 = vpack.c.bf16 %v5256_v24, %v5208_v51  ;;  %v5255_v63 = vmul.f32 %v5239_v28, %v10388_v56  ;;  %v5384_v45 = vld [vmem:[#allocation10 + $0x348] sm:$0xff]  ;;  %v5050_v22 = vld [vmem:[#allocation10 + $0x58] sm:$0xff]  ;;  %v5193_v56 = vld [vmem:[#allocation10 + $0x150] sm:$0xff] }
 0x9e9   :  { %5832 = vmatpush1.msra.mxu1 %v5491_v14  ;;  %7995 = vmatprep.subr.bf16.mxu0 %v7994_v26  ;;  %v5352_v61 = vmul.f32 %v5336_v0, %v10429_v35  ;;  %v5028_v26 = vsel %vm1132_vm8, %v10348_v18, %v10409_v8  ;;  %v7998_v2 = vpack.c.bf16 %v10358_v40, %v5398_v47  ;;  %v5246_v14 = vld [vmem:[#allocation10 + $0x1f8] sm:$0xff]  ;;  %v5388_v28 = vld [vmem:[#allocation10 + $0x368] sm:$0xff] }
 0x9ea   :  { %v10435_v54 = vpop.permute.xlu1 %5015  ;;  %6508 = vmatmul.mubr.msk.f32.vlgmr.msra.gmra.mrb[26].mxu1 %vm4387_vm14, %v10300_v12  ;;  %8003 = vmatprep.subr.bf16.mxu1 %v8002_v32  ;;  %v10457_v7 = vmul.f32 %v10082_v11, %v5436_v4  ;;  %v10459_v0 = vmul.f32 %v5049_v34, %v5029_v58  ;;  %v10461_v48 = vmul.f32 %v5383_v25, %v5029_v58  ;;  %v5477_v4 = vld [vmem:[#allocation10 + $0x430] sm:$0xff] }
 0x9eb   :  { %v5014_v6 = vpop.permute.xlu0 %5013  ;;  %8005 = vmatpush1.bf16.msra.mxu1 %v8004_v37  ;;  %v10466_v18 = vmul.f32 %v10082_v11, %v5102_v9  ;;  %v5351_v40 = vmul.f32 %v5335_v30, %v10402_v5  ;;  %v8008_v47 = vpack.c.bf16 %v5255_v63, %v5207_v31  ;;  %6021 = vmatprep.mubr.f32.mxu1 %v10754_v33  ;;  %v5051_v30 = vld [vmem:[#allocation10 + $0x60] sm:$0xff]  ;;  %v5242_v63 = vld [vmem:[#allocation10 + $0x1d8] sm:$0xff] }
 0x9ec   :  { %8007 = vmatprep.subr.bf16.mxu1 %v8006_v1  ;;  %7997 = vmatpush1.bf16.msra.mxu0 %v7996_v23  ;;  %v8000_v32 = vpack.c.bf16 %v10337_v21, %v5397_v43  ;;  %v5400_v11 = vmul.f32 %v5384_v45, %v5028_v26  ;;  %v8010_v37 = vpack.c.bf16 %v5352_v61, %v10368_v29  ;;  %v5479_v43 = vld [vmem:[#allocation10 + $0x440] sm:$0xff]  ;;  %v5054_v45 = vld [vmem:[#allocation10 + $0x78] sm:$0xff] }
 0x9ed   :  { %7999 = vmatprep.subr.bf16.mxu0 %v7998_v2  ;;  %v5494_v34 = vmul.f32 %v5478_v27, %v10402_v5  ;;  %v5066_v25 = vmul.f32 %v5050_v22, %v5028_v26  ;;  %v10479_v31 = vmul.f32 %v5241_v19, %v5028_v26  ;;  %v10482_v9 = vmul.f32 %v5193_v56, %v10429_v35  ;;  %v5052_v26 = vld [vmem:[#allocation10 + $0x68] sm:$0xff]  ;;  %v5386_v56 = vld [vmem:[#allocation10 + $0x358] sm:$0xff] }
 0x9ee   :  { %v10463_v51 = vpop.permute.xlu1 %5017  ;;  %v10488_v21 = vmul.f32 %v5246_v14, %v10160_v36  ;;  %v10493_v29 = vsel %vm1132_vm8, %v10409_v8, %v5014_v6  ;;  %v8016_v61 = vpack.c.bf16 %v10365_v53, %v10461_v48  ;;  %v5493_v36 = vmul.f32 %v5477_v4, %v10395_v62  ;;  %v5338_v53 = vld [vmem:[#allocation10 + $0x2d8] sm:$0xff]  ;;  %v5480_v19 = vld [vmem:[#allocation10 + $0x448] sm:$0xff] }
 0x9ef   :  { %v10473_v58 = vsel %vm1132_vm8, %v10463_v51, %v10155_v39  ;;  %v5158_v24 = vpop.permute.xlu0 %5157  ;;  %8009 = vmatpush1.bf16.msra.mxu1 %v8008_v47  ;;  %v5194_v39 = vld [vmem:[#allocation10 + $0x158] sm:$0xff]  ;;  %v8012_v1 = vpack.c.bf16 %v5351_v40, %v10351_v3  ;;  %v10507_v2 = vsel %vm1132_vm8, %v5014_v6, %v10435_v54  ;;  %v8014_v62 = vpack.c.bf16 %v10383_v41, %v5400_v11 }
 0x9f0   :  { %v5171_v23 = vsel %vm1205_vm9, %v10417_v52, %v5158_v24  ;;  %v10496_v5 = vmul.f32 %v5388_v28, %v10473_v58  ;;  %8011 = vmatprep.subr.bf16.mxu1 %v8010_v37  ;;  %8001 = vmatpush1.bf16.msra.mxu0 %v8000_v32  ;;  %v8020_v52 = vpack.c.bf16 %v10362_v44, %v10459_v0  ;;  %v5198_v41 = vld [vmem:[#allocation10 + $0x178] sm:$0xff]  ;;  %v5196_v32 = vld [vmem:[#allocation10 + $0x168] sm:$0xff] }
 0x9f1   :  { %5902 = vmatprep.subr.mxu0 %v5494_v34  ;;  %v5210_v27 = vmul.f32 %v5194_v39, %v5171_v23  ;;  %v5495_v3 = vmul.f32 %v5479_v43, %v10429_v35  ;;  %v8024_v0 = vpack.c.bf16 %v10479_v31, %v10482_v9  ;;  %v10518_v48 = vmul.f32 %v5051_v30, %v10493_v29  ;;  %v5341_v35 = vld [vmem:[#allocation10 + $0x2f0] sm:$0xff]  ;;  %v5244_v9 = vld [vmem:[#allocation10 + $0x1e8] sm:$0xff] }
 0x9f2   :  { %v5162_v22 = vpop.permute.xlu1 %5161  ;;  %v8018_v6 = vpack.c.bf16 %v10406_v20, %v5066_v25  ;;  %v5258_v14 = vmul.f32 %v5242_v63, %v10493_v29  ;;  %v10523_v40 = vmul.f32 %v5054_v45, %v10473_v58  ;;  %v8046_v47 = vpack.c.bf16 %v10457_v7, %v10496_v5  ;;  %v5289_v43 = vld [vmem:[#allocation10 + $0x250] sm:$0xff]  ;;  %v5195_v63 = vld [vmem:[#allocation10 + $0x160] sm:$0xff]  ;;  %v6275_v7 = vld [vmem:[#allocation16 + $0x8] sm:$0xff] }
 0x9f3   :  { %v5160_v8 = vpop.permute.xlu0 %5159  ;;  %8013 = vmatpush1.bf16.msra.mxu1 %v8012_v1  ;;  %v5068_v28 = vmul.f32 %v5052_v26, %v10507_v2  ;;  %v5496_v34 = vmul.f32 %v5480_v19, %v5171_v23  ;;  %v5402_v31 = vmul.f32 %v5386_v56, %v10507_v2  ;;  %v10546_v39 = vsel %vm1132_vm8, %v10435_v54, %v10463_v51  ;;  %v5340_v51 = vld [vmem:[#allocation10 + $0x2e8] sm:$0xff] }
 0x9f4   :  { %v10511_v44 = vsel %vm1205_vm9, %v5158_v24, %v5160_v8  ;;  %8015 = vmatprep.subr.bf16.mxu1 %v8014_v62  ;;  %5903 = vmatpush1.msra.mxu0 %v5493_v36  ;;  %v5337_v24 = vld [vmem:[#allocation10 + $0x2d0] sm:$0xff]  ;;  %v10530_v20 = vsel %vm1205_vm9, %v5160_v8, %v5162_v22  ;;  %v8022_v25 = vpack.c.bf16 %v5258_v14, %v5210_v27  ;;  %v5243_v27 = vld [vmem:[#allocation10 + $0x1e0] sm:$0xff]  ;;  %v5292_v14 = vld [vmem:[#allocation10 + $0x268] sm:$0xff] }
 0x9f5   :  { %v5354_v4 = vmul.f32 %v5338_v53, %v10511_v44  ;;  %6509 = vmatmul.mubr.msk.f32.vlgmr.msra.gmra.mrb[54].mxu0 %vm4387_vm14, %v10300_v12  ;;  %8019 = vmatprep.subr.bf16.mxu0 %v8018_v6  ;;  %v5385_v36 = vld [vmem:[#allocation10 + $0x350] sm:$0xff]  ;;  %v5353_v1 = vmul.f32 %v5337_v24, %v5171_v23  ;;  %v5212_v45 = vmul.f32 %v5196_v32, %v10530_v20 }
 0x9f6   :  { %8021 = vmatpush1.bf16.msra.mxu0 %v8020_v52  ;;  %6092 = vmatprep.mubr.f32.mxu0 %v10754_v33  ;;  %v5434_v52 = vld [vmem:[#allocation10 + $0x3d8] sm:$0xff]  ;;  %v8050_v54 = vpack.c.bf16 %v10466_v18, %v10523_v40  ;;  %v5260_v53 = vmul.f32 %v5244_v9, %v10546_v39  ;;  %v5305_v62 = vmul.f32 %v10056_v55, %v5289_v43  ;;  %v5053_v24 = vld [vmem:[#allocation10 + $0x70] sm:$0xff]  ;;  %v5435_v43 = vld [vmem:[#allocation10 + $0x3e0] sm:$0xff] }
 0x9f7   :  { %v5164_v11 = vpop.permute.xlu0 %5163  ;;  %8017 = vmatpush1.bf16.msra.mxu1 %v8016_v61  ;;  %8023 = vmatprep.subr.bf16.mxu0 %v8022_v25  ;;  %v8026_v26 = vpack.c.bf16 %v5354_v4, %v10432_v60  ;;  %v8034_v6 = vpack.c.bf16 %v10441_v38, %v5068_v28  ;;  %v5450_v46 = vmul.f32 %v10068_v57, %v5434_v52  ;;  %v5482_v28 = vld [vmem:[#allocation10 + $0x458] sm:$0xff]  ;;  %v5101_v25 = vld [vmem:[#allocation10 + $0xf0] sm:$0xff] }
 0x9f8   :  { %v10538_v37 = vsel %vm1205_vm9, %v5164_v11, %v10175_v15  ;;  %5973 = vmatprep.subr.mxu1 %v5496_v34  ;;  %v10559_v61 = vsel %vm1205_vm9, %v5162_v22, %v5164_v11  ;;  %v5433_v22 = vld [vmem:[#allocation10 + $0x3d0] sm:$0xff]  ;;  %v5401_v19 = vmul.f32 %v5385_v36, %v10493_v29  ;;  %v8036_v56 = vpack.c.bf16 %v10421_v10, %v10518_v48  ;;  %v5387_v34 = vld [vmem:[#allocation10 + $0x360] sm:$0xff] }
 0x9f9   :  { %v10549_v30 = vmul.f32 %v5198_v41, %v10538_v37  ;;  %v10552_v15 = vmul.f32 %v5341_v35, %v10538_v37  ;;  %v5211_v60 = vmul.f32 %v5195_v63, %v10511_v44  ;;  %v8028_v41 = vpack.c.bf16 %v5353_v1, %v5305_v62  ;;  %v5339_v35 = vld [vmem:[#allocation10 + $0x2e0] sm:$0xff]  ;;  %v5481_v9 = vld [vmem:[#allocation10 + $0x450] sm:$0xff]  ;;  %v8193_v63 = vld [vmem:[%s10720_s18 + $0x68] sm:$0xff] }
 0x9fa   :  { %8025 = vmatpush1.bf16.msra.mxu0 %v8024_v0  ;;  %v5356_v55 = vmul.f32 %v5340_v51, %v10559_v61  ;;  %v8038_v38 = vpack.c.bf16 %v5260_v53, %v5212_v45  ;;  %v5259_v0 = vmul.f32 %v5243_v27, %v10507_v2  ;;  %v8030_v29 = vpack.c.bf16 %v5450_v46, %v5402_v31  ;;  %v5197_v1 = vld [vmem:[#allocation10 + $0x170] sm:$0xff]  ;;  %v5483_v62 = vld [vmem:[#allocation10 + $0x460] sm:$0xff] }
 0x9fb   :  { %v8060_v8 = vpack.c.bf16 %v10552_v15, %v10438_v13  ;;  %v8054_v23 = vpack.c.bf16 %v10488_v21, %v10549_v30  ;;  %5974 = vmatpush1.msra.mxu1 %v5495_v3  ;;  %8027 = vmatprep.subr.bf16.mxu0 %v8026_v26  ;;  %v5449_v10 = vmul.f32 %v10058_v42, %v5433_v22  ;;  %v5291_v3 = vld [vmem:[#allocation10 + $0x260] sm:$0xff]  ;;  %v5245_v51 = vld [vmem:[#allocation10 + $0x1f0] sm:$0xff]  ;;  %v5486_v30 = vld [vmem:[#allocation10 + $0x478] sm:$0xff] }
 0x9fc   :  { %6510 = vmatmul.mubr.msk.f32.vlgmr.msra.gmra.mrb[28].mxu1 %vm4387_vm14, %v10300_v12  ;;  %8035 = vmatprep.subr.bf16.mxu1 %v8034_v6  ;;  %v5308_v48 = vmul.f32 %v10070_v59, %v5292_v14  ;;  %v5355_v32 = vmul.f32 %v5339_v35, %v10530_v20  ;;  %v8040_v4 = vpack.c.bf16 %v5259_v0, %v5211_v60  ;;  %v6274_v46 = vld [vmem:[#allocation16] sm:$0xff]  ;;  %v6273_v22 = vld [vmem:[%s10777_s12] sm:$0xff] }
 0x9fd   :  { %8037 = vmatpush1.bf16.msra.mxu1 %v8036_v56  ;;  %6163 = vmatprep.mubr.f32.mxu1 %v10754_v33  ;;  %v8032_v11 = vpack.c.bf16 %v5449_v10, %v5401_v19  ;;  %v5307_v31 = vmul.f32 %v10068_v57, %v5291_v3  ;;  %v5498_v42 = vmul.f32 %v5482_v28, %v10530_v20  ;;  %v5484_v20 = vld [vmem:[#allocation10 + $0x468] sm:$0xff]  ;;  %v10778_v19 = vld [vmem:[#allocation30_spill] sm:$0xff] }
 0x9fe   :  { %8039 = vmatprep.subr.bf16.mxu1 %v8038_v38  ;;  %8029 = vmatpush1.bf16.msra.mxu0 %v8028_v41  ;;  %v8042_v2 = vpack.c.bf16 %v5356_v55, %v5308_v48  ;;  %v5069_v52 = vmul.f32 %v5053_v24, %v10546_v39  ;;  %v5403_v59 = vmul.f32 %v5387_v34, %v10546_v39  ;;  %v10779_v56 = vld [vmem:[#allocation32_spill] sm:$0xff]  ;;  %v10781_v13 = vld [vmem:[#allocation33_spill] sm:$0xff]  ;;  %v6364_v41 = vld [vmem:[#allocation19 + $0x18] sm:$0xff] }
 0x9ff   :  { %8031 = vmatprep.subr.bf16.mxu0 %v8030_v29  ;;  %v8044_v36 = vpack.c.bf16 %v5355_v32, %v5307_v31  ;;  %v5117_v45 = vmul.f32 %v8193_v63, %v5101_v25  ;;  %v5497_v57 = vmul.f32 %v5481_v9, %v10511_v44  ;;  %v5451_v26 = vmul.f32 %v8193_v63, %v5435_v43  ;;  %v6363_v14 = vld [vmem:[#allocation19 + $0x10] sm:$0xff] }
 0xa00   :  { %v5213_v53 = vmul.f32 %v5197_v1, %v10559_v61  ;;  %v5261_v44 = vmul.f32 %v5245_v51, %v10473_v58  ;;  %v5500_v6 = vmul.f32 %v5484_v20, %v10538_v37  ;;  %v5499_v18 = vmul.f32 %v5483_v62, %v10559_v61  ;;  %v6276_v58 = vld [vmem:[#allocation16 + $0x10] sm:$0xff]  ;;  %v10776_v61 = vld [vmem:[#allocation28_spill] sm:$0xff] }
 0xa01   :  { %8041 = vmatpush1.bf16.msra.mxu1 %v8040_v4  ;;  %v8052_v27 = vpack.c.bf16 %v5117_v45, %v5069_v52  ;;  %v8048_v39 = vpack.c.bf16 %v5451_v26, %v5403_v59  ;;  %v8067_v40 = vpack.c.bf16 %v6275_v7, %v6274_v46  ;;  %v10774_v37 = vpack.c.bf16 %v10192_v49, %v10195_v17  ;;  %v5485_v17 = vld [vmem:[#allocation10 + $0x470] sm:$0xff] }
 0xa02   :  { %8043 = vmatprep.subr.bf16.mxu1 %v8042_v2  ;;  %8033 = vmatpush1.bf16.msra.mxu0 %v8032_v11  ;;  %v8056_v5 = vpack.c.bf16 %v5261_v44, %v5213_v53  ;;  %v10775_v49 = vpack.c.bf16 %v10183_v16, %v10170_v50  ;;  %v10780_v60 = vpack.c.bf16 %v10778_v19, %v10779_v56  ;;  %v6361_v50 = vld [vmem:[#allocation19] sm:$0xff]  ;;  %v6362_v16 = vld [vmem:[#allocation19 + $0x8] sm:$0xff] }
 0xa03   :  { %6044 = vmatprep.subr.mxu0 %v5498_v42  ;;  %v5501_v15 = vmul.f32 %v5485_v17, %v10781_v13  ;;  %v8076_v35 = vpack.c.bf16 %v6364_v41, %v6363_v14  ;;  %v10632_v55 = vpop.permute.xlu1 %5667 }
 0xa05   :  { %8045 = vmatpush1.bf16.msra.mxu1 %v8044_v36 }
 0xa06   :  { %8047 = vmatprep.subr.bf16.mxu1 %v8046_v47  ;;  %6045 = vmatpush1.msra.mxu0 %v5497_v57  ;;  %v6277_v47 = vld [vmem:[#allocation16 + $0x18] sm:$0xff] }
 0xa07   :  { %6511 = vmatmul.mubr.msk.f32.vlgmr.msra.gmra.mrb[56].mxu0 %vm4387_vm14, %v10300_v12  ;;  %8051 = vmatprep.subr.bf16.mxu0 %v8050_v54  ;;  %v8479_v54 = vmov 0.0|0.0   ;;  %v8070_v21 = vpack.c.bf16 %v6277_v47, %v6276_v58 }
 0xa08   :  { %8053 = vmatpush1.bf16.msra.mxu0 %v8052_v27  ;;  %6234 = vmatprep.mubr.f32.mxu0 %v10754_v33 }
 0xa09   :  { %8049 = vmatpush1.bf16.msra.mxu1 %v8048_v39  ;;  %8055 = vmatprep.subr.bf16.mxu0 %v8054_v23  ;;  %v5502_v23 = vmul.f32 %v5486_v30, %v10776_v61 }
 0xa0a   :  { %6115 = vmatprep.subr.mxu1 %v5500_v6 }
 0xa0c   :  { %8057 = vmatpush1.bf16.msra.mxu0 %v8056_v5 }
 0xa0d   :  { %6116 = vmatpush1.msra.mxu1 %v5499_v18  ;;  %8059 = vmatprep.subr.bf16.mxu0 %v10774_v37  ;;  %v6514_v18 = vld [vmem:[#allocation18] ss:$0 sm:$0xff] }
 0xa0e   :  { %6512 = vmatmul.mubr.msk.f32.vlgmr.msra.gmra.mrb[30].mxu1 %vm4387_vm14, %v10300_v12  ;;  %8066 = vmatprep.subr.bf16.mxu1 %v8479_v54 }
 0xa0f   :  { %8068 = vmatpush3.bf16.msra.mxu1 %v8067_v40  ;;  %6628 = vmatprep.mubr.msk.f32.mxu1 %vm8480_vm15, %v10754_v33 }
 0xa10   :  { %8061 = vmatpush1.bf16.msra.mxu0 %v8060_v8  ;;  %8069 = vmatprep.subr.bf16.mxu1 %v8479_v54  ;;  %v8073_v8 = vpack.c.bf16 %v6362_v16, %v6361_v50 }
 0xa11   :  { %8063 = vmatprep.subr.bf16.mxu0 %v10775_v49 }
 0xa13   :  { %8071 = vmatpush3.bf16.msra.mxu1 %v8070_v21 }
 0xa14   :  { %8065 = vmatpush1.bf16.msra.mxu0 %v10780_v60  ;;  %v6516_v60 = vld [vmem:[#allocation21] ss:$0 sm:$0xff] }
 0xa15   :  { %6186 = vmatprep.subr.mxu0 %v5502_v23 }
 0xa16   :  { %6629 = vmatmul.mubr.msk.f32.vlgmr.msra.gmra.mrb[32].mxu1 %vm237_vm0, %v6273_v22 }
 0xa18   :  { %6187 = vmatpush1.msra.mxu0 %v5501_v15 }
 0xa19   :  { %6513 = vmatmul.mubr.msk.f32.vlgmr.msra.gmra.mrb[58].mxu0 %vm4387_vm14, %v10300_v12  ;;  %8072 = vmatprep.subr.bf16.mxu0 %v8479_v54 }
 0xa1a   :  { %6639 = vmatprep.mubr.msk.f32.mxu0 %vm8480_vm15, %v10754_v33  ;;  %8074 = vmatpush3.bf16.msra.mxu0 %v8073_v8 }
 0xa1b   :  { %8075 = vmatprep.subr.bf16.mxu0 %v8479_v54 }
 0xa1e   :  { %8077 = vmatpush3.bf16.msra.mxu0 %v8076_v35 }
 0xaaa   :  { %v5739_v38 = vpop.f32.mrb[24].mxu1 }
 0xaab   :  { %v5740_v0 = vadd.f32 %v5739_v38, %v10632_v55  ;;  %v5741_v29 = vpop.f32.mrb[25].mxu1 }
 0xaac   :  { %v5742_v12 = vadd.f32 %v5741_v29, %v10632_v55 }
 0xaad   :  { %8161 = vtanh.f32 %v5740_v0 }
 0xaae   :  { %8163 = vtanh.f32 %v5742_v12 }
 0xab6   :  { %v5810_v33 = vpop.f32.mrb[52].mxu0 }
 0xab7   :  { %v5811_v10 = vadd.f32 %v5810_v33, %v10632_v55  ;;  %v5812_v3 = vpop.f32.mrb[53].mxu0  ;;  %v8162_v28 = vpop.eup %8161 }
 0xab8   :  { %v5813_v48 = vadd.f32 %v5812_v3, %v10632_v55  ;;  %v8164_v24 = vpop.eup %8163  ;;  %6257 = vst [vmem:[%s10721_s19] sm:$0xff] %v8162_v28 }
 0xab9   :  { %8165 = vtanh.f32 %v5811_v10  ;;  %6258 = vst [vmem:[%s10721_s19 + $0x8] sm:$0xff] %v8164_v24 }
 0xaba   :  { %8167 = vtanh.f32 %v5813_v48 }
 0xabd   :  { %v5881_v32 = vpop.f32.mrb[26].mxu1 }
 0xabe   :  { %v5882_v4 = vadd.f32 %v5881_v32, %v10632_v55  ;;  %v5883_v11 = vpop.f32.mrb[27].mxu1 }
 0xabf   :  { %v5884_v34 = vadd.f32 %v5883_v11, %v10632_v55 }
 0xac0   :  { %8169 = vtanh.f32 %v5882_v4 }
 0xac1   :  { %8171 = vtanh.f32 %v5884_v34 }
 0xac3   :  { %v8166_v2 = vpop.eup %8165 }
 0xac4   :  { %v8168_v25 = vpop.eup %8167  ;;  %6259 = vst [vmem:[%s10721_s19 + $0x10] sm:$0xff] %v8166_v2 }
 0xac5   :  { %6260 = vst [vmem:[%s10721_s19 + $0x18] sm:$0xff] %v8168_v25 }
 0xac8   :  { %v5952_v31 = vpop.f32.mrb[54].mxu0 }
 0xac9   :  { %v5953_v9 = vadd.f32 %v5952_v31, %v10632_v55  ;;  %v5954_v42 = vpop.f32.mrb[55].mxu0 }
 0xaca   :  { %v8170_v43 = vpop.eup %8169  ;;  %v5955_v52 = vadd.f32 %v5954_v42, %v10632_v55 }
 0xacb   :  { %v8172_v59 = vpop.eup %8171  ;;  %6261 = vst [vmem:[%s10721_s19 + $0x20] sm:$0xff] %v8170_v43  ;;  %8173 = vtanh.f32 %v5953_v9 }
 0xacc   :  { %6262 = vst [vmem:[%s10721_s19 + $0x28] sm:$0xff] %v8172_v59  ;;  %8175 = vtanh.f32 %v5955_v52 }
 0xacf   :  { %v6023_v36 = vpop.f32.mrb[28].mxu1 }
 0xad0   :  { %v6024_v1 = vadd.f32 %v6023_v36, %v10632_v55  ;;  %v6025_v63 = vpop.f32.mrb[29].mxu1 }
 0xad1   :  { %v6026_v45 = vadd.f32 %v6025_v63, %v10632_v55 }
 0xad2   :  { %8177 = vtanh.f32 %v6024_v1 }
 0xad3   :  { %8179 = vtanh.f32 %v6026_v45 }
 0xad5   :  { %v8174_v57 = vpop.eup %8173 }
 0xad6   :  { %v8176_v51 = vpop.eup %8175  ;;  %6263 = vst [vmem:[%s10721_s19 + $0x30] sm:$0xff] %v8174_v57 }
 0xad7   :  { %6264 = vst [vmem:[%s10721_s19 + $0x38] sm:$0xff] %v8176_v51 }
 0xada   :  { %v6094_v26 = vpop.f32.mrb[56].mxu0 }
 0xadb   :  { %v6095_v20 = vadd.f32 %v6094_v26, %v10632_v55  ;;  %v6096_v27 = vpop.f32.mrb[57].mxu0 }
 0xadc   :  { %v8178_v53 = vpop.eup %8177  ;;  %v6097_v39 = vadd.f32 %v6096_v27, %v10632_v55 }
 0xadd   :  { %v8180_v44 = vpop.eup %8179  ;;  %6265 = vst [vmem:[%s10721_s19 + $0x40] sm:$0xff] %v8178_v53  ;;  %8181 = vtanh.f32 %v6095_v20 }
 0xade   :  { %6266 = vst [vmem:[%s10721_s19 + $0x48] sm:$0xff] %v8180_v44  ;;  %8183 = vtanh.f32 %v6097_v39 }
 0xae1   :  { %v6165_v62 = vpop.f32.mrb[30].mxu1 }
 0xae2   :  { %v6166_v6 = vadd.f32 %v6165_v62, %v10632_v55  ;;  %v6167_v46 = vpop.f32.mrb[31].mxu1 }
 0xae3   :  { %v6168_v7 = vadd.f32 %v6167_v46, %v10632_v55 }
 0xae4   :  { %8185 = vtanh.f32 %v6166_v6 }
 0xae5   :  { %8187 = vtanh.f32 %v6168_v7 }
 0xae7   :  { %v8182_v5 = vpop.eup %8181 }
 0xae8   :  { %v8184_v40 = vpop.eup %8183  ;;  %6267 = vst [vmem:[%s10721_s19 + $0x50] sm:$0xff] %v8182_v5 }
 0xae9   :  { %6268 = vst [vmem:[%s10721_s19 + $0x58] sm:$0xff] %v8184_v40  ;;  %v6354_v58 = vpop.f32.mrb[32].mxu1 }
 0xaea   :  { %v6355_v47 = vadd.f32 %v6514_v18, %v6354_v58  ;;  %v6630_v37 = vpop.f32.mrb[33].mxu1 }
 0xaec   :  { %v6236_v54 = vpop.f32.mrb[58].mxu0  ;;  %vm6358_vm1 = vcmp.gt.f32.partialorder %v6355_v47, 0.0  ;;  %v6359_v21 = vmul.f32 0.2, %v6355_v47 }
 0xaed   :  { %v6237_v30 = vadd.f32 %v6236_v54, %v10632_v55  ;;  %v6238_v49 = vpop.f32.mrb[59].mxu0 }
 0xaee   :  { %v8186_v17 = vpop.eup %8185  ;;  %v6239_v61 = vadd.f32 %v6238_v49, %v10632_v55  ;;  %v6360_v23 = vsel %vm6358_vm1, %v6355_v47, %v6359_v21 }
 0xaef   :  { %v8188_v22 = vpop.eup %8187  ;;  %6269 = vst [vmem:[%s10721_s19 + $0x60] sm:$0xff] %v8186_v17  ;;  %8189 = vtanh.f32 %v6237_v30  ;;  %6640 = vmatmul.mubr.msk.f32.vlgmr.msra.gmra.mrb[60].mxu0 %vm237_vm0, %v6360_v23 }
 0xaf0   :  { %6270 = vst [vmem:[%s10721_s19 + $0x68] sm:$0xff] %v8188_v22  ;;  %8191 = vtanh.f32 %v6239_v61 }
 0xaf9   :  { %v8190_v19 = vpop.eup %8189 }
 0xafa   :  { %v8192_v56 = vpop.eup %8191  ;;  %6271 = vst [vmem:[%s10721_s19 + $0x70] sm:$0xff] %v8190_v19 }
 0xafb   :  { %6272 = vst [vmem:[%s10721_s19 + $0x78] sm:$0xff] %v8192_v56 }
 0xbc2   :  { %v6441_v13 = vpop.f32.mrb[60].mxu0 }
 0xbc3   :  { %v6442_v15 = vadd.f32 %v6516_v60, %v6441_v13  ;;  %v6641_v50 = vpop.f32.mrb[61].mxu0 }
 0xbc5   :  { %6445 = vst [vmem:[%s10782_s24] sm:$0xff] %v6442_v15 }
 0xbc6   :  { %6458 = vsyncpa [#allocation6], 1 }
 0xbc7   :  { %6459 = vsyncpa [#allocation8], 1 }
 0xbc8   :  { %6460 = vsyncpa [#allocation11], 1 }
 0xbc9   :  { %6461 = vsyncpa [#allocation14], 1 }
 0xbca   :  { %6462 = vsyncpa [#allocation17], 1 }
 0xbcb   :  { %6463 = vsyncpa [#allocation20], 1 }

</bundles_post_ra>
